<compile_context>
chip_gen: v5e
topology: v5e:2x2
jax: 0.10.0
libtpu: 0.0.40
codegen_flags: <defaults>
</compile_context>

<pallas_src>
import functools
import math

import jax
import jax.numpy as jnp
from jax.experimental import pallas as pl
from jax.experimental.pallas import tpu as pltpu


_MATMUL_DTYPE = jnp.float32   # flip to jnp.bfloat16 for the bf16 MXU path
_PAD = 128                    # zero halo (in lanes) on each side of the H*W axis


# ----------------------------- in-kernel math ------------------------------

def _erf(x):
    # float32-accurate erf (Abramowitz & Stegun 7.1.26, |err| ~ 1.5e-7), built
    # only from ops guaranteed to lower in Pallas/Mosaic.
    a1, a2, a3, a4, a5 = (0.254829592, -0.284496736, 1.421413741,
                          -1.453152027, 1.061405429)
    p = 0.3275911
    s = jnp.where(x >= 0.0, 1.0, -1.0)
    z = jnp.abs(x)
    t = 1.0 / (1.0 + p * z)
    poly = ((((a5 * t + a4) * t + a3) * t + a2) * t + a1) * t
    return s * (1.0 - poly * jnp.exp(-z * z))


def _gelu(x):
    # exact (erf-based) GELU, matching torch.nn.GELU() defaults.
    return 0.5 * x * (1.0 + _erf(x * (1.0 / math.sqrt(2.0))))


def _silu(x):
    return x * (1.0 / (1.0 + jnp.exp(-x)))


# ------------------------------ fused kernel -------------------------------

def _up_fused_kernel(x_ref, t_ref,
                     w1a_ref, g1a_ref, b1a_ref,
                     w1b_ref, g1b_ref, b1b_ref,
                     w2a_ref, g2a_ref, b2a_ref,
                     w2b_ref, g2b_ref, b2b_ref,
                     we_ref, be_ref,
                     o_ref,
                     apad_ref, patch_ref,
                     *, H, W):
    """One grid step = one sample of the whole Up block (both DoubleConvs + emb).

    Layout: activations are (C, H*W) -- channels in sublanes, pixels in lanes.
      x_ref    : (1, cin, H*W)   f32   upsampled+concatenated input (NCHW flat)
      t_ref    : (1, 1, emb_dim) f32   time embedding
      w*_ref   : (Co, 9*KS)            conv weights, im2col layout (zero-padded K)
      g*/b*_ref: (Co, 1)         f32   GroupNorm(1, Co) affine
      we_ref   : (cout, emb_dim) f32 ; be_ref: (cout, 1) f32
      o_ref    : (1, cout, H*W)  f32   output (NCHW flat -> lane-dense store)
      apad_ref : (KS, _PAD + H*W + _PAD) f32  zero-haloed activation scratch
      patch_ref: (9*KS, H*W)     f32   im2col patch matrix scratch
    """
    HW = H * W
    cin = x_ref.shape[1]
    cmid = w2a_ref.shape[0]
    cout = o_ref.shape[1]
    KS = patch_ref.shape[0] // 9          # per-tap row stride in the patch matrix

    # Zero the scratch: the halo of apad_ref must be 0 (it provides the conv's
    # H-boundary zero padding); patch rows c >= Ci of the mid-channel conv are
    # multiplied by zero weight columns but must stay finite.
    apad_ref[...] = jnp.zeros(apad_ref.shape, apad_ref.dtype)
    patch_ref[...] = jnp.zeros(patch_ref.shape, patch_ref.dtype)

    # W-boundary masks over the flattened pixel axis (H-boundary taps land in
    # the zero halo of apad_ref and need no mask).
    col = jax.lax.broadcasted_iota(jnp.int32, (1, HW), 1)
    w_idx = col % W
    not_first_col = w_idx >= 1            # tap looks left  (dx = -1)
    not_last_col = w_idx <= W - 2         # tap looks right (dx = +1)

    def conv3x3_gn(act, ci, w_ref, g_ref, b_ref):
        """3x3 conv (pad=1, no bias) + GroupNorm(1, Co).  act: (ci, H*W) f32."""
        # stage the activation in the zero-haloed scratch (aligned store)
        apad_ref[:ci, _PAD:_PAD + HW] = act
        # build the im2col matrix: row tap*KS + c = input shifted by (dy, dx)
        for tap in range(9):
            dy, dx = tap // 3 - 1, tap % 3 - 1
            shift = dy * W + dx
            slab = apad_ref[:ci, _PAD + shift:_PAD + shift + HW]
            if dx == -1:
                slab = jnp.where(not_first_col, slab, 0.0)
            elif dx == 1:
                slab = jnp.where(not_last_col, slab, 0.0)
            patch_ref[tap * KS:tap * KS + ci, :] = slab
        patches = patch_ref[...].astype(_MATMUL_DTYPE)            # (9*KS, HW)
        h = jnp.dot(w_ref[...].astype(_MATMUL_DTYPE), patches,
                    preferred_element_type=jnp.float32)           # (Co, HW) f32
        # GroupNorm(num_groups=1): per-sample stats over (C, H, W), eps=1e-5,
        # biased variance, per-channel affine.
        mean = jnp.mean(h, axis=(0, 1), keepdims=True)
        var = jnp.mean(jnp.square(h - mean), axis=(0, 1), keepdims=True)
        h = (h - mean) * jax.lax.rsqrt(var + 1e-5)
        return h * g_ref[...] + b_ref[...]

    x0 = x_ref[0].astype(jnp.float32)                             # (cin, HW)

    # DoubleConv #1 (residual, in -> in):  gelu(x0 + GN(conv(gelu(GN(conv(x0))))))
    h = _gelu(conv3x3_gn(x0, cin, w1a_ref, g1a_ref, b1a_ref))
    x1 = _gelu(x0 + conv3x3_gn(h, cin, w1b_ref, g1b_ref, b1b_ref))

    # DoubleConv #2 (in -> out, mid = in // 2)
    h = _gelu(conv3x3_gn(x1, cin, w2a_ref, g2a_ref, b2a_ref))
    y = conv3x3_gn(h, cmid, w2b_ref, g2b_ref, b2b_ref)            # (cout, HW)

    # time embedding: Linear(SiLU(t)), broadcast over all pixels.
    trow = _silu(t_ref[0].astype(jnp.float32))                    # (1, emb_dim)
    emb = jnp.sum(we_ref[...] * trow, axis=1, keepdims=True) + be_ref[...]
    o_ref[...] = (y + emb).reshape(1, cout, HW).astype(o_ref.dtype)


# ------------------------------ JAX wrapper ---------------------------------

def bilinear_up2_align_corners(x):
    """nn.Upsample(scale_factor=2, mode='bilinear', align_corners=True), NCHW."""
    B, C, H, W = x.shape
    H2, W2 = 2 * H, 2 * W

    def coords(n_in, n_out):
        if n_in == 1:
            z = jnp.zeros((n_out,), jnp.int32)
            return z, z, jnp.zeros((n_out,), jnp.float32)
        src = jnp.arange(n_out, dtype=jnp.float32) * ((n_in - 1) / (n_out - 1))
        i0 = jnp.clip(jnp.floor(src).astype(jnp.int32), 0, n_in - 1)
        i1 = jnp.clip(i0 + 1, 0, n_in - 1)
        return i0, i1, src - i0.astype(jnp.float32)

    h0, h1, hf = coords(H, H2)
    w0, w1, wf = coords(W, W2)
    xh = (x[:, :, h0, :] * (1.0 - hf)[None, None, :, None]
          + x[:, :, h1, :] * hf[None, None, :, None])
    xw = (xh[:, :, :, w0] * (1.0 - wf)[None, None, None, :]
          + xh[:, :, :, w1] * wf[None, None, None, :])
    return xw


@jax.jit
def up_forward(x, conn, t, params):
    """`Up.forward`: x (B,Cx,H0,W0), conn (B,Cc,2H0,2W0), t (B,emb_dim). NCHW."""
    x_up = bilinear_up2_align_corners(x)
    x_cat = jnp.concatenate([x_up, conn], axis=1)        # (B, in_ch, H, W) NCHW
    B, cin, H, W = x_cat.shape
    HW = H * W
    cout = params['w2b'].shape[0]
    emb_dim = params['we'].shape[1]
    KS = params['w1a'].shape[1] // 9

    x_flat = x_cat.reshape(B, cin, HW)                   # lane-dense (C, H*W)
    t_row = t[:, None, :]                                # (B, 1, emb_dim)

    def full2(a):  # whole small 2-D parameter, resident in VMEM for all steps
        return pl.BlockSpec(a.shape, lambda b: (0, 0))

    in_specs = [
        pl.BlockSpec((1, cin, HW), lambda b: (b, 0, 0)),
        pl.BlockSpec((1, 1, emb_dim), lambda b: (b, 0, 0)),
        full2(params['w1a']), full2(params['g1a']), full2(params['b1a']),
        full2(params['w1b']), full2(params['g1b']), full2(params['b1b']),
        full2(params['w2a']), full2(params['g2a']), full2(params['b2a']),
        full2(params['w2b']), full2(params['g2b']), full2(params['b2b']),
        full2(params['we']), full2(params['be']),
    ]

    out = pl.pallas_call(
        functools.partial(_up_fused_kernel, H=H, W=W),
        out_shape=jax.ShapeDtypeStruct((B, cout, HW), jnp.float32),
        grid=(B,),
        in_specs=in_specs,
        out_specs=pl.BlockSpec((1, cout, HW), lambda b: (b, 0, 0)),
        scratch_shapes=[
            pltpu.VMEM((KS, _PAD + HW + _PAD), jnp.float32),  # haloed activation
            pltpu.VMEM((9 * KS, HW), jnp.float32),            # im2col patches
        ],
        compiler_params=pltpu.CompilerParams(
            dimension_semantics=("parallel",)),
    )(x_flat, t_row,
      params['w1a'], params['g1a'], params['b1a'],
      params['w1b'], params['g1b'], params['b1b'],
      params['w2a'], params['g2a'], params['b2a'],
      params['w2b'], params['g2b'], params['b2b'],
      params['we'], params['be'])

    return out.reshape(B, cout, H, W)                    # already NCHW


# ------------------------------ parameters ----------------------------------

def init_params(key, in_ch, out_ch, emb_dim):
    """Deterministic init (torch defaults).  Conv weights are stored in the
    kernel's im2col layout: (Co, 9*KS), per-tap row stride KS (= in_ch rounded
    up to a multiple of 8), zero columns for channels >= Ci.
    (From a torch state dict: w.permute(0, 2, 3, 1) -> pad C to KS -> reshape.)
    """
    mid2 = in_ch // 2
    KS = max(8, ((in_ch + 7) // 8) * 8)
    ks = jax.random.split(key, 6)

    def conv_w(k, ci, co):
        bound = 1.0 / math.sqrt(ci * 9)                  # torch Conv2d default
        w = jax.random.uniform(k, (co, 3, 3, ci), jnp.float32, -bound, bound)
        wq = jnp.zeros((co, 9, KS), jnp.float32)
        wq = wq.at[:, :, :ci].set(w.reshape(co, 9, ci))
        return wq.reshape(co, 9 * KS)

    def gn(c):                                           # GN affine defaults
        return (jnp.ones((c, 1), jnp.float32), jnp.zeros((c, 1), jnp.float32))

    g1a, b1a = gn(in_ch)
    g1b, b1b = gn(in_ch)
    g2a, b2a = gn(mid2)
    g2b, b2b = gn(out_ch)
    lb = 1.0 / math.sqrt(emb_dim)                        # torch Linear default
    we = jax.random.uniform(ks[4], (out_ch, emb_dim), jnp.float32, -lb, lb)
    be = jax.random.uniform(ks[5], (out_ch, 1), jnp.float32, -lb, lb)
    return dict(
        w1a=conv_w(ks[0], in_ch, in_ch), g1a=g1a, b1a=b1a,
        w1b=conv_w(ks[1], in_ch, in_ch), g1b=g1b, b1b=b1b,
        w2a=conv_w(ks[2], in_ch, mid2), g2a=g2a, b2a=b2a,
        w2b=conv_w(ks[3], mid2, out_ch), g2b=g2b, b2b=b2b,
        we=we, be=be)


# --------------------------- pure-XLA reference ------------------------------

def _unpack_conv_w(wq, ci):
    """(Co, 9*KS) kernel layout -> (Co, Ci, 3, 3) (torch OIHW)."""
    co = wq.shape[0]
    KS = wq.shape[1] // 9
    w = wq.astype(jnp.float32).reshape(co, 3, 3, KS)[:, :, :, :ci]
    return jnp.transpose(w, (0, 3, 1, 2))


def _conv_gn_ref(x, wq, g, b, ci):
    w = _unpack_conv_w(wq, ci)
    y = jax.lax.conv_general_dilated(
        x, w, window_strides=(1, 1), padding=((1, 1), (1, 1)),
        dimension_numbers=('NCHW', 'OIHW', 'NCHW'),
        precision=jax.lax.Precision.HIGHEST)
    mean = jnp.mean(y, axis=(1, 2, 3), keepdims=True)
    var = jnp.mean(jnp.square(y - mean), axis=(1, 2, 3), keepdims=True)
    y = (y - mean) * jax.lax.rsqrt(var + 1e-5)
    c = y.shape[1]
    return y * g.reshape(1, c, 1, 1) + b.reshape(1, c, 1, 1)


def up_reference(x, conn, t, params):
    """Pure-JAX reference mirroring the torch Up.forward (for validation)."""
    x_cat = jnp.concatenate([bilinear_up2_align_corners(x), conn], axis=1)
    cin = x_cat.shape[1]
    cmid = params['w2a'].shape[0]
    gelu = functools.partial(jax.nn.gelu, approximate=False)

    h = gelu(_conv_gn_ref(x_cat, params['w1a'], params['g1a'], params['b1a'], cin))
    x1 = gelu(x_cat + _conv_gn_ref(h, params['w1b'], params['g1b'], params['b1b'], cin))
    h = gelu(_conv_gn_ref(x1, params['w2a'], params['g2a'], params['b2a'], cin))
    y = _conv_gn_ref(h, params['w2b'], params['g2b'], params['b2b'], cmid)

    emb = jax.nn.silu(t) @ params['we'].T + params['be'][:, 0]     # (B, cout)
    return y + emb[:, :, None, None]


if __name__ == "__main__":
    key = jax.random.PRNGKey(0)
    kx, kc, kt, kp = jax.random.split(key, 4)

    B, Cx, H0, W0 = 2, 4, 16, 16      # x before upsample
    Cc = 4                            # skip-connection channels
    in_ch = Cx + Cc                   # channels after upsample + concat (= 8)
    out_ch = 4
    emb_dim = 32

    x = jax.random.normal(kx, (B, Cx, H0, W0), jnp.float32)
    conn = jax.random.normal(kc, (B, Cc, 2 * H0, 2 * W0), jnp.float32)
    t = jax.random.normal(kt, (B, emb_dim), jnp.float32)
    params = init_params(kp, in_ch, out_ch, emb_dim)

    out = jax.block_until_ready(up_forward(x, conn, t, params))
    assert out.shape == (B, out_ch, 2 * H0, 2 * W0), out.shape
    assert bool(jnp.all(jnp.isfinite(out)))

    # Validate against a pure-XLA reference.  Loose threshold only to absorb
    # MXU multi-pass f32 rounding differences; layout/shift/mask bugs would
    # show up as O(1) errors.
    ref = jax.block_until_ready(up_reference(x, conn, t, params))
    max_err = float(jnp.max(jnp.abs(out - ref)))
    assert max_err < 0.1, f"max abs error vs reference: {max_err}"

    print("KERNEL_OK")
</pallas_src>

<mosaic_0001>
module attributes {stable_mosaic.version = 11 : i64} {
  func.func @_up_fused_kernel(%arg0: i32, %arg1: memref<1x8x1024xf32, #tpu.memory_space<vmem>>, %arg2: memref<1x1x32xf32, #tpu.memory_space<vmem>>, %arg3: memref<8x72xf32, #tpu.memory_space<vmem>>, %arg4: memref<8x1xf32, #tpu.memory_space<vmem>>, %arg5: memref<8x1xf32, #tpu.memory_space<vmem>>, %arg6: memref<8x72xf32, #tpu.memory_space<vmem>>, %arg7: memref<8x1xf32, #tpu.memory_space<vmem>>, %arg8: memref<8x1xf32, #tpu.memory_space<vmem>>, %arg9: memref<4x72xf32, #tpu.memory_space<vmem>>, %arg10: memref<4x1xf32, #tpu.memory_space<vmem>>, %arg11: memref<4x1xf32, #tpu.memory_space<vmem>>, %arg12: memref<4x72xf32, #tpu.memory_space<vmem>>, %arg13: memref<4x1xf32, #tpu.memory_space<vmem>>, %arg14: memref<4x1xf32, #tpu.memory_space<vmem>>, %arg15: memref<4x32xf32, #tpu.memory_space<vmem>>, %arg16: memref<4x1xf32, #tpu.memory_space<vmem>>, %arg17: memref<1x4x1024xf32, #tpu.memory_space<vmem>>, %arg18: memref<8x1280xf32, #tpu.memory_space<vmem>>, %arg19: memref<72x1024xf32, #tpu.memory_space<vmem>>) attributes {dimension_semantics = [#tpu.dimension_semantics<parallel>], iteration_bounds = array<i64: 2>, scalar_prefetch = 0 : i64, scratch_operands = 2 : i64, tpu.core_type = #tpu.core_type<tc>, window_params = [{transform_indices = @transform_0, window_bounds = array<i64: 1, 8, 1024>}, {transform_indices = @transform_1, window_bounds = array<i64: 1, 1, 32>}, {pipeline_mode = #tpu.pipeline_mode<synchronous>, transform_indices = @transform_2, window_bounds = array<i64: 8, 72>}, {pipeline_mode = #tpu.pipeline_mode<synchronous>, transform_indices = @transform_3, window_bounds = array<i64: 8, 1>}, {pipeline_mode = #tpu.pipeline_mode<synchronous>, transform_indices = @transform_4, window_bounds = array<i64: 8, 1>}, {pipeline_mode = #tpu.pipeline_mode<synchronous>, transform_indices = @transform_5, window_bounds = array<i64: 8, 72>}, {pipeline_mode = #tpu.pipeline_mode<synchronous>, transform_indices = @transform_6, window_bounds = array<i64: 8, 1>}, {pipeline_mode = #tpu.pipeline_mode<synchronous>, transform_indices = @transform_7, window_bounds = array<i64: 8, 1>}, {pipeline_mode = #tpu.pipeline_mode<synchronous>, transform_indices = @transform_8, window_bounds = array<i64: 4, 72>}, {pipeline_mode = #tpu.pipeline_mode<synchronous>, transform_indices = @transform_9, window_bounds = array<i64: 4, 1>}, {pipeline_mode = #tpu.pipeline_mode<synchronous>, transform_indices = @transform_10, window_bounds = array<i64: 4, 1>}, {pipeline_mode = #tpu.pipeline_mode<synchronous>, transform_indices = @transform_11, window_bounds = array<i64: 4, 72>}, {pipeline_mode = #tpu.pipeline_mode<synchronous>, transform_indices = @transform_12, window_bounds = array<i64: 4, 1>}, {pipeline_mode = #tpu.pipeline_mode<synchronous>, transform_indices = @transform_13, window_bounds = array<i64: 4, 1>}, {pipeline_mode = #tpu.pipeline_mode<synchronous>, transform_indices = @transform_14, window_bounds = array<i64: 4, 32>}, {pipeline_mode = #tpu.pipeline_mode<synchronous>, transform_indices = @transform_15, window_bounds = array<i64: 4, 1>}, {transform_indices = @transform_16, window_bounds = array<i64: 1, 4, 1024>}]} {
    %cst = arith.constant 0.000000e+00 : f32
    %0 = vector.broadcast %cst : f32 to vector<8x1280xf32>
    %c0 = arith.constant 0 : index
    %c0_0 = arith.constant 0 : index
    %1 = vector.load %arg18[%c0, %c0_0] : memref<8x1280xf32, #tpu.memory_space<vmem>>, vector<8x1280xf32>
    tpu.vector_store %arg18[%c0, %c0_0], %0 {strides = array<i32>} : memref<8x1280xf32, #tpu.memory_space<vmem>>, vector<8x1280xf32>,
    %cst_1 = arith.constant 0.000000e+00 : f32
    %2 = vector.broadcast %cst_1 : f32 to vector<72x1024xf32>
    %c0_2 = arith.constant 0 : index
    %c0_3 = arith.constant 0 : index
    %3 = vector.load %arg19[%c0_2, %c0_3] : memref<72x1024xf32, #tpu.memory_space<vmem>>, vector<72x1024xf32>
    tpu.vector_store %arg19[%c0_2, %c0_3], %2 {strides = array<i32>} : memref<72x1024xf32, #tpu.memory_space<vmem>>, vector<72x1024xf32>,
    %4 = tpu.iota {dimensions = array<i32: 1>} : vector<1x1024xi32>
    %c32_i32 = arith.constant 32 : i32
    %c0_i32 = arith.constant 0 : i32
    %5 = arith.cmpi eq, %c32_i32, %c0_i32 : i32
    %c1_i32 = arith.constant 1 : i32
    %6 = arith.select %5, %c1_i32, %c32_i32 : i32
    %7 = vector.broadcast %6 : i32 to vector<1x1024xi32>
    %8 = arith.remsi %4, %7 : vector<1x1024xi32>
    %c0_i32_4 = arith.constant 0 : i32
    %9 = vector.broadcast %c0_i32_4 : i32 to vector<1x1024xi32>
    %10 = arith.cmpi ne, %8, %9 : vector<1x1024xi32>
    %c0_i32_5 = arith.constant 0 : i32
    %11 = vector.broadcast %c0_i32_5 : i32 to vector<1x1024xi32>
    %12 = arith.cmpi slt, %8, %11 : vector<1x1024xi32>
    %c0_i32_6 = arith.constant 0 : i32
    %13 = arith.cmpi slt, %6, %c0_i32_6 : i32
    %14 = vector.broadcast %13 : i1 to vector<1x1024xi1>
    %15 = vector.broadcast %14 : vector<1x1024xi1> to vector<1x1024xi1>
    %16 = arith.xori %12, %15 : vector<1x1024xi1>
    %17 = arith.andi %16, %10 : vector<1x1024xi1>
    %18 = vector.broadcast %6 : i32 to vector<1x1024xi32>
    %19 = arith.addi %8, %18 : vector<1x1024xi32>
    %20 = arith.select %17, %19, %8 : vector<1x1024xi1>, vector<1x1024xi32>
    %c1_i32_7 = arith.constant 1 : i32
    %21 = vector.broadcast %c1_i32_7 : i32 to vector<1x1024xi32>
    %22 = arith.cmpi sge, %20, %21 : vector<1x1024xi32>
    %c30_i32 = arith.constant 30 : i32
    %23 = vector.broadcast %c30_i32 : i32 to vector<1x1024xi32>
    %24 = arith.cmpi sle, %20, %23 : vector<1x1024xi32>
    %c0_8 = arith.constant 0 : index
    %c0_9 = arith.constant 0 : index
    %c0_10 = arith.constant 0 : index
    %25 = vector.load %arg1[%c0_8, %c0_9, %c0_10] : memref<1x8x1024xf32, #tpu.memory_space<vmem>>, vector<1x8x1024xf32>
    %26 = vector.shape_cast %25 : vector<1x8x1024xf32> to vector<8x1024xf32>
    %c0_11 = arith.constant 0 : index
    %c128 = arith.constant 128 : index
    %27 = vector.load %arg18[%c0_11, %c128] : memref<8x1280xf32, #tpu.memory_space<vmem>>, vector<8x1024xf32>
    tpu.vector_store %arg18[%c0_11, %c128], %26 {strides = array<i32>} : memref<8x1280xf32, #tpu.memory_space<vmem>>, vector<8x1024xf32>,
    %c0_12 = arith.constant 0 : index
    %c95 = arith.constant 95 : index
    %28 = vector.load %arg18[%c0_12, %c95] : memref<8x1280xf32, #tpu.memory_space<vmem>>, vector<8x1024xf32>
    %cst_13 = arith.constant 0.000000e+00 : f32
    %29 = vector.shape_cast %22 : vector<1x1024xi1> to vector<1x1024xi1>
    %30 = vector.broadcast %29 : vector<1x1024xi1> to vector<8x1024xi1>
    %31 = vector.broadcast %cst_13 : f32 to vector<8x1024xf32>
    %32 = arith.select %30, %28, %31 : vector<8x1024xi1>, vector<8x1024xf32>
    %c0_14 = arith.constant 0 : index
    %c0_15 = arith.constant 0 : index
    %33 = vector.load %arg19[%c0_14, %c0_15] : memref<72x1024xf32, #tpu.memory_space<vmem>>, vector<8x1024xf32>
    tpu.vector_store %arg19[%c0_14, %c0_15], %32 {strides = array<i32>} : memref<72x1024xf32, #tpu.memory_space<vmem>>, vector<8x1024xf32>,
    %c0_16 = arith.constant 0 : index
    %c96 = arith.constant 96 : index
    %34 = vector.load %arg18[%c0_16, %c96] : memref<8x1280xf32, #tpu.memory_space<vmem>>, vector<8x1024xf32>
    %c8 = arith.constant 8 : index
    %c0_17 = arith.constant 0 : index
    %35 = vector.load %arg19[%c8, %c0_17] : memref<72x1024xf32, #tpu.memory_space<vmem>>, vector<8x1024xf32>
    tpu.vector_store %arg19[%c8, %c0_17], %34 {strides = array<i32>} : memref<72x1024xf32, #tpu.memory_space<vmem>>, vector<8x1024xf32>,
    %c0_18 = arith.constant 0 : index
    %c97 = arith.constant 97 : index
    %36 = vector.load %arg18[%c0_18, %c97] : memref<8x1280xf32, #tpu.memory_space<vmem>>, vector<8x1024xf32>
    %cst_19 = arith.constant 0.000000e+00 : f32
    %37 = vector.shape_cast %24 : vector<1x1024xi1> to vector<1x1024xi1>
    %38 = vector.broadcast %37 : vector<1x1024xi1> to vector<8x1024xi1>
    %39 = vector.broadcast %cst_19 : f32 to vector<8x1024xf32>
    %40 = arith.select %38, %36, %39 : vector<8x1024xi1>, vector<8x1024xf32>
    %c16 = arith.constant 16 : index
    %c0_20 = arith.constant 0 : index
    %41 = vector.load %arg19[%c16, %c0_20] : memref<72x1024xf32, #tpu.memory_space<vmem>>, vector<8x1024xf32>
    tpu.vector_store %arg19[%c16, %c0_20], %40 {strides = array<i32>} : memref<72x1024xf32, #tpu.memory_space<vmem>>, vector<8x1024xf32>,
    %c0_21 = arith.constant 0 : index
    %c127 = arith.constant 127 : index
    %42 = vector.load %arg18[%c0_21, %c127] : memref<8x1280xf32, #tpu.memory_space<vmem>>, vector<8x1024xf32>
    %cst_22 = arith.constant 0.000000e+00 : f32
    %43 = vector.shape_cast %22 : vector<1x1024xi1> to vector<1x1024xi1>
    %44 = vector.broadcast %43 : vector<1x1024xi1> to vector<8x1024xi1>
    %45 = vector.broadcast %cst_22 : f32 to vector<8x1024xf32>
    %46 = arith.select %44, %42, %45 : vector<8x1024xi1>, vector<8x1024xf32>
    %c24 = arith.constant 24 : index
    %c0_23 = arith.constant 0 : index
    %47 = vector.load %arg19[%c24, %c0_23] : memref<72x1024xf32, #tpu.memory_space<vmem>>, vector<8x1024xf32>
    tpu.vector_store %arg19[%c24, %c0_23], %46 {strides = array<i32>} : memref<72x1024xf32, #tpu.memory_space<vmem>>, vector<8x1024xf32>,
    %c0_24 = arith.constant 0 : index
    %c128_25 = arith.constant 128 : index
    %48 = vector.load %arg18[%c0_24, %c128_25] : memref<8x1280xf32, #tpu.memory_space<vmem>>, vector<8x1024xf32>
    %c32 = arith.constant 32 : index
    %c0_26 = arith.constant 0 : index
    %49 = vector.load %arg19[%c32, %c0_26] : memref<72x1024xf32, #tpu.memory_space<vmem>>, vector<8x1024xf32>
    tpu.vector_store %arg19[%c32, %c0_26], %48 {strides = array<i32>} : memref<72x1024xf32, #tpu.memory_space<vmem>>, vector<8x1024xf32>,
    %c0_27 = arith.constant 0 : index
    %c129 = arith.constant 129 : index
    %50 = vector.load %arg18[%c0_27, %c129] : memref<8x1280xf32, #tpu.memory_space<vmem>>, vector<8x1024xf32>
    %cst_28 = arith.constant 0.000000e+00 : f32
    %51 = vector.shape_cast %24 : vector<1x1024xi1> to vector<1x1024xi1>
    %52 = vector.broadcast %51 : vector<1x1024xi1> to vector<8x1024xi1>
    %53 = vector.broadcast %cst_28 : f32 to vector<8x1024xf32>
    %54 = arith.select %52, %50, %53 : vector<8x1024xi1>, vector<8x1024xf32>
    %c40 = arith.constant 40 : index
    %c0_29 = arith.constant 0 : index
    %55 = vector.load %arg19[%c40, %c0_29] : memref<72x1024xf32, #tpu.memory_space<vmem>>, vector<8x1024xf32>
    tpu.vector_store %arg19[%c40, %c0_29], %54 {strides = array<i32>} : memref<72x1024xf32, #tpu.memory_space<vmem>>, vector<8x1024xf32>,
    %c0_30 = arith.constant 0 : index
    %c159 = arith.constant 159 : index
    %56 = vector.load %arg18[%c0_30, %c159] : memref<8x1280xf32, #tpu.memory_space<vmem>>, vector<8x1024xf32>
    %cst_31 = arith.constant 0.000000e+00 : f32
    %57 = vector.shape_cast %22 : vector<1x1024xi1> to vector<1x1024xi1>
    %58 = vector.broadcast %57 : vector<1x1024xi1> to vector<8x1024xi1>
    %59 = vector.broadcast %cst_31 : f32 to vector<8x1024xf32>
    %60 = arith.select %58, %56, %59 : vector<8x1024xi1>, vector<8x1024xf32>
    %c48 = arith.constant 48 : index
    %c0_32 = arith.constant 0 : index
    %61 = vector.load %arg19[%c48, %c0_32] : memref<72x1024xf32, #tpu.memory_space<vmem>>, vector<8x1024xf32>
    tpu.vector_store %arg19[%c48, %c0_32], %60 {strides = array<i32>} : memref<72x1024xf32, #tpu.memory_space<vmem>>, vector<8x1024xf32>,
    %c0_33 = arith.constant 0 : index
    %c160 = arith.constant 160 : index
    %62 = vector.load %arg18[%c0_33, %c160] : memref<8x1280xf32, #tpu.memory_space<vmem>>, vector<8x1024xf32>
    %c56 = arith.constant 56 : index
    %c0_34 = arith.constant 0 : index
    %63 = vector.load %arg19[%c56, %c0_34] : memref<72x1024xf32, #tpu.memory_space<vmem>>, vector<8x1024xf32>
    tpu.vector_store %arg19[%c56, %c0_34], %62 {strides = array<i32>} : memref<72x1024xf32, #tpu.memory_space<vmem>>, vector<8x1024xf32>,
    %c0_35 = arith.constant 0 : index
    %c161 = arith.constant 161 : index
    %64 = vector.load %arg18[%c0_35, %c161] : memref<8x1280xf32, #tpu.memory_space<vmem>>, vector<8x1024xf32>
    %cst_36 = arith.constant 0.000000e+00 : f32
    %65 = vector.shape_cast %24 : vector<1x1024xi1> to vector<1x1024xi1>
    %66 = vector.broadcast %65 : vector<1x1024xi1> to vector<8x1024xi1>
    %67 = vector.broadcast %cst_36 : f32 to vector<8x1024xf32>
    %68 = arith.select %66, %64, %67 : vector<8x1024xi1>, vector<8x1024xf32>
    %c64 = arith.constant 64 : index
    %c0_37 = arith.constant 0 : index
    %69 = vector.load %arg19[%c64, %c0_37] : memref<72x1024xf32, #tpu.memory_space<vmem>>, vector<8x1024xf32>
    tpu.vector_store %arg19[%c64, %c0_37], %68 {strides = array<i32>} : memref<72x1024xf32, #tpu.memory_space<vmem>>, vector<8x1024xf32>,
    %c0_38 = arith.constant 0 : index
    %c0_39 = arith.constant 0 : index
    %70 = vector.load %arg19[%c0_38, %c0_39] : memref<72x1024xf32, #tpu.memory_space<vmem>>, vector<72x1024xf32>
    %c0_40 = arith.constant 0 : index
    %c0_41 = arith.constant 0 : index
    %71 = vector.load %arg3[%c0_40, %c0_41] : memref<8x72xf32, #tpu.memory_space<vmem>>, vector<8x72xf32>
    %cst_42 = arith.constant dense<0.000000e+00> : vector<8x1024xf32>
    %72 = tpu.matmul %71, %70, %cst_42 {dimension_numbers = #tpu.dot_dimension_numbers<[1], [0], [0], [1], [0, 0, 1, 1], [], []>} : vector<8x72xf32>, vector<72x1024xf32>, vector<8x1024xf32> -> vector<8x1024xf32>
    %73 = vector.shape_cast %72 : vector<8x1024xf32> to vector<1x8x1024xf32>
    %cst_43 = arith.constant dense<0.000000e+00> : vector<1xf32>
    %74 = vector.multi_reduction <add>, %73, %cst_43 [1, 2] : vector<1x8x1024xf32> to vector<1xf32>
    %75 = vector.shape_cast %74 : vector<1xf32> to vector<1x1x1xf32>
    %76 = vector.extract %75[0, 0, 0] : f32 from vector<1x1x1xf32>
    %77 = vector.broadcast %76 : f32 to vector<1x1xf32>
    %cst_44 = arith.constant 8.192000e+03 : f32
    %78 = vector.broadcast %cst_44 : f32 to vector<1x1xf32>
    %79 = arith.divf %77, %78 : vector<1x1xf32>
    %80 = vector.broadcast %79 : vector<1x1xf32> to vector<8x1024xf32>
    %81 = arith.subf %72, %80 : vector<8x1024xf32>
    %82 = arith.mulf %81, %81 : vector<8x1024xf32>
    %83 = vector.shape_cast %82 : vector<8x1024xf32> to vector<1x8x1024xf32>
    %cst_45 = arith.constant dense<0.000000e+00> : vector<1xf32>
    %84 = vector.multi_reduction <add>, %83, %cst_45 [1, 2] : vector<1x8x1024xf32> to vector<1xf32>
    %85 = vector.shape_cast %84 : vector<1xf32> to vector<1x1x1xf32>
    %86 = vector.extract %85[0, 0, 0] : f32 from vector<1x1x1xf32>
    %87 = vector.broadcast %86 : f32 to vector<1x1xf32>
    %cst_46 = arith.constant 8.192000e+03 : f32
    %88 = vector.broadcast %cst_46 : f32 to vector<1x1xf32>
    %89 = arith.divf %87, %88 : vector<1x1xf32>
    %90 = vector.broadcast %79 : vector<1x1xf32> to vector<8x1024xf32>
    %91 = arith.subf %72, %90 : vector<8x1024xf32>
    %cst_47 = arith.constant 9.99999974E-6 : f32
    %92 = vector.broadcast %cst_47 : f32 to vector<1x1xf32>
    %93 = arith.addf %89, %92 : vector<1x1xf32>
    %94 = math.rsqrt %93 : vector<1x1xf32>
    %95 = vector.broadcast %94 : vector<1x1xf32> to vector<8x1024xf32>
    %96 = arith.mulf %91, %95 : vector<8x1024xf32>
    %c0_48 = arith.constant 0 : index
    %c0_49 = arith.constant 0 : index
    %97 = vector.load %arg4[%c0_48, %c0_49] : memref<8x1xf32, #tpu.memory_space<vmem>>, vector<8x1xf32>
    %98 = vector.broadcast %97 : vector<8x1xf32> to vector<8x1024xf32>
    %99 = arith.mulf %96, %98 : vector<8x1024xf32>
    %c0_50 = arith.constant 0 : index
    %c0_51 = arith.constant 0 : index
    %100 = vector.load %arg5[%c0_50, %c0_51] : memref<8x1xf32, #tpu.memory_space<vmem>>, vector<8x1xf32>
    %101 = vector.broadcast %100 : vector<8x1xf32> to vector<8x1024xf32>
    %102 = arith.addf %99, %101 : vector<8x1024xf32>
    %cst_52 = arith.constant 5.000000e-01 : f32
    %103 = vector.broadcast %cst_52 : f32 to vector<8x1024xf32>
    %104 = arith.mulf %103, %102 : vector<8x1024xf32>
    %cst_53 = arith.constant 0.707106769 : f32
    %105 = vector.broadcast %cst_53 : f32 to vector<8x1024xf32>
    %106 = arith.mulf %102, %105 : vector<8x1024xf32>
    %cst_54 = arith.constant 0.000000e+00 : f32
    %107 = vector.broadcast %cst_54 : f32 to vector<8x1024xf32>
    %108 = arith.cmpf oge, %106, %107 : vector<8x1024xf32>
    %cst_55 = arith.constant 1.000000e+00 : f32
    %cst_56 = arith.constant -1.000000e+00 : f32
    %109 = vector.broadcast %cst_55 : f32 to vector<8x1024xf32>
    %110 = vector.broadcast %cst_56 : f32 to vector<8x1024xf32>
    %111 = arith.select %108, %109, %110 : vector<8x1024xi1>, vector<8x1024xf32>
    %112 = math.absf %106 : vector<8x1024xf32>
    %cst_57 = arith.constant 0.327591091 : f32
    %113 = vector.broadcast %cst_57 : f32 to vector<8x1024xf32>
    %114 = arith.mulf %113, %112 : vector<8x1024xf32>
    %cst_58 = arith.constant 1.000000e+00 : f32
    %115 = vector.broadcast %cst_58 : f32 to vector<8x1024xf32>
    %116 = arith.addf %115, %114 : vector<8x1024xf32>
    %cst_59 = arith.constant 1.000000e+00 : f32
    %117 = vector.broadcast %cst_59 : f32 to vector<8x1024xf32>
    %118 = arith.divf %117, %116 : vector<8x1024xf32>
    %cst_60 = arith.constant 1.06140542 : f32
    %119 = vector.broadcast %cst_60 : f32 to vector<8x1024xf32>
    %120 = arith.mulf %119, %118 : vector<8x1024xf32>
    %cst_61 = arith.constant -1.45315206 : f32
    %121 = vector.broadcast %cst_61 : f32 to vector<8x1024xf32>
    %122 = arith.addf %120, %121 : vector<8x1024xf32>
    %123 = arith.mulf %122, %118 : vector<8x1024xf32>
    %cst_62 = arith.constant 1.42141378 : f32
    %124 = vector.broadcast %cst_62 : f32 to vector<8x1024xf32>
    %125 = arith.addf %123, %124 : vector<8x1024xf32>
    %126 = arith.mulf %125, %118 : vector<8x1024xf32>
    %cst_63 = arith.constant -0.284496725 : f32
    %127 = vector.broadcast %cst_63 : f32 to vector<8x1024xf32>
    %128 = arith.addf %126, %127 : vector<8x1024xf32>
    %129 = arith.mulf %128, %118 : vector<8x1024xf32>
    %cst_64 = arith.constant 0.254829586 : f32
    %130 = vector.broadcast %cst_64 : f32 to vector<8x1024xf32>
    %131 = arith.addf %129, %130 : vector<8x1024xf32>
    %132 = arith.mulf %131, %118 : vector<8x1024xf32>
    %cst_65 = arith.constant 0.000000e+00 : f32
    %133 = vector.broadcast %cst_65 : f32 to vector<8x1024xf32>
    %134 = arith.subf %133, %112 : vector<8x1024xf32>
    %135 = arith.mulf %134, %112 : vector<8x1024xf32>
    %136 = math.exp %135 : vector<8x1024xf32>
    %137 = arith.mulf %132, %136 : vector<8x1024xf32>
    %cst_66 = arith.constant 1.000000e+00 : f32
    %138 = vector.broadcast %cst_66 : f32 to vector<8x1024xf32>
    %139 = arith.subf %138, %137 : vector<8x1024xf32>
    %140 = arith.mulf %111, %139 : vector<8x1024xf32>
    %cst_67 = arith.constant 1.000000e+00 : f32
    %141 = vector.broadcast %cst_67 : f32 to vector<8x1024xf32>
    %142 = arith.addf %141, %140 : vector<8x1024xf32>
    %143 = arith.mulf %104, %142 : vector<8x1024xf32>
    %c0_68 = arith.constant 0 : index
    %c128_69 = arith.constant 128 : index
    %144 = vector.load %arg18[%c0_68, %c128_69] : memref<8x1280xf32, #tpu.memory_space<vmem>>, vector<8x1024xf32>
    tpu.vector_store %arg18[%c0_68, %c128_69], %143 {strides = array<i32>} : memref<8x1280xf32, #tpu.memory_space<vmem>>, vector<8x1024xf32>,
    %c0_70 = arith.constant 0 : index
    %c95_71 = arith.constant 95 : index
    %145 = vector.load %arg18[%c0_70, %c95_71] : memref<8x1280xf32, #tpu.memory_space<vmem>>, vector<8x1024xf32>
    %cst_72 = arith.constant 0.000000e+00 : f32
    %146 = vector.shape_cast %22 : vector<1x1024xi1> to vector<1x1024xi1>
    %147 = vector.broadcast %146 : vector<1x1024xi1> to vector<8x1024xi1>
    %148 = vector.broadcast %cst_72 : f32 to vector<8x1024xf32>
    %149 = arith.select %147, %145, %148 : vector<8x1024xi1>, vector<8x1024xf32>
    %c0_73 = arith.constant 0 : index
    %c0_74 = arith.constant 0 : index
    %150 = vector.load %arg19[%c0_73, %c0_74] : memref<72x1024xf32, #tpu.memory_space<vmem>>, vector<8x1024xf32>
    tpu.vector_store %arg19[%c0_73, %c0_74], %149 {strides = array<i32>} : memref<72x1024xf32, #tpu.memory_space<vmem>>, vector<8x1024xf32>,
    %c0_75 = arith.constant 0 : index
    %c96_76 = arith.constant 96 : index
    %151 = vector.load %arg18[%c0_75, %c96_76] : memref<8x1280xf32, #tpu.memory_space<vmem>>, vector<8x1024xf32>
    %c8_77 = arith.constant 8 : index
    %c0_78 = arith.constant 0 : index
    %152 = vector.load %arg19[%c8_77, %c0_78] : memref<72x1024xf32, #tpu.memory_space<vmem>>, vector<8x1024xf32>
    tpu.vector_store %arg19[%c8_77, %c0_78], %151 {strides = array<i32>} : memref<72x1024xf32, #tpu.memory_space<vmem>>, vector<8x1024xf32>,
    %c0_79 = arith.constant 0 : index
    %c97_80 = arith.constant 97 : index
    %153 = vector.load %arg18[%c0_79, %c97_80] : memref<8x1280xf32, #tpu.memory_space<vmem>>, vector<8x1024xf32>
    %cst_81 = arith.constant 0.000000e+00 : f32
    %154 = vector.shape_cast %24 : vector<1x1024xi1> to vector<1x1024xi1>
    %155 = vector.broadcast %154 : vector<1x1024xi1> to vector<8x1024xi1>
    %156 = vector.broadcast %cst_81 : f32 to vector<8x1024xf32>
    %157 = arith.select %155, %153, %156 : vector<8x1024xi1>, vector<8x1024xf32>
    %c16_82 = arith.constant 16 : index
    %c0_83 = arith.constant 0 : index
    %158 = vector.load %arg19[%c16_82, %c0_83] : memref<72x1024xf32, #tpu.memory_space<vmem>>, vector<8x1024xf32>
    tpu.vector_store %arg19[%c16_82, %c0_83], %157 {strides = array<i32>} : memref<72x1024xf32, #tpu.memory_space<vmem>>, vector<8x1024xf32>,
    %c0_84 = arith.constant 0 : index
    %c127_85 = arith.constant 127 : index
    %159 = vector.load %arg18[%c0_84, %c127_85] : memref<8x1280xf32, #tpu.memory_space<vmem>>, vector<8x1024xf32>
    %cst_86 = arith.constant 0.000000e+00 : f32
    %160 = vector.shape_cast %22 : vector<1x1024xi1> to vector<1x1024xi1>
    %161 = vector.broadcast %160 : vector<1x1024xi1> to vector<8x1024xi1>
    %162 = vector.broadcast %cst_86 : f32 to vector<8x1024xf32>
    %163 = arith.select %161, %159, %162 : vector<8x1024xi1>, vector<8x1024xf32>
    %c24_87 = arith.constant 24 : index
    %c0_88 = arith.constant 0 : index
    %164 = vector.load %arg19[%c24_87, %c0_88] : memref<72x1024xf32, #tpu.memory_space<vmem>>, vector<8x1024xf32>
    tpu.vector_store %arg19[%c24_87, %c0_88], %163 {strides = array<i32>} : memref<72x1024xf32, #tpu.memory_space<vmem>>, vector<8x1024xf32>,
    %c0_89 = arith.constant 0 : index
    %c128_90 = arith.constant 128 : index
    %165 = vector.load %arg18[%c0_89, %c128_90] : memref<8x1280xf32, #tpu.memory_space<vmem>>, vector<8x1024xf32>
    %c32_91 = arith.constant 32 : index
    %c0_92 = arith.constant 0 : index
    %166 = vector.load %arg19[%c32_91, %c0_92] : memref<72x1024xf32, #tpu.memory_space<vmem>>, vector<8x1024xf32>
    tpu.vector_store %arg19[%c32_91, %c0_92], %165 {strides = array<i32>} : memref<72x1024xf32, #tpu.memory_space<vmem>>, vector<8x1024xf32>,
    %c0_93 = arith.constant 0 : index
    %c129_94 = arith.constant 129 : index
    %167 = vector.load %arg18[%c0_93, %c129_94] : memref<8x1280xf32, #tpu.memory_space<vmem>>, vector<8x1024xf32>
    %cst_95 = arith.constant 0.000000e+00 : f32
    %168 = vector.shape_cast %24 : vector<1x1024xi1> to vector<1x1024xi1>
    %169 = vector.broadcast %168 : vector<1x1024xi1> to vector<8x1024xi1>
    %170 = vector.broadcast %cst_95 : f32 to vector<8x1024xf32>
    %171 = arith.select %169, %167, %170 : vector<8x1024xi1>, vector<8x1024xf32>
    %c40_96 = arith.constant 40 : index
    %c0_97 = arith.constant 0 : index
    %172 = vector.load %arg19[%c40_96, %c0_97] : memref<72x1024xf32, #tpu.memory_space<vmem>>, vector<8x1024xf32>
    tpu.vector_store %arg19[%c40_96, %c0_97], %171 {strides = array<i32>} : memref<72x1024xf32, #tpu.memory_space<vmem>>, vector<8x1024xf32>,
    %c0_98 = arith.constant 0 : index
    %c159_99 = arith.constant 159 : index
    %173 = vector.load %arg18[%c0_98, %c159_99] : memref<8x1280xf32, #tpu.memory_space<vmem>>, vector<8x1024xf32>
    %cst_100 = arith.constant 0.000000e+00 : f32
    %174 = vector.shape_cast %22 : vector<1x1024xi1> to vector<1x1024xi1>
    %175 = vector.broadcast %174 : vector<1x1024xi1> to vector<8x1024xi1>
    %176 = vector.broadcast %cst_100 : f32 to vector<8x1024xf32>
    %177 = arith.select %175, %173, %176 : vector<8x1024xi1>, vector<8x1024xf32>
    %c48_101 = arith.constant 48 : index
    %c0_102 = arith.constant 0 : index
    %178 = vector.load %arg19[%c48_101, %c0_102] : memref<72x1024xf32, #tpu.memory_space<vmem>>, vector<8x1024xf32>
    tpu.vector_store %arg19[%c48_101, %c0_102], %177 {strides = array<i32>} : memref<72x1024xf32, #tpu.memory_space<vmem>>, vector<8x1024xf32>,
    %c0_103 = arith.constant 0 : index
    %c160_104 = arith.constant 160 : index
    %179 = vector.load %arg18[%c0_103, %c160_104] : memref<8x1280xf32, #tpu.memory_space<vmem>>, vector<8x1024xf32>
    %c56_105 = arith.constant 56 : index
    %c0_106 = arith.constant 0 : index
    %180 = vector.load %arg19[%c56_105, %c0_106] : memref<72x1024xf32, #tpu.memory_space<vmem>>, vector<8x1024xf32>
    tpu.vector_store %arg19[%c56_105, %c0_106], %179 {strides = array<i32>} : memref<72x1024xf32, #tpu.memory_space<vmem>>, vector<8x1024xf32>,
    %c0_107 = arith.constant 0 : index
    %c161_108 = arith.constant 161 : index
    %181 = vector.load %arg18[%c0_107, %c161_108] : memref<8x1280xf32, #tpu.memory_space<vmem>>, vector<8x1024xf32>
    %cst_109 = arith.constant 0.000000e+00 : f32
    %182 = vector.shape_cast %24 : vector<1x1024xi1> to vector<1x1024xi1>
    %183 = vector.broadcast %182 : vector<1x1024xi1> to vector<8x1024xi1>
    %184 = vector.broadcast %cst_109 : f32 to vector<8x1024xf32>
    %185 = arith.select %183, %181, %184 : vector<8x1024xi1>, vector<8x1024xf32>
    %c64_110 = arith.constant 64 : index
    %c0_111 = arith.constant 0 : index
    %186 = vector.load %arg19[%c64_110, %c0_111] : memref<72x1024xf32, #tpu.memory_space<vmem>>, vector<8x1024xf32>
    tpu.vector_store %arg19[%c64_110, %c0_111], %185 {strides = array<i32>} : memref<72x1024xf32, #tpu.memory_space<vmem>>, vector<8x1024xf32>,
    %c0_112 = arith.constant 0 : index
    %c0_113 = arith.constant 0 : index
    %187 = vector.load %arg19[%c0_112, %c0_113] : memref<72x1024xf32, #tpu.memory_space<vmem>>, vector<72x1024xf32>
    %c0_114 = arith.constant 0 : index
    %c0_115 = arith.constant 0 : index
    %188 = vector.load %arg6[%c0_114, %c0_115] : memref<8x72xf32, #tpu.memory_space<vmem>>, vector<8x72xf32>
    %cst_116 = arith.constant dense<0.000000e+00> : vector<8x1024xf32>
    %189 = tpu.matmul %188, %187, %cst_116 {dimension_numbers = #tpu.dot_dimension_numbers<[1], [0], [0], [1], [0, 0, 1, 1], [], []>} : vector<8x72xf32>, vector<72x1024xf32>, vector<8x1024xf32> -> vector<8x1024xf32>
    %190 = vector.shape_cast %189 : vector<8x1024xf32> to vector<1x8x1024xf32>
    %cst_117 = arith.constant dense<0.000000e+00> : vector<1xf32>
    %191 = vector.multi_reduction <add>, %190, %cst_117 [1, 2] : vector<1x8x1024xf32> to vector<1xf32>
    %192 = vector.shape_cast %191 : vector<1xf32> to vector<1x1x1xf32>
    %193 = vector.extract %192[0, 0, 0] : f32 from vector<1x1x1xf32>
    %194 = vector.broadcast %193 : f32 to vector<1x1xf32>
    %cst_118 = arith.constant 8.192000e+03 : f32
    %195 = vector.broadcast %cst_118 : f32 to vector<1x1xf32>
    %196 = arith.divf %194, %195 : vector<1x1xf32>
    %197 = vector.broadcast %196 : vector<1x1xf32> to vector<8x1024xf32>
    %198 = arith.subf %189, %197 : vector<8x1024xf32>
    %199 = arith.mulf %198, %198 : vector<8x1024xf32>
    %200 = vector.shape_cast %199 : vector<8x1024xf32> to vector<1x8x1024xf32>
    %cst_119 = arith.constant dense<0.000000e+00> : vector<1xf32>
    %201 = vector.multi_reduction <add>, %200, %cst_119 [1, 2] : vector<1x8x1024xf32> to vector<1xf32>
    %202 = vector.shape_cast %201 : vector<1xf32> to vector<1x1x1xf32>
    %203 = vector.extract %202[0, 0, 0] : f32 from vector<1x1x1xf32>
    %204 = vector.broadcast %203 : f32 to vector<1x1xf32>
    %cst_120 = arith.constant 8.192000e+03 : f32
    %205 = vector.broadcast %cst_120 : f32 to vector<1x1xf32>
    %206 = arith.divf %204, %205 : vector<1x1xf32>
    %207 = vector.broadcast %196 : vector<1x1xf32> to vector<8x1024xf32>
    %208 = arith.subf %189, %207 : vector<8x1024xf32>
    %cst_121 = arith.constant 9.99999974E-6 : f32
    %209 = vector.broadcast %cst_121 : f32 to vector<1x1xf32>
    %210 = arith.addf %206, %209 : vector<1x1xf32>
    %211 = math.rsqrt %210 : vector<1x1xf32>
    %212 = vector.broadcast %211 : vector<1x1xf32> to vector<8x1024xf32>
    %213 = arith.mulf %208, %212 : vector<8x1024xf32>
    %c0_122 = arith.constant 0 : index
    %c0_123 = arith.constant 0 : index
    %214 = vector.load %arg7[%c0_122, %c0_123] : memref<8x1xf32, #tpu.memory_space<vmem>>, vector<8x1xf32>
    %215 = vector.broadcast %214 : vector<8x1xf32> to vector<8x1024xf32>
    %216 = arith.mulf %213, %215 : vector<8x1024xf32>
    %c0_124 = arith.constant 0 : index
    %c0_125 = arith.constant 0 : index
    %217 = vector.load %arg8[%c0_124, %c0_125] : memref<8x1xf32, #tpu.memory_space<vmem>>, vector<8x1xf32>
    %218 = vector.broadcast %217 : vector<8x1xf32> to vector<8x1024xf32>
    %219 = arith.addf %216, %218 : vector<8x1024xf32>
    %220 = arith.addf %26, %219 : vector<8x1024xf32>
    %cst_126 = arith.constant 5.000000e-01 : f32
    %221 = vector.broadcast %cst_126 : f32 to vector<8x1024xf32>
    %222 = arith.mulf %221, %220 : vector<8x1024xf32>
    %cst_127 = arith.constant 0.707106769 : f32
    %223 = vector.broadcast %cst_127 : f32 to vector<8x1024xf32>
    %224 = arith.mulf %220, %223 : vector<8x1024xf32>
    %cst_128 = arith.constant 0.000000e+00 : f32
    %225 = vector.broadcast %cst_128 : f32 to vector<8x1024xf32>
    %226 = arith.cmpf oge, %224, %225 : vector<8x1024xf32>
    %cst_129 = arith.constant 1.000000e+00 : f32
    %cst_130 = arith.constant -1.000000e+00 : f32
    %227 = vector.broadcast %cst_129 : f32 to vector<8x1024xf32>
    %228 = vector.broadcast %cst_130 : f32 to vector<8x1024xf32>
    %229 = arith.select %226, %227, %228 : vector<8x1024xi1>, vector<8x1024xf32>
    %230 = math.absf %224 : vector<8x1024xf32>
    %cst_131 = arith.constant 0.327591091 : f32
    %231 = vector.broadcast %cst_131 : f32 to vector<8x1024xf32>
    %232 = arith.mulf %231, %230 : vector<8x1024xf32>
    %cst_132 = arith.constant 1.000000e+00 : f32
    %233 = vector.broadcast %cst_132 : f32 to vector<8x1024xf32>
    %234 = arith.addf %233, %232 : vector<8x1024xf32>
    %cst_133 = arith.constant 1.000000e+00 : f32
    %235 = vector.broadcast %cst_133 : f32 to vector<8x1024xf32>
    %236 = arith.divf %235, %234 : vector<8x1024xf32>
    %cst_134 = arith.constant 1.06140542 : f32
    %237 = vector.broadcast %cst_134 : f32 to vector<8x1024xf32>
    %238 = arith.mulf %237, %236 : vector<8x1024xf32>
    %cst_135 = arith.constant -1.45315206 : f32
    %239 = vector.broadcast %cst_135 : f32 to vector<8x1024xf32>
    %240 = arith.addf %238, %239 : vector<8x1024xf32>
    %241 = arith.mulf %240, %236 : vector<8x1024xf32>
    %cst_136 = arith.constant 1.42141378 : f32
    %242 = vector.broadcast %cst_136 : f32 to vector<8x1024xf32>
    %243 = arith.addf %241, %242 : vector<8x1024xf32>
    %244 = arith.mulf %243, %236 : vector<8x1024xf32>
    %cst_137 = arith.constant -0.284496725 : f32
    %245 = vector.broadcast %cst_137 : f32 to vector<8x1024xf32>
    %246 = arith.addf %244, %245 : vector<8x1024xf32>
    %247 = arith.mulf %246, %236 : vector<8x1024xf32>
    %cst_138 = arith.constant 0.254829586 : f32
    %248 = vector.broadcast %cst_138 : f32 to vector<8x1024xf32>
    %249 = arith.addf %247, %248 : vector<8x1024xf32>
    %250 = arith.mulf %249, %236 : vector<8x1024xf32>
    %cst_139 = arith.constant 0.000000e+00 : f32
    %251 = vector.broadcast %cst_139 : f32 to vector<8x1024xf32>
    %252 = arith.subf %251, %230 : vector<8x1024xf32>
    %253 = arith.mulf %252, %230 : vector<8x1024xf32>
    %254 = math.exp %253 : vector<8x1024xf32>
    %255 = arith.mulf %250, %254 : vector<8x1024xf32>
    %cst_140 = arith.constant 1.000000e+00 : f32
    %256 = vector.broadcast %cst_140 : f32 to vector<8x1024xf32>
    %257 = arith.subf %256, %255 : vector<8x1024xf32>
    %258 = arith.mulf %229, %257 : vector<8x1024xf32>
    %cst_141 = arith.constant 1.000000e+00 : f32
    %259 = vector.broadcast %cst_141 : f32 to vector<8x1024xf32>
    %260 = arith.addf %259, %258 : vector<8x1024xf32>
    %261 = arith.mulf %222, %260 : vector<8x1024xf32>
    %c0_142 = arith.constant 0 : index
    %c128_143 = arith.constant 128 : index
    %262 = vector.load %arg18[%c0_142, %c128_143] : memref<8x1280xf32, #tpu.memory_space<vmem>>, vector<8x1024xf32>
    tpu.vector_store %arg18[%c0_142, %c128_143], %261 {strides = array<i32>} : memref<8x1280xf32, #tpu.memory_space<vmem>>, vector<8x1024xf32>,
    %c0_144 = arith.constant 0 : index
    %c95_145 = arith.constant 95 : index
    %263 = vector.load %arg18[%c0_144, %c95_145] : memref<8x1280xf32, #tpu.memory_space<vmem>>, vector<8x1024xf32>
    %cst_146 = arith.constant 0.000000e+00 : f32
    %264 = vector.shape_cast %22 : vector<1x1024xi1> to vector<1x1024xi1>
    %265 = vector.broadcast %264 : vector<1x1024xi1> to vector<8x1024xi1>
    %266 = vector.broadcast %cst_146 : f32 to vector<8x1024xf32>
    %267 = arith.select %265, %263, %266 : vector<8x1024xi1>, vector<8x1024xf32>
    %c0_147 = arith.constant 0 : index
    %c0_148 = arith.constant 0 : index
    %268 = vector.load %arg19[%c0_147, %c0_148] : memref<72x1024xf32, #tpu.memory_space<vmem>>, vector<8x1024xf32>
    tpu.vector_store %arg19[%c0_147, %c0_148], %267 {strides = array<i32>} : memref<72x1024xf32, #tpu.memory_space<vmem>>, vector<8x1024xf32>,
    %c0_149 = arith.constant 0 : index
    %c96_150 = arith.constant 96 : index
    %269 = vector.load %arg18[%c0_149, %c96_150] : memref<8x1280xf32, #tpu.memory_space<vmem>>, vector<8x1024xf32>
    %c8_151 = arith.constant 8 : index
    %c0_152 = arith.constant 0 : index
    %270 = vector.load %arg19[%c8_151, %c0_152] : memref<72x1024xf32, #tpu.memory_space<vmem>>, vector<8x1024xf32>
    tpu.vector_store %arg19[%c8_151, %c0_152], %269 {strides = array<i32>} : memref<72x1024xf32, #tpu.memory_space<vmem>>, vector<8x1024xf32>,
    %c0_153 = arith.constant 0 : index
    %c97_154 = arith.constant 97 : index
    %271 = vector.load %arg18[%c0_153, %c97_154] : memref<8x1280xf32, #tpu.memory_space<vmem>>, vector<8x1024xf32>
    %cst_155 = arith.constant 0.000000e+00 : f32
    %272 = vector.shape_cast %24 : vector<1x1024xi1> to vector<1x1024xi1>
    %273 = vector.broadcast %272 : vector<1x1024xi1> to vector<8x1024xi1>
    %274 = vector.broadcast %cst_155 : f32 to vector<8x1024xf32>
    %275 = arith.select %273, %271, %274 : vector<8x1024xi1>, vector<8x1024xf32>
    %c16_156 = arith.constant 16 : index
    %c0_157 = arith.constant 0 : index
    %276 = vector.load %arg19[%c16_156, %c0_157] : memref<72x1024xf32, #tpu.memory_space<vmem>>, vector<8x1024xf32>
    tpu.vector_store %arg19[%c16_156, %c0_157], %275 {strides = array<i32>} : memref<72x1024xf32, #tpu.memory_space<vmem>>, vector<8x1024xf32>,
    %c0_158 = arith.constant 0 : index
    %c127_159 = arith.constant 127 : index
    %277 = vector.load %arg18[%c0_158, %c127_159] : memref<8x1280xf32, #tpu.memory_space<vmem>>, vector<8x1024xf32>
    %cst_160 = arith.constant 0.000000e+00 : f32
    %278 = vector.shape_cast %22 : vector<1x1024xi1> to vector<1x1024xi1>
    %279 = vector.broadcast %278 : vector<1x1024xi1> to vector<8x1024xi1>
    %280 = vector.broadcast %cst_160 : f32 to vector<8x1024xf32>
    %281 = arith.select %279, %277, %280 : vector<8x1024xi1>, vector<8x1024xf32>
    %c24_161 = arith.constant 24 : index
    %c0_162 = arith.constant 0 : index
    %282 = vector.load %arg19[%c24_161, %c0_162] : memref<72x1024xf32, #tpu.memory_space<vmem>>, vector<8x1024xf32>
    tpu.vector_store %arg19[%c24_161, %c0_162], %281 {strides = array<i32>} : memref<72x1024xf32, #tpu.memory_space<vmem>>, vector<8x1024xf32>,
    %c0_163 = arith.constant 0 : index
    %c128_164 = arith.constant 128 : index
    %283 = vector.load %arg18[%c0_163, %c128_164] : memref<8x1280xf32, #tpu.memory_space<vmem>>, vector<8x1024xf32>
    %c32_165 = arith.constant 32 : index
    %c0_166 = arith.constant 0 : index
    %284 = vector.load %arg19[%c32_165, %c0_166] : memref<72x1024xf32, #tpu.memory_space<vmem>>, vector<8x1024xf32>
    tpu.vector_store %arg19[%c32_165, %c0_166], %283 {strides = array<i32>} : memref<72x1024xf32, #tpu.memory_space<vmem>>, vector<8x1024xf32>,
    %c0_167 = arith.constant 0 : index
    %c129_168 = arith.constant 129 : index
    %285 = vector.load %arg18[%c0_167, %c129_168] : memref<8x1280xf32, #tpu.memory_space<vmem>>, vector<8x1024xf32>
    %cst_169 = arith.constant 0.000000e+00 : f32
    %286 = vector.shape_cast %24 : vector<1x1024xi1> to vector<1x1024xi1>
    %287 = vector.broadcast %286 : vector<1x1024xi1> to vector<8x1024xi1>
    %288 = vector.broadcast %cst_169 : f32 to vector<8x1024xf32>
    %289 = arith.select %287, %285, %288 : vector<8x1024xi1>, vector<8x1024xf32>
    %c40_170 = arith.constant 40 : index
    %c0_171 = arith.constant 0 : index
    %290 = vector.load %arg19[%c40_170, %c0_171] : memref<72x1024xf32, #tpu.memory_space<vmem>>, vector<8x1024xf32>
    tpu.vector_store %arg19[%c40_170, %c0_171], %289 {strides = array<i32>} : memref<72x1024xf32, #tpu.memory_space<vmem>>, vector<8x1024xf32>,
    %c0_172 = arith.constant 0 : index
    %c159_173 = arith.constant 159 : index
    %291 = vector.load %arg18[%c0_172, %c159_173] : memref<8x1280xf32, #tpu.memory_space<vmem>>, vector<8x1024xf32>
    %cst_174 = arith.constant 0.000000e+00 : f32
    %292 = vector.shape_cast %22 : vector<1x1024xi1> to vector<1x1024xi1>
    %293 = vector.broadcast %292 : vector<1x1024xi1> to vector<8x1024xi1>
    %294 = vector.broadcast %cst_174 : f32 to vector<8x1024xf32>
    %295 = arith.select %293, %291, %294 : vector<8x1024xi1>, vector<8x1024xf32>
    %c48_175 = arith.constant 48 : index
    %c0_176 = arith.constant 0 : index
    %296 = vector.load %arg19[%c48_175, %c0_176] : memref<72x1024xf32, #tpu.memory_space<vmem>>, vector<8x1024xf32>
    tpu.vector_store %arg19[%c48_175, %c0_176], %295 {strides = array<i32>} : memref<72x1024xf32, #tpu.memory_space<vmem>>, vector<8x1024xf32>,
    %c0_177 = arith.constant 0 : index
    %c160_178 = arith.constant 160 : index
    %297 = vector.load %arg18[%c0_177, %c160_178] : memref<8x1280xf32, #tpu.memory_space<vmem>>, vector<8x1024xf32>
    %c56_179 = arith.constant 56 : index
    %c0_180 = arith.constant 0 : index
    %298 = vector.load %arg19[%c56_179, %c0_180] : memref<72x1024xf32, #tpu.memory_space<vmem>>, vector<8x1024xf32>
    tpu.vector_store %arg19[%c56_179, %c0_180], %297 {strides = array<i32>} : memref<72x1024xf32, #tpu.memory_space<vmem>>, vector<8x1024xf32>,
    %c0_181 = arith.constant 0 : index
    %c161_182 = arith.constant 161 : index
    %299 = vector.load %arg18[%c0_181, %c161_182] : memref<8x1280xf32, #tpu.memory_space<vmem>>, vector<8x1024xf32>
    %cst_183 = arith.constant 0.000000e+00 : f32
    %300 = vector.shape_cast %24 : vector<1x1024xi1> to vector<1x1024xi1>
    %301 = vector.broadcast %300 : vector<1x1024xi1> to vector<8x1024xi1>
    %302 = vector.broadcast %cst_183 : f32 to vector<8x1024xf32>
    %303 = arith.select %301, %299, %302 : vector<8x1024xi1>, vector<8x1024xf32>
    %c64_184 = arith.constant 64 : index
    %c0_185 = arith.constant 0 : index
    %304 = vector.load %arg19[%c64_184, %c0_185] : memref<72x1024xf32, #tpu.memory_space<vmem>>, vector<8x1024xf32>
    tpu.vector_store %arg19[%c64_184, %c0_185], %303 {strides = array<i32>} : memref<72x1024xf32, #tpu.memory_space<vmem>>, vector<8x1024xf32>,
    %c0_186 = arith.constant 0 : index
    %c0_187 = arith.constant 0 : index
    %305 = vector.load %arg19[%c0_186, %c0_187] : memref<72x1024xf32, #tpu.memory_space<vmem>>, vector<72x1024xf32>
    %c0_188 = arith.constant 0 : index
    %c0_189 = arith.constant 0 : index
    %306 = vector.load %arg9[%c0_188, %c0_189] : memref<4x72xf32, #tpu.memory_space<vmem>>, vector<4x72xf32>
    %cst_190 = arith.constant dense<0.000000e+00> : vector<4x1024xf32>
    %307 = tpu.matmul %306, %305, %cst_190 {dimension_numbers = #tpu.dot_dimension_numbers<[1], [0], [0], [1], [0, 0, 1, 1], [], []>} : vector<4x72xf32>, vector<72x1024xf32>, vector<4x1024xf32> -> vector<4x1024xf32>
    %308 = vector.shape_cast %307 : vector<4x1024xf32> to vector<1x4x1024xf32>
    %cst_191 = arith.constant dense<0.000000e+00> : vector<1xf32>
    %309 = vector.multi_reduction <add>, %308, %cst_191 [1, 2] : vector<1x4x1024xf32> to vector<1xf32>
    %310 = vector.shape_cast %309 : vector<1xf32> to vector<1x1x1xf32>
    %311 = vector.extract %310[0, 0, 0] : f32 from vector<1x1x1xf32>
    %312 = vector.broadcast %311 : f32 to vector<1x1xf32>
    %cst_192 = arith.constant 4.096000e+03 : f32
    %313 = vector.broadcast %cst_192 : f32 to vector<1x1xf32>
    %314 = arith.divf %312, %313 : vector<1x1xf32>
    %315 = vector.broadcast %314 : vector<1x1xf32> to vector<4x1024xf32>
    %316 = arith.subf %307, %315 : vector<4x1024xf32>
    %317 = arith.mulf %316, %316 : vector<4x1024xf32>
    %318 = vector.shape_cast %317 : vector<4x1024xf32> to vector<1x4x1024xf32>
    %cst_193 = arith.constant dense<0.000000e+00> : vector<1xf32>
    %319 = vector.multi_reduction <add>, %318, %cst_193 [1, 2] : vector<1x4x1024xf32> to vector<1xf32>
    %320 = vector.shape_cast %319 : vector<1xf32> to vector<1x1x1xf32>
    %321 = vector.extract %320[0, 0, 0] : f32 from vector<1x1x1xf32>
    %322 = vector.broadcast %321 : f32 to vector<1x1xf32>
    %cst_194 = arith.constant 4.096000e+03 : f32
    %323 = vector.broadcast %cst_194 : f32 to vector<1x1xf32>
    %324 = arith.divf %322, %323 : vector<1x1xf32>
    %325 = vector.broadcast %314 : vector<1x1xf32> to vector<4x1024xf32>
    %326 = arith.subf %307, %325 : vector<4x1024xf32>
    %cst_195 = arith.constant 9.99999974E-6 : f32
    %327 = vector.broadcast %cst_195 : f32 to vector<1x1xf32>
    %328 = arith.addf %324, %327 : vector<1x1xf32>
    %329 = math.rsqrt %328 : vector<1x1xf32>
    %330 = vector.broadcast %329 : vector<1x1xf32> to vector<4x1024xf32>
    %331 = arith.mulf %326, %330 : vector<4x1024xf32>
    %c0_196 = arith.constant 0 : index
    %c0_197 = arith.constant 0 : index
    %332 = vector.load %arg10[%c0_196, %c0_197] : memref<4x1xf32, #tpu.memory_space<vmem>>, vector<4x1xf32>
    %333 = vector.broadcast %332 : vector<4x1xf32> to vector<4x1024xf32>
    %334 = arith.mulf %331, %333 : vector<4x1024xf32>
    %c0_198 = arith.constant 0 : index
    %c0_199 = arith.constant 0 : index
    %335 = vector.load %arg11[%c0_198, %c0_199] : memref<4x1xf32, #tpu.memory_space<vmem>>, vector<4x1xf32>
    %336 = vector.broadcast %335 : vector<4x1xf32> to vector<4x1024xf32>
    %337 = arith.addf %334, %336 : vector<4x1024xf32>
    %cst_200 = arith.constant 5.000000e-01 : f32
    %338 = vector.broadcast %cst_200 : f32 to vector<4x1024xf32>
    %339 = arith.mulf %338, %337 : vector<4x1024xf32>
    %cst_201 = arith.constant 0.707106769 : f32
    %340 = vector.broadcast %cst_201 : f32 to vector<4x1024xf32>
    %341 = arith.mulf %337, %340 : vector<4x1024xf32>
    %cst_202 = arith.constant 0.000000e+00 : f32
    %342 = vector.broadcast %cst_202 : f32 to vector<4x1024xf32>
    %343 = arith.cmpf oge, %341, %342 : vector<4x1024xf32>
    %cst_203 = arith.constant 1.000000e+00 : f32
    %cst_204 = arith.constant -1.000000e+00 : f32
    %344 = vector.broadcast %cst_203 : f32 to vector<4x1024xf32>
    %345 = vector.broadcast %cst_204 : f32 to vector<4x1024xf32>
    %346 = arith.select %343, %344, %345 : vector<4x1024xi1>, vector<4x1024xf32>
    %347 = math.absf %341 : vector<4x1024xf32>
    %cst_205 = arith.constant 0.327591091 : f32
    %348 = vector.broadcast %cst_205 : f32 to vector<4x1024xf32>
    %349 = arith.mulf %348, %347 : vector<4x1024xf32>
    %cst_206 = arith.constant 1.000000e+00 : f32
    %350 = vector.broadcast %cst_206 : f32 to vector<4x1024xf32>
    %351 = arith.addf %350, %349 : vector<4x1024xf32>
    %cst_207 = arith.constant 1.000000e+00 : f32
    %352 = vector.broadcast %cst_207 : f32 to vector<4x1024xf32>
    %353 = arith.divf %352, %351 : vector<4x1024xf32>
    %cst_208 = arith.constant 1.06140542 : f32
    %354 = vector.broadcast %cst_208 : f32 to vector<4x1024xf32>
    %355 = arith.mulf %354, %353 : vector<4x1024xf32>
    %cst_209 = arith.constant -1.45315206 : f32
    %356 = vector.broadcast %cst_209 : f32 to vector<4x1024xf32>
    %357 = arith.addf %355, %356 : vector<4x1024xf32>
    %358 = arith.mulf %357, %353 : vector<4x1024xf32>
    %cst_210 = arith.constant 1.42141378 : f32
    %359 = vector.broadcast %cst_210 : f32 to vector<4x1024xf32>
    %360 = arith.addf %358, %359 : vector<4x1024xf32>
    %361 = arith.mulf %360, %353 : vector<4x1024xf32>
    %cst_211 = arith.constant -0.284496725 : f32
    %362 = vector.broadcast %cst_211 : f32 to vector<4x1024xf32>
    %363 = arith.addf %361, %362 : vector<4x1024xf32>
    %364 = arith.mulf %363, %353 : vector<4x1024xf32>
    %cst_212 = arith.constant 0.254829586 : f32
    %365 = vector.broadcast %cst_212 : f32 to vector<4x1024xf32>
    %366 = arith.addf %364, %365 : vector<4x1024xf32>
    %367 = arith.mulf %366, %353 : vector<4x1024xf32>
    %cst_213 = arith.constant 0.000000e+00 : f32
    %368 = vector.broadcast %cst_213 : f32 to vector<4x1024xf32>
    %369 = arith.subf %368, %347 : vector<4x1024xf32>
    %370 = arith.mulf %369, %347 : vector<4x1024xf32>
    %371 = math.exp %370 : vector<4x1024xf32>
    %372 = arith.mulf %367, %371 : vector<4x1024xf32>
    %cst_214 = arith.constant 1.000000e+00 : f32
    %373 = vector.broadcast %cst_214 : f32 to vector<4x1024xf32>
    %374 = arith.subf %373, %372 : vector<4x1024xf32>
    %375 = arith.mulf %346, %374 : vector<4x1024xf32>
    %cst_215 = arith.constant 1.000000e+00 : f32
    %376 = vector.broadcast %cst_215 : f32 to vector<4x1024xf32>
    %377 = arith.addf %376, %375 : vector<4x1024xf32>
    %378 = arith.mulf %339, %377 : vector<4x1024xf32>
    %c0_216 = arith.constant 0 : index
    %c128_217 = arith.constant 128 : index
    %379 = vector.load %arg18[%c0_216, %c128_217] : memref<8x1280xf32, #tpu.memory_space<vmem>>, vector<4x1024xf32>
    tpu.vector_store %arg18[%c0_216, %c128_217], %378 {strides = array<i32>} : memref<8x1280xf32, #tpu.memory_space<vmem>>, vector<4x1024xf32>,
    %c0_218 = arith.constant 0 : index
    %c95_219 = arith.constant 95 : index
    %380 = vector.load %arg18[%c0_218, %c95_219] : memref<8x1280xf32, #tpu.memory_space<vmem>>, vector<4x1024xf32>
    %cst_220 = arith.constant 0.000000e+00 : f32
    %381 = vector.shape_cast %22 : vector<1x1024xi1> to vector<1x1024xi1>
    %382 = vector.broadcast %381 : vector<1x1024xi1> to vector<4x1024xi1>
    %383 = vector.broadcast %cst_220 : f32 to vector<4x1024xf32>
    %384 = arith.select %382, %380, %383 : vector<4x1024xi1>, vector<4x1024xf32>
    %c0_221 = arith.constant 0 : index
    %c0_222 = arith.constant 0 : index
    %385 = vector.load %arg19[%c0_221, %c0_222] : memref<72x1024xf32, #tpu.memory_space<vmem>>, vector<4x1024xf32>
    tpu.vector_store %arg19[%c0_221, %c0_222], %384 {strides = array<i32>} : memref<72x1024xf32, #tpu.memory_space<vmem>>, vector<4x1024xf32>,
    %c0_223 = arith.constant 0 : index
    %c96_224 = arith.constant 96 : index
    %386 = vector.load %arg18[%c0_223, %c96_224] : memref<8x1280xf32, #tpu.memory_space<vmem>>, vector<4x1024xf32>
    %c8_225 = arith.constant 8 : index
    %c0_226 = arith.constant 0 : index
    %387 = vector.load %arg19[%c8_225, %c0_226] : memref<72x1024xf32, #tpu.memory_space<vmem>>, vector<4x1024xf32>
    tpu.vector_store %arg19[%c8_225, %c0_226], %386 {strides = array<i32>} : memref<72x1024xf32, #tpu.memory_space<vmem>>, vector<4x1024xf32>,
    %c0_227 = arith.constant 0 : index
    %c97_228 = arith.constant 97 : index
    %388 = vector.load %arg18[%c0_227, %c97_228] : memref<8x1280xf32, #tpu.memory_space<vmem>>, vector<4x1024xf32>
    %cst_229 = arith.constant 0.000000e+00 : f32
    %389 = vector.shape_cast %24 : vector<1x1024xi1> to vector<1x1024xi1>
    %390 = vector.broadcast %389 : vector<1x1024xi1> to vector<4x1024xi1>
    %391 = vector.broadcast %cst_229 : f32 to vector<4x1024xf32>
    %392 = arith.select %390, %388, %391 : vector<4x1024xi1>, vector<4x1024xf32>
    %c16_230 = arith.constant 16 : index
    %c0_231 = arith.constant 0 : index
    %393 = vector.load %arg19[%c16_230, %c0_231] : memref<72x1024xf32, #tpu.memory_space<vmem>>, vector<4x1024xf32>
    tpu.vector_store %arg19[%c16_230, %c0_231], %392 {strides = array<i32>} : memref<72x1024xf32, #tpu.memory_space<vmem>>, vector<4x1024xf32>,
    %c0_232 = arith.constant 0 : index
    %c127_233 = arith.constant 127 : index
    %394 = vector.load %arg18[%c0_232, %c127_233] : memref<8x1280xf32, #tpu.memory_space<vmem>>, vector<4x1024xf32>
    %cst_234 = arith.constant 0.000000e+00 : f32
    %395 = vector.shape_cast %22 : vector<1x1024xi1> to vector<1x1024xi1>
    %396 = vector.broadcast %395 : vector<1x1024xi1> to vector<4x1024xi1>
    %397 = vector.broadcast %cst_234 : f32 to vector<4x1024xf32>
    %398 = arith.select %396, %394, %397 : vector<4x1024xi1>, vector<4x1024xf32>
    %c24_235 = arith.constant 24 : index
    %c0_236 = arith.constant 0 : index
    %399 = vector.load %arg19[%c24_235, %c0_236] : memref<72x1024xf32, #tpu.memory_space<vmem>>, vector<4x1024xf32>
    tpu.vector_store %arg19[%c24_235, %c0_236], %398 {strides = array<i32>} : memref<72x1024xf32, #tpu.memory_space<vmem>>, vector<4x1024xf32>,
    %c0_237 = arith.constant 0 : index
    %c128_238 = arith.constant 128 : index
    %400 = vector.load %arg18[%c0_237, %c128_238] : memref<8x1280xf32, #tpu.memory_space<vmem>>, vector<4x1024xf32>
    %c32_239 = arith.constant 32 : index
    %c0_240 = arith.constant 0 : index
    %401 = vector.load %arg19[%c32_239, %c0_240] : memref<72x1024xf32, #tpu.memory_space<vmem>>, vector<4x1024xf32>
    tpu.vector_store %arg19[%c32_239, %c0_240], %400 {strides = array<i32>} : memref<72x1024xf32, #tpu.memory_space<vmem>>, vector<4x1024xf32>,
    %c0_241 = arith.constant 0 : index
    %c129_242 = arith.constant 129 : index
    %402 = vector.load %arg18[%c0_241, %c129_242] : memref<8x1280xf32, #tpu.memory_space<vmem>>, vector<4x1024xf32>
    %cst_243 = arith.constant 0.000000e+00 : f32
    %403 = vector.shape_cast %24 : vector<1x1024xi1> to vector<1x1024xi1>
    %404 = vector.broadcast %403 : vector<1x1024xi1> to vector<4x1024xi1>
    %405 = vector.broadcast %cst_243 : f32 to vector<4x1024xf32>
    %406 = arith.select %404, %402, %405 : vector<4x1024xi1>, vector<4x1024xf32>
    %c40_244 = arith.constant 40 : index
    %c0_245 = arith.constant 0 : index
    %407 = vector.load %arg19[%c40_244, %c0_245] : memref<72x1024xf32, #tpu.memory_space<vmem>>, vector<4x1024xf32>
    tpu.vector_store %arg19[%c40_244, %c0_245], %406 {strides = array<i32>} : memref<72x1024xf32, #tpu.memory_space<vmem>>, vector<4x1024xf32>,
    %c0_246 = arith.constant 0 : index
    %c159_247 = arith.constant 159 : index
    %408 = vector.load %arg18[%c0_246, %c159_247] : memref<8x1280xf32, #tpu.memory_space<vmem>>, vector<4x1024xf32>
    %cst_248 = arith.constant 0.000000e+00 : f32
    %409 = vector.shape_cast %22 : vector<1x1024xi1> to vector<1x1024xi1>
    %410 = vector.broadcast %409 : vector<1x1024xi1> to vector<4x1024xi1>
    %411 = vector.broadcast %cst_248 : f32 to vector<4x1024xf32>
    %412 = arith.select %410, %408, %411 : vector<4x1024xi1>, vector<4x1024xf32>
    %c48_249 = arith.constant 48 : index
    %c0_250 = arith.constant 0 : index
    %413 = vector.load %arg19[%c48_249, %c0_250] : memref<72x1024xf32, #tpu.memory_space<vmem>>, vector<4x1024xf32>
    tpu.vector_store %arg19[%c48_249, %c0_250], %412 {strides = array<i32>} : memref<72x1024xf32, #tpu.memory_space<vmem>>, vector<4x1024xf32>,
    %c0_251 = arith.constant 0 : index
    %c160_252 = arith.constant 160 : index
    %414 = vector.load %arg18[%c0_251, %c160_252] : memref<8x1280xf32, #tpu.memory_space<vmem>>, vector<4x1024xf32>
    %c56_253 = arith.constant 56 : index
    %c0_254 = arith.constant 0 : index
    %415 = vector.load %arg19[%c56_253, %c0_254] : memref<72x1024xf32, #tpu.memory_space<vmem>>, vector<4x1024xf32>
    tpu.vector_store %arg19[%c56_253, %c0_254], %414 {strides = array<i32>} : memref<72x1024xf32, #tpu.memory_space<vmem>>, vector<4x1024xf32>,
    %c0_255 = arith.constant 0 : index
    %c161_256 = arith.constant 161 : index
    %416 = vector.load %arg18[%c0_255, %c161_256] : memref<8x1280xf32, #tpu.memory_space<vmem>>, vector<4x1024xf32>
    %cst_257 = arith.constant 0.000000e+00 : f32
    %417 = vector.shape_cast %24 : vector<1x1024xi1> to vector<1x1024xi1>
    %418 = vector.broadcast %417 : vector<1x1024xi1> to vector<4x1024xi1>
    %419 = vector.broadcast %cst_257 : f32 to vector<4x1024xf32>
    %420 = arith.select %418, %416, %419 : vector<4x1024xi1>, vector<4x1024xf32>
    %c64_258 = arith.constant 64 : index
    %c0_259 = arith.constant 0 : index
    %421 = vector.load %arg19[%c64_258, %c0_259] : memref<72x1024xf32, #tpu.memory_space<vmem>>, vector<4x1024xf32>
    tpu.vector_store %arg19[%c64_258, %c0_259], %420 {strides = array<i32>} : memref<72x1024xf32, #tpu.memory_space<vmem>>, vector<4x1024xf32>,
    %c0_260 = arith.constant 0 : index
    %c0_261 = arith.constant 0 : index
    %422 = vector.load %arg19[%c0_260, %c0_261] : memref<72x1024xf32, #tpu.memory_space<vmem>>, vector<72x1024xf32>
    %c0_262 = arith.constant 0 : index
    %c0_263 = arith.constant 0 : index
    %423 = vector.load %arg12[%c0_262, %c0_263] : memref<4x72xf32, #tpu.memory_space<vmem>>, vector<4x72xf32>
    %cst_264 = arith.constant dense<0.000000e+00> : vector<4x1024xf32>
    %424 = tpu.matmul %423, %422, %cst_264 {dimension_numbers = #tpu.dot_dimension_numbers<[1], [0], [0], [1], [0, 0, 1, 1], [], []>} : vector<4x72xf32>, vector<72x1024xf32>, vector<4x1024xf32> -> vector<4x1024xf32>
    %425 = vector.shape_cast %424 : vector<4x1024xf32> to vector<1x4x1024xf32>
    %cst_265 = arith.constant dense<0.000000e+00> : vector<1xf32>
    %426 = vector.multi_reduction <add>, %425, %cst_265 [1, 2] : vector<1x4x1024xf32> to vector<1xf32>
    %427 = vector.shape_cast %426 : vector<1xf32> to vector<1x1x1xf32>
    %428 = vector.extract %427[0, 0, 0] : f32 from vector<1x1x1xf32>
    %429 = vector.broadcast %428 : f32 to vector<1x1xf32>
    %cst_266 = arith.constant 4.096000e+03 : f32
    %430 = vector.broadcast %cst_266 : f32 to vector<1x1xf32>
    %431 = arith.divf %429, %430 : vector<1x1xf32>
    %432 = vector.broadcast %431 : vector<1x1xf32> to vector<4x1024xf32>
    %433 = arith.subf %424, %432 : vector<4x1024xf32>
    %434 = arith.mulf %433, %433 : vector<4x1024xf32>
    %435 = vector.shape_cast %434 : vector<4x1024xf32> to vector<1x4x1024xf32>
    %cst_267 = arith.constant dense<0.000000e+00> : vector<1xf32>
    %436 = vector.multi_reduction <add>, %435, %cst_267 [1, 2] : vector<1x4x1024xf32> to vector<1xf32>
    %437 = vector.shape_cast %436 : vector<1xf32> to vector<1x1x1xf32>
    %438 = vector.extract %437[0, 0, 0] : f32 from vector<1x1x1xf32>
    %439 = vector.broadcast %438 : f32 to vector<1x1xf32>
    %cst_268 = arith.constant 4.096000e+03 : f32
    %440 = vector.broadcast %cst_268 : f32 to vector<1x1xf32>
    %441 = arith.divf %439, %440 : vector<1x1xf32>
    %442 = vector.broadcast %431 : vector<1x1xf32> to vector<4x1024xf32>
    %443 = arith.subf %424, %442 : vector<4x1024xf32>
    %cst_269 = arith.constant 9.99999974E-6 : f32
    %444 = vector.broadcast %cst_269 : f32 to vector<1x1xf32>
    %445 = arith.addf %441, %444 : vector<1x1xf32>
    %446 = math.rsqrt %445 : vector<1x1xf32>
    %447 = vector.broadcast %446 : vector<1x1xf32> to vector<4x1024xf32>
    %448 = arith.mulf %443, %447 : vector<4x1024xf32>
    %c0_270 = arith.constant 0 : index
    %c0_271 = arith.constant 0 : index
    %449 = vector.load %arg13[%c0_270, %c0_271] : memref<4x1xf32, #tpu.memory_space<vmem>>, vector<4x1xf32>
    %450 = vector.broadcast %449 : vector<4x1xf32> to vector<4x1024xf32>
    %451 = arith.mulf %448, %450 : vector<4x1024xf32>
    %c0_272 = arith.constant 0 : index
    %c0_273 = arith.constant 0 : index
    %452 = vector.load %arg14[%c0_272, %c0_273] : memref<4x1xf32, #tpu.memory_space<vmem>>, vector<4x1xf32>
    %453 = vector.broadcast %452 : vector<4x1xf32> to vector<4x1024xf32>
    %454 = arith.addf %451, %453 : vector<4x1024xf32>
    %c0_274 = arith.constant 0 : index
    %c0_275 = arith.constant 0 : index
    %c0_276 = arith.constant 0 : index
    %455 = vector.load %arg2[%c0_274, %c0_275, %c0_276] : memref<1x1x32xf32, #tpu.memory_space<vmem>>, vector<1x1x32xf32>
    %456 = vector.shape_cast %455 : vector<1x1x32xf32> to vector<1x32xf32>
    %cst_277 = arith.constant 0.000000e+00 : f32
    %457 = vector.broadcast %cst_277 : f32 to vector<1x32xf32>
    %458 = arith.subf %457, %456 : vector<1x32xf32>
    %459 = math.exp %458 : vector<1x32xf32>
    %cst_278 = arith.constant 1.000000e+00 : f32
    %460 = vector.broadcast %cst_278 : f32 to vector<1x32xf32>
    %461 = arith.addf %460, %459 : vector<1x32xf32>
    %cst_279 = arith.constant 1.000000e+00 : f32
    %462 = vector.broadcast %cst_279 : f32 to vector<1x32xf32>
    %463 = arith.divf %462, %461 : vector<1x32xf32>
    %464 = arith.mulf %456, %463 : vector<1x32xf32>
    %c0_280 = arith.constant 0 : index
    %c0_281 = arith.constant 0 : index
    %465 = vector.load %arg15[%c0_280, %c0_281] : memref<4x32xf32, #tpu.memory_space<vmem>>, vector<4x32xf32>
    %466 = vector.broadcast %464 : vector<1x32xf32> to vector<4x32xf32>
    %467 = arith.mulf %465, %466 : vector<4x32xf32>
    %cst_282 = arith.constant dense<0.000000e+00> : vector<4xf32>
    %468 = vector.multi_reduction <add>, %467, %cst_282 [1] : vector<4x32xf32> to vector<4xf32>
    %469 = vector.shape_cast %468 : vector<4xf32> to vector<4x1xf32>
    %c0_283 = arith.constant 0 : index
    %c0_284 = arith.constant 0 : index
    %470 = vector.load %arg16[%c0_283, %c0_284] : memref<4x1xf32, #tpu.memory_space<vmem>>, vector<4x1xf32>
    %471 = arith.addf %469, %470 : vector<4x1xf32>
    %472 = vector.broadcast %471 : vector<4x1xf32> to vector<4x1024xf32>
    %473 = arith.addf %454, %472 : vector<4x1024xf32>
    %474 = vector.shape_cast %473 : vector<4x1024xf32> to vector<1x4x1024xf32>
    %c0_285 = arith.constant 0 : index
    %c0_286 = arith.constant 0 : index
    %c0_287 = arith.constant 0 : index
    %475 = vector.load %arg17[%c0_285, %c0_286, %c0_287] : memref<1x4x1024xf32, #tpu.memory_space<vmem>>, vector<1x4x1024xf32>
    tpu.vector_store %arg17[%c0_285, %c0_286, %c0_287], %474 {strides = array<i32>} : memref<1x4x1024xf32, #tpu.memory_space<vmem>>, vector<1x4x1024xf32>,
    return
  }
  func.func @transform_0(%arg0: i32) -> (i32, i32, i32) {
    %c0_i32 = arith.constant 0 : i32
    %c0_i32_0 = arith.constant 0 : i32
    %c0_i32_1 = arith.constant 0 : i32
    return %arg0, %c0_i32, %c0_i32_0 : i32, i32, i32
  }
  func.func @transform_1(%arg0: i32) -> (i32, i32, i32) {
    %c0_i32 = arith.constant 0 : i32
    %c0_i32_0 = arith.constant 0 : i32
    %c0_i32_1 = arith.constant 0 : i32
    return %arg0, %c0_i32, %c0_i32_0 : i32, i32, i32
  }
  func.func @transform_2(%arg0: i32) -> (i32, i32) {
    %c0_i32 = arith.constant 0 : i32
    %c0_i32_0 = arith.constant 0 : i32
    %c0_i32_1 = arith.constant 0 : i32
    return %c0_i32, %c0_i32_0 : i32, i32
  }
  func.func @transform_3(%arg0: i32) -> (i32, i32) {
    %c0_i32 = arith.constant 0 : i32
    %c0_i32_0 = arith.constant 0 : i32
    %c0_i32_1 = arith.constant 0 : i32
    return %c0_i32, %c0_i32_0 : i32, i32
  }
  func.func @transform_4(%arg0: i32) -> (i32, i32) {
    %c0_i32 = arith.constant 0 : i32
    %c0_i32_0 = arith.constant 0 : i32
    %c0_i32_1 = arith.constant 0 : i32
    return %c0_i32, %c0_i32_0 : i32, i32
  }
  func.func @transform_5(%arg0: i32) -> (i32, i32) {
    %c0_i32 = arith.constant 0 : i32
    %c0_i32_0 = arith.constant 0 : i32
    %c0_i32_1 = arith.constant 0 : i32
    return %c0_i32, %c0_i32_0 : i32, i32
  }
  func.func @transform_6(%arg0: i32) -> (i32, i32) {
    %c0_i32 = arith.constant 0 : i32
    %c0_i32_0 = arith.constant 0 : i32
    %c0_i32_1 = arith.constant 0 : i32
    return %c0_i32, %c0_i32_0 : i32, i32
  }
  func.func @transform_7(%arg0: i32) -> (i32, i32) {
    %c0_i32 = arith.constant 0 : i32
    %c0_i32_0 = arith.constant 0 : i32
    %c0_i32_1 = arith.constant 0 : i32
    return %c0_i32, %c0_i32_0 : i32, i32
  }
  func.func @transform_8(%arg0: i32) -> (i32, i32) {
    %c0_i32 = arith.constant 0 : i32
    %c0_i32_0 = arith.constant 0 : i32
    %c0_i32_1 = arith.constant 0 : i32
    return %c0_i32, %c0_i32_0 : i32, i32
  }
  func.func @transform_9(%arg0: i32) -> (i32, i32) {
    %c0_i32 = arith.constant 0 : i32
    %c0_i32_0 = arith.constant 0 : i32
    %c0_i32_1 = arith.constant 0 : i32
    return %c0_i32, %c0_i32_0 : i32, i32
  }
  func.func @transform_10(%arg0: i32) -> (i32, i32) {
    %c0_i32 = arith.constant 0 : i32
    %c0_i32_0 = arith.constant 0 : i32
    %c0_i32_1 = arith.constant 0 : i32
    return %c0_i32, %c0_i32_0 : i32, i32
  }
  func.func @transform_11(%arg0: i32) -> (i32, i32) {
    %c0_i32 = arith.constant 0 : i32
    %c0_i32_0 = arith.constant 0 : i32
    %c0_i32_1 = arith.constant 0 : i32
    return %c0_i32, %c0_i32_0 : i32, i32
  }
  func.func @transform_12(%arg0: i32) -> (i32, i32) {
    %c0_i32 = arith.constant 0 : i32
    %c0_i32_0 = arith.constant 0 : i32
    %c0_i32_1 = arith.constant 0 : i32
    return %c0_i32, %c0_i32_0 : i32, i32
  }
  func.func @transform_13(%arg0: i32) -> (i32, i32) {
    %c0_i32 = arith.constant 0 : i32
    %c0_i32_0 = arith.constant 0 : i32
    %c0_i32_1 = arith.constant 0 : i32
    return %c0_i32, %c0_i32_0 : i32, i32
  }
  func.func @transform_14(%arg0: i32) -> (i32, i32) {
    %c0_i32 = arith.constant 0 : i32
    %c0_i32_0 = arith.constant 0 : i32
    %c0_i32_1 = arith.constant 0 : i32
    return %c0_i32, %c0_i32_0 : i32, i32
  }
  func.func @transform_15(%arg0: i32) -> (i32, i32) {
    %c0_i32 = arith.constant 0 : i32
    %c0_i32_0 = arith.constant 0 : i32
    %c0_i32_1 = arith.constant 0 : i32
    return %c0_i32, %c0_i32_0 : i32, i32
  }
  func.func @transform_16(%arg0: i32) -> (i32, i32, i32) {
    %c0_i32 = arith.constant 0 : i32
    %c0_i32_0 = arith.constant 0 : i32
    %c0_i32_1 = arith.constant 0 : i32
    return %arg0, %c0_i32, %c0_i32_0 : i32, i32, i32
  }
}

</mosaic_0001>

<bundles_post_ra>
// kernel: up_forward.1
= control target key start
LH: loop header
LB: loop body
LE: loop exit
PB: predicated region body
PF: predicated region fallthrough
CT: control target
= control target key end

     0   :  { %s5940_s21 = smov 0   ;;  %s9024_s0 = inlined_call_operand.vmem [shape: f32[2,8,1024], index: 0, kind: input, shape index: {}]   ;;  %s9025_s1 = inlined_call_operand.vmem [shape: f32[2,1,32], index: 1, kind: input, shape index: {}]   ;;  %s9026_s2 = inlined_call_operand.vmem [shape: f32[8,72], index: 2, kind: input, shape index: {}]   ;;  %s9027_s3 = inlined_call_operand.vmem [shape: f32[8,1], index: 3, kind: input, shape index: {}]   ;;  %s9028_s4 = inlined_call_operand.vmem [shape: f32[8,1], index: 4, kind: input, shape index: {}]   ;;  %s9029_s5 = inlined_call_operand.vmem [shape: f32[8,72], index: 5, kind: input, shape index: {}]   ;;  %s9030_s6 = inlined_call_operand.vmem [shape: f32[8,1], index: 6, kind: input, shape index: {}]   ;;  %s9031_s7 = inlined_call_operand.vmem [shape: f32[8,1], index: 7, kind: input, shape index: {}]   ;;  %s9032_s8 = inlined_call_operand.vmem [shape: f32[4,72], index: 8, kind: input, shape index: {}]   ;;  %s9033_s9 = inlined_call_operand.vmem [shape: f32[4,1], index: 9, kind: input, shape index: {}]   ;;  %s9034_s10 = inlined_call_operand.vmem [shape: f32[4,1], index: 10, kind: input, shape index: {}]   ;;  %s9035_s11 = inlined_call_operand.vmem [shape: f32[4,72], index: 11, kind: input, shape index: {}]   ;;  %s9036_s12 = inlined_call_operand.vmem [shape: f32[4,1], index: 12, kind: input, shape index: {}]   ;;  %s9037_s13 = inlined_call_operand.vmem [shape: f32[4,1], index: 13, kind: input, shape index: {}]   ;;  %s9038_s14 = inlined_call_operand.vmem [shape: f32[4,32], index: 14, kind: input, shape index: {}]   ;;  %s9039_s15 = inlined_call_operand.vmem [shape: f32[4,1], index: 15, kind: input, shape index: {}]   ;;  %s9040_s16 = inlined_call_operand.vmem [shape: f32[2,4,1024], index: 16, kind: output, shape index: {}]  }
   0x1   :  { %9166 = sst [smem:[#allocation20_spill]] %s9024_s0 }
   0x2 LB: > { %s5484_s22 = sadd.s32 4294967295, %s5840_s21   ;;  %p5488_p0 = scmp.ge.s32.totalorder %s5840_s21, 1  ;;  %s5840_s21 = sphi %s5940_s21, %s26_s21  }
   0x3   : > { %p470_p1 = scmp.lt.s32.totalorder %s5840_s21, 3 }
   0x5   : > { %p471_p2 = pnand %p5488_p0, %p470_p1 }
   0x7   : > { %474 = sbr.rel (%p471_p2) target bundleno = 3619 (0xe23), region = 84 }
   0xc   : > { %p523_p3 = scmp.lt.s32.totalorder %s5484_s22, 1  ;;  %v5842_v0 = vmov 0.0   ;;  %s9167_s26 = sld [smem:[#allocation20_spill]]  ;;  %v618_v11 = vlaneseq  ;;  %vm9047_vm0 = vcmask 777216   ;;  %v9168_v24 = vmov 0 }
   0xd   : > { %536 = vst [vmem:[#allocation2 + $0x30] sm:$0xff] %v5842_v0  ;;  %s5843_s28 = smov 95   ;;  %s5844_s29 = smov 96   ;;  %v9171_v25 = vmov 0  ;;  %v9174_v27 = vmov 0  ;;  %v9177_v28 = vmov 0 }
   0xe   : > { %s9627_s22 = smov (!%p523_p3, %s5484_s22), 1  ;;  %545 = vst [vmem:[#allocation2 + $0x38] sm:$0xff] %v5842_v0  ;;  %s5845_s30 = smov 97   ;;  %v6073_v13 = vand.u32 127, %v618_v11  ;;  %vm9045_vm5 = vcmask 785408   ;;  %vm9044_vm6 = vcmask 793600  }
   0xf   : > { %s5527_s23 = sshll.u32 %s9627_s22, 6  ;;  %s5846_s0 = smov 127   ;;  %v9179_v36 = vmov 0  ;;  %vm9043_vm8 = vcmask 1039360   ;;  %v9182_v51 = vmov 0  ;;  %v9185_v52 = vmov 0 }
  0x10   : > { %s5847_s17 = smov 1   ;;  %s9098_s18 = smov 31   ;;  %v621_v14 = vadd.s32 256, %v6073_v13  ;;  %v6083_v15 = vadd.s32 384, %v6073_v13  ;;  %v6088_v18 = vadd.s32 128, %v6073_v13  ;;  %v631_v22 = vand.u32 31, %v6073_v13 }
  0x11   : > { %s9062_s19 = smov 32   ;;  %s5850_s20 = smov 33   ;;  %v9188_v53 = vmov 0  ;;  %vm9041_vm12 = vcmask 7168   ;;  %vm9042_vm13 = vcmask 252928   ;;  %vm9046_vm14 = vcmask 261120  }
  0x12   : > { %s5956_s27 = scalar_lea.vmem %s9167_s26, %s5527_s23  ;;  %v645_v20 = vand.u32 31, %v621_v14  ;;  %v652_v21 = vand.u32 31, %v6083_v15  ;;  %v638_v23 = vand.u32 31, %v6088_v18  ;;  %vm6107_vm3 = vcmp.le.s32.totalorder %v631_v22, 30  ;;  %s9256_s25 = smov 32  }
  0x13   : > { %v5959_v1 = vld [vmem:[%s5956_s27 + $0x20] sm:$0xff]  ;;  %v5962_v2 = vld [vmem:[%s5956_s27 + $0x10] sm:$0xff]  ;;  %v5975_v4 = vld [vmem:[%s5956_s27 + $0x18] sm:$0xff]  ;;  %v9175_v27 = vsel %vm6107_vm3, 4294967295, %v9174_v27  ;;  %vm6172_vm9 = vcmp.ge.s32.totalorder %v631_v22, 1  ;;  %vm9050_vm15 = vcmask 269312  }
  0x14   : > { %v5965_v3 = vld [vmem:[%s5956_s27] sm:$0xff]  ;;  %751 = vst [vmem:[#allocation2 + $0x28] sm:$0xff] %v5959_v1  ;;  %1296 = vrot.lane.b32.xlu2 %v5959_v1, %s5843_s28  ;;  %1292 = vrot.lane.b32.xlu0 %v5962_v2, %s5843_s28  ;;  %v5978_v5 = vld [vmem:[%s5956_s27 + $0x8] sm:$0xff]  ;;  %vm6099_vm1 = vcmp.le.s32.totalorder %v645_v20, 30  ;;  %vm6103_vm2 = vcmp.le.s32.totalorder %v652_v21, 30  ;;  %vm6111_vm4 = vcmp.le.s32.totalorder %v638_v23, 30 }
  0x15   : > { %1288 = vrot.lane.b32.xlu1 %v5965_v3, %s5843_s28  ;;  %v6011_v6 = vld [vmem:[%s5956_s27 + $0x30] sm:$0xff]  ;;  %v6020_v7 = vld [vmem:[%s5956_s27 + $0x38] sm:$0xff]  ;;  %v6029_v8 = vld [vmem:[%s5956_s27 + $0x28] sm:$0xff]  ;;  %v9169_v24 = vsel %vm6099_vm1, 4294967295, %v9168_v24  ;;  %v9172_v25 = vsel %vm6103_vm2, 4294967295, %v9171_v25  ;;  %9176 = vst [vmem:[#allocation6_spill] sm:$0xff] %v9175_v27 }
  0x16   : > { %9170 = vst [vmem:[#allocation4_spill] sm:$0xff] %v9169_v24  ;;  %v9178_v28 = vsel %vm6111_vm4, 4294967295, %v9177_v28  ;;  %vm6134_vm7 = vcmp.ge.s32.totalorder %v645_v20, 1  ;;  %v9183_v51 = vsel %vm6172_vm9, 4294967295, %v9182_v51  ;;  %vm6176_vm10 = vcmp.ge.s32.totalorder %v638_v23, 1 }
  0x17   : > { %9173 = vst [vmem:[#allocation5_spill] sm:$0xff] %v9172_v25  ;;  %v9180_v36 = vsel %vm6134_vm7, 4294967295, %v9179_v36  ;;  %v9186_v52 = vsel %vm6176_vm10, 4294967295, %v9185_v52  ;;  %vm6181_vm11 = vcmp.ge.s32.totalorder %v652_v21, 1 }
  0x18   : > { %9181 = vst [vmem:[#allocation7_spill] sm:$0xff] %v9180_v36  ;;  %v9189_v53 = vsel %vm6181_vm11, 4294967295, %v9188_v53 }
  0x19   : > { %9184 = vst [vmem:[#allocation8_spill] sm:$0xff] %v9183_v51 }
  0x1a   : > { %9187 = vst [vmem:[#allocation9_spill] sm:$0xff] %v9186_v52 }
  0x1b   : > { %9190 = vst [vmem:[#allocation10_spill] sm:$0xff] %v9189_v53 }
  0x1c   : > { %1294 = vrot.lane.b32.xlu0 %v5975_v4, %s5843_s28  ;;  %1231 = vrot.lane.b32.xlu2 %v5962_v2, %s5844_s29 }
  0x1d   : > { %1290 = vrot.lane.b32.xlu1 %v5978_v5, %s5843_s28 }
  0x24   : > { %1233 = vrot.lane.b32.xlu0 %v5975_v4, %s5844_s29  ;;  %1164 = vrot.lane.b32.xlu2 %v5975_v4, %s5845_s30 }
  0x25   : > { %1162 = vrot.lane.b32.xlu1 %v5962_v2, %s5845_s30 }
  0x2c   : > { %1235 = vrot.lane.b32.xlu2 %v5959_v1, %s5844_s29  ;;  %1227 = vrot.lane.b32.xlu0 %v5965_v3, %s5844_s29 }
  0x2d   : > { %1229 = vrot.lane.b32.xlu1 %v5978_v5, %s5844_s29 }
  0x34   : > { %1093 = vrot.lane.b32.xlu0 %v5962_v2, %s5846_s0  ;;  %1158 = vrot.lane.b32.xlu2 %v5965_v3, %s5845_s30 }
  0x35   : > { %1095 = vrot.lane.b32.xlu1 %v5975_v4, %s5846_s0 }
  0x3c   : > { %1160 = vrot.lane.b32.xlu0 %v5978_v5, %s5845_s30  ;;  %1089 = vrot.lane.b32.xlu2 %v5965_v3, %s5846_s0 }
  0x3d   : > { %1166 = vrot.lane.b32.xlu1 %v5959_v1, %s5845_s30 }
  0x44   : > { %1091 = vrot.lane.b32.xlu0 %v5978_v5, %s5846_s0  ;;  %1300 = vrot.lane.b32.xlu2 %v6011_v6, %s5843_s28 }
  0x45   : > { %1097 = vrot.lane.b32.xlu1 %v5959_v1, %s5846_s0 }
  0x4c   : > { %1302 = vrot.lane.b32.xlu0 %v6020_v7, %s5843_s28  ;;  %1010 = vrot.lane.b32.xlu2 %v5962_v2, %s5847_s17 }
  0x4d   : > { %1008 = vrot.lane.b32.xlu1 %v5978_v5, %s5847_s17 }
  0x54   : > { %1298 = vrot.lane.b32.xlu0 %v6029_v8, %s5843_s28  ;;  %1239 = vrot.lane.b32.xlu2 %v6011_v6, %s5844_s29 }
  0x55   : > { %1304 = vrot.lane.b32.xlu1 %v5842_v0, %s5843_s28 }
  0x5c   : > { %1241 = vrot.lane.b32.xlu0 %v6020_v7, %s5844_s29  ;;  %941 = vrot.lane.b32.xlu2 %v5962_v2, %s9098_s18 }
  0x5d   : > { %939 = vrot.lane.b32.xlu1 %v5978_v5, %s9098_s18 }
  0x64   : > { %1004 = vrot.lane.b32.xlu0 %v5842_v0, %s5847_s17  ;;  %1012 = vrot.lane.b32.xlu2 %v5975_v4, %s5847_s17 }
  0x65   : > { %1006 = vrot.lane.b32.xlu1 %v5965_v3, %s5847_s17 }
  0x6c   : > { %1170 = vrot.lane.b32.xlu0 %v6011_v6, %s5845_s30  ;;  %1237 = vrot.lane.b32.xlu2 %v6029_v8, %s5844_s29 }
  0x6d   : > { %1172 = vrot.lane.b32.xlu1 %v6020_v7, %s5845_s30 }
  0x6e   : > { %v6055_v9 = vpop.permute.xlu2 %1296 }
  0x74   : > { %1243 = vrot.lane.b32.xlu0 %v5842_v0, %s5844_s29  ;;  %937 = vrot.lane.b32.xlu2 %v5965_v3, %s9098_s18 }
  0x75   : > { %935 = vrot.lane.b32.xlu1 %v5842_v0, %s9098_s18 }
  0x76   : > { %v6063_v10 = vpop.permute.xlu2 %1231 }
  0x7c   : > { %943 = vrot.lane.b32.xlu0 %v5975_v4, %s9098_s18  ;;  %1103 = vrot.lane.b32.xlu2 %v6020_v7, %s5846_s0 }
  0x7d   : > { %1101 = vrot.lane.b32.xlu1 %v6011_v6, %s5846_s0 }
  0x7e   : > { %v6071_v12 = vpop.permute.xlu2 %1164 }
  0x84   : > { %1168 = vrot.lane.b32.xlu0 %v6029_v8, %s5845_s30  ;;  %862 = vrot.lane.b32.xlu2 %v5978_v5, %s9062_s19 }
  0x85   : > { %1174 = vrot.lane.b32.xlu1 %v5842_v0, %s5845_s30 }
  0x86   : > { %v1293_v16 = vpop.permute.xlu0 %1292  ;;  %v6085_v17 = vpop.permute.xlu2 %1235 }
  0x87   : > { %v1289_v19 = vpop.permute.xlu1 %1288 }
  0x8c   : > { %864 = vrot.lane.b32.xlu0 %v5962_v2, %s9062_s19  ;;  %795 = vrot.lane.b32.xlu2 %v5962_v2, %s5850_s20 }
  0x8d   : > { %793 = vrot.lane.b32.xlu1 %v5978_v5, %s5850_s20 }
  0x8e   : > { %v1295_v26 = vpop.permute.xlu0 %1294  ;;  %v1159_v29 = vpop.permute.xlu2 %1158 }
  0x8f   : > { %v1309_v30 = vsel %vm9047_vm0, %v1293_v16, %v1295_v26  ;;  %v1310_v31 = vsel %vm9047_vm0, %v1295_v26, %v6055_v9  ;;  %v1291_v32 = vpop.permute.xlu1 %1290 }
  0x90   : > { %v1307_v33 = vsel %vm9047_vm0, %v1289_v19, %v1291_v32  ;;  %v1308_v34 = vsel %vm9047_vm0, %v1291_v32, %v1293_v16  ;;  %5690 = vmatpush.msk.msra.mxu2 %vm6099_vm1, %v1309_v30  ;;  %5691 = vmatpush.msk.msra.mxu3 %vm6103_vm2, %v1310_v31 }
  0x91   : > { %5692 = vmatpush.msk.msra.mxu0 %vm6107_vm3, %v1307_v33  ;;  %5693 = vmatpush.msk.msra.mxu1 %vm6111_vm4, %v1308_v34 }
  0x94   : > { %1099 = vrot.lane.b32.xlu0 %v6029_v8, %s5846_s0  ;;  %858 = vrot.lane.b32.xlu2 %v5842_v0, %s9062_s19 }
  0x95   : > { %1105 = vrot.lane.b32.xlu1 %v5842_v0, %s5846_s0 }
  0x96   : > { %v1234_v35 = vpop.permute.xlu0 %1233  ;;  %v1090_v37 = vpop.permute.xlu2 %1089 }
  0x97   : > { %v1248_v38 = vsel %vm9045_vm5, %v6063_v10, %v1234_v35  ;;  %v1249_v39 = vsel %vm9045_vm5, %v1234_v35, %v6085_v17  ;;  %v1163_v40 = vpop.permute.xlu1 %1162 }
  0x98   : > { %v1179_v41 = vsel %vm9044_vm6, %v1163_v40, %v6071_v12  ;;  %1464 = vmatpush.msra.mxu2 %v1248_v38  ;;  %1484 = vmatpush.msra.mxu3 %v1249_v39 }
  0x9a   : > { %5694 = vmatpush.msk.msra.mxu2 %vm6134_vm7, %v1179_v41 }
  0x9c   : > { %789 = vrot.lane.b32.xlu2 %v5842_v0, %s5850_s20  ;;  %860 = vrot.lane.b32.xlu0 %v5965_v3, %s9062_s19 }
  0x9d   : > { %866 = vrot.lane.b32.xlu1 %v5975_v4, %s9062_s19 }
  0x9e   : > { %v1228_v42 = vpop.permute.xlu0 %1227  ;;  %v6152_v43 = vpop.permute.xlu2 %1300 }
  0x9f   : > { %v1230_v44 = vpop.permute.xlu1 %1229 }
  0xa0   : > { %v1247_v45 = vsel %vm9045_vm5, %v1230_v44, %v6063_v10  ;;  %v1246_v46 = vsel %vm9045_vm5, %v1228_v42, %v1230_v44 }
  0xa1   : > { %1424 = vmatpush.msra.mxu0 %v1246_v46  ;;  %1444 = vmatpush.msra.mxu1 %v1247_v45  ;;  %v625_v45 = vadd.s32 768, %v6073_v13 }
  0xa4   : > { %1016 = vrot.lane.b32.xlu2 %v6029_v8, %s5847_s17  ;;  %791 = vrot.lane.b32.xlu0 %v5965_v3, %s5850_s20 }
  0xa5   : > { %797 = vrot.lane.b32.xlu1 %v5975_v4, %s5850_s20 }
  0xa6   : > { %v1094_v47 = vpop.permute.xlu0 %1093  ;;  %v1011_v48 = vpop.permute.xlu2 %1010 }
  0xa7   : > { %v1096_v49 = vpop.permute.xlu1 %1095 }
  0xa8   : > { %v1110_v50 = vsel %vm9043_vm8, %v1094_v47, %v1096_v49 }
  0xa9   : > { %5695 = vmatpush.msk.msra.mxu2 %vm6099_vm1, %v1110_v50  ;;  %v9191_v50 = vmov 0 }
  0xab   : > { %1467 = vmatpush.msra.mxu2 %v5962_v2 }
  0xac   : > { %949 = vrot.lane.b32.xlu2 %v6011_v6, %s9098_s18  ;;  %1018 = vrot.lane.b32.xlu0 %v6011_v6, %s5847_s17 }
  0xad   : > { %947 = vrot.lane.b32.xlu1 %v6029_v8, %s9098_s18 }
  0xae   : > { %v1161_v54 = vpop.permute.xlu0 %1160  ;;  %v6185_v55 = vpop.permute.xlu2 %1239 }
  0xaf   : > { %v6187_v56 = vpop.permute.xlu1 %1166  ;;  %v1177_v57 = vsel %vm9044_vm6, %v1159_v29, %v1161_v54  ;;  %v1178_v58 = vsel %vm9044_vm6, %v1161_v54, %v1163_v40 }
  0xb0   : > { %v1180_v59 = vsel %vm9044_vm6, %v6071_v12, %v6187_v56  ;;  %5696 = vmatpush.msk.msra.mxu0 %vm6172_vm9, %v1177_v57  ;;  %5697 = vmatpush.msk.msra.mxu1 %vm6176_vm10, %v1178_v58 }
  0xb1   : > { %5698 = vmatpush.msk.msra.mxu3 %vm6181_vm11, %v1180_v59 }
  0xb4   : > { %945 = vrot.lane.b32.xlu2 %v5959_v1, %s9098_s18  ;;  %1014 = vrot.lane.b32.xlu0 %v5959_v1, %s5847_s17 }
  0xb5   : > { %1020 = vrot.lane.b32.xlu1 %v6020_v7, %s5847_s17 }
  0xb6   : > { %v1092_v60 = vpop.permute.xlu0 %1091  ;;  %v942_v61 = vpop.permute.xlu2 %941 }
  0xb7   : > { %v6206_v62 = vpop.permute.xlu1 %1097  ;;  %v1108_v63 = vsel %vm9043_vm8, %v1090_v37, %v1092_v60  ;;  %v1109_v2 = vsel %vm9043_vm8, %v1092_v60, %v1094_v47 }
  0xb8   : > { %v1111_v10 = vsel %vm9043_vm8, %v1096_v49, %v6206_v62  ;;  %5699 = vmatpush.msk.msra.mxu0 %vm6107_vm3, %v1108_v63  ;;  %5700 = vmatpush.msk.msra.mxu1 %vm6111_vm4, %v1109_v2 }
  0xb9   : > { %5701 = vmatpush.msk.msra.mxu3 %vm6103_vm2, %v1111_v10 }
  0xba   : > { %1427 = vmatpush.msra.mxu0 %v5965_v3  ;;  %1447 = vmatpush.msra.mxu1 %v5978_v5 }
  0xbb   : > { %1487 = vmatpush.msra.mxu3 %v5975_v4 }
  0xbc   : > { %872 = vrot.lane.b32.xlu2 %v6011_v6, %s9062_s19  ;;  %951 = vrot.lane.b32.xlu0 %v6020_v7, %s9098_s18 }
  0xbd   : > { %870 = vrot.lane.b32.xlu1 %v6029_v8, %s9062_s19 }
  0xbe   : > { %v6227_v11 = vpop.permute.xlu0 %1302  ;;  %v6229_v12 = vpop.permute.xlu2 %1012 }
  0xbf   : > { %v1009_v14 = vpop.permute.xlu1 %1008  ;;  %v1026_v3 = vsel %vm9041_vm12, %v1011_v48, %v6229_v12  ;;  %v1313_v54 = vsel %vm9047_vm0, %v6152_v43, %v6227_v11 }
  0xc0   : > { %v1025_v5 = vsel %vm9041_vm12, %v1009_v14, %v1011_v48  ;;  %5702 = vmatpush.msk.msra.mxu3 %vm6181_vm11, %v1026_v3  ;;  %v673_v48 = vand.u32 31, %v625_v45  ;;  %v9200_v45 = vmov 0 }
  0xc1   : > { %5703 = vmatpush.msk.msra.mxu2 %vm6134_vm7, %v1025_v5 }
  0xc4   : > { %868 = vrot.lane.b32.xlu2 %v5959_v1, %s9062_s19  ;;  %801 = vrot.lane.b32.xlu0 %v6029_v8, %s5850_s20 }
  0xc5   : > { %803 = vrot.lane.b32.xlu1 %v6011_v6, %s5850_s20 }
  0xc6   : > { %v6244_v4 = vpop.permute.xlu0 %1298  ;;  %v6246_v15 = vpop.permute.xlu2 %1237 }
  0xc7   : > { %v6248_v16 = vpop.permute.xlu1 %1304 }
  0xcc   : > { %874 = vrot.lane.b32.xlu0 %v6020_v7, %s9062_s19  ;;  %805 = vrot.lane.b32.xlu2 %v6020_v7, %s5850_s20 }
  0xcd   : > { %799 = vrot.lane.b32.xlu1 %v5959_v1, %s5850_s20 }
  0xce   : > { %v6256_v18 = vpop.permute.xlu0 %1241  ;;  %v938_v19 = vpop.permute.xlu2 %937 }
  0xcf   : > { %v940_v20 = vpop.permute.xlu1 %939  ;;  %v1252_v2 = vsel %vm9045_vm5, %v6185_v55, %v6256_v18 }
  0xd0   : > { %v956_v21 = vsel %vm9042_vm13, %v940_v20, %v942_v61  ;;  %v955_v29 = vsel %vm9042_vm13, %v938_v19, %v940_v20  ;;  %v623_v20 = vadd.s32 512, %v6073_v13 }
  0xd1   : > { %5704 = vmatpush.msk.msra.mxu2 %vm6099_vm1, %v956_v21  ;;  %v624_v21 = vadd.s32 640, %v6073_v13 }
  0xd6   : > { %v1005_v22 = vpop.permute.xlu0 %1004  ;;  %v6261_v23 = vpop.permute.xlu2 %1103 }
  0xd7   : > { %v1007_v26 = vpop.permute.xlu1 %1006 }
  0xd8   : > { %v1023_v30 = vsel %vm9041_vm12, %v1005_v22, %v1007_v26  ;;  %v1024_v1 = vsel %vm9041_vm12, %v1007_v26, %v1009_v14  ;;  %vm6296_vm12 = vcmp.le.s32.totalorder %v673_v48, 30 }
  0xd9   : > { %5705 = vmatpush.msk.msra.mxu0 %vm6172_vm9, %v1023_v30  ;;  %5706 = vmatpush.msk.msra.mxu1 %vm6176_vm10, %v1024_v1  ;;  %v9192_v50 = vsel %vm6296_vm12, 4294967295, %v9191_v50 }
  0xda   : > { %9193 = vst [vmem:[#allocation11_spill] sm:$0xff] %v9192_v50 }
  0xdb   : > { %5707 = vmatpush.msk.msra.mxu1 %vm6111_vm4, %v955_v29 }
  0xde   : > { %v6272_v31 = vpop.permute.xlu0 %1170  ;;  %v863_v32 = vpop.permute.xlu2 %862 }
  0xdf   : > { %v6274_v33 = vpop.permute.xlu1 %1172 }
  0xe0   : > { %v1183_v63 = vsel %vm9044_vm6, %v6272_v31, %v6274_v33 }
  0xe6   : > { %v6276_v34 = vpop.permute.xlu0 %1243  ;;  %v6278_v35 = vpop.permute.xlu2 %795 }
  0xe7   : > { %v936_v37 = vpop.permute.xlu1 %935 }
  0xe8   : > { %v954_v38 = vsel %vm9042_vm13, %v936_v37, %v938_v19  ;;  %v626_v19 = vadd.s32 896, %v6073_v13 }
  0xe9   : > { %5708 = vmatpush.msk.msra.mxu0 %vm6107_vm3, %v954_v38  ;;  %v666_v38 = vand.u32 31, %v624_v21 }
  0xea   : > { %v680_v37 = vand.u32 31, %v626_v19 }
  0xeb   : > { %vm6349_vm5 = vcmp.le.s32.totalorder %v666_v38, 30 }
  0xee   : > { %v6283_v39 = vpop.permute.xlu0 %943  ;;  %v859_v40 = vpop.permute.xlu2 %858 }
  0xef   : > { %v957_v41 = vsel %vm9042_vm13, %v942_v61, %v6283_v39  ;;  %v6287_v42 = vpop.permute.xlu1 %1101  ;;  %vm6310_vm13 = vcmp.ge.s32.totalorder %v673_v48, 1  ;;  %v9194_v61 = vmov 0  ;;  %v1312_v48 = vsel %vm9047_vm0, %v6244_v4, %v6152_v43 }
  0xf0   : > { %5709 = vmatpush.msk.msra.mxu3 %vm6103_vm2, %v957_v41  ;;  %v9195_v61 = vsel %vm6310_vm13, 4294967295, %v9194_v61  ;;  %v1114_v10 = vsel %vm9043_vm8, %v6287_v42, %v6261_v23  ;;  %vm6341_vm8 = vcmp.le.s32.totalorder %v680_v37, 30  ;;  %v9197_v41 = vmov 0 }
  0xf1   : > { %9196 = vst [vmem:[#allocation12_spill] sm:$0xff] %v9195_v61  ;;  %v9198_v41 = vsel %vm6341_vm8, 4294967295, %v9197_v41 }
  0xf2   : > { %9199 = vst [vmem:[#allocation13_spill] sm:$0xff] %v9198_v41 }
  0xf6   : > { %v6291_v44 = vpop.permute.xlu0 %1168  ;;  %v790_v47 = vpop.permute.xlu2 %789 }
  0xf7   : > { %v6294_v46 = vpop.permute.xlu1 %1174 }
  0xfe   : > { %v865_v49 = vpop.permute.xlu0 %864  ;;  %v6306_v60 = vpop.permute.xlu2 %1016 }
  0xff   : > { %v879_v57 = vsel %vm9046_vm14, %v863_v32, %v865_v49  ;;  %v794_v58 = vpop.permute.xlu1 %793 }
 0x100   : > { %v810_v59 = vsel %vm9050_vm15, %v794_v58, %v6278_v35  ;;  %1470 = vmatpush.msra.mxu2 %v879_v57 }
 0x102   : > { %5710 = vmatpush.msk.msra.mxu2 %vm6134_vm7, %v810_v59 }
 0x104   : > { %5711 = vmatpush.msk.msrb.mxu2 %vm6296_vm12, %v1313_v54  ;;  %v1314_v54 = vsel %vm9047_vm0, %v6227_v11, %v6248_v16  ;;  %v9207_v11 = vmov 0 }
 0x106   : > { %1544 = vmatpush.msrb.mxu2 %v1252_v2  ;;  %v1100_v14 = vpop.permute.xlu0 %1099  ;;  %v6329_v5 = vpop.permute.xlu2 %949  ;;  %v6369_v2 = vld [vmem:[%s9026_s2] sm:$0xff] }
 0x107   : > { %v1106_v3 = vpop.permute.xlu1 %1105 }
 0x108   : > { %5712 = vmatpush.msk.msrb.mxu2 %vm6310_vm13, %v1183_v63 }
 0x10a   : > { %5713 = vmatpush.msk.msrb.mxu2 %vm6296_vm12, %v1114_v10 }
 0x10c   : > { %1547 = vmatpush.msrb.mxu2 %v6011_v6  ;;  %v659_v6 = vand.u32 31, %v623_v20 }
 0x10e   : > { %v861_v22 = vpop.permute.xlu0 %860  ;;  %v946_v13 = vpop.permute.xlu2 %945  ;;  %vm6345_vm6 = vcmp.le.s32.totalorder %v659_v6, 30  ;;  %vm6383_vm7 = vcmp.ge.s32.totalorder %v659_v6, 1 }
 0x10f   : > { %v6335_v26 = vpop.permute.xlu1 %866  ;;  %v877_v29 = vsel %vm9046_vm14, %v859_v40, %v861_v22  ;;  %v878_v30 = vsel %vm9046_vm14, %v861_v22, %v863_v32  ;;  %v9201_v45 = vsel %vm6345_vm6, 4294967295, %v9200_v45  ;;  %v9203_v32 = vmov 0 }
 0x110   : > { %v880_v1 = vsel %vm9046_vm14, %v865_v49, %v6335_v26  ;;  %1430 = vmatpush.msra.mxu0 %v877_v29  ;;  %1450 = vmatpush.msra.mxu1 %v878_v30  ;;  %9202 = vst [vmem:[#allocation14_spill] sm:$0xff] %v9201_v45  ;;  %v9204_v32 = vsel %vm6349_vm5, 4294967295, %v9203_v32  ;;  %v1311_v40 = vsel %vm9047_vm0, %v6055_v9, %v6244_v4  ;;  %vm9051_vm14 = vcmask 588800  }
 0x111   : > { %1490 = vmatpush.msra.mxu3 %v880_v1  ;;  %9205 = vst [vmem:[#allocation15_spill] sm:$0xff] %v9204_v32  ;;  %5495 = vmatmul.msk.f32.vlgmr.msra.gmra.mxu2 %vm9051_vm14, %v6369_v2  ;;  %vm9206_vm0 = vcmask 785408   ;;  %v9208_v11 = vsel %vm6383_vm7, 4294967295, %v9207_v11 }
 0x112   : > { %v1250_v43 = vsel %vm9206_vm0, %v6085_v17, %v6246_v15  ;;  %9209 = vst [vmem:[#allocation16_spill] sm:$0xff] %v9208_v11  ;;  %vm6394_vm0 = vcmp.ge.s32.totalorder %v666_v38, 1  ;;  %v9211_v17 = vmov 0 }
 0x113   : > { %v9212_v17 = vsel %vm6394_vm0, 4294967295, %v9211_v17 }
 0x114   : > { %9213 = vst [vmem:[#allocation17_spill] sm:$0xff] %v9212_v17 }
 0x116   : > { %v792_v49 = vpop.permute.xlu0 %791 }
 0x117   : > { %v6362_v57 = vpop.permute.xlu1 %797  ;;  %v808_v59 = vsel %vm9050_vm15, %v790_v47, %v792_v49  ;;  %v809_v63 = vsel %vm9050_vm15, %v792_v49, %v794_v58 }
 0x118   : > { %v811_v9 = vsel %vm9050_vm15, %v6278_v35, %v6362_v57  ;;  %5714 = vmatpush.msk.msra.mxu0 %vm6172_vm9, %v808_v59  ;;  %5715 = vmatpush.msk.msra.mxu1 %vm6176_vm10, %v809_v63  ;;  %vm9210_vm15 = vcmask 793600   ;;  %vm6401_vm10 = vcmp.ge.s32.totalorder %v680_v37, 1  ;;  %v9215_v35 = vmov 0 }
 0x119   : > { %v1181_v4 = vsel %vm9210_vm15, %v6187_v56, %v6291_v44  ;;  %5716 = vmatpush.msk.msra.mxu3 %vm6181_vm11, %v811_v9  ;;  %vm9214_vm14 = vmmov %vm9210_vm15  ;;  %v9216_v35 = vsel %vm6401_vm10, 4294967295, %v9215_v35  ;;  %vm9219_vm9 = vcmask 785408   ;;  %vm9221_vm11 = vcmask 1039360  }
 0x11a   : > { %5717 = vmatpush.msk.msrb.mxu0 %vm6345_vm6, %v1311_v40  ;;  %v1182_v16 = vsel %vm9214_vm14, %v6291_v44, %v6272_v31  ;;  %9217 = vst [vmem:[#allocation18_spill] sm:$0xff] %v9216_v35  ;;  %vm9218_vm15 = vmmov %vm9214_vm14  ;;  %5718 = vmatpush.msk.msrb.mxu1 %vm6349_vm5, %v1312_v48  ;;  %v1251_v47 = vsel %vm9219_vm9, %v6246_v15, %v6185_v55 }
 0x11b   : > { %v1184_v56 = vsel %vm9218_vm15, %v6274_v33, %v6294_v46  ;;  %5719 = vmatpush.msk.msrb.mxu3 %vm6341_vm8, %v1314_v54  ;;  %vm9220_vm14 = vmmov %vm9219_vm9  ;;  %v1112_v44 = vsel %vm9221_vm11, %v6206_v62, %v1100_v14  ;;  %vm9222_vm15 = vcmask 588800   ;;  %v873_v62 = vpop.permute.xlu2 %872 }
 0x11c   : > { %v1253_v31 = vsel %vm9220_vm14, %v6256_v18, %v6276_v34  ;;  %1504 = vmatpush.msrb.mxu0 %v1250_v43  ;;  %5496 = vmatmul.msk.f32.vlgmr.msra.gmra.mxu3 %vm9222_vm15, %v6369_v2  ;;  %vm9223_vm2 = vmmov %vm9221_vm11  ;;  %vm9226_vm11 = vcmask 7168  }
 0x11d   : > { %v1113_v33 = vsel %vm9223_vm2, %v1100_v14, %v6287_v42  ;;  %vm9224_vm4 = vmmov %vm9223_vm2  ;;  %1524 = vmatpush.msrb.mxu1 %v1251_v47  ;;  %1564 = vmatpush.msrb.mxu3 %v1253_v31  ;;  %vm9227_vm2 = vcmask 252928  }
 0x11e   : > { %v1115_v46 = vsel %vm9224_vm4, %v6261_v23, %v1106_v3  ;;  %v1019_v55 = vpop.permute.xlu0 %1018  ;;  %5720 = vmatpush.msk.msrb.mxu0 %vm6383_vm7, %v1181_v4  ;;  %vm9225_vm9 = vmmov %vm9222_vm15  ;;  %v1059_v23 = vld [vmem:[#allocation2 + $0x28] sm:$0xff] }
 0x11f   : > { %5494 = vmatmul.msk.f32.vlgmr.msra.gmra.mxu1 %vm9225_vm9, %v6369_v2  ;;  %v948_v15 = vpop.permute.xlu1 %947  ;;  %v1029_v18 = vsel %vm9226_vm11, %v6306_v60, %v1019_v55  ;;  %5722 = vmatpush.msk.msrb.mxu3 %vm6401_vm10, %v1184_v56  ;;  %vm9228_vm4 = vmmov %vm9225_vm9 }
 0x120   : > { %5721 = vmatpush.msk.msrb.mxu1 %vm6394_vm0, %v1182_v16  ;;  %v960_v34 = vsel %vm9227_vm2, %v948_v15, %v6329_v5  ;;  %5723 = vmatpush.msk.msrb.mxu0 %vm6345_vm6, %v1112_v44  ;;  %vm9229_vm14 = vmmov %vm9227_vm2 }
 0x121   : > { %5725 = vmatpush.msk.msrb.mxu3 %vm6341_vm8, %v1115_v46  ;;  %5726 = vmatpush.msk.msrb.mxu2 %vm6310_vm13, %v1029_v18  ;;  %v958_v58 = vsel %vm9229_vm14, %v6283_v39, %v946_v13  ;;  %vm9230_vm15 = vmmov %vm9227_vm2 }
 0x122   : > { %5724 = vmatpush.msk.msrb.mxu1 %vm6349_vm5, %v1113_v33  ;;  %1507 = vmatpush.msrb.mxu0 %v1059_v23  ;;  %v959_v10 = vsel %vm9230_vm15, %v946_v13, %v948_v15  ;;  %vm9231_vm9 = vmmov %vm9226_vm11 }
 0x123   : > { %1567 = vmatpush.msrb.mxu3 %v6020_v7  ;;  %5727 = vmatpush.msk.msrb.mxu2 %vm6296_vm12, %v960_v34  ;;  %vm9232_vm11 = vmmov %vm9231_vm9  ;;  %v869_v19 = vpop.permute.xlu2 %868  ;;  %v5851_v34 = vmov 8192.0  }
 0x124   : > { %1527 = vmatpush.msrb.mxu1 %v6029_v8  ;;  %5493 = vmatmul.msk.f32.vlgmr.msra.gmra.mxu0 %vm9228_vm4, %v6369_v2  ;;  %vm9233_vm2 = vmmov %vm9231_vm9  ;;  %vm9234_vm4 = vcmask 261120   ;;  %5569 = vrcp.f32 %v5851_v34 }
 0x125   : > { %vm9235_vm15 = vmmov %vm9234_vm4 }
 0x126   : > { %v1015_v42 = vpop.permute.xlu0 %1014 }
 0x127   : > { %v1021_v14 = vpop.permute.xlu1 %1020  ;;  %v1027_v3 = vsel %vm9231_vm9, %v6229_v12, %v1015_v42  ;;  %v1028_v8 = vsel %vm9232_vm11, %v1015_v42, %v6306_v60  ;;  %v881_v12 = vsel %vm9234_vm4, %v6335_v26, %v869_v19  ;;  %vm9236_vm9 = vmmov %vm9234_vm4  ;;  %vm9237_vm11 = vcmask 269312  }
 0x128   : > { %v1030_v7 = vsel %vm9233_vm2, %v1019_v55, %v1021_v14  ;;  %5728 = vmatpush.msk.msrb.mxu0 %vm6383_vm7, %v1027_v3  ;;  %5729 = vmatpush.msk.msrb.mxu1 %vm6394_vm0, %v1028_v8  ;;  %vm9238_vm2 = vcmask 588800   ;;  %vm9239_vm4 = vmmov %vm9237_vm11  ;;  %v1654_v14 = vld [vmem:[%s9027_s3] sm:$0xff]  ;;  %v5852_v8 = vmov 0  }
 0x129   : > { %5730 = vmatpush.msk.msrb.mxu3 %vm6401_vm10, %v1030_v7  ;;  %5566 = vset.pattern.permute.xlu2 %v5852_v8 }
 0x12a   : > { %5731 = vmatpush.msk.msrb.mxu0 %vm6345_vm6, %v958_v58  ;;  %5732 = vmatpush.msk.msrb.mxu1 %vm6349_vm5, %v959_v10  ;;  %v5570_v42 = vpop.eup %5569 }
 0x12b   : > { %v1594_v58 = vmul.f32 8192.0, %v5570_v42  ;;  %5567 = vset.pattern.permute.xlu0 %v5852_v8  ;;  %1657 = vperm.xlu2 %5566, %v1654_v14  }
 0x12c   : > { %1510 = vmatpush.msrb.mxu0 %v881_v12  ;;  %5568 = vset.pattern.permute.xlu1 %v5852_v8 }
 0x12d   : > { %v1595_v10 = vsub.f32 1.0, %v1594_v58 }
 0x12e   : > { %v952_v39 = vpop.permute.xlu0 %951 }
 0x12f   : > { %v871_v60 = vpop.permute.xlu1 %870  ;;  %v961_v20 = vsel %vm9229_vm14, %v6329_v5, %v952_v39  ;;  %v806_v5 = vpop.permute.xlu2 %805  ;;  %vm9240_vm14 = vmmov %vm9236_vm9  ;;  %v1596_v3 = vmul.f32 %v5570_v42, %v1595_v10 }
 0x130   : > { %v882_v21 = vsel %vm9235_vm15, %v869_v19, %v871_v60  ;;  %v883_v22 = vsel %vm9236_vm9, %v871_v60, %v873_v62  ;;  %5733 = vmatpush.msk.msrb.mxu3 %vm6341_vm8, %v961_v20  ;;  %vm9241_vm15 = vmmov %vm9239_vm4  ;;  %v1668_v19 = vld [vmem:[%s9028_s4] sm:$0xff] }
 0x131   : > { %1530 = vmatpush.msrb.mxu1 %v882_v21  ;;  %1550 = vmatpush.msrb.mxu2 %v883_v22  ;;  %vm9242_vm9 = vmmov %vm9239_vm4  ;;  %v1597_v7 = vadd.f32 %v5570_v42, %v1596_v3 }
 0x133   : > { %1671 = vperm.xlu2 %5566, %v1668_v19  }
 0x136   : > { %v802_v29 = vpop.permute.xlu0 %801 }
 0x137   : > { %v804_v30 = vpop.permute.xlu1 %803 }
 0x138   : > { %v814_v1 = vsel %vm9237_vm11, %v802_v29, %v804_v30  ;;  %v815_v37 = vsel %vm9239_vm4, %v804_v30, %v806_v5  ;;  %vm9243_vm11 = vmmov %vm9238_vm2 }
 0x139   : > { %5734 = vmatpush.msk.msrb.mxu2 %vm6310_vm13, %v814_v1  ;;  %vm9244_vm4 = vmmov %vm9238_vm2 }
 0x13a   : > { %5499 = vmatmul.msk.f32.vlgmr.msrb.gmra.mxu2 %vm9238_vm2, %v6369_v2 }
 0x13b   : > { %2224 = vrot.lane.b32.xlu2 %v5842_v0, %s5847_s17 }
 0x13e   : > { %v875_v26 = vpop.permute.xlu0 %874 }
 0x13f   : > { %v800_v6 = vpop.permute.xlu1 %799  ;;  %v884_v38 = vsel %vm9240_vm14, %v873_v62, %v875_v26  ;;  %vm1598_vm14 = vweird.f32 %v5570_v42 }
 0x140   : > { %v812_v13 = vsel %vm9241_vm15, %v6362_v57, %v800_v6  ;;  %v813_v40 = vsel %vm9242_vm9, %v800_v6, %v802_v29  ;;  %1570 = vmatpush.msrb.mxu3 %v884_v38  ;;  %v6510_v12 = vsel %vm1598_vm14, %v5570_v42, %v1597_v7 }
 0x141   : > { %5735 = vmatpush.msk.msrb.mxu0 %vm6383_vm7, %v812_v13  ;;  %5736 = vmatpush.msk.msrb.mxu1 %vm6394_vm0, %v813_v40  ;;  %9245 = vst [vmem:[#allocation19_spill] sm:$0xff] %v6510_v12 }
 0x142   : > { %5497 = vmatmul.msk.f32.vlgmr.msrb.gmra.mxu0 %vm9243_vm11, %v6369_v2  ;;  %5737 = vmatpush.msk.msrb.mxu3 %vm6401_vm10, %v815_v37 }
 0x143   : > { %5500 = vmatmul.msk.f32.vlgmr.msrb.gmra.mxu3 %vm9238_vm2, %v6369_v2  ;;  %5498 = vmatmul.msk.f32.vlgmr.msrb.gmra.mxu1 %vm9244_vm4, %v6369_v2 }
 0x144   : > { %2460 = vrot.lane.b32.xlu2 %v5842_v0, %s5844_s29 }
 0x194   : > { %v1473_v57 = vpop.f32.mrf.mxu2 }
 0x19c   : > { %v1453_v49 = vpop.f32.mrf.mxu1 }
 0x19f   : > { %v1493_v63 = vpop.f32.mrf.mxu3 }
 0x1a1   : > { %v1433_v48 = vpop.f32.mrf.mxu0 }
 0x1a2   : > { %v1576_v54 = vadd.f32 %v1453_v49, %v1433_v48 }
 0x1a4   : > { %v1577_v59 = vadd.f32 %v1576_v54, %v1473_v57 }
 0x1a6   : > { %v1578_v9 = vadd.f32 %v1577_v59, %v1493_v63 }
 0x1bd   : > { %v1553_v56 = vpop.f32.mrf.mxu2 }
 0x1bf   : > { %v1513_v43 = vpop.f32.mrf.mxu0 }
 0x1c0   : > { %v1579_v4 = vadd.f32 %v1578_v9, %v1513_v43  ;;  %v1533_v16 = vpop.f32.mrf.mxu1 }
 0x1c2   : > { %v1580_v47 = vadd.f32 %v1579_v4, %v1533_v16 }
 0x1c4   : > { %v1581_v31 = vadd.f32 %v1580_v47, %v1553_v56 }
 0x1c6   : > { %v1573_v44 = vpop.f32.mrf.mxu3 }
 0x1c7   : > { %v1582_v33 = vadd.f32 %v1581_v31, %v1573_v44 }
 0x1c9   : > { %1583 = vadd.xlane.f32.xlu0 %v1582_v33 }
 0x1dd   : > { %2096 = vrot.lane.b32.xlu0 %v5842_v0, %s9062_s19 }
 0x1e5   : > { %2028 = vrot.lane.b32.xlu0 %v5842_v0, %s5850_s20 }
 0x23c   : > { %v1584_v2 = vpop.xlane.xlu0 %1583 }
 0x23d   : > { %v1585_v46 = vrot.slane %v1584_v2, 4 }
 0x23f   : > { %v1586_v55 = vadd.f32 %v1585_v46, %v1584_v2 }
 0x241   : > { %v1587_v62 = vrot.slane %v1586_v55, 2 }
 0x243   : > { %v1588_v15 = vadd.f32 %v1587_v62, %v1586_v55 }
 0x245   : > { %v1589_v18 = vrot.slane %v1588_v15, 1 }
 0x247   : > { %v1590_v23 = vadd.f32 %v1589_v18, %v1588_v15 }
 0x249   : > { %5529 = vpush %v1590_v23 }
 0x27a   : > { %s5530_s19 = spop %5529 }
 0x27b   : > { %v1592_v39 = vstv %s5530_s19 }
 0x27c   : > { %v1600_v60 = vmul.f32 %v6510_v12, %v1592_v39 }
 0x27e   : > { %v1601_v20 = vsub.f32 %v1433_v48, %v1600_v60  ;;  %v1602_v21 = vsub.f32 %v1453_v49, %v1600_v60  ;;  %v1603_v22 = vsub.f32 %v1473_v57, %v1600_v60  ;;  %v1604_v29 = vsub.f32 %v1493_v63, %v1600_v60 }
 0x27f   : > { %v1605_v5 = vsub.f32 %v1513_v43, %v1600_v60  ;;  %v6515_v6 = vsub.f32 %v1533_v16, %v1600_v60  ;;  %v1607_v40 = vsub.f32 %v1553_v56, %v1600_v60  ;;  %v6517_v9 = vsub.f32 %v1573_v44, %v1600_v60 }
 0x280   : > { %v1609_v30 = vmul.f32 %v1601_v20, %v1601_v20  ;;  %v1610_v1 = vmul.f32 %v1602_v21, %v1602_v21  ;;  %v1611_v26 = vmul.f32 %v1603_v22, %v1603_v22  ;;  %v1612_v38 = vmul.f32 %v1604_v29, %v1604_v29 }
 0x281   : > { %v1613_v54 = vmul.f32 %v1605_v5, %v1605_v5  ;;  %v1614_v48 = vmul.f32 %v6515_v6, %v6515_v6  ;;  %v1615_v57 = vmul.f32 %v1607_v40, %v1607_v40  ;;  %v1616_v43 = vmul.f32 %v6517_v9, %v6517_v9 }
 0x282   : > { %v1617_v37 = vadd.f32 %v1610_v1, %v1609_v30 }
 0x284   : > { %v1618_v13 = vadd.f32 %v1617_v37, %v1611_v26 }
 0x286   : > { %v1619_v59 = vadd.f32 %v1618_v13, %v1612_v38 }
 0x288   : > { %v1620_v49 = vadd.f32 %v1619_v59, %v1613_v54 }
 0x28a   : > { %v1621_v63 = vadd.f32 %v1620_v49, %v1614_v48 }
 0x28c   : > { %v1622_v4 = vadd.f32 %v1621_v63, %v1615_v57 }
 0x28e   : > { %v1623_v16 = vadd.f32 %v1622_v4, %v1616_v43 }
 0x290   : > { %1624 = vadd.xlane.f32.xlu1 %v1623_v16 }
 0x2a9   : > { %2520 = vrot.lane.b32.xlu1 %v5842_v0, %s5843_s28 }
 0x2b1   : > { %2156 = vrot.lane.b32.xlu1 %v5842_v0, %s9098_s18 }
 0x2b9   : > { %2392 = vrot.lane.b32.xlu1 %v5842_v0, %s5845_s30 }
 0x2c1   : > { %2324 = vrot.lane.b32.xlu1 %v5842_v0, %s5846_s0  ;;  %v6534_v0 = vpop.permute.xlu2 %1657 }
 0x2c9   : > { %v6548_v38 = vpop.permute.xlu2 %1671 }
 0x303   : > { %v1625_v56 = vpop.xlane.xlu1 %1624 }
 0x304   : > { %v1626_v47 = vrot.slane %v1625_v56, 4 }
 0x306   : > { %v1627_v31 = vadd.f32 %v1626_v47, %v1625_v56 }
 0x308   : > { %v1628_v44 = vrot.slane %v1627_v31, 2 }
 0x30a   : > { %v1629_v33 = vadd.f32 %v1628_v44, %v1627_v31 }
 0x30c   : > { %v1630_v2 = vrot.slane %v1629_v33, 1 }
 0x30e   : > { %v1631_v46 = vadd.f32 %v1630_v2, %v1629_v33 }
 0x310   : > { %5531 = vpush %v1631_v46 }
 0x341   : > { %s5532_s19 = spop %5531 }
 0x342   : > { %v1633_v55 = vstv %s5532_s19 }
 0x343   : > { %v1634_v62 = vmul.f32 %v1633_v55, %v6510_v12 }
 0x345   : > { %v1635_v15 = vadd.f32 1e-05, %v1634_v62 }
 0x347   : > { %5571 = vrsqrt.f32 %v1635_v15  ;;  %vm1642_vm9 = vweird.f32 %v1635_v15 }
 0x34d   : > { %v5572_v18 = vpop.eup %5571 }
 0x34e   : > { %v1637_v23 = vmul.f32 %v5572_v18, %v1635_v15  ;;  %vm1643_vm15 = vweird.f32 %v5572_v18 }
 0x34f   : > { %vm1644_vm11 = vmor %vm1642_vm9, %vm1643_vm15 }
 0x350   : > { %v1638_v34 = vmul.f32 %v5572_v18, %v1637_v23 }
 0x352   : > { %v1639_v42 = vmul.f32 0.5, %v1638_v34 }
 0x354   : > { %v1640_v58 = vsub.f32 1.5, %v1639_v42 }
 0x356   : > { %v1641_v10 = vmul.f32 %v5572_v18, %v1640_v58 }
 0x358   : > { %v6536_v14 = vsel %vm1644_vm11, %v5572_v18, %v1641_v10 }
 0x359   : > { %v1646_v3 = vmul.f32 %v6536_v14, %v1601_v20  ;;  %v1647_v8 = vmul.f32 %v6536_v14, %v1602_v21  ;;  %v1648_v7 = vmul.f32 %v6536_v14, %v1603_v22  ;;  %v1649_v19 = vmul.f32 %v6536_v14, %v1604_v29 }
 0x35a   : > { %v1650_v39 = vmul.f32 %v6536_v14, %v1605_v5  ;;  %v1652_v20 = vmul.f32 %v6536_v14, %v1607_v40 }
 0x35b   : > { %v1660_v60 = vmul.f32 %v6534_v0, %v1646_v3  ;;  %v1661_v30 = vmul.f32 %v6534_v0, %v1647_v8  ;;  %v1662_v1 = vmul.f32 %v6534_v0, %v1648_v7  ;;  %v1663_v26 = vmul.f32 %v6534_v0, %v1649_v19 }
 0x35c   : > { %v1664_v37 = vmul.f32 %v6534_v0, %v1650_v39  ;;  %v1666_v54 = vmul.f32 %v6534_v0, %v1652_v20 }
 0x35d   : > { %v6552_v21 = vadd.f32 %v6548_v38, %v1660_v60  ;;  %v6555_v22 = vadd.f32 %v6548_v38, %v1661_v30  ;;  %v6558_v29 = vadd.f32 %v6548_v38, %v1662_v1  ;;  %v6561_v5 = vadd.f32 %v6548_v38, %v1663_v26 }
 0x35e   : > { %v6564_v13 = vadd.f32 %v6548_v38, %v1664_v37  ;;  %v6583_v63 = vadd.f32 %v6548_v38, %v1666_v54  ;;  %v1653_v30 = vmul.f32 %v6536_v14, %v6517_v9 }
 0x35f   : > { %v6568_v59 = vmul.f32 0.70710677, %v6552_v21  ;;  %v6571_v40 = vmul.f32 0.70710677, %v6555_v22  ;;  %v6574_v48 = vmul.f32 0.70710677, %v6558_v29 }
 0x360   : > { %v6577_v49 = vmul.f32 0.70710677, %v6561_v5  ;;  %v6580_v57 = vmul.f32 0.70710677, %v6564_v13  ;;  %v6604_v2 = vmul.f32 0.70710677, %v6583_v63 }
 0x361   : > { %v6586_v43 = vand.u32 2147483647, %v6568_v59  ;;  %v6589_v4 = vand.u32 2147483647, %v6571_v40  ;;  %v6592_v16 = vand.u32 2147483647, %v6574_v48 }
 0x362   : > { %v6595_v56 = vand.u32 2147483647, %v6577_v49  ;;  %v6598_v47 = vand.u32 2147483647, %v6580_v57  ;;  %v6612_v34 = vand.u32 2147483647, %v6604_v2 }
 0x363   : > { %v1722_v31 = vmul.f32 0.3275911, %v6586_v43  ;;  %v1723_v44 = vmul.f32 0.3275911, %v6589_v4  ;;  %v1724_v33 = vmul.f32 0.3275911, %v6592_v16 }
 0x364   : > { %v1725_v46 = vmul.f32 0.3275911, %v6595_v56  ;;  %v1726_v55 = vmul.f32 0.3275911, %v6598_v47  ;;  %v1728_v58 = vmul.f32 0.3275911, %v6612_v34 }
 0x365   : > { %v6608_v62 = vadd.f32 1.0, %v1722_v31  ;;  %v1731_v15 = vadd.f32 1.0, %v1723_v44  ;;  %v1732_v18 = vadd.f32 1.0, %v1724_v33 }
 0x366   : > { %v1733_v23 = vadd.f32 1.0, %v1725_v46  ;;  %v6614_v42 = vadd.f32 1.0, %v1726_v55  ;;  %v6624_v1 = vadd.f32 1.0, %v1728_v58 }
 0x367   : > { %5573 = vrcp.f32 %v6608_v62  ;;  %v1762_v8 = vand.u32 2147483647, %v1731_v15  ;;  %v1764_v60 = vand.u32 2147483648, %v1731_v15  ;;  %vm1758_vm2 = vweird.f32 %v1731_v15 }
 0x368   : > { %5575 = vrcp.f32 %v1731_v15  ;;  %v1777_v54 = vand.u32 2147483647, %v1732_v18  ;;  %v1779_v33 = vand.u32 2147483648, %v1732_v18  ;;  %vm1788_vm11 = vweird.f32 %v1733_v23 }
 0x369   : > { %5577 = vrcp.f32 %v1732_v18  ;;  %vm6626_vm14 = vcmp.eq.f32.partialorder %v1762_v8, 8.507059e+37  ;;  %v1765_v9 = vor.u32 1.1754944e-38, %v1764_v60  ;;  %v1792_v45 = vand.u32 2147483647, %v1733_v23 }
 0x36a   : > { %5579 = vrcp.f32 %v1733_v23  ;;  %v1794_v8 = vand.u32 2147483648, %v1733_v23  ;;  %vm9250_vm7 = vweird.f32 %v1732_v18 }
 0x36b   : > { %5581 = vrcp.f32 %v6614_v42  ;;  %vm1793_vm6 = vcmp.eq.f32.partialorder %v1792_v45, 8.507059e+37  ;;  %v1667_v45 = vmul.f32 %v6534_v0, %v1653_v30 }
 0x36c   : > { %5583 = vrcp.f32 %v6624_v1 }
 0x36d   : > { %v6617_v10 = vpop.eup %5573 }
 0x36e   : > { %v5576_v3 = vpop.eup %5575  ;;  %v1739_v19 = vmul.f32 %v6617_v10, %v6608_v62 }
 0x36f   : > { %v5578_v7 = vpop.eup %5577  ;;  %v1754_v39 = vmul.f32 %v5576_v3, %v1731_v15  ;;  %vm1759_vm15 = vweird.f32 %v5576_v3  ;;  %v1809_v15 = vand.u32 2147483648, %v6614_v42 }
 0x370   : > { %v1769_v26 = vmul.f32 %v5578_v7, %v1732_v18  ;;  %v5580_v37 = vpop.eup %5579  ;;  %v1740_v12 = vsub.f32 1.0, %v1739_v19  ;;  %vm1774_vm9 = vweird.f32 %v5578_v7  ;;  %vm6632_vm4 = vmor %vm1758_vm2, %vm1759_vm15  ;;  %vm1744_vm2 = vweird.f32 %v6617_v10 }
 0x371   : > { %v1755_v20 = vsub.f32 1.0, %v1754_v39  ;;  %v1784_v46 = vmul.f32 %v5580_v37, %v1733_v23  ;;  %v5582_v55 = vpop.eup %5581  ;;  %vm1789_vm0 = vweird.f32 %v5580_v37  ;;  %vm6638_vm5 = vmor %vm9250_vm7, %vm1774_vm9  ;;  %vm1778_vm15 = vcmp.eq.f32.partialorder %v1777_v54, 8.507059e+37 }
 0x372   : > { %v1770_v44 = vsub.f32 1.0, %v1769_v26  ;;  %v1799_v39 = vmul.f32 %v5582_v55, %v6614_v42  ;;  %v1741_v60 = vmul.f32 %v6617_v10, %v1740_v12  ;;  %v1780_v12 = vor.u32 1.1754944e-38, %v1779_v33  ;;  %vm1790_vm7 = vmor %vm1788_vm11, %vm1789_vm0 }
 0x373   : > { %v1756_v17 = vmul.f32 %v5576_v3, %v1755_v20  ;;  %v1785_v11 = vsub.f32 1.0, %v1784_v46  ;;  %vm1803_vm9 = vweird.f32 %v6614_v42  ;;  %v1749_v23 = vand.u32 2147483648, %v6608_v62 }
 0x374   : > { %v1771_v58 = vmul.f32 %v5578_v7, %v1770_v44  ;;  %v1800_v19 = vsub.f32 1.0, %v1799_v39  ;;  %v1795_v39 = vor.u32 1.1754944e-38, %v1794_v8  ;;  %v1742_v35 = vadd.f32 %v6617_v10, %v1741_v60 }
 0x375   : > { %v1757_v32 = vadd.f32 %v5576_v3, %v1756_v17  ;;  %v1786_v61 = vmul.f32 %v5580_v37, %v1785_v11  ;;  %v1807_v17 = vand.u32 2147483647, %v6614_v42  ;;  %vm1743_vm11 = vweird.f32 %v6608_v62 }
 0x376   : > { %v1772_v26 = vadd.f32 %v5578_v7, %v1771_v58  ;;  %v1801_v58 = vmul.f32 %v5582_v55, %v1800_v19  ;;  %v1750_v30 = vor.u32 1.1754944e-38, %v1749_v23 }
 0x377   : > { %v1761_v44 = vsel %vm6632_vm4, %v5576_v3, %v1757_v32  ;;  %v1787_v46 = vadd.f32 %v5580_v37, %v1786_v61  ;;  %v1810_v3 = vor.u32 1.1754944e-38, %v1809_v15  ;;  %vm1808_vm0 = vcmp.eq.f32.partialorder %v1807_v17, 8.507059e+37  ;;  %v6680_v17 = vpop.eup %5583 }
 0x378   : > { %v1776_v11 = vsel %vm6638_vm5, %v5578_v7, %v1772_v26  ;;  %v1802_v41 = vadd.f32 %v5582_v55, %v1801_v58  ;;  %v6654_v32 = vsel %vm6626_vm14, %v1765_v9, %v1761_v44  ;;  %vm9253_vm5 = vweird.f32 %v5582_v55  ;;  %vm1745_vm14 = vmor %vm1743_vm11, %vm1744_vm2 }
 0x379   : > { %v1791_v18 = vsel %vm1790_vm7, %v5580_v37, %v1787_v46  ;;  %v6656_v61 = vsel %vm1778_vm15, %v1780_v12, %v1776_v11  ;;  %vm1805_vm4 = vmor %vm1803_vm9, %vm9253_vm5  ;;  %v1747_v37 = vand.u32 2147483647, %v6608_v62  ;;  %v1859_v31 = vmul.f32 1.0614054, %v6654_v32 }
 0x37a   : > { %v6660_v7 = vsel %vm1793_vm6, %v1795_v39, %v1791_v18  ;;  %v1806_v42 = vsel %vm1805_vm4, %v5582_v55, %v1802_v41  ;;  %v1860_v33 = vmul.f32 1.0614054, %v6656_v61  ;;  %v1746_v9 = vsel %vm1745_vm14, %v6617_v10, %v1742_v35 }
 0x37b   : > { %v6665_v54 = vsel %vm1808_vm0, %v1810_v3, %v1806_v42  ;;  %v1861_v41 = vmul.f32 1.0614054, %v6660_v7  ;;  %v6676_v62 = vadd.f32 %v6548_v38, %v1667_v45  ;;  %vm1748_vm6 = vcmp.eq.f32.partialorder %v1747_v37, 8.507059e+37 }
 0x37c   : > { %v1862_v55 = vmul.f32 1.0614054, %v6665_v54  ;;  %v6678_v8 = vsel %vm1748_vm6, %v1750_v30, %v1746_v9  ;;  %v1867_v26 = vadd.f32 -1.4531521, %v1859_v31  ;;  %v1868_v19 = vadd.f32 -1.4531521, %v1860_v33 }
 0x37d   : > { %v1869_v60 = vadd.f32 -1.4531521, %v1861_v41  ;;  %v1651_v10 = vmul.f32 %v6536_v14, %v6515_v6  ;;  %v6685_v15 = vmul.f32 0.70710677, %v6676_v62  ;;  %v1858_v44 = vmul.f32 1.0614054, %v6678_v8 }
 0x37e   : > { %v1870_v20 = vadd.f32 -1.4531521, %v1862_v55  ;;  %v1875_v11 = vmul.f32 %v1867_v26, %v6654_v32  ;;  %v1876_v46 = vmul.f32 %v1868_v19, %v6656_v61  ;;  %v1829_v12 = vmul.f32 %v6680_v17, %v6624_v1 }
 0x37f   : > { %v1877_v58 = vmul.f32 %v1869_v60, %v6660_v7  ;;  %v1665_v39 = vmul.f32 %v6534_v0, %v1651_v10  ;;  %v6696_v6 = vand.u32 2147483647, %v6685_v15  ;;  %v1866_v14 = vadd.f32 -1.4531521, %v1858_v44 }
 0x380   : > { %v1878_v18 = vmul.f32 %v1870_v20, %v6665_v54  ;;  %v1883_v35 = vadd.f32 1.4214138, %v1875_v11  ;;  %v1884_v3 = vadd.f32 1.4214138, %v1876_v46  ;;  %v1830_v42 = vsub.f32 1.0, %v1829_v12 }
 0x381   : > { %v1885_v23 = vadd.f32 1.4214138, %v1877_v58  ;;  %v6699_v37 = vadd.f32 %v6548_v38, %v1665_v39  ;;  %v1729_v31 = vmul.f32 0.3275911, %v6696_v6  ;;  %v1874_v33 = vmul.f32 %v1866_v14, %v6678_v8 }
 0x382   : > { %v1886_v45 = vadd.f32 1.4214138, %v1878_v18  ;;  %v1891_v9 = vmul.f32 %v1883_v35, %v6654_v32  ;;  %v1892_v0 = vmul.f32 %v1884_v3, %v6656_v61  ;;  %v1831_v30 = vmul.f32 %v6680_v17, %v1830_v42 }
 0x383   : > { %v1893_v41 = vmul.f32 %v1885_v23, %v6660_v7  ;;  %v6709_v26 = vmul.f32 0.70710677, %v6699_v37  ;;  %v6711_v19 = vadd.f32 1.0, %v1729_v31  ;;  %v1882_v38 = vadd.f32 1.4214138, %v1874_v33 }
 0x384   : > { %v1894_v55 = vmul.f32 %v1886_v45, %v6665_v54  ;;  %vm1833_vm2 = vweird.f32 %v6624_v1  ;;  %v1899_v60 = vadd.f32 -0.28449672, %v1891_v9  ;;  %v1900_v20 = vadd.f32 -0.28449672, %v1892_v0 }
 0x385   : > { %v1931_v10 = vsub.f32 0.0, %v6589_v4  ;;  %v1901_v44 = vadd.f32 -0.28449672, %v1893_v41  ;;  %v1932_v11 = vsub.f32 0.0, %v6592_v16  ;;  %v1933_v46 = vsub.f32 0.0, %v6595_v56 }
 0x386   : > { %v1934_v58 = vsub.f32 0.0, %v6598_v47  ;;  %v1832_v12 = vadd.f32 %v6680_v17, %v1831_v30  ;;  %vm1834_vm15 = vweird.f32 %v6680_v17  ;;  %v1839_v18 = vand.u32 2147483648, %v6624_v1 }
 0x387   : > { %v1902_v39 = vadd.f32 -0.28449672, %v1894_v55  ;;  %v1890_v14 = vmul.f32 %v1882_v38, %v6678_v8  ;;  %v1939_v35 = vmul.f32 %v1931_v10, %v6589_v4  ;;  %v1940_v3 = vmul.f32 %v1932_v11, %v6592_v16  ;;  %vm6735_vm7 = vmor %vm1833_vm2, %vm1834_vm15 }
 0x388   : > { %v1941_v23 = vmul.f32 %v1933_v46, %v6595_v56  ;;  %v1907_v42 = vmul.f32 %v1899_v60, %v6654_v32  ;;  %v1908_v45 = vmul.f32 %v1900_v20, %v6656_v61  ;;  %v1930_v31 = vsub.f32 0.0, %v6586_v43 }
 0x389   : > { %v1942_v33 = vmul.f32 %v1934_v58, %v6598_v47  ;;  %5585 = vrcp.f32 %v6711_v19  ;;  %v1909_v9 = vmul.f32 %v1901_v44, %v6660_v7  ;;  %v1948_v0 = vmul.f32 1.442695, %v1939_v35 }
 0x38a   : > { %v1950_v41 = vmul.f32 1.442695, %v1940_v3  ;;  %v1837_v16 = vand.u32 2147483647, %v6624_v1  ;;  %v1910_v56 = vmul.f32 %v1902_v39, %v6665_v54  ;;  %v1952_v30 = vmul.f32 1.442695, %v1941_v23 }
 0x38b   : > { %v1836_v47 = vsel %vm6735_vm7, %v6680_v17, %v1832_v12  ;;  %v1898_v55 = vadd.f32 -0.28449672, %v1890_v14  ;;  %v1954_v38 = vmul.f32 1.442695, %v1942_v33  ;;  %v1915_v60 = vadd.f32 0.2548296, %v1907_v42 }
 0x38c   : > { %v1916_v20 = vadd.f32 0.2548296, %v1908_v45  ;;  %v1938_v10 = vmul.f32 %v1930_v31, %v6586_v43  ;;  %5587 = vpow2.f32 %v1948_v0  ;;  %v6746_v44 = vand.u32 2147483647, %v6709_v26 }
 0x38d   : > { %v1840_v11 = vor.u32 1.1754944e-38, %v1839_v18  ;;  %v1917_v46 = vadd.f32 0.2548296, %v1909_v9  ;;  %5589 = vpow2.f32 %v1950_v41  ;;  %vm1838_vm9 = vcmp.eq.f32.partialorder %v1837_v16, 8.507059e+37 }
 0x38e   : > { %v1918_v1 = vadd.f32 0.2548296, %v1910_v56  ;;  %5591 = vpow2.f32 %v1952_v30  ;;  %v1906_v17 = vmul.f32 %v1898_v55, %v6678_v8  ;;  %v1923_v12 = vmul.f32 %v1915_v60, %v6654_v32 }
 0x38f   : > { %v6748_v58 = vpop.eup %5585  ;;  %v6750_v39 = vsel %vm1838_vm9, %v1840_v11, %v1836_v47  ;;  %5593 = vpow2.f32 %v1954_v38  ;;  %v1924_v43 = vmul.f32 %v1916_v20, %v6656_v61  ;;  %v1946_v14 = vmul.f32 1.442695, %v1938_v10 }
 0x390   : > { %v1727_v35 = vmul.f32 0.3275911, %v6746_v44  ;;  %v1925_v18 = vmul.f32 %v1917_v46, %v6660_v7  ;;  %v1844_v23 = vmul.f32 %v6748_v58, %v6711_v19  ;;  %v1864_v42 = vmul.f32 1.0614054, %v6750_v39 }
 0x391   : > { %v1926_v45 = vmul.f32 %v1918_v1, %v6665_v54  ;;  %v1914_v33 = vadd.f32 0.2548296, %v1906_v17  ;;  %vm1700_vm5 = vcmp.ge.f32.partialorder %v6574_v48, 0.0  ;;  %5595 = vpow2.f32 %v1946_v14 }
 0x392   : > { %v5588_v3 = vpop.eup %5587  ;;  %vm1702_vm4 = vcmp.ge.f32.partialorder %v6580_v57, 0.0  ;;  %v6763_v7 = vadd.f32 1.0, %v1727_v35  ;;  %v1845_v4 = vsub.f32 1.0, %v1844_v23  ;;  %v1872_v16 = vadd.f32 -1.4531521, %v1864_v42 }
 0x393   : > { %v5590_v31 = vpop.eup %5589  ;;  %v1963_v32 = vmul.f32 %v5588_v3, %v1923_v12  ;;  %vm1699_vm0 = vcmp.ge.f32.partialorder %v6571_v40, 0.0  ;;  %vm1701_vm11 = vcmp.ge.f32.partialorder %v6577_v49, 0.0  ;;  %v9100_v54 = vmov -1.0  }
 0x394   : > { %v5592_v9 = vpop.eup %5591  ;;  %v1964_v61 = vmul.f32 %v5590_v31, %v1924_v43  ;;  %v1708_v48 = vsel %vm1700_vm5, 1.0, %v9100_v54  ;;  %v1922_v47 = vmul.f32 %v1914_v33, %v6678_v8  ;;  %v1684_v10 = vmul.f32 0.5, %v6558_v29 }
 0x395   : > { %v5594_v0 = vpop.eup %5593  ;;  %v1965_v41 = vmul.f32 %v5592_v9, %v1925_v18  ;;  %v1971_v55 = vsub.f32 1.0, %v1963_v32  ;;  %v1710_v11 = vsel %vm1702_vm4, 1.0, %v9100_v54  ;;  %5597 = vrcp.f32 %v6763_v7 }
 0x396   : > { %v1966_v56 = vmul.f32 %v5594_v0, %v1926_v45  ;;  %v1972_v30 = vsub.f32 1.0, %v1964_v61  ;;  %v1846_v1 = vmul.f32 %v6748_v58, %v1845_v4  ;;  %v1880_v17 = vmul.f32 %v1872_v16, %v6750_v39 }
 0x397   : > { %v1973_v38 = vsub.f32 1.0, %v1965_v41  ;;  %v5596_v46 = vpop.eup %5595  ;;  %v1686_v8 = vmul.f32 0.5, %v6564_v13  ;;  %v1707_v14 = vsel %vm1699_vm0, 1.0, %v9100_v54  ;;  %v1709_v29 = vsel %vm1701_vm11, 1.0, %v9100_v54 }
 0x398   : > { %v1974_v60 = vsub.f32 1.0, %v1966_v56  ;;  %v1980_v20 = vmul.f32 %v1972_v30, %v1708_v48  ;;  %v1962_v57 = vmul.f32 %v5596_v46, %v1922_v47  ;;  %v1979_v35 = vmul.f32 %v1971_v55, %v1707_v14 }
 0x399   : > { %v1981_v18 = vmul.f32 %v1973_v38, %v1709_v29  ;;  %v1847_v42 = vadd.f32 %v6748_v58, %v1846_v1  ;;  %vm1849_vm14 = vweird.f32 %v6748_v58  ;;  %v1888_v45 = vadd.f32 1.4214138, %v1880_v17 }
 0x39a   : > { %v1982_v12 = vmul.f32 %v1974_v60, %v1710_v11  ;;  %v1988_v43 = vadd.f32 1.0, %v1980_v20  ;;  %vm1698_vm6 = vcmp.ge.f32.partialorder %v6568_v59, 0.0  ;;  %vm1848_vm2 = vweird.f32 %v6711_v19 }
 0x39b   : > { %v5598_v40 = vpop.eup %5597  ;;  %v1854_v49 = vand.u32 2147483648, %v6711_v19  ;;  %v1852_v31 = vand.u32 2147483647, %v6711_v19  ;;  %v1970_v33 = vsub.f32 1.0, %v1962_v57  ;;  %v1987_v9 = vadd.f32 1.0, %v1979_v35  ;;  %vm1850_vm15 = vmor %vm1848_vm2, %vm1849_vm14 }
 0x39c   : > { %v1990_v3 = vadd.f32 1.0, %v1982_v12  ;;  %v6783_v23 = vmul.f32 %v1988_v43, %v1684_v10  ;;  %v1989_v32 = vadd.f32 1.0, %v1981_v18  ;;  %v1683_v61 = vmul.f32 0.5, %v6555_v22 }
 0x39d   : > { %v1685_v0 = vmul.f32 0.5, %v6561_v5  ;;  %v1851_v41 = vsel %vm1850_vm15, %v6748_v58, %v1847_v42  ;;  %v1896_v59 = vmul.f32 %v1888_v45, %v6750_v39  ;;  %v1706_v4 = vsel %vm1698_vm6, 1.0, %v9100_v54 }
 0x39e   : > { %v6787_v13 = vmul.f32 %v1990_v3, %v1686_v8  ;;  %2508 = vrot.lane.b32.xlu2 %v6783_v23, %s5843_s28  ;;  %2448 = vrot.lane.b32.xlu1 %v6783_v23, %s5844_s29  ;;  %v1814_v16 = vmul.f32 %v5598_v40, %v6763_v7  ;;  %v1855_v19 = vor.u32 1.1754944e-38, %v1854_v49  ;;  %v1936_v56 = vsub.f32 0.0, %v6612_v34 }
 0x39f   : > { %vm1853_vm7 = vcmp.eq.f32.partialorder %v1852_v31, 8.507059e+37  ;;  %v1978_v30 = vmul.f32 %v1970_v33, %v1706_v4  ;;  %v6806_v48 = vmul.f32 %v1987_v9, %v1683_v61  ;;  %v6808_v47 = vmul.f32 %v1989_v32, %v1685_v0 }
 0x3a0   : > { %2512 = vrot.lane.b32.xlu0 %v6787_v13, %s5843_s28  ;;  %v1856_v22 = vsel %vm1853_vm7, %v1855_v19, %v1851_v41  ;;  %v1904_v55 = vadd.f32 -0.28449672, %v1896_v59  ;;  %v1944_v5 = vmul.f32 %v1936_v56, %v6612_v34  ;;  %v1815_v58 = vsub.f32 1.0, %v1814_v16 }
 0x3a1   : > { %v1865_v38 = vmul.f32 1.0614054, %v1856_v22  ;;  %v1986_v60 = vadd.f32 1.0, %v1978_v30  ;;  %v1682_v20 = vmul.f32 0.5, %v6552_v21  ;;  %vm1819_vm9 = vweird.f32 %v5598_v40 }
 0x3a2   : > { %v1912_v10 = vmul.f32 %v1904_v55, %v6750_v39  ;;  %v1958_v11 = vmul.f32 1.442695, %v1944_v5  ;;  %v1816_v46 = vmul.f32 %v5598_v40, %v1815_v58  ;;  %v1824_v21 = vand.u32 2147483648, %v6763_v7 }
 0x3a3   : > { %v1873_v1 = vadd.f32 -1.4531521, %v1865_v38  ;;  %v6819_v17 = vmul.f32 %v1986_v60, %v1682_v20  ;;  %vm1818_vm5 = vweird.f32 %v6763_v7  ;;  %v1822_v8 = vand.u32 2147483647, %v6763_v7 }
 0x3a4   : > { %v1920_v12 = vadd.f32 0.2548296, %v1912_v10  ;;  %5599 = vpow2.f32 %v1958_v11  ;;  %v1817_v34 = vadd.f32 %v5598_v40, %v1816_v46  ;;  %vm1820_vm4 = vmor %vm1818_vm5, %vm1819_vm9  ;;  %v1825_v18 = vor.u32 1.1754944e-38, %v1824_v21  ;;  %v6882_v21 = vpop.permute.xlu2 %2224 }
 0x3a5   : > { %v1881_v43 = vmul.f32 %v1873_v1, %v1856_v22  ;;  %vm1823_vm0 = vcmp.eq.f32.partialorder %v1822_v8, 8.507059e+37  ;;  %vm1704_vm11 = vcmp.ge.f32.partialorder %v6604_v2, 0.0  ;;  %v1688_v59 = vmul.f32 0.5, %v6583_v63 }
 0x3a6   : > { %2510 = vrot.lane.b32.xlu2 %v6808_v47, %s5843_s28  ;;  %2446 = vrot.lane.b32.xlu1 %v6806_v48, %s5844_s29  ;;  %v1928_v14 = vmul.f32 %v1920_v12, %v6750_v39  ;;  %v1821_v29 = vsel %vm1820_vm4, %v5598_v40, %v1817_v34  ;;  %v1937_v39 = vsub.f32 0.0, %v6696_v6  ;;  %v1712_v31 = vsel %vm1704_vm11, 1.0, %v9100_v54 }
 0x3a7   : > { %v1889_v57 = vadd.f32 1.4214138, %v1881_v43  ;;  %v1826_v42 = vsel %vm1823_vm0, %v1825_v18, %v1821_v29  ;;  %v1935_v55 = vsub.f32 0.0, %v6746_v44  ;;  %vm1705_vm14 = vcmp.ge.f32.partialorder %v6685_v15, 0.0 }
 0x3a8   : > { %2382 = vrot.lane.b32.xlu0 %v6808_v47, %s5845_s30  ;;  %v1863_v7 = vmul.f32 1.0614054, %v1826_v42  ;;  %v1945_v33 = vmul.f32 %v1937_v39, %v6696_v6  ;;  %v1713_v60 = vsel %vm1705_vm14, 1.0, %v9100_v54  ;;  %v1689_v15 = vmul.f32 0.5, %v6676_v62 }
 0x3a9   : > { %v1897_v45 = vmul.f32 %v1889_v57, %v1856_v22  ;;  %v1943_v58 = vmul.f32 %v1935_v55, %v6746_v44  ;;  %vm1703_vm6 = vcmp.ge.f32.partialorder %v6709_v26, 0.0  ;;  %v1687_v26 = vmul.f32 0.5, %v6699_v37 }
 0x3aa   : > { %v5600_v35 = vpop.eup %5599  ;;  %v1871_v9 = vadd.f32 -1.4531521, %v1863_v7  ;;  %v1960_v2 = vmul.f32 1.442695, %v1945_v33  ;;  %v1711_v62 = vsel %vm1703_vm6, 1.0, %v9100_v54  ;;  %vm9257_vm2 = vcmask 777216  }
 0x3ab   : > { %v1968_v3 = vmul.f32 %v5600_v35, %v1928_v14  ;;  %v1905_v49 = vadd.f32 -0.28449672, %v1897_v45  ;;  %v1956_v20 = vmul.f32 1.442695, %v1943_v58  ;;  %v6891_v14 = vpop.permute.xlu1 %2520  ;;  %vm9258_vm15 = vmmov %vm9257_vm2  ;;  %vm9261_vm5 = vnez %v9178_v28 }
 0x3ac   : > { %v1879_v0 = vmul.f32 %v1871_v9, %v1826_v42  ;;  %5601 = vpow2.f32 %v1960_v2  ;;  %v6900_v35 = vpop.permute.xlu2 %2460  ;;  %vm9259_vm7 = vmmov %vm9257_vm2  ;;  %vm9262_vm4 = vnez %v9172_v25  ;;  %vm9263_vm0 = vcmask 785408  }
 0x3ad   : > { %v1976_v40 = vsub.f32 1.0, %v1968_v3  ;;  %v1913_v61 = vmul.f32 %v1905_v49, %v1856_v22  ;;  %5603 = vpow2.f32 %v1956_v20  ;;  %vm9260_vm9 = vmmov %vm9257_vm2  ;;  %vm9265_vm14 = vcmask 793600  }
 0x3ae   : > { %2314 = vrot.lane.b32.xlu1 %v6808_v47, %s5846_s0  ;;  %2504 = vrot.lane.b32.xlu2 %v6819_v17, %s5843_s28  ;;  %v1887_v6 = vadd.f32 1.4214138, %v1879_v0  ;;  %vm9264_vm11 = vmmov %vm9263_vm0 }
 0x3af   : > { %v1984_v32 = vmul.f32 %v1976_v40, %v1712_v31  ;;  %v1921_v4 = vadd.f32 0.2548296, %v1913_v61  ;;  %vm9266_vm6 = vmmov %vm9263_vm0 }
 0x3b0   : > { %2452 = vrot.lane.b32.xlu0 %v6787_v13, %s5844_s29  ;;  %v1895_v56 = vmul.f32 %v1887_v6, %v1826_v42 }
 0x3b1   : > { %v1992_v41 = vadd.f32 1.0, %v1984_v32  ;;  %v1929_v19 = vmul.f32 %v1921_v4, %v1856_v22 }
 0x3b2   : > { %v5602_v30 = vpop.eup %5601  ;;  %v1903_v5 = vadd.f32 -0.28449672, %v1895_v56 }
 0x3b3   : > { %v6848_v16 = vmul.f32 %v1992_v41, %v1688_v59  ;;  %v1969_v63 = vmul.f32 %v5602_v30, %v1929_v19  ;;  %v5604_v12 = vpop.eup %5603  ;;  %v6904_v18 = vpop.permute.xlu1 %2156 }
 0x3b4   : > { %v1911_v38 = vmul.f32 %v1903_v5, %v1826_v42 }
 0x3b5   : > { %v1977_v22 = vsub.f32 1.0, %v1969_v63 }
 0x3b6   : > { %2384 = vrot.lane.b32.xlu1 %v6787_v13, %s5845_s30  ;;  %2506 = vrot.lane.b32.xlu2 %v6806_v48, %s5843_s28  ;;  %v1919_v11 = vadd.f32 0.2548296, %v1911_v38 }
 0x3b7   : > { %v1985_v10 = vmul.f32 %v1977_v22, %v1713_v60 }
 0x3b8   : > { %2376 = vrot.lane.b32.xlu0 %v6819_v17, %s5845_s30  ;;  %v1927_v46 = vmul.f32 %v1919_v11, %v1826_v42  ;;  %v6918_v42 = vpop.permute.xlu0 %2096 }
 0x3b9   : > { %v1993_v44 = vadd.f32 1.0, %v1985_v10 }
 0x3ba   : > { %v1967_v34 = vmul.f32 %v5604_v12, %v1927_v46 }
 0x3bb   : > { %v6873_v1 = vmul.f32 %v1993_v44, %v1689_v15  ;;  %v6912_v3 = vpop.permute.xlu1 %2392 }
 0x3bc   : > { %v1975_v43 = vsub.f32 1.0, %v1967_v34 }
 0x3be   : > { %2316 = vrot.lane.b32.xlu1 %v6787_v13, %s5846_s0  ;;  %2450 = vrot.lane.b32.xlu2 %v6808_v47, %s5844_s29  ;;  %v1983_v8 = vmul.f32 %v1975_v43, %v1711_v62 }
 0x3c0   : > { %2308 = vrot.lane.b32.xlu0 %v6819_v17, %s5846_s0  ;;  %v1991_v29 = vadd.f32 1.0, %v1983_v8  ;;  %v6933_v49 = vpop.permute.xlu0 %2028 }
 0x3c2   : > { %v6894_v57 = vmul.f32 %v1991_v29, %v1687_v26 }
 0x3c3   : > { %v6929_v7 = vpop.permute.xlu1 %2324 }
 0x3c6   : > { %2228 = vrot.lane.b32.xlu1 %v6806_v48, %s5847_s17  ;;  %2380 = vrot.lane.b32.xlu2 %v6783_v23, %s5845_s30 }
 0x3c8   : > { %2516 = vrot.lane.b32.xlu0 %v6848_v16, %s5843_s28 }
 0x3ce   : > { %2160 = vrot.lane.b32.xlu1 %v6806_v48, %s9098_s18  ;;  %2444 = vrot.lane.b32.xlu2 %v6819_v17, %s5844_s29 }
 0x3d0   : > { %2230 = vrot.lane.b32.xlu0 %v6783_v23, %s5847_s17 }
 0x3d6   : > { %2312 = vrot.lane.b32.xlu2 %v6783_v23, %s5846_s0  ;;  %2226 = vrot.lane.b32.xlu1 %v6819_v17, %s5847_s17 }
 0x3d8   : > { %2456 = vrot.lane.b32.xlu0 %v6848_v16, %s5844_s29 }
 0x3de   : > { %2378 = vrot.lane.b32.xlu2 %v6806_v48, %s5845_s30  ;;  %2390 = vrot.lane.b32.xlu1 %v6873_v1, %s5845_s30 }
 0x3e0   : > { %2162 = vrot.lane.b32.xlu0 %v6783_v23, %s9098_s18 }
 0x3e6   : > { %2310 = vrot.lane.b32.xlu2 %v6806_v48, %s5846_s0  ;;  %2320 = vrot.lane.b32.xlu1 %v6848_v16, %s5846_s0 }
 0x3e8   : > { %2232 = vrot.lane.b32.xlu0 %v6808_v47, %s5847_s17 }
 0x3ee   : > { %2518 = vrot.lane.b32.xlu2 %v6873_v1, %s5843_s28  ;;  %2032 = vrot.lane.b32.xlu1 %v6806_v48, %s5850_s20 }
 0x3f0   : > { %2454 = vrot.lane.b32.xlu0 %v6894_v57, %s5844_s29 }
 0x3f6   : > { %2514 = vrot.lane.b32.xlu2 %v6894_v57, %s5843_s28  ;;  %2104 = vrot.lane.b32.xlu1 %v6808_v47, %s9256_s25 }
 0x3f8   : > { %2158 = vrot.lane.b32.xlu0 %v6819_v17, %s9098_s18  ;;  %v2509_v37 = vpop.permute.xlu2 %2508 }
 0x3fe   : > { %2458 = vrot.lane.b32.xlu2 %v6873_v1, %s5844_s29  ;;  %2036 = vrot.lane.b32.xlu1 %v6808_v47, %s5850_s20 }
 0x400   : > { %2322 = vrot.lane.b32.xlu0 %v6873_v1, %s5846_s0  ;;  %v2511_v45 = vpop.permute.xlu2 %2510 }
 0x401   : > { %v2524_v39 = vsel %vm9257_vm2, %v2509_v37, %v2511_v45  ;;  %vm9267_vm2 = vnez %v9180_v36 }
 0x402   : > { %5738 = vmatpush.msk.msra.mxu2 %vm6099_vm1, %v2524_v39 }
 0x406   : > { %2388 = vrot.lane.b32.xlu2 %v6848_v16, %s5845_s30  ;;  %2168 = vrot.lane.b32.xlu1 %v6894_v57, %s9098_s18 }
 0x408   : > { %2100 = vrot.lane.b32.xlu0 %v6806_v48, %s9256_s25  ;;  %v2505_v40 = vpop.permute.xlu2 %2504 }
 0x40e   : > { %2164 = vrot.lane.b32.xlu2 %v6808_v47, %s9098_s18  ;;  %2240 = vrot.lane.b32.xlu1 %v6873_v1, %s5847_s17 }
 0x410   : > { %2034 = vrot.lane.b32.xlu0 %v6783_v23, %s5850_s20  ;;  %v2507_v31 = vpop.permute.xlu2 %2506  ;;  %v2449_v33 = vpop.permute.xlu1 %2448 }
 0x411   : > { %v2522_v9 = vsel %vm9258_vm15, %v2505_v40, %v2507_v31  ;;  %v2523_v32 = vsel %vm9259_vm7, %v2507_v31, %v2509_v37  ;;  %vm9268_vm15 = vmmov %vm9263_vm0 }
 0x412   : > { %v6943_v61 = vpop.permute.xlu0 %2512  ;;  %5739 = vmatpush.msk.msra.mxu0 %vm6107_vm3, %v2522_v9  ;;  %5740 = vmatpush.msk.msra.mxu1 %vm9261_vm5, %v2523_v32  ;;  %vm9269_vm7 = vmmov %vm9265_vm14 }
 0x413   : > { %v2525_v2 = vsel %vm9260_vm9, %v2511_v45, %v6943_v61  ;;  %vm9270_vm9 = vnez %v9189_v53 }
 0x414   : > { %5741 = vmatpush.msk.msra.mxu3 %vm9262_vm4, %v2525_v2 }
 0x416   : > { %2386 = vrot.lane.b32.xlu2 %v6894_v57, %s5845_s30  ;;  %2108 = vrot.lane.b32.xlu1 %v6894_v57, %s9256_s25 }
 0x418   : > { %2236 = vrot.lane.b32.xlu0 %v6894_v57, %s5847_s17  ;;  %v2451_v0 = vpop.permute.xlu2 %2450  ;;  %v2447_v41 = vpop.permute.xlu1 %2446 }
 0x419   : > { %v2464_v59 = vsel %vm9263_vm0, %v2449_v33, %v2451_v0  ;;  %v2463_v4 = vsel %vm9264_vm11, %v2447_v41, %v2449_v33  ;;  %vm9271_vm0 = vcmask 1039360  }
 0x41a   : > { %v2383_v6 = vpop.permute.xlu0 %2382  ;;  %2658 = vmatpush.msra.mxu1 %v2463_v4  ;;  %2678 = vmatpush.msra.mxu2 %v2464_v59  ;;  %vm9272_vm11 = vmmov %vm9271_vm0 }
 0x41e   : > { %2102 = vrot.lane.b32.xlu2 %v6783_v23, %s9256_s25  ;;  %2042 = vrot.lane.b32.xlu1 %v6848_v16, %s5850_s20 }
 0x420   : > { %2170 = vrot.lane.b32.xlu0 %v6848_v16, %s9098_s18  ;;  %v2381_v19 = vpop.permute.xlu2 %2380  ;;  %v2315_v56 = vpop.permute.xlu1 %2314 }
 0x421   : > { %v2396_v30 = vsel %vm9265_vm14, %v2381_v19, %v2383_v6  ;;  %vm9273_vm14 = vmmov %vm9269_vm7 }
 0x422   : > { %v6968_v55 = vpop.permute.xlu0 %2452  ;;  %5742 = vmatpush.msk.msra.mxu2 %vm9267_vm2, %v2396_v30 }
 0x423   : > { %v2465_v63 = vsel %vm9266_vm6, %v2451_v0, %v6968_v55  ;;  %vm9274_vm6 = vmmov %vm9269_vm7 }
 0x424   : > { %2698 = vmatpush.msra.mxu3 %v2465_v63 }
 0x426   : > { %2318 = vrot.lane.b32.xlu2 %v6894_v57, %s5846_s0  ;;  %2038 = vrot.lane.b32.xlu1 %v6787_v13, %s5850_s20 }
 0x428   : > { %2166 = vrot.lane.b32.xlu0 %v6787_v13, %s9098_s18  ;;  %v2445_v5 = vpop.permute.xlu2 %2444  ;;  %v6980_v58 = vpop.permute.xlu1 %2384 }
 0x429   : > { %v2462_v22 = vsel %vm9268_vm15, %v2445_v5, %v2447_v41  ;;  %v2397_v38 = vsel %vm9269_vm7, %v2383_v6, %v6980_v58  ;;  %vm9275_vm15 = vnez %v9183_v51  ;;  %vm9276_vm7 = vnez %v9186_v52 }
 0x42a   : > { %v2377_v60 = vpop.permute.xlu0 %2376  ;;  %2638 = vmatpush.msra.mxu0 %v2462_v22  ;;  %5743 = vmatpush.msk.msra.mxu3 %vm9270_vm9, %v2397_v38 }
 0x42e   : > { %2098 = vrot.lane.b32.xlu2 %v6819_v17, %s9256_s25 }
 0x430   : > { %2110 = vrot.lane.b32.xlu0 %v6848_v16, %s9256_s25  ;;  %v2313_v20 = vpop.permute.xlu2 %2312  ;;  %v6991_v10 = vpop.permute.xlu1 %2316 }
 0x431   : > { %v2328_v11 = vsel %vm9271_vm0, %v2313_v20, %v2315_v56  ;;  %v2329_v44 = vsel %vm9272_vm11, %v2315_v56, %v6991_v10  ;;  %vm9277_vm11 = vmmov %vm9271_vm0 }
 0x432   : > { %v2309_v15 = vpop.permute.xlu0 %2308  ;;  %5744 = vmatpush.msk.msra.mxu2 %vm6099_vm1, %v2328_v11  ;;  %5745 = vmatpush.msk.msra.mxu3 %vm9262_vm4, %v2329_v44 }
 0x434   : > { %2681 = vmatpush.msra.mxu2 %v6783_v23  ;;  %2701 = vmatpush.msra.mxu3 %v6808_v47 }
 0x436   : > { %2030 = vrot.lane.b32.xlu2 %v6819_v17, %s5850_s20 }
 0x438   : > { %2106 = vrot.lane.b32.xlu0 %v6787_v13, %s9256_s25  ;;  %v2379_v46 = vpop.permute.xlu2 %2378  ;;  %v2229_v12 = vpop.permute.xlu1 %2228 }
 0x439   : > { %v2394_v34 = vsel %vm9273_vm14, %v2377_v60, %v2379_v46  ;;  %v2395_v43 = vsel %vm9274_vm6, %v2379_v46, %v2381_v19  ;;  %vm9278_vm14 = vcmask 7168  }
 0x43a   : > { %v7008_v62 = vpop.permute.xlu0 %2516  ;;  %5746 = vmatpush.msk.msra.mxu0 %vm9275_vm15, %v2394_v34  ;;  %5747 = vmatpush.msk.msra.mxu1 %vm9276_vm7, %v2395_v43  ;;  %vm9279_vm6 = vmmov %vm9278_vm14 }
 0x43e   : > { %2238 = vrot.lane.b32.xlu2 %v6848_v16, %s5847_s17 }
 0x440   : > { %2044 = vrot.lane.b32.xlu0 %v6873_v1, %s5850_s20  ;;  %v2311_v23 = vpop.permute.xlu2 %2310  ;;  %v2161_v47 = vpop.permute.xlu1 %2160 }
 0x441   : > { %v2326_v8 = vsel %vm9271_vm0, %v2309_v15, %v2311_v23  ;;  %v2327_v29 = vsel %vm9277_vm11, %v2311_v23, %v2313_v20  ;;  %vm9280_vm0 = vmmov %vm9279_vm6  ;;  %vm9281_vm11 = vcmask 252928  }
 0x442   : > { %v2231_v26 = vpop.permute.xlu0 %2230  ;;  %5748 = vmatpush.msk.msra.mxu0 %vm6107_vm3, %v2326_v8  ;;  %5749 = vmatpush.msk.msra.mxu1 %vm9261_vm5, %v2327_v29 }
 0x443   : > { %v2244_v37 = vsel %vm9278_vm14, %v2229_v12, %v2231_v26  ;;  %vm9282_vm14 = vmmov %vm9280_vm0 }
 0x444   : > { %5750 = vmatpush.msk.msra.mxu2 %vm9267_vm2, %v2244_v37  ;;  %2641 = vmatpush.msra.mxu0 %v6819_v17 }
 0x445   : > { %2661 = vmatpush.msra.mxu1 %v6806_v48 }
 0x446   : > { %2234 = vrot.lane.b32.xlu2 %v6787_v13, %s5847_s17 }
 0x448   : > { %v2519_v45 = vpop.permute.xlu2 %2518  ;;  %v2227_v39 = vpop.permute.xlu1 %2226 }
 0x449   : > { %v2242_v40 = vsel %vm9279_vm6, %v6882_v21, %v2227_v39  ;;  %v2243_v31 = vsel %vm9280_vm0, %v2227_v39, %v2229_v12  ;;  %vm9283_vm6 = vmmov %vm9281_vm11 }
 0x44a   : > { %v7034_v33 = vpop.permute.xlu0 %2456  ;;  %5751 = vmatpush.msk.msra.mxu0 %vm9275_vm15, %v2242_v40  ;;  %5752 = vmatpush.msk.msra.mxu1 %vm9276_vm7, %v2243_v31  ;;  %vm9284_vm0 = vmmov %vm9283_vm6 }
 0x44e   : > { %2172 = vrot.lane.b32.xlu2 %v6873_v1, %s9098_s18 }
 0x450   : > { %v7042_v17 = vpop.permute.xlu2 %2514  ;;  %v2391_v48 = vpop.permute.xlu1 %2390 }
 0x452   : > { %v2163_v9 = vpop.permute.xlu0 %2162 }
 0x453   : > { %v2176_v32 = vsel %vm9281_vm11, %v2161_v47, %v2163_v9  ;;  %vm9285_vm11 = vmmov %vm9284_vm0 }
 0x454   : > { %5753 = vmatpush.msk.msra.mxu2 %vm6099_vm1, %v2176_v32 }
 0x456   : > { %2040 = vrot.lane.b32.xlu2 %v6894_v57, %s5850_s20 }
 0x458   : > { %v2459_v21 = vpop.permute.xlu2 %2458  ;;  %v7049_v2 = vpop.permute.xlu1 %2320 }
 0x45a   : > { %v7051_v0 = vpop.permute.xlu0 %2232 }
 0x45b   : > { %v2245_v41 = vsel %vm9282_vm14, %v2231_v26, %v7051_v0  ;;  %vm9286_vm14 = vcmask 261120  }
 0x45c   : > { %5754 = vmatpush.msk.msra.mxu3 %vm9270_vm9, %v2245_v41 }
 0x45e   : > { %2112 = vrot.lane.b32.xlu2 %v6873_v1, %s9256_s25 }
 0x460   : > { %v7059_v59 = vpop.permute.xlu2 %2388  ;;  %v2033_v4 = vpop.permute.xlu1 %2032 }
 0x462   : > { %v7061_v6 = vpop.permute.xlu0 %2454 }
 0x468   : > { %v7063_v19 = vpop.permute.xlu2 %2164  ;;  %v7067_v63 = vpop.permute.xlu1 %2104 }
 0x469   : > { %v2177_v56 = vsel %vm9283_vm6, %v2163_v9, %v7063_v19  ;;  %vm9287_vm6 = vmmov %vm9286_vm14 }
 0x46a   : > { %v2159_v30 = vpop.permute.xlu0 %2158  ;;  %5755 = vmatpush.msk.msra.mxu3 %vm9262_vm4, %v2177_v56  ;;  %vm9290_vm4 = vcmask 269312  }
 0x46b   : > { %v2174_v5 = vsel %vm9284_vm0, %v6904_v18, %v2159_v30  ;;  %v2175_v22 = vsel %vm9285_vm11, %v2159_v30, %v2161_v47  ;;  %vm9288_vm0 = vcmask 777216   ;;  %vm9291_vm1 = vmmov %vm9290_vm4 }
 0x46c   : > { %5756 = vmatpush.msk.msra.mxu0 %vm6107_vm3, %v2174_v5  ;;  %5757 = vmatpush.msk.msra.mxu1 %vm9261_vm5, %v2175_v22  ;;  %v2528_v34 = vsel %vm9288_vm0, %v7008_v62, %v2519_v45  ;;  %vm9289_vm11 = vmmov %vm9288_vm0  ;;  %vm9297_vm0 = vcmask 1039360   ;;  %vm9330_vm5 = vcmask 7168  }
 0x46d   : > { %v2529_v43 = vsel %vm9289_vm11, %v2519_v45, %v6891_v14  ;;  %vm9298_vm11 = vmmov %vm9297_vm0 }
 0x46e   : > { %vm9331_vm3 = vmmov %vm9330_vm5 }
 0x470   : > { %v2387_v38 = vpop.permute.xlu2 %2386  ;;  %v7078_v20 = vpop.permute.xlu1 %2036 }
 0x472   : > { %v2323_v60 = vpop.permute.xlu0 %2322 }
 0x473   : > { %v2332_v39 = vsel %vm9297_vm0, %v7049_v2, %v2323_v60  ;;  %vm9305_vm0 = vcmask 269312  }
 0x478   : > { %v2103_v11 = vpop.permute.xlu2 %2102  ;;  %v7083_v46 = vpop.permute.xlu1 %2168 }
 0x479   : > { %v2117_v44 = vsel %vm9286_vm14, %v2103_v11, %v7067_v63  ;;  %vm9292_vm14 = vcmask 793600  }
 0x47a   : > { %v2101_v18 = vpop.permute.xlu0 %2100  ;;  %2704 = vmatpush.msra.mxu3 %v2117_v44  ;;  %v2401_v29 = vsel %vm9292_vm14, %v2391_v48, %v6912_v3  ;;  %v2333_v3 = vsel %vm9298_vm11, %v2323_v60, %v6929_v7  ;;  %vm9306_vm11 = vmmov %vm9305_vm0  ;;  %v9319_v60 = vld [vmem:[#allocation17_spill] sm:$0xff] }
 0x47b   : > { %v2116_v15 = vsel %vm9287_vm6, %v2101_v18, %v2103_v11  ;;  %vm9293_vm6 = vmmov %vm9292_vm14  ;;  %vm9299_vm14 = vcmask 261120  }
 0x47c   : > { %2684 = vmatpush.msra.mxu2 %v2116_v15  ;;  %v2400_v26 = vsel %vm9293_vm6, %v7059_v59, %v2391_v48  ;;  %vm9300_vm6 = vmmov %vm9299_vm14 }
 0x480   : > { %v2319_v12 = vpop.permute.xlu2 %2318  ;;  %v2241_v31 = vpop.permute.xlu1 %2240 }
 0x482   : > { %v2035_v23 = vpop.permute.xlu0 %2034 }
 0x483   : > { %v2048_v47 = vsel %vm9290_vm4, %v2033_v4, %v2035_v23  ;;  %v2049_v8 = vsel %vm9291_vm1, %v2035_v23, %v7078_v20  ;;  %vm9295_vm1 = vcmask 785408  }
 0x484   : > { %5758 = vmatpush.msk.msra.mxu2 %vm9267_vm2, %v2048_v47  ;;  %5759 = vmatpush.msk.msra.mxu3 %vm9270_vm9, %v2049_v8  ;;  %v2468_v37 = vsel %vm9295_vm1, %v7034_v33, %v2459_v21  ;;  %vm9296_vm4 = vmmov %vm9295_vm1  ;;  %vm9303_vm1 = vcmask 777216   ;;  %vm9315_vm9 = vcmask 1039360   ;;  %vm9320_vm2 = vnez %v9319_v60 }
 0x485   : > { %v2469_v45 = vsel %vm9296_vm4, %v2459_v21, %v6900_v35  ;;  %vm9304_vm4 = vmmov %vm9303_vm1 }
 0x486   : > { %5760 = vmatpush.msk.msrb.mxu2 %vm6296_vm12, %v2528_v34  ;;  %5761 = vmatpush.msk.msrb.mxu3 %vm6341_vm8, %v2529_v43  ;;  %v2527_v7 = vsel %vm9304_vm4, %v7042_v17, %v7008_v62 }
 0x488   : > { %v2099_v40 = vpop.permute.xlu2 %2098  ;;  %2758 = vmatpush.msrb.mxu2 %v2468_v37  ;;  %2778 = vmatpush.msrb.mxu3 %v2469_v45  ;;  %v2109_v22 = vpop.permute.xlu1 %2108 }
 0x489   : > { %v2114_v48 = vsel %vm9299_vm14, %v6918_v42, %v2099_v40  ;;  %v2115_v9 = vsel %vm9300_vm6, %v2099_v40, %v2101_v18  ;;  %v2526_v42 = vsel %vm9303_vm1, %v6943_v61, %v7042_v17  ;;  %vm9307_vm14 = vcmask 793600   ;;  %v9309_v61 = vld [vmem:[#allocation14_spill] sm:$0xff] }
 0x48a   : > { %v2237_v32 = vpop.permute.xlu0 %2236  ;;  %5762 = vmatpush.msk.msrb.mxu2 %vm6310_vm13, %v2400_v26  ;;  %5763 = vmatpush.msk.msrb.mxu3 %vm6401_vm10, %v2401_v29  ;;  %vm9308_vm6 = vmmov %vm9307_vm14  ;;  %vm9310_vm1 = vnez %v9309_v61 }
 0x48b   : > { %2644 = vmatpush.msra.mxu0 %v2114_v48  ;;  %2664 = vmatpush.msra.mxu1 %v2115_v9 }
 0x48c   : > { %5764 = vmatpush.msk.msrb.mxu2 %vm6296_vm12, %v2332_v39  ;;  %5765 = vmatpush.msk.msrb.mxu3 %vm6341_vm8, %v2333_v3 }
 0x48e   : > { %2761 = vmatpush.msrb.mxu2 %v6848_v16  ;;  %2781 = vmatpush.msrb.mxu3 %v6873_v1  ;;  %v2398_v16 = vsel %vm9307_vm14, %v6980_v58, %v2387_v38  ;;  %v2399_v1 = vsel %vm9308_vm6, %v2387_v38, %v7059_v59  ;;  %v2330_v58 = vsel %vm9315_vm9, %v6991_v10, %v2319_v12  ;;  %vm9316_vm14 = vmmov %vm9315_vm9  ;;  %v9317_v38 = vld [vmem:[#allocation16_spill] sm:$0xff]  ;;  %vm9324_vm9 = vcmask 588800  }
 0x48f   : > { %v2331_v59 = vsel %vm9316_vm14, %v2319_v12, %v7049_v2  ;;  %vm9318_vm6 = vnez %v9317_v38  ;;  %v2626_v2 = vld [vmem:[%s9029_s5] sm:$0xff]  ;;  %vm9326_vm14 = vmmov %vm9324_vm9 }
 0x490   : > { %v2031_v21 = vpop.permute.xlu2 %2030  ;;  %v2043_v11 = vpop.permute.xlu1 %2042  ;;  %5504 = vmatmul.msk.f32.vlgmr.msra.gmra.mxu3 %vm9326_vm14, %v2626_v2 }
 0x491   : > { %v2046_v56 = vsel %vm9305_vm0, %v6933_v49, %v2031_v21  ;;  %v2047_v30 = vsel %vm9306_vm11, %v2031_v21, %v2033_v4  ;;  %v9311_v49 = vld [vmem:[#allocation15_spill] sm:$0xff]  ;;  %vm9313_vm0 = vcmask 785408  }
 0x492   : > { %v2171_v5 = vpop.permute.xlu0 %2170  ;;  %5766 = vmatpush.msk.msra.mxu0 %vm9275_vm15, %v2046_v56  ;;  %5767 = vmatpush.msk.msra.mxu1 %vm9276_vm7, %v2047_v30  ;;  %vm9312_vm4 = vnez %v9311_v49  ;;  %v2466_v62 = vsel %vm9313_vm0, %v6968_v55, %v7061_v6  ;;  %vm9314_vm11 = vmmov %vm9313_vm0  ;;  %vm9321_vm0 = vcmask 252928   ;;  %vm9322_vm15 = vcmask 7168  }
 0x493   : > { %v2467_v17 = vsel %vm9314_vm11, %v7061_v6, %v7034_v33  ;;  %v2180_v55 = vsel %vm9321_vm0, %v7083_v46, %v2171_v5  ;;  %vm9323_vm11 = vmmov %vm9322_vm15  ;;  %5501 = vmatmul.msk.f32.vlgmr.msra.gmra.mxu0 %vm9324_vm9, %v2626_v2 }
 0x494   : > { %5768 = vmatpush.msk.msrb.mxu0 %vm9310_vm1, %v2526_v42  ;;  %5769 = vmatpush.msk.msrb.mxu1 %vm9312_vm4, %v2527_v7  ;;  %vm9327_vm0 = vmmov %vm9324_vm9 }
 0x495   : > { %5502 = vmatmul.msk.f32.vlgmr.msra.gmra.mxu1 %vm9327_vm0, %v2626_v2  ;;  %vm9337_vm14 = vmmov %vm9327_vm0 }
 0x496   : > { %2718 = vmatpush.msrb.mxu0 %v2466_v62  ;;  %2738 = vmatpush.msrb.mxu1 %v2467_v17  ;;  %v5681_v62 = vld [vmem:[#allocation2 + $0x30] sm:$0xff] }
 0x498   : > { %v2239_v4 = vpop.permute.xlu2 %2238  ;;  %5770 = vmatpush.msk.msrb.mxu0 %vm9318_vm6, %v2398_v16  ;;  %5771 = vmatpush.msk.msrb.mxu1 %vm9320_vm2, %v2399_v1 }
 0x499   : > { %v2248_v33 = vsel %vm9322_vm15, %v2237_v32, %v2239_v4  ;;  %v2249_v6 = vsel %vm9323_vm11, %v2239_v4, %v2241_v31  ;;  %vm9325_vm15 = vmmov %vm9324_vm9  ;;  %vm9328_vm11 = vcmask 252928   ;;  %vm9332_vm9 = vcmask 261120  }
 0x49a   : > { %v2167_v10 = vpop.permute.xlu0 %2166  ;;  %5772 = vmatpush.msk.msrb.mxu0 %vm9310_vm1, %v2330_v58  ;;  %5773 = vmatpush.msk.msrb.mxu1 %vm9312_vm4, %v2331_v59  ;;  %vm9329_vm7 = vmmov %vm9328_vm11 }
 0x49b   : > { %5774 = vmatpush.msk.msrb.mxu2 %vm6310_vm13, %v2248_v33  ;;  %5775 = vmatpush.msk.msrb.mxu3 %vm6401_vm10, %v2249_v6  ;;  %v2178_v18 = vsel %vm9328_vm11, %v7063_v19, %v2167_v10  ;;  %v2039_v19 = vpop.permute.xlu1 %2038 }
 0x49c   : > { %2721 = vmatpush.msrb.mxu0 %v6787_v13  ;;  %2741 = vmatpush.msrb.mxu1 %v6894_v57  ;;  %v2179_v13 = vsel %vm9329_vm7, %v2167_v10, %v7083_v46  ;;  %v2861_v10 = vld [vmem:[%s9030_s6] sm:$0xff] }
 0x49d   : > { %5776 = vmatpush.msk.msrb.mxu2 %vm6296_vm12, %v2180_v55  ;;  %2864 = vperm.xlu0 %5567, %v2861_v10  }
 0x49e   : > { %5503 = vmatmul.msk.f32.vlgmr.msra.gmra.mxu2 %vm9325_vm15, %v2626_v2 }
 0x4a0   : > { %v2235_v44 = vpop.permute.xlu2 %2234 }
 0x4a1   : > { %v2246_v57 = vsel %vm9330_vm5, %v7051_v0, %v2235_v44  ;;  %v2247_v15 = vsel %vm9331_vm3, %v2235_v44, %v2237_v32  ;;  %vm9333_vm5 = vmmov %vm9329_vm7  ;;  %vm9334_vm3 = vcmask 269312   ;;  %v9344_v44 = vld [vmem:[#allocation19_spill] sm:$0xff] }
 0x4a2   : > { %v2111_v12 = vpop.permute.xlu0 %2110  ;;  %5777 = vmatpush.msk.msrb.mxu0 %vm9318_vm6, %v2246_v57  ;;  %5778 = vmatpush.msk.msrb.mxu1 %vm9320_vm2, %v2247_v15  ;;  %v2050_v43 = vsel %vm9334_vm3, %v7078_v20, %v2039_v19  ;;  %vm9335_vm7 = vmmov %vm9332_vm9 }
 0x4a3   : > { %v2120_v34 = vsel %vm9332_vm9, %v2109_v22, %v2111_v12  ;;  %vm9336_vm15 = vmmov %vm9335_vm7 }
 0x4a4   : > { %2764 = vmatpush.msrb.mxu2 %v2120_v34  ;;  %5779 = vmatpush.msk.msrb.mxu0 %vm9310_vm1, %v2178_v18  ;;  %vm9338_vm0 = vmmov %vm9334_vm3 }
 0x4a5   : > { %5780 = vmatpush.msk.msrb.mxu1 %vm9312_vm4, %v2179_v13  ;;  %vm9339_vm11 = vmmov %vm9338_vm0 }
 0x4a6   : > { %vm9340_vm9 = vmmov %vm9337_vm14 }
 0x4a7   : > { %vm9342_vm3 = vmmov %vm9338_vm0 }
 0x4a8   : > { %v2173_v0 = vpop.permute.xlu2 %2172 }
 0x4a9   : > { %v2181_v46 = vsel %vm9333_vm5, %v2171_v5, %v2173_v0  ;;  %vm9341_vm5 = vmmov %vm9340_vm9 }
 0x4aa   : > { %v2107_v23 = vpop.permute.xlu0 %2106  ;;  %5781 = vmatpush.msk.msrb.mxu3 %vm6341_vm8, %v2181_v46 }
 0x4ab   : > { %v2118_v47 = vsel %vm9335_vm7, %v7067_v63, %v2107_v23  ;;  %v2119_v8 = vsel %vm9336_vm15, %v2107_v23, %v2109_v22  ;;  %vm9343_vm15 = vmmov %vm9341_vm5 }
 0x4ac   : > { %2724 = vmatpush.msrb.mxu0 %v2118_v47  ;;  %2744 = vmatpush.msrb.mxu1 %v2119_v8 }
 0x4ae   : > { %5782 = vmatpush.msk.msrb.mxu0 %vm9318_vm6, %v2050_v43 }
 0x4af   : > { %5505 = vmatmul.msk.f32.vlgmr.msrb.gmra.mxu0 %vm9337_vm14, %v2626_v2 }
 0x4b0   : > { %v2041_v29 = vpop.permute.xlu2 %2040 }
 0x4b1   : > { %v2051_v26 = vsel %vm9338_vm0, %v2039_v19, %v2041_v29  ;;  %v2052_v20 = vsel %vm9339_vm11, %v2041_v29, %v2043_v11 }
 0x4b2   : > { %5783 = vmatpush.msk.msrb.mxu1 %vm9320_vm2, %v2051_v26  ;;  %5784 = vmatpush.msk.msrb.mxu2 %vm6310_vm13, %v2052_v20  ;;  %v2045_v63 = vpop.permute.xlu0 %2044 }
 0x4b3   : > { %5507 = vmatmul.msk.f32.vlgmr.msrb.gmra.mxu2 %vm9340_vm9, %v2626_v2  ;;  %5506 = vmatmul.msk.f32.vlgmr.msrb.gmra.mxu1 %vm9341_vm5, %v2626_v2  ;;  %v2053_v37 = vsel %vm9342_vm3, %v2043_v11, %v2045_v63 }
 0x4b8   : > { %v2113_v45 = vpop.permute.xlu2 %2112 }
 0x4b9   : > { %v2121_v39 = vsel %vm9335_vm7, %v2111_v12, %v2113_v45 }
 0x4ba   : > { %2784 = vmatpush.msrb.mxu3 %v2121_v39 }
 0x4bc   : > { %5785 = vmatpush.msk.msrb.mxu3 %vm6401_vm10, %v2053_v37 }
 0x4bd   : > { %5508 = vmatmul.msk.f32.vlgmr.msrb.gmra.mxu3 %vm9343_vm15, %v2626_v2  ;;  %v2875_v2 = vld [vmem:[%s9031_s7] sm:$0xff] }
 0x4be   : > { %2878 = vperm.xlu0 %5567, %v2875_v2  }
 0x4c6   : > { %3311 = vrot.lane.b32.xlu0 %v5681_v62, %s9256_s25 }
 0x4ce   : > { %3243 = vrot.lane.b32.xlu0 %v5681_v62, %s5850_s20 }
 0x510   : > { %v2647_v40 = vpop.f32.mrf.mxu0 }
 0x512   : > { %v2667_v3 = vpop.f32.mrf.mxu1 }
 0x513   : > { %v2790_v31 = vadd.f32 %v2667_v3, %v2647_v40  ;;  %v2707_v32 = vpop.f32.mrf.mxu3 }
 0x521   : > { %v2687_v48 = vpop.f32.mrf.mxu2 }
 0x522   : > { %v2791_v9 = vadd.f32 %v2790_v31, %v2687_v48 }
 0x524   : > { %v2792_v42 = vadd.f32 %v2791_v9, %v2707_v32 }
 0x52c   : > { %v2727_v7 = vpop.f32.mrf.mxu0 }
 0x52d   : > { %v2793_v21 = vadd.f32 %v2792_v42, %v2727_v7 }
 0x530   : > { %v2747_v56 = vpop.f32.mrf.mxu1 }
 0x531   : > { %v2794_v30 = vadd.f32 %v2793_v21, %v2747_v56 }
 0x536   : > { %v2767_v5 = vpop.f32.mrf.mxu2 }
 0x537   : > { %v2795_v22 = vadd.f32 %v2794_v30, %v2767_v5 }
 0x540   : > { %v2787_v16 = vpop.f32.mrf.mxu3 }
 0x541   : > { %v2796_v1 = vadd.f32 %v2795_v22, %v2787_v16 }
 0x543   : > { %2797 = vadd.xlane.f32.xlu2 %v2796_v1 }
 0x55b   : > { %3735 = vrot.lane.b32.xlu2 %v5681_v62, %s5843_s28 }
 0x563   : > { %3371 = vrot.lane.b32.xlu2 %v5681_v62, %s9098_s18 }
 0x56b   : > { %3607 = vrot.lane.b32.xlu2 %v5681_v62, %s5845_s30 }
 0x573   : > { %3539 = vrot.lane.b32.xlu2 %v5681_v62, %s5846_s0 }
 0x5b6   : > { %v2798_v17 = vpop.xlane.xlu2 %2797 }
 0x5b7   : > { %v2799_v58 = vrot.slane %v2798_v17, 4 }
 0x5b9   : > { %v2800_v59 = vadd.f32 %v2799_v58, %v2798_v17 }
 0x5bb   : > { %v2801_v4 = vrot.slane %v2800_v59, 2 }
 0x5bd   : > { %v2802_v55 = vadd.f32 %v2801_v4, %v2800_v59  ;;  %v2865_v4 = vpop.permute.xlu0 %2864 }
 0x5bf   : > { %v2803_v33 = vrot.slane %v2802_v55, 1 }
 0x5c1   : > { %v2804_v6 = vadd.f32 %v2803_v33, %v2802_v55 }
 0x5c3   : > { %5533 = vpush %v2804_v6 }
 0x5f4   : > { %s5534_s18 = spop %5533 }
 0x5f5   : > { %v2806_v11 = vstv %s5534_s18 }
 0x5f6   : > { %v2807_v18 = vmul.f32 %v2806_v11, %v9344_v44 }
 0x5f8   : > { %v2808_v13 = vsub.f32 %v2647_v40, %v2807_v18  ;;  %v2809_v57 = vsub.f32 %v2667_v3, %v2807_v18  ;;  %v2810_v15 = vsub.f32 %v2687_v48, %v2807_v18  ;;  %v2811_v12 = vsub.f32 %v2707_v32, %v2807_v18 }
 0x5f9   : > { %v2812_v0 = vsub.f32 %v2727_v7, %v2807_v18  ;;  %v2813_v23 = vsub.f32 %v2747_v56, %v2807_v18  ;;  %v2814_v29 = vsub.f32 %v2767_v5, %v2807_v18  ;;  %v2815_v63 = vsub.f32 %v2787_v16, %v2807_v18 }
 0x5fa   : > { %v2816_v34 = vmul.f32 %v2808_v13, %v2808_v13  ;;  %v2817_v19 = vmul.f32 %v2809_v57, %v2809_v57  ;;  %v2818_v46 = vmul.f32 %v2810_v15, %v2810_v15  ;;  %v2819_v47 = vmul.f32 %v2811_v12, %v2811_v12 }
 0x5fb   : > { %v2820_v26 = vmul.f32 %v2812_v0, %v2812_v0  ;;  %v2821_v37 = vmul.f32 %v2813_v23, %v2813_v23  ;;  %v2822_v39 = vmul.f32 %v2814_v29, %v2814_v29  ;;  %v2823_v40 = vmul.f32 %v2815_v63, %v2815_v63 }
 0x5fc   : > { %v2824_v43 = vadd.f32 %v2817_v19, %v2816_v34 }
 0x5fe   : > { %v2825_v8 = vadd.f32 %v2824_v43, %v2818_v46 }
 0x600   : > { %v2826_v20 = vadd.f32 %v2825_v8, %v2819_v47 }
 0x602   : > { %v2827_v45 = vadd.f32 %v2826_v20, %v2820_v26 }
 0x604   : > { %v2828_v3 = vadd.f32 %v2827_v45, %v2821_v37  ;;  %v2879_v45 = vpop.permute.xlu0 %2878 }
 0x606   : > { %v2829_v31 = vadd.f32 %v2828_v3, %v2822_v39  ;;  %v5682_v3 = vld [vmem:[%s5956_s27] sm:$0xff] }
 0x608   : > { %v2830_v48 = vadd.f32 %v2829_v31, %v2823_v40  ;;  %v5683_v31 = vld [vmem:[%s5956_s27 + $0x8] sm:$0xff] }
 0x60a   : > { %2831 = vadd.xlane.f32.xlu1 %v2830_v48 }
 0x623   : > { %3439 = vrot.lane.b32.xlu1 %v5681_v62, %s5847_s17 }
 0x62b   : > { %3675 = vrot.lane.b32.xlu1 %v5681_v62, %s5844_s29 }
 0x67d   : > { %v2832_v9 = vpop.xlane.xlu1 %2831 }
 0x67e   : > { %v2833_v32 = vrot.slane %v2832_v9, 4 }
 0x680   : > { %v2834_v42 = vadd.f32 %v2833_v32, %v2832_v9  ;;  %v5684_v9 = vld [vmem:[%s5956_s27 + $0x10] sm:$0xff] }
 0x682   : > { %v2835_v7 = vrot.slane %v2834_v42, 2 }
 0x684   : > { %v2836_v21 = vadd.f32 %v2835_v7, %v2834_v42  ;;  %v5685_v42 = vld [vmem:[%s5956_s27 + $0x18] sm:$0xff] }
 0x686   : > { %v2837_v56 = vrot.slane %v2836_v21, 1 }
 0x688   : > { %v2838_v30 = vadd.f32 %v2837_v56, %v2836_v21  ;;  %v5686_v21 = vld [vmem:[#allocation2 + $0x28] sm:$0xff] }
 0x68a   : > { %5535 = vpush %v2838_v30  ;;  %v5687_v30 = vld [vmem:[%s5956_s27 + $0x28] sm:$0xff] }
 0x6bb   : > { %s5536_s18 = spop %5535 }
 0x6bc   : > { %v2840_v5 = vstv %s5536_s18 }
 0x6bd   : > { %v2841_v22 = vmul.f32 %v2840_v5, %v9344_v44 }
 0x6bf   : > { %v2842_v16 = vadd.f32 1e-05, %v2841_v22  ;;  %v5688_v22 = vld [vmem:[%s5956_s27 + $0x30] sm:$0xff] }
 0x6c1   : > { %5605 = vrsqrt.f32 %v2842_v16  ;;  %vm2849_vm0 = vweird.f32 %v2842_v16 }
 0x6c7   : > { %v5606_v1 = vpop.eup %5605 }
 0x6c8   : > { %v2844_v17 = vmul.f32 %v5606_v1, %v2842_v16  ;;  %vm2850_vm14 = vweird.f32 %v5606_v1 }
 0x6c9   : > { %vm2851_vm11 = vmor %vm2849_vm0, %vm2850_vm14 }
 0x6ca   : > { %v2845_v58 = vmul.f32 %v5606_v1, %v2844_v17 }
 0x6cc   : > { %v2846_v59 = vmul.f32 0.5, %v2845_v58 }
 0x6ce   : > { %v2847_v62 = vsub.f32 1.5, %v2846_v59 }
 0x6d0   : > { %v2848_v55 = vmul.f32 %v5606_v1, %v2847_v62 }
 0x6d2   : > { %v2852_v33 = vsel %vm2851_vm11, %v5606_v1, %v2848_v55  ;;  %v5689_v1 = vld [vmem:[%s5956_s27 + $0x38] sm:$0xff]  ;;  %s9375_s27 = smov 31  }
 0x6d3   : > { %v2853_v6 = vmul.f32 %v2852_v33, %v2808_v13  ;;  %v2854_v10 = vmul.f32 %v2852_v33, %v2809_v57  ;;  %v2855_v2 = vmul.f32 %v2852_v33, %v2810_v15  ;;  %v2856_v11 = vmul.f32 %v2852_v33, %v2811_v12 }
 0x6d4   : > { %v2857_v18 = vmul.f32 %v2852_v33, %v2812_v0  ;;  %v2858_v34 = vmul.f32 %v2852_v33, %v2813_v23  ;;  %v2859_v44 = vmul.f32 %v2852_v33, %v2814_v29  ;;  %v2860_v19 = vmul.f32 %v2852_v33, %v2815_v63 }
 0x6d5   : > { %v2867_v46 = vmul.f32 %v2865_v4, %v2853_v6  ;;  %v2868_v43 = vmul.f32 %v2865_v4, %v2854_v10  ;;  %v2869_v47 = vmul.f32 %v2865_v4, %v2855_v2  ;;  %v2870_v8 = vmul.f32 %v2865_v4, %v2856_v11 }
 0x6d6   : > { %v2871_v26 = vmul.f32 %v2865_v4, %v2857_v18  ;;  %v2872_v20 = vmul.f32 %v2865_v4, %v2858_v34  ;;  %v2873_v37 = vmul.f32 %v2865_v4, %v2859_v44  ;;  %v2874_v13 = vmul.f32 %v2865_v4, %v2860_v19 }
 0x6d7   : > { %v2881_v57 = vadd.f32 %v2879_v45, %v2867_v46  ;;  %v2882_v15 = vadd.f32 %v2879_v45, %v2868_v43  ;;  %v2883_v12 = vadd.f32 %v2879_v45, %v2869_v47  ;;  %v2884_v0 = vadd.f32 %v2879_v45, %v2870_v8 }
 0x6d8   : > { %v2885_v23 = vadd.f32 %v2879_v45, %v2871_v26  ;;  %v2886_v29 = vadd.f32 %v2879_v45, %v2872_v20  ;;  %v2887_v63 = vadd.f32 %v2879_v45, %v2873_v37  ;;  %v2888_v39 = vadd.f32 %v2879_v45, %v2874_v13 }
 0x6d9   : > { %v7240_v40 = vadd.f32 %v5682_v3, %v2881_v57  ;;  %v7243_v48 = vadd.f32 %v5683_v31, %v2882_v15  ;;  %v7246_v32 = vadd.f32 %v5684_v9, %v2883_v12  ;;  %v7249_v7 = vadd.f32 %v5685_v42, %v2884_v0 }
 0x6da   : > { %v7251_v56 = vadd.f32 %v5686_v21, %v2885_v23  ;;  %v7254_v5 = vadd.f32 %v5687_v30, %v2886_v29  ;;  %v7257_v16 = vadd.f32 %v5688_v22, %v2887_v63  ;;  %v7260_v17 = vadd.f32 %v5689_v1, %v2888_v39 }
 0x6db   : > { %v7263_v58 = vmul.f32 0.70710677, %v7240_v40  ;;  %v7266_v59 = vmul.f32 0.70710677, %v7243_v48  ;;  %v7269_v4 = vmul.f32 0.70710677, %v7246_v32 }
 0x6dc   : > { %v7272_v62 = vmul.f32 0.70710677, %v7249_v7  ;;  %v7275_v55 = vmul.f32 0.70710677, %v7251_v56  ;;  %v7278_v33 = vmul.f32 0.70710677, %v7254_v5 }
 0x6dd   : > { %v7281_v6 = vmul.f32 0.70710677, %v7257_v16  ;;  %v7284_v10 = vmul.f32 0.70710677, %v7260_v17  ;;  %v7287_v2 = vand.u32 2147483647, %v7263_v58 }
 0x6de   : > { %v7290_v11 = vand.u32 2147483647, %v7266_v59  ;;  %v7293_v18 = vand.u32 2147483647, %v7269_v4  ;;  %v7296_v34 = vand.u32 2147483647, %v7272_v62 }
 0x6df   : > { %v7299_v44 = vand.u32 2147483647, %v7275_v55  ;;  %v7302_v19 = vand.u32 2147483647, %v7278_v33  ;;  %v2937_v46 = vmul.f32 0.3275911, %v7287_v2 }
 0x6e0   : > { %v2938_v43 = vmul.f32 0.3275911, %v7290_v11  ;;  %v2939_v47 = vmul.f32 0.3275911, %v7293_v18  ;;  %v7308_v8 = vand.u32 2147483647, %v7281_v6 }
 0x6e1   : > { %v7311_v26 = vand.u32 2147483647, %v7284_v10  ;;  %v2940_v20 = vmul.f32 0.3275911, %v7296_v34  ;;  %v2941_v37 = vmul.f32 0.3275911, %v7299_v44 }
 0x6e2   : > { %v7315_v45 = vadd.f32 1.0, %v2937_v46  ;;  %v7317_v13 = vadd.f32 1.0, %v2938_v43  ;;  %v7319_v57 = vadd.f32 1.0, %v2939_v47  ;;  %v2942_v15 = vmul.f32 0.3275911, %v7302_v19 }
 0x6e3   : > { %v7322_v12 = vadd.f32 1.0, %v2940_v20  ;;  %v2943_v0 = vmul.f32 0.3275911, %v7308_v8  ;;  %v2944_v23 = vmul.f32 0.3275911, %v7311_v26  ;;  %v7328_v29 = vadd.f32 1.0, %v2941_v37 }
 0x6e4   : > { %5607 = vrcp.f32 %v7315_v45  ;;  %v2964_v63 = vand.u32 2147483648, %v7315_v45  ;;  %v2979_v39 = vand.u32 2147483648, %v7317_v13  ;;  %v7333_v3 = vadd.f32 1.0, %v2942_v15 }
 0x6e5   : > { %5609 = vrcp.f32 %v7317_v13  ;;  %v2994_v31 = vand.u32 2147483648, %v7319_v57  ;;  %v7337_v9 = vadd.f32 1.0, %v2943_v0  ;;  %v7339_v42 = vadd.f32 1.0, %v2944_v23 }
 0x6e6   : > { %5611 = vrcp.f32 %v7319_v57  ;;  %vm2958_vm9 = vweird.f32 %v7315_v45  ;;  %v2962_v21 = vand.u32 2147483647, %v7315_v45  ;;  %v2977_v22 = vand.u32 2147483647, %v7317_v13 }
 0x6e7   : > { %5613 = vrcp.f32 %v7322_v12  ;;  %v3009_v1 = vand.u32 2147483648, %v7322_v12  ;;  %v2965_v47 = vor.u32 1.1754944e-38, %v2964_v63  ;;  %v7353_v20 = vor.u32 1.1754944e-38, %v2979_v39 }
 0x6e8   : > { %5615 = vrcp.f32 %v7328_v29  ;;  %v2992_v37 = vand.u32 2147483647, %v7319_v57  ;;  %v7361_v23 = vor.u32 1.1754944e-38, %v2994_v31  ;;  %v3007_v54 = vand.u32 2147483647, %v7322_v12 }
 0x6e9   : > { %v3022_v60 = vand.u32 2147483647, %v7328_v29  ;;  %vm7365_vm7 = vcmp.eq.f32.partialorder %v2962_v21, 8.507059e+37  ;;  %v3024_v50 = vand.u32 2147483648, %v7328_v29  ;;  %5617 = vrcp.f32 %v7333_v3 }
 0x6ea   : > { %v7343_v30 = vpop.eup %5607  ;;  %vm7377_vm11 = vcmp.eq.f32.partialorder %v2977_v22, 8.507059e+37  ;;  %vm7382_vm3 = vcmp.eq.f32.partialorder %v2992_v37, 8.507059e+37  ;;  %vm7389_vm0 = vcmp.eq.f32.partialorder %v3007_v54, 8.507059e+37  ;;  %v3037_v22 = vand.u32 2147483647, %v7333_v3 }
 0x6eb   : > { %v7349_v46 = vpop.eup %5609  ;;  %v2954_v43 = vmul.f32 %v7343_v30, %v7315_v45  ;;  %vm2959_vm14 = vweird.f32 %v7343_v30  ;;  %5619 = vrcp.f32 %v7337_v9  ;;  %vm7399_vm5 = vcmp.eq.f32.partialorder %v3022_v60, 8.507059e+37 }
 0x6ec   : > { %v7357_v15 = vpop.eup %5611  ;;  %v2969_v0 = vmul.f32 %v7349_v46, %v7317_v13  ;;  %vm7407_vm15 = vmor %vm2958_vm9, %vm2959_vm14  ;;  %vm9357_vm12 = vweird.f32 %v7349_v46  ;;  %vm9358_vm4 = vweird.f32 %v7317_v13  ;;  %vm9362_vm14 = vweird.f32 %v7319_v57 }
 0x6ed   : > { %v2955_v38 = vsub.f32 1.0, %v2954_v43  ;;  %v2984_v39 = vmul.f32 %v7357_v15, %v7319_v57  ;;  %v5614_v31 = vpop.eup %5613  ;;  %v3010_v43 = vor.u32 1.1754944e-38, %v3009_v1  ;;  %vm7420_vm13 = vmor %vm9358_vm4, %vm9357_vm12  ;;  %vm9361_vm9 = vweird.f32 %v7357_v15 }
 0x6ee   : > { %v2970_v49 = vsub.f32 1.0, %v2969_v0  ;;  %v2999_v53 = vmul.f32 %v5614_v31, %v7322_v12  ;;  %v5616_v0 = vpop.eup %5615  ;;  %vm7429_vm6 = vmor %vm9362_vm14, %vm9361_vm9  ;;  %vm7434_vm2 = vcmp.eq.f32.partialorder %v3037_v22, 8.507059e+37  ;;  %vm9367_vm12 = vweird.f32 %v5614_v31 }
 0x6ef   : > { %v2956_v21 = vmul.f32 %v7343_v30, %v2955_v38  ;;  %v2985_v61 = vsub.f32 1.0, %v2984_v39  ;;  %v3039_v39 = vand.u32 2147483648, %v7333_v3  ;;  %v3014_v51 = vmul.f32 %v5616_v0, %v7328_v29 }
 0x6f0   : > { %v2971_v1 = vmul.f32 %v7349_v46, %v2970_v49  ;;  %v3000_v14 = vsub.f32 1.0, %v2999_v53  ;;  %v5618_v53 = vpop.eup %5617  ;;  %vm9368_vm4 = vweird.f32 %v7322_v12  ;;  %5621 = vrcp.f32 %v7339_v42 }
 0x6f1   : > { %v2957_v37 = vadd.f32 %v7343_v30, %v2956_v21  ;;  %v2986_v36 = vmul.f32 %v7357_v15, %v2985_v61  ;;  %v3025_v21 = vor.u32 1.1754944e-38, %v3024_v50  ;;  %v3015_v25 = vsub.f32 1.0, %v3014_v51  ;;  %v5620_v24 = vpop.eup %5619  ;;  %vm3005_vm9 = vmor %vm9368_vm4, %vm9367_vm12 }
 0x6f2   : > { %v2972_v49 = vadd.f32 %v7349_v46, %v2971_v1  ;;  %v3001_v1 = vmul.f32 %v5614_v31, %v3000_v14  ;;  %vm3034_vm14 = vweird.f32 %v5618_v53  ;;  %v3044_v60 = vmul.f32 %v5620_v24, %v7337_v9 }
 0x6f3   : > { %v2961_v61 = vsel %vm7407_vm15, %v7343_v30, %v2957_v37  ;;  %v2987_v45 = vadd.f32 %v7357_v15, %v2986_v36  ;;  %v3029_v30 = vmul.f32 %v5618_v53, %v7333_v3  ;;  %v3040_v37 = vor.u32 1.1754944e-38, %v3039_v39 }
 0x6f4   : > { %v3052_v36 = vand.u32 2147483647, %v7337_v9  ;;  %v2976_v51 = vsel %vm7420_vm13, %v7349_v46, %v2972_v49  ;;  %v3002_v57 = vadd.f32 %v5614_v31, %v3001_v1  ;;  %v3016_v54 = vmul.f32 %v5616_v0, %v3015_v25 }
 0x6f5   : > { %v2991_v14 = vsel %vm7429_vm6, %v7357_v15, %v2987_v45  ;;  %v7447_v22 = vsel %vm7365_vm7, %v2965_v47, %v2961_v61  ;;  %v3030_v39 = vsub.f32 1.0, %v3029_v30  ;;  %vm3048_vm15 = vweird.f32 %v7337_v9 }
 0x6f6   : > { %v3006_v46 = vsel %vm3005_vm9, %v5614_v31, %v3002_v57  ;;  %v3017_v49 = vadd.f32 %v5616_v0, %v3016_v54  ;;  %v3054_v15 = vand.u32 2147483648, %v7337_v9  ;;  %v7458_v25 = vsel %vm7377_vm11, %v7353_v20, %v2976_v51  ;;  %v5622_v51 = vpop.eup %5621 }
 0x6f7   : > { %v7463_v12 = vsel %vm7382_vm3, %v7361_v23, %v2991_v14  ;;  %vm9369_vm13 = vweird.f32 %v5616_v0  ;;  %vm9370_vm6 = vweird.f32 %v7328_v29  ;;  %v3031_v47 = vmul.f32 %v5618_v53, %v3030_v39 }
 0x6f8   : > { %vm3020_vm7 = vmor %vm9370_vm6, %vm9369_vm13  ;;  %v7471_v63 = vsel %vm7389_vm0, %v3010_v43, %v3006_v46  ;;  %v3045_v41 = vsub.f32 1.0, %v3044_v60  ;;  %vm7473_vm11 = vcmp.eq.f32.partialorder %v3052_v36, 8.507059e+37  ;;  %vm3049_vm3 = vweird.f32 %v5620_v24 }
 0x6f9   : > { %v3021_v31 = vsel %vm3020_vm7, %v5616_v0, %v3017_v49  ;;  %v3032_v23 = vadd.f32 %v5618_v53, %v3031_v47  ;;  %v3073_v29 = vmul.f32 1.0614054, %v7447_v22  ;;  %vm9373_vm12 = vweird.f32 %v7333_v3 }
 0x6fa   : > { %v7479_v35 = vsel %vm7399_vm5, %v3025_v21, %v3021_v31  ;;  %vm3035_vm4 = vmor %vm9373_vm12, %vm3034_vm14  ;;  %v3046_v43 = vmul.f32 %v5620_v24, %v3045_v41  ;;  %v3055_v38 = vor.u32 1.1754944e-38, %v3054_v15  ;;  %v3074_v0 = vmul.f32 1.0614054, %v7458_v25 }
 0x6fb   : > { %v3075_v61 = vmul.f32 1.0614054, %v7463_v12  ;;  %v3036_v45 = vsel %vm3035_vm4, %v5618_v53, %v3032_v23  ;;  %v3067_v1 = vand.u32 2147483647, %v7339_v42  ;;  %v3076_v52 = vmul.f32 1.0614054, %v7471_v63  ;;  %vm3050_vm5 = vmor %vm3048_vm15, %vm3049_vm3 }
 0x6fc   : > { %v3077_v21 = vmul.f32 1.0614054, %v7479_v35  ;;  %v7492_v50 = vsel %vm7434_vm2, %v3040_v37, %v3036_v45  ;;  %v3047_v30 = vadd.f32 %v5620_v24, %v3046_v43  ;;  %v3081_v3 = vadd.f32 -1.4531521, %v3073_v29 }
 0x6fd   : > { %v3082_v36 = vadd.f32 -1.4531521, %v3074_v0  ;;  %v3078_v53 = vmul.f32 1.0614054, %v7492_v50  ;;  %v3083_v14 = vadd.f32 -1.4531521, %v3075_v61  ;;  %v3059_v39 = vmul.f32 %v5622_v51, %v7339_v42 }
 0x6fe   : > { %v3084_v57 = vadd.f32 -1.4531521, %v3076_v52  ;;  %v3051_v54 = vsel %vm3050_vm5, %v5620_v24, %v3047_v30  ;;  %v3069_v46 = vand.u32 2147483648, %v7339_v42  ;;  %v3085_v13 = vadd.f32 -1.4531521, %v3077_v21 }
 0x6ff   : > { %v7502_v37 = vsel %vm7473_vm11, %v3055_v38, %v3051_v54  ;;  %v3086_v49 = vadd.f32 -1.4531521, %v3078_v53  ;;  %v3089_v60 = vmul.f32 %v3081_v3, %v7447_v22  ;;  %v3090_v9 = vmul.f32 %v3082_v36, %v7458_v25 }
 0x700   : > { %v3060_v15 = vsub.f32 1.0, %v3059_v39  ;;  %v3079_v47 = vmul.f32 1.0614054, %v7502_v37  ;;  %v3091_v31 = vmul.f32 %v3083_v14, %v7463_v12  ;;  %v3092_v24 = vmul.f32 %v3084_v57, %v7471_v63 }
 0x701   : > { %vm3064_vm2 = vweird.f32 %v5622_v51  ;;  %v3093_v41 = vmul.f32 %v3085_v13, %v7479_v35  ;;  %v3094_v23 = vmul.f32 %v3086_v49, %v7492_v50  ;;  %v3097_v20 = vadd.f32 1.4214138, %v3089_v60 }
 0x702   : > { %v3061_v29 = vmul.f32 %v5622_v51, %v3060_v15  ;;  %v3087_v43 = vadd.f32 -1.4531521, %v3079_v47  ;;  %v3098_v38 = vadd.f32 1.4214138, %v3090_v9  ;;  %v3099_v0 = vadd.f32 1.4214138, %v3091_v31 }
 0x703   : > { %vm3063_vm0 = vweird.f32 %v7339_v42  ;;  %v3100_v45 = vadd.f32 1.4214138, %v3092_v24  ;;  %v3101_v52 = vadd.f32 1.4214138, %v3093_v41  ;;  %v3070_v21 = vor.u32 1.1754944e-38, %v3069_v46 }
 0x704   : > { %v3062_v61 = vadd.f32 %v5622_v51, %v3061_v29  ;;  %vm3065_vm15 = vmor %vm3063_vm0, %vm3064_vm2  ;;  %v3095_v30 = vmul.f32 %v3087_v43, %v7502_v37  ;;  %v3102_v3 = vadd.f32 1.4214138, %v3094_v23  ;;  %v3105_v36 = vmul.f32 %v3097_v20, %v7447_v22 }
 0x705   : > { %vm3068_vm9 = vcmp.eq.f32.partialorder %v3067_v1, 8.507059e+37  ;;  %v3106_v14 = vmul.f32 %v3098_v38, %v7458_v25  ;;  %v3107_v57 = vmul.f32 %v3099_v0, %v7463_v12  ;;  %v3108_v42 = vmul.f32 %v3100_v45, %v7471_v63 }
 0x706   : > { %v3066_v53 = vsel %vm3065_vm15, %v5622_v51, %v3062_v61  ;;  %v3109_v13 = vmul.f32 %v3101_v52, %v7479_v35  ;;  %v3103_v46 = vadd.f32 1.4214138, %v3095_v30  ;;  %v3110_v49 = vmul.f32 %v3102_v3, %v7492_v50 }
 0x707   : > { %v7516_v54 = vsel %vm3068_vm9, %v3070_v21, %v3066_v53  ;;  %v3113_v60 = vadd.f32 -0.28449672, %v3105_v36  ;;  %v3114_v15 = vadd.f32 -0.28449672, %v3106_v14  ;;  %v3115_v51 = vadd.f32 -0.28449672, %v3107_v57 }
 0x708   : > { %v3080_v39 = vmul.f32 1.0614054, %v7516_v54  ;;  %v7523_v1 = vmul.f32 0.5, %v7240_v40  ;;  %v7526_v47 = vmul.f32 0.5, %v7243_v48  ;;  %v7529_v31 = vmul.f32 0.5, %v7246_v32 }
 0x709   : > { %v7532_v24 = vmul.f32 0.5, %v7249_v7  ;;  %v7535_v41 = vmul.f32 0.5, %v7251_v56  ;;  %v3116_v20 = vadd.f32 -0.28449672, %v3108_v42  ;;  %v3117_v29 = vadd.f32 -0.28449672, %v3109_v13 }
 0x70a   : > { %v3088_v9 = vadd.f32 -1.4531521, %v3080_v39  ;;  %v3111_v43 = vmul.f32 %v3103_v46, %v7502_v37  ;;  %v3118_v40 = vadd.f32 -0.28449672, %v3110_v49  ;;  %v3121_v38 = vmul.f32 %v3113_v60, %v7447_v22 }
 0x70b   : > { %v3145_v48 = vsub.f32 0.0, %v7287_v2  ;;  %v3122_v32 = vmul.f32 %v3114_v15, %v7458_v25  ;;  %v3123_v7 = vmul.f32 %v3115_v51, %v7463_v12  ;;  %v3146_v61 = vsub.f32 0.0, %v7290_v11 }
 0x70c   : > { %v3096_v23 = vmul.f32 %v3088_v9, %v7516_v54  ;;  %v3147_v56 = vsub.f32 0.0, %v7293_v18  ;;  %v3148_v45 = vsub.f32 0.0, %v7296_v34  ;;  %v3149_v52 = vsub.f32 0.0, %v7299_v44 }
 0x70d   : > { %v3150_v21 = vsub.f32 0.0, %v7302_v19  ;;  %v3124_v3 = vmul.f32 %v3116_v20, %v7471_v63  ;;  %v3151_v36 = vsub.f32 0.0, %v7308_v8  ;;  %v3152_v53 = vsub.f32 0.0, %v7311_v26 }
 0x70e   : > { %v3104_v0 = vadd.f32 1.4214138, %v3096_v23  ;;  %vm2913_vm14 = vcmp.ge.f32.partialorder %v7263_v58, 0.0  ;;  %v3153_v14 = vmul.f32 %v3145_v48, %v7287_v2  ;;  %v3154_v57 = vmul.f32 %v3146_v61, %v7290_v11 }
 0x70f   : > { %v3155_v39 = vmul.f32 %v3147_v56, %v7293_v18  ;;  %v3156_v42 = vmul.f32 %v3148_v45, %v7296_v34  ;;  %vm2914_vm13 = vcmp.ge.f32.partialorder %v7266_v59, 0.0  ;;  %vm2915_vm6 = vcmp.ge.f32.partialorder %v7269_v4, 0.0 }
 0x710   : > { %v3112_v30 = vmul.f32 %v3104_v0, %v7516_v54  ;;  %v3119_v13 = vadd.f32 -0.28449672, %v3111_v43  ;;  %v3157_v49 = vmul.f32 %v3149_v52, %v7299_v44  ;;  %v3158_v60 = vmul.f32 %v3150_v21, %v7302_v19 }
 0x711   : > { %vm2916_vm7 = vcmp.ge.f32.partialorder %v7272_v62, 0.0  ;;  %v3159_v2 = vmul.f32 %v3151_v36, %v7308_v8  ;;  %v3161_v9 = vmul.f32 1.442695, %v3153_v14  ;;  %v3163_v11 = vmul.f32 1.442695, %v3154_v57 }
 0x712   : > { %v3120_v46 = vadd.f32 -0.28449672, %v3112_v30  ;;  %v3165_v15 = vmul.f32 1.442695, %v3155_v39  ;;  %vm2917_vm11 = vcmp.ge.f32.partialorder %v7275_v55, 0.0  ;;  %v3125_v18 = vmul.f32 %v3117_v29, %v7479_v35 }
 0x713   : > { %v3129_v34 = vadd.f32 0.2548296, %v3121_v38  ;;  %v3160_v51 = vmul.f32 %v3152_v53, %v7311_v26  ;;  %v3167_v23 = vmul.f32 1.442695, %v3156_v42  ;;  %v3126_v20 = vmul.f32 %v3118_v40, %v7492_v50 }
 0x714   : > { %v3130_v44 = vadd.f32 0.2548296, %v3122_v32  ;;  %5623 = vpow2.f32 %v3161_v9  ;;  %v3169_v19 = vmul.f32 1.442695, %v3157_v49  ;;  %v3127_v43 = vmul.f32 %v3119_v13, %v7502_v37 }
 0x715   : > { %v3131_v48 = vadd.f32 0.2548296, %v3123_v7  ;;  %5625 = vpow2.f32 %v3163_v11  ;;  %v3171_v8 = vmul.f32 1.442695, %v3158_v60  ;;  %v3128_v0 = vmul.f32 %v3120_v46, %v7516_v54 }
 0x716   : > { %v3132_v61 = vadd.f32 0.2548296, %v3124_v3  ;;  %5627 = vpow2.f32 %v3165_v15  ;;  %v3173_v56 = vmul.f32 1.442695, %v3159_v2  ;;  %v3133_v29 = vadd.f32 0.2548296, %v3125_v18 }
 0x717   : > { %v3137_v38 = vmul.f32 %v3129_v34, %v7447_v22  ;;  %5629 = vpow2.f32 %v3167_v23  ;;  %v3175_v26 = vmul.f32 1.442695, %v3160_v51  ;;  %vm2918_vm3 = vcmp.ge.f32.partialorder %v7278_v33, 0.0 }
 0x718   : > { %v3134_v40 = vadd.f32 0.2548296, %v3126_v20  ;;  %v3138_v32 = vmul.f32 %v3130_v44, %v7458_v25  ;;  %5631 = vpow2.f32 %v3169_v19  ;;  %vm2919_vm12 = vcmp.ge.f32.partialorder %v7281_v6, 0.0 }
 0x719   : > { %v3135_v7 = vadd.f32 0.2548296, %v3127_v43  ;;  %v3139_v45 = vmul.f32 %v3131_v48, %v7463_v12  ;;  %5633 = vpow2.f32 %v3171_v8  ;;  %vm2920_vm4 = vcmp.ge.f32.partialorder %v7284_v10, 0.0 }
 0x71a   : > { %v5624_v52 = vpop.eup %5623  ;;  %v3136_v21 = vadd.f32 0.2548296, %v3128_v0  ;;  %v3140_v22 = vmul.f32 %v3132_v61, %v7471_v63  ;;  %5635 = vpow2.f32 %v3173_v56  ;;  %v9374_v3 = vmov -1.0  }
 0x71b   : > { %v5626_v30 = vpop.eup %5625  ;;  %v2921_v36 = vsel %vm2913_vm14, 1.0, %v9374_v3  ;;  %v3141_v25 = vmul.f32 %v3133_v29, %v7479_v35  ;;  %5637 = vpow2.f32 %v3175_v26  ;;  %v3177_v53 = vmul.f32 %v5624_v52, %v3137_v38 }
 0x71c   : > { %v5628_v14 = vpop.eup %5627  ;;  %v2922_v12 = vsel %vm2914_vm13, 1.0, %v9374_v3  ;;  %v2923_v57 = vsel %vm2915_vm6, 1.0, %v9374_v3  ;;  %v3142_v63 = vmul.f32 %v3134_v40, %v7492_v50  ;;  %v3178_v39 = vmul.f32 %v5626_v30, %v3138_v32 }
 0x71d   : > { %v5630_v42 = vpop.eup %5629  ;;  %v2924_v58 = vsel %vm2916_vm7, 1.0, %v9374_v3  ;;  %v3143_v35 = vmul.f32 %v3135_v7, %v7502_v37  ;;  %v3179_v13 = vmul.f32 %v5628_v14, %v3139_v45  ;;  %v3185_v46 = vsub.f32 1.0, %v3177_v53 }
 0x71e   : > { %v5632_v49 = vpop.eup %5631  ;;  %v2925_v59 = vsel %vm2917_vm11, 1.0, %v9374_v3  ;;  %v3144_v4 = vmul.f32 %v3136_v21, %v7516_v54  ;;  %v3180_v60 = vmul.f32 %v5630_v42, %v3140_v22  ;;  %v3186_v2 = vsub.f32 1.0, %v3178_v39 }
 0x71f   : > { %v5634_v50 = vpop.eup %5633  ;;  %v2926_v9 = vsel %vm2918_vm3, 1.0, %v9374_v3  ;;  %v3181_v62 = vmul.f32 %v5632_v49, %v3141_v25  ;;  %v3187_v11 = vsub.f32 1.0, %v3179_v13  ;;  %v3193_v15 = vmul.f32 %v3185_v46, %v2921_v36 }
 0x720   : > { %v5636_v37 = vpop.eup %5635  ;;  %v2927_v18 = vsel %vm2919_vm12, 1.0, %v9374_v3  ;;  %v3182_v34 = vmul.f32 %v5634_v50, %v3142_v63  ;;  %v3188_v55 = vsub.f32 1.0, %v3180_v60  ;;  %v3194_v51 = vmul.f32 %v3186_v2, %v2922_v12  ;;  %v7728_v63 = vpop.permute.xlu0 %3311 }
 0x721   : > { %v5638_v23 = vpop.eup %5637  ;;  %v3183_v54 = vmul.f32 %v5636_v37, %v3143_v35  ;;  %v3189_v20 = vsub.f32 1.0, %v3181_v62  ;;  %v3195_v44 = vmul.f32 %v3187_v11, %v2923_v57  ;;  %v3201_v19 = vadd.f32 1.0, %v3193_v15  ;;  %v7724_v57 = vpop.permute.xlu1 %3439  ;;  %v9382_v37 = vld [vmem:[#allocation4_spill] sm:$0xff] }
 0x722   : > { %v3184_v43 = vmul.f32 %v5638_v23, %v3144_v4  ;;  %v3190_v48 = vsub.f32 1.0, %v3182_v34  ;;  %v3196_v33 = vmul.f32 %v3188_v55, %v2924_v58  ;;  %v3202_v8 = vadd.f32 1.0, %v3194_v51  ;;  %v9385_v23 = vld [vmem:[#allocation5_spill] sm:$0xff] }
 0x723   : > { %v3191_v0 = vsub.f32 1.0, %v3183_v54  ;;  %v3197_v61 = vmul.f32 %v3189_v20, %v2925_v59  ;;  %v3203_v56 = vadd.f32 1.0, %v3195_v44  ;;  %v7602_v29 = vmul.f32 %v3201_v19, %v7523_v1 }
 0x724   : > { %v3192_v6 = vsub.f32 1.0, %v3184_v43  ;;  %v3198_v38 = vmul.f32 %v3190_v48, %v2926_v9  ;;  %v3204_v26 = vadd.f32 1.0, %v3196_v33  ;;  %v7605_v40 = vmul.f32 %v3202_v8, %v7526_v47 }
 0x725   : > { %v2928_v32 = vsel %vm2920_vm4, 1.0, %v9374_v3  ;;  %v3199_v7 = vmul.f32 %v3191_v0, %v2927_v18  ;;  %v3205_v45 = vadd.f32 1.0, %v3197_v61  ;;  %v7611_v52 = vmul.f32 %v3203_v56, %v7529_v31  ;;  %3217 = vst [vmem:[#allocation2] sm:$0xff] %v7602_v29  ;;  %3719 = vrot.lane.b32.xlu2 %v7602_v29, %s5843_s28  ;;  %v9390_v56 = vld [vmem:[#allocation9_spill] sm:$0xff] }
 0x726   : > { %v2902_v1 = vmul.f32 0.5, %v7254_v5  ;;  %v3200_v21 = vmul.f32 %v3192_v6, %v2928_v32  ;;  %v3206_v22 = vadd.f32 1.0, %v3198_v38  ;;  %v7618_v47 = vmul.f32 %v3204_v26, %v7532_v24  ;;  %3218 = vst [vmem:[#allocation2 + $0x18] sm:$0xff] %v7605_v40  ;;  %3721 = vrot.lane.b32.xlu1 %v7605_v40, %s5843_s28 }
 0x727   : > { %v2903_v10 = vmul.f32 0.5, %v7257_v16  ;;  %v3207_v31 = vadd.f32 1.0, %v3199_v7  ;;  %v7625_v30 = vmul.f32 %v3205_v45, %v7535_v41  ;;  %3219 = vst [vmem:[#allocation2 + $0x10] sm:$0xff] %v7611_v52  ;;  %3723 = vrot.lane.b32.xlu0 %v7611_v52, %s5843_s28  ;;  %v2904_v5 = vmul.f32 0.5, %v7260_v17  ;;  %v7686_v17 = vpop.permute.xlu2 %3735 }
 0x728   : > { %v3208_v24 = vadd.f32 1.0, %v3200_v21  ;;  %v7631_v36 = vmul.f32 %v3206_v22, %v2902_v1  ;;  %3220 = vst [vmem:[#allocation2 + $0x48] sm:$0xff] %v7618_v47  ;;  %v7744_v35 = vpop.permute.xlu0 %3243  ;;  %vm9376_vm5 = vcmask 777216   ;;  %vm9377_vm2 = vnez %v9175_v27 }
 0x729   : > { %v7634_v25 = vmul.f32 %v3207_v31, %v2903_v10  ;;  %3221 = vst [vmem:[#allocation2 + $0x28] sm:$0xff] %v7625_v30  ;;  %v7740_v42 = vpop.permute.xlu1 %3675  ;;  %vm9378_vm0 = vmmov %vm9376_vm5  ;;  %vm9379_vm15 = vnez %v9178_v28  ;;  %vm9380_vm9 = vcmask 785408   ;;  %vm9383_vm13 = vnez %v9382_v37 }
 0x72a   : > { %v7637_v16 = vmul.f32 %v3208_v24, %v2904_v5  ;;  %3222 = vst [vmem:[#allocation2 + $0x8] sm:$0xff] %v7631_v36  ;;  %vm9381_vm14 = vmmov %vm9378_vm0  ;;  %vm9384_vm6 = vcmask 1039360   ;;  %vm9386_vm7 = vnez %v9385_v23  ;;  %vm9389_vm12 = vcmask 793600  }
 0x72b   : > { %3223 = vst [vmem:[#allocation2 + $0x20] sm:$0xff] %v7634_v25  ;;  %vm9387_vm11 = vmmov %vm9384_vm6  ;;  %vm9391_vm4 = vnez %v9390_v56 }
 0x72c   : > { %3224 = vst [vmem:[#allocation2 + $0x40] sm:$0xff] %v7637_v16  ;;  %vm9388_vm3 = vmmov %vm9378_vm0 }
 0x72d   : > { %3595 = vrot.lane.b32.xlu2 %v7611_v52, %s5845_s30  ;;  %3498 = vst [vmem:[#allocation3 + $0x1c0] sm:$0xff] %v7605_v40 }
 0x72e   : > { %3659 = vrot.lane.b32.xlu1 %v7602_v29, %s5844_s29  ;;  %3499 = vst [vmem:[#allocation3] sm:$0xff] %v7611_v52 }
 0x72f   : > { %3725 = vrot.lane.b32.xlu0 %v7618_v47, %s5843_s28  ;;  %3500 = vst [vmem:[#allocation3 + $0xe0] sm:$0xff] %v7618_v47  ;;  %v7694_v41 = vpop.permute.xlu2 %3371 }
 0x730   : > { %3497 = vst [vmem:[#allocation3 + $0x1b0] sm:$0xff] %v7602_v29 }
 0x731   : > { %3501 = vst [vmem:[#allocation3 + $0x28] sm:$0xff] %v7625_v30 }
 0x732   : > { %3502 = vst [vmem:[#allocation3 + $0x190] sm:$0xff] %v7631_v36 }
 0x733   : > { %3503 = vst [vmem:[#allocation3 + $0x218] sm:$0xff] %v7634_v25 }
 0x734   : > { %3504 = vst [vmem:[#allocation3 + $0x108] sm:$0xff] %v7637_v16 }
 0x735   : > { %3661 = vrot.lane.b32.xlu2 %v7605_v40, %s5844_s29 }
 0x736   : > { %3527 = vrot.lane.b32.xlu1 %v7611_v52, %s5846_s0 }
 0x737   : > { %3727 = vrot.lane.b32.xlu0 %v7625_v30, %s5843_s28  ;;  %v7702_v53 = vpop.permute.xlu2 %3607 }
 0x73d   : > { %3529 = vrot.lane.b32.xlu2 %v7618_v47, %s5846_s0 }
 0x73e   : > { %3593 = vrot.lane.b32.xlu1 %v7605_v40, %s5845_s30 }
 0x73f   : > { %3663 = vrot.lane.b32.xlu0 %v7611_v52, %s5844_s29  ;;  %v7712_v14 = vpop.permute.xlu2 %3539 }
 0x745   : > { %3599 = vrot.lane.b32.xlu2 %v7625_v30, %s5845_s30 }
 0x746   : > { %3525 = vrot.lane.b32.xlu1 %v7605_v40, %s5846_s0 }
 0x747   : > { %3665 = vrot.lane.b32.xlu0 %v7618_v47, %s5844_s29 }
 0x74d   : > { %3531 = vrot.lane.b32.xlu2 %v7625_v30, %s5846_s0 }
 0x74e   : > { %3733 = vrot.lane.b32.xlu1 %v7637_v16, %s5843_s28 }
 0x74f   : > { %3597 = vrot.lane.b32.xlu0 %v7618_v47, %s5845_s30 }
 0x755   : > { %3443 = vrot.lane.b32.xlu2 %v7605_v40, %s5847_s17 }
 0x756   : > { %3729 = vrot.lane.b32.xlu1 %v7631_v36, %s5843_s28 }
 0x757   : > { %3667 = vrot.lane.b32.xlu0 %v7625_v30, %s5844_s29 }
 0x75d   : > { %3375 = vrot.lane.b32.xlu2 %v7605_v40, %s9375_s27 }
 0x75e   : > { %3673 = vrot.lane.b32.xlu1 %v7637_v16, %s5844_s29 }
 0x75f   : > { %3591 = vrot.lane.b32.xlu0 %v7602_v29, %s5845_s30 }
 0x765   : > { %3441 = vrot.lane.b32.xlu2 %v7602_v29, %s5847_s17 }
 0x766   : > { %3603 = vrot.lane.b32.xlu1 %v7634_v25, %s5845_s30 }
 0x767   : > { %3523 = vrot.lane.b32.xlu0 %v7602_v29, %s5846_s0 }
 0x76d   : > { %3605 = vrot.lane.b32.xlu2 %v7637_v16, %s5845_s30 }
 0x76e   : > { %3379 = vrot.lane.b32.xlu1 %v7618_v47, %s9375_s27 }
 0x76f   : > { %3731 = vrot.lane.b32.xlu0 %v7634_v25, %s5843_s28 }
 0x775   : > { %3535 = vrot.lane.b32.xlu2 %v7634_v25, %s5846_s0 }
 0x776   : > { %3601 = vrot.lane.b32.xlu1 %v7631_v36, %s5845_s30 }
 0x777   : > { %3445 = vrot.lane.b32.xlu0 %v7611_v52, %s5847_s17 }
 0x77d   : > { %3247 = vrot.lane.b32.xlu2 %v7605_v40, %s5850_s20 }
 0x77e   : > { %3317 = vrot.lane.b32.xlu1 %v7611_v52, %s9256_s25 }
 0x77f   : > { %3671 = vrot.lane.b32.xlu0 %v7634_v25, %s5844_s29  ;;  %v3720_v12 = vpop.permute.xlu2 %3719 }
 0x785   : > { %3319 = vrot.lane.b32.xlu2 %v7618_v47, %s9256_s25 }
 0x786   : > { %3533 = vrot.lane.b32.xlu1 %v7631_v36, %s5846_s0 }
 0x787   : > { %3377 = vrot.lane.b32.xlu0 %v7611_v52, %s9375_s27  ;;  %v7734_v39 = vpop.permute.xlu2 %3595 }
 0x78d   : > { %3251 = vrot.lane.b32.xlu2 %v7618_v47, %s5850_s20 }
 0x78e   : > { %3313 = vrot.lane.b32.xlu1 %v7602_v29, %s9256_s25 }
 0x78f   : > { %3447 = vrot.lane.b32.xlu0 %v7618_v47, %s5847_s17  ;;  %v3662_v58 = vpop.permute.xlu2 %3661 }
 0x795   : > { %3383 = vrot.lane.b32.xlu2 %v7631_v36, %s9375_s27 }
 0x796   : > { %3245 = vrot.lane.b32.xlu1 %v7602_v29, %s5850_s20 }
 0x797   : > { %3669 = vrot.lane.b32.xlu0 %v7631_v36, %s5844_s29  ;;  %v3530_v13 = vpop.permute.xlu2 %3529 }
 0x798   : > { %v3722_v46 = vpop.permute.xlu1 %3721 }
 0x799   : > { %v3737_v49 = vsel %vm9376_vm5, %v3720_v12, %v3722_v46  ;;  %v3724_v59 = vpop.permute.xlu0 %3723  ;;  %vm9392_vm5 = vmmov %vm9380_vm9 }
 0x79a   : > { %v3753_v4 = vsel %vm9377_vm2, %v3737_v49, 0.0  ;;  %v3738_v60 = vsel %vm9378_vm0, %v3722_v46, %v3724_v59  ;;  %5786 = vmatpush.msk.msra.mxu0 %vm9377_vm2, %v3737_v49  ;;  %vm9393_vm0 = vmmov %vm9384_vm6  ;;  %v9400_v46 = vld [vmem:[#allocation13_spill] sm:$0xff] }
 0x79b   : > { %3761 = vst [vmem:[#allocation3 + $0x1c8] sm:$0xff] %v3753_v4  ;;  %v3754_v2 = vsel %vm9379_vm15, %v3738_v60, 0.0  ;;  %5787 = vmatpush.msk.msra.mxu1 %vm9379_vm15, %v3738_v60  ;;  %v9404_v60 = vld [vmem:[#allocation10_spill] sm:$0xff] }
 0x79c   : > { %3762 = vst [vmem:[#allocation3 + $0x130] sm:$0xff] %v3754_v2 }
 0x79d   : > { %3455 = vrot.lane.b32.xlu2 %v7637_v16, %s5847_s17 }
 0x79e   : > { %3453 = vrot.lane.b32.xlu1 %v7634_v25, %s5847_s17 }
 0x79f   : > { %3373 = vrot.lane.b32.xlu0 %v7602_v29, %s9375_s27  ;;  %v7768_v50 = vpop.permute.xlu2 %3599 }
 0x7a0   : > { %v3660_v9 = vpop.permute.xlu1 %3659 }
 0x7a1   : > { %v3677_v62 = vsel %vm9380_vm9, %v3660_v9, %v3662_v58  ;;  %v3726_v11 = vpop.permute.xlu0 %3725  ;;  %vm9394_vm9 = vmmov %vm9392_vm5 }
 0x7a2   : > { %3693 = vst [vmem:[#allocation3 + $0x228] sm:$0xff] %v3677_v62  ;;  %v3739_v15 = vsel %vm9381_vm14, %v3724_v59, %v3726_v11  ;;  %3853 = vmatpush.msra.mxu0 %v3677_v62  ;;  %vm9395_vm14 = vcmask 7168  }
 0x7a3   : > { %v3755_v18 = vsel %vm9383_vm13, %v3739_v15, 0.0  ;;  %5788 = vmatpush.msk.msra.mxu2 %vm9383_vm13, %v3739_v15 }
 0x7a4   : > { %3763 = vst [vmem:[#allocation3 + $0x48] sm:$0xff] %v3755_v18 }
 0x7a5   : > { %3323 = vrot.lane.b32.xlu2 %v7631_v36, %s9256_s25 }
 0x7a6   : > { %3449 = vrot.lane.b32.xlu1 %v7625_v30, %s5847_s17 }
 0x7a7   : > { %3537 = vrot.lane.b32.xlu0 %v7637_v16, %s5846_s0  ;;  %v7782_v34 = vpop.permute.xlu2 %3531 }
 0x7a8   : > { %v7786_v55 = vsel %vm9384_vm6, %v3530_v13, %v7782_v34  ;;  %v3528_v51 = vpop.permute.xlu1 %3527  ;;  %vm9396_vm6 = vmmov %vm9395_vm14 }
 0x7a9   : > { %v3560_v54 = vsel %vm9386_vm7, %v7786_v55, 0.0  ;;  %v3543_v20 = vsel %vm9387_vm11, %v3528_v51, %v3530_v13  ;;  %v7792_v44 = vpop.permute.xlu0 %3727  ;;  %vm9397_vm11 = vmmov %vm9388_vm3 }
 0x7aa   : > { %3568 = vst [vmem:[#allocation3 + $0x90] sm:$0xff] %v3560_v54  ;;  %v3559_v19 = vsel %vm9383_vm13, %v3543_v20, 0.0  ;;  %v3740_v43 = vsel %vm9388_vm3, %v3726_v11, %v7792_v44 }
 0x7ab   : > { %3567 = vst [vmem:[#allocation3 + $0x1a8] sm:$0xff] %v3559_v19  ;;  %v3756_v48 = vsel %vm9386_vm7, %v3740_v43, 0.0  ;;  %5789 = vmatpush.msk.msra.mxu3 %vm9386_vm7, %v3740_v43 }
 0x7ac   : > { %3764 = vst [vmem:[#allocation3 + $0x158] sm:$0xff] %v3756_v48 }
 0x7ad   : > { %3257 = vrot.lane.b32.xlu2 %v7634_v25, %s5850_s20 }
 0x7ae   : > { %3387 = vrot.lane.b32.xlu1 %v7637_v16, %s9375_s27 }
 0x7af   : > { %3315 = vrot.lane.b32.xlu0 %v7605_v40, %s9256_s25  ;;  %v7808_v33 = vpop.permute.xlu2 %3443 }
 0x7b0   : > { %v7810_v8 = vpop.permute.xlu1 %3593 }
 0x7b1   : > { %v3610_v0 = vsel %vm9389_vm12, %v7810_v8, %v7734_v39  ;;  %v3664_v61 = vpop.permute.xlu0 %3663 }
 0x7b2   : > { %v3626_v6 = vsel %vm9391_vm4, %v3610_v0, 0.0  ;;  %v3678_v38 = vsel %vm9392_vm5, %v3662_v58, %v3664_v61  ;;  %vm9401_vm5 = vmmov %vm9389_vm12 }
 0x7b3   : > { %3634 = vst [vmem:[#allocation3 + $0x1d0] sm:$0xff] %v3626_v6  ;;  %3873 = vmatpush.msra.mxu1 %v3678_v38  ;;  %v9413_v6 = vld [vmem:[#allocation12_spill] sm:$0xff] }
 0x7b4   : > { %3694 = vst [vmem:[#allocation3 + $0x30] sm:$0xff] %v3678_v38 }
 0x7b5   : > { %3253 = vrot.lane.b32.xlu2 %v7625_v30, %s5850_s20  ;;  %5790 = vmatpush.msk.msra.mxu1 %vm9391_vm4, %v3610_v0 }
 0x7b6   : > { %3255 = vrot.lane.b32.xlu1 %v7631_v36, %s5850_s20 }
 0x7b7   : > { %3249 = vrot.lane.b32.xlu0 %v7611_v52, %s5850_s20  ;;  %v7826_v26 = vpop.permute.xlu2 %3375 }
 0x7b8   : > { %v7828_v32 = vpop.permute.xlu1 %3525 }
 0x7b9   : > { %v3542_v7 = vsel %vm9393_vm0, %v7828_v32, %v3528_v51  ;;  %v3666_v45 = vpop.permute.xlu0 %3665 }
 0x7ba   : > { %v3558_v1 = vsel %vm9379_vm15, %v3542_v7, 0.0  ;;  %v3679_v21 = vsel %vm9394_vm9, %v3664_v61, %v3666_v45  ;;  %5791 = vmatpush.msk.msra.mxu1 %vm9379_vm15, %v3542_v7  ;;  %vm9405_vm9 = vnez %v9404_v60 }
 0x7bb   : > { %3566 = vst [vmem:[#allocation3 + $0x18] sm:$0xff] %v3558_v1  ;;  %3893 = vmatpush.msra.mxu2 %v3679_v21 }
 0x7bc   : > { %3695 = vst [vmem:[#allocation3 + $0x1b8] sm:$0xff] %v3679_v21  ;;  %3876 = vmatpush.msra.mxu1 %v7605_v40  ;;  %v9398_v40 = vld [vmem:[#allocation8_spill] sm:$0xff] }
 0x7bd   : > { %vm9399_vm3 = vnez %v9398_v40 }
 0x7be   : > { %3327 = vrot.lane.b32.xlu1 %v7637_v16, %s9256_s25 }
 0x7bf   : > { %3451 = vrot.lane.b32.xlu0 %v7631_v36, %s5847_s17  ;;  %v3442_v22 = vpop.permute.xlu2 %3441 }
 0x7c0   : > { %v7842_v10 = vpop.permute.xlu1 %3733  ;;  %v3457_v31 = vsel %vm9395_vm14, %v7724_v57, %v3442_v22  ;;  %v3458_v5 = vsel %vm9396_vm6, %v3442_v22, %v7808_v33  ;;  %vm9406_vm14 = vmmov %vm9401_vm5 }
 0x7c1   : > { %v7851_v24 = vsel %vm9397_vm11, %v7842_v10, %v7686_v17  ;;  %v3473_v12 = vsel %vm9399_vm3, %v3457_v31, 0.0  ;;  %v3474_v58 = vsel %vm9391_vm4, %v3458_v5, 0.0  ;;  %v3598_v13 = vpop.permute.xlu0 %3597  ;;  %5792 = vmatpush.msk.msra.mxu1 %vm9391_vm4, %v3458_v5  ;;  %v9402_v17 = vld [vmem:[#allocation7_spill] sm:$0xff]  ;;  %vm9407_vm6 = vmmov %vm9397_vm11  ;;  %vm9410_vm11 = vcmask 785408  }
 0x7c2   : > { %v3760_v49 = vsel %vm6341_vm8, %v7851_v24, 0.0  ;;  %3481 = vst [vmem:[#allocation3 + $0x88] sm:$0xff] %v3473_v12  ;;  %v3611_v57 = vsel %vm9389_vm12, %v7734_v39, %v3598_v13  ;;  %v3612_v59 = vsel %vm9401_vm5, %v3598_v13, %v7768_v50  ;;  %vm9403_vm0 = vnez %v9402_v17  ;;  %vm9411_vm12 = vmmov %vm9410_vm11  ;;  %v9420_v12 = vld [vmem:[#allocation11_spill] sm:$0xff] }
 0x7c3   : > { %3768 = vst [vmem:[#allocation3 + $0x220] sm:$0xff] %v3760_v49  ;;  %v3627_v4 = vsel %vm9403_vm0, %v3611_v57, 0.0  ;;  %v3628_v2 = vsel %vm9405_vm9, %v3612_v59, 0.0  ;;  %5793 = vmatpush.msk.msra.mxu2 %vm9403_vm0, %v3611_v57 }
 0x7c4   : > { %3482 = vst [vmem:[#allocation3 + $0x60] sm:$0xff] %v3474_v58 }
 0x7c5   : > { %3635 = vst [vmem:[#allocation3 + $0x1f0] sm:$0xff] %v3627_v4  ;;  %5794 = vmatpush.msk.msra.mxu2 %vm9383_vm13, %v3543_v20 }
 0x7c6   : > { %3636 = vst [vmem:[#allocation3 + $0x1e0] sm:$0xff] %v3628_v2  ;;  %v9426_v2 = vld [vmem:[#allocation17_spill] sm:$0xff] }
 0x7c7   : > { %3385 = vrot.lane.b32.xlu0 %v7634_v25, %s9375_s27  ;;  %v3606_v39 = vpop.permute.xlu2 %3605  ;;  %3896 = vmatpush.msra.mxu2 %v7611_v52  ;;  %vm9427_vm8 = vnez %v9426_v2 }
 0x7c8   : > { %v3730_v9 = vpop.permute.xlu1 %3729  ;;  %v7878_v62 = vsel %vm9406_vm14, %v3606_v39, %v7702_v53  ;;  %vm9412_vm14 = vmmov %vm9401_vm5 }
 0x7c9   : > { %v7883_v11 = vsel %vm9407_vm6, %v7792_v44, %v3730_v9  ;;  %v3632_v18 = vsel %vm6401_vm10, %v7878_v62, 0.0  ;;  %v7888_v51 = vpop.permute.xlu0 %3667  ;;  %vm9414_vm6 = vnez %v9413_v6 }
 0x7ca   : > { %v3757_v20 = vsel %vm9310_vm1, %v7883_v11, 0.0  ;;  %3640 = vst [vmem:[#allocation3 + $0x110] sm:$0xff] %v3632_v18  ;;  %v3680_v53 = vsel %vm9410_vm11, %v3666_v45, %v7888_v51  ;;  %vm9415_vm11 = vcmask 1039360   ;;  %v4100_v18 = vld [vmem:[%s9033_s9] sm:$0xf] }
 0x7cb   : > { %3765 = vst [vmem:[#allocation3 + $0x118] sm:$0xff] %v3757_v20  ;;  %3913 = vmatpush.msra.mxu3 %v3680_v53 }
 0x7cc   : > { %3696 = vst [vmem:[#allocation3 + $0x120] sm:$0xff] %v3680_v53 }
 0x7cd   : > { %5795 = vmatpush.msk.msra.mxu3 %vm9405_vm9, %v3612_v59  ;;  %v9424_v59 = vld [vmem:[#allocation16_spill] sm:$0xff] }
 0x7cf   : > { %3381 = vrot.lane.b32.xlu0 %v7625_v30, %s9375_s27  ;;  %v7899_v52 = vpop.permute.xlu2 %3535  ;;  %5796 = vmatpush.msk.msra.mxu3 %vm9386_vm7, %v7786_v55 }
 0x7d0   : > { %v3674_v44 = vpop.permute.xlu1 %3673 }
 0x7d1   : > { %v7906_v19 = vsel %vm9411_vm12, %v3674_v44, %v7740_v42  ;;  %v3592_v43 = vpop.permute.xlu0 %3591  ;;  %3916 = vmatpush.msra.mxu3 %v7618_v47  ;;  %vm9416_vm12 = vcmask 777216  }
 0x7d2   : > { %3700 = vst [vmem:[#allocation3 + $0x8] sm:$0xff] %v7906_v19  ;;  %v3609_v48 = vsel %vm9401_vm5, %v3592_v43, %v7810_v8  ;;  %vm9417_vm5 = vmmov %vm9416_vm12 }
 0x7d3   : > { %v3625_v0 = vsel %vm9399_vm3, %v3609_v48, 0.0  ;;  %5797 = vmatpush.msk.msra.mxu0 %vm9399_vm3, %v3609_v48 }
 0x7d4   : > { %3633 = vst [vmem:[#allocation3 + $0x1e8] sm:$0xff] %v3625_v0  ;;  %v4114_v0 = vld [vmem:[%s9034_s10] sm:$0xf] }
 0x7d7   : > { %3325 = vrot.lane.b32.xlu0 %v7634_v25, %s9256_s25  ;;  %v7918_v42 = vpop.permute.xlu2 %3247 }
 0x7d8   : > { %v3604_v55 = vpop.permute.xlu1 %3603 }
 0x7d9   : > { %v7921_v47 = vsel %vm9412_vm14, %v3604_v55, %v3606_v39  ;;  %v3524_v61 = vpop.permute.xlu0 %3523 }
 0x7da   : > { %v3631_v8 = vsel %vm9414_vm6, %v7921_v47, 0.0  ;;  %v3541_v38 = vsel %vm9415_vm11, %v3524_v61, %v7828_v32  ;;  %vm9421_vm11 = vnez %v9420_v12  ;;  %vm9425_vm6 = vnez %v9424_v59 }
 0x7db   : > { %3639 = vst [vmem:[#allocation3 + $0x198] sm:$0xff] %v3631_v8  ;;  %v3557_v7 = vsel %vm9377_vm2, %v3541_v38, 0.0  ;;  %5798 = vmatpush.msk.msra.mxu0 %vm9377_vm2, %v3541_v38 }
 0x7dc   : > { %3565 = vst [vmem:[#allocation3 + $0xf8] sm:$0xff] %v3557_v7 }
 0x7dd   : > { %3856 = vmatpush.msra.mxu0 %v7602_v29  ;;  %v9418_v29 = vld [vmem:[#allocation15_spill] sm:$0xff] }
 0x7de   : > { %vm9419_vm14 = vnez %v9418_v29 }
 0x7df   : > { %3321 = vrot.lane.b32.xlu0 %v7625_v30, %s9256_s25  ;;  %v7935_v45 = vpop.permute.xlu2 %3319  ;;  %5799 = vmatpush.msk.msra.mxu0 %vm9399_vm3, %v3457_v31 }
 0x7e0   : > { %v7937_v1 = vpop.permute.xlu1 %3379 }
 0x7e1   : > { %v3732_v32 = vpop.permute.xlu0 %3731 }
 0x7e2   : > { %v7942_v21 = vsel %vm9416_vm12, %v3730_v9, %v3732_v32  ;;  %v7946_v22 = vsel %vm9417_vm5, %v3732_v32, %v7842_v10  ;;  %vm9422_vm12 = vcmask 793600  }
 0x7e3   : > { %v3758_v5 = vsel %vm9419_vm14, %v7942_v21, 0.0  ;;  %v3759_v58 = vsel %vm9421_vm11, %v7946_v22, 0.0  ;;  %vm9423_vm5 = vmmov %vm9422_vm12  ;;  %vm9428_vm11 = vcmask 7168  }
 0x7e4   : > { %3766 = vst [vmem:[#allocation3 + $0xf0] sm:$0xff] %v3758_v5 }
 0x7e5   : > { %3767 = vst [vmem:[#allocation3 + $0x238] sm:$0xff] %v3759_v58 }
 0x7e7   : > { %3259 = vrot.lane.b32.xlu0 %v7637_v16, %s5850_s20  ;;  %v7956_v31 = vpop.permute.xlu2 %3251 }
 0x7e8   : > { %v3602_v13 = vpop.permute.xlu1 %3601 }
 0x7e9   : > { %v7960_v10 = vsel %vm9422_vm12, %v7768_v50, %v3602_v13  ;;  %v7963_v49 = vsel %vm9423_vm5, %v3602_v13, %v3604_v55  ;;  %v3446_v57 = vpop.permute.xlu0 %3445  ;;  %vm9430_vm12 = vcmask 785408   ;;  %vm9431_vm5 = vcmask 1039360  }
 0x7ea   : > { %v3629_v4 = vsel %vm9425_vm6, %v7960_v10, 0.0  ;;  %v3630_v39 = vsel %vm9427_vm8, %v7963_v49, 0.0  ;;  %v3459_v9 = vsel %vm9428_vm11, %v7808_v33, %v3446_v57  ;;  %vm9429_vm11 = vcmask 261120  }
 0x7eb   : > { %3637 = vst [vmem:[#allocation3 + $0x150] sm:$0xff] %v3629_v4  ;;  %v3475_v50 = vsel %vm9403_vm0, %v3459_v9, 0.0  ;;  %5800 = vmatpush.msk.msra.mxu2 %vm9403_vm0, %v3459_v9 }
 0x7ec   : > { %3638 = vst [vmem:[#allocation3 + $0x148] sm:$0xff] %v3630_v39 }
 0x7ed   : > { %3483 = vst [vmem:[#allocation3 + $0x230] sm:$0xff] %v3475_v50 }
 0x7ef   : > { %4103 = vperm.xlu0 %5567, %v4100_v18   ;;  %v7980_v20 = vpop.permute.xlu2 %3383 }
 0x7f0   : > { %v7982_v53 = vpop.permute.xlu1 %3317 }
 0x7f1   : > { %v3332_v33 = vsel %vm9429_vm11, %v7982_v53, %v7935_v45  ;;  %v3672_v43 = vpop.permute.xlu0 %3671  ;;  %vm9432_vm11 = vmmov %vm9431_vm5 }
 0x7f2   : > { %3348 = vst [vmem:[#allocation3 + $0x38] sm:$0xff] %v3332_v33  ;;  %v7988_v48 = vsel %vm9430_vm12, %v3672_v43, %v3674_v44  ;;  %vm9433_vm12 = vcmask 252928  }
 0x7f3   : > { %3699 = vst [vmem:[#allocation3 + $0x170] sm:$0xff] %v7988_v48  ;;  %vm9434_vm0 = vmmov %vm9433_vm12 }
 0x7f7   : > { %4117 = vperm.xlu0 %5567, %v4114_v0   ;;  %v3456_v55 = vpop.permute.xlu2 %3455 }
 0x7f8   : > { %v3534_v61 = vpop.permute.xlu1 %3533 }
 0x7f9   : > { %v7996_v8 = vsel %vm9431_vm5, %v7782_v34, %v3534_v61  ;;  %v8000_v38 = vsel %vm9432_vm11, %v3534_v61, %v7899_v52  ;;  %v3378_v7 = vpop.permute.xlu0 %3377  ;;  %vm9435_vm5 = vcmask 261120   ;;  %vm9437_vm11 = vcmask 269312  }
 0x7fa   : > { %v3561_v44 = vsel %vm9310_vm1, %v7996_v8, 0.0  ;;  %v3562_v32 = vsel %vm9419_vm14, %v8000_v38, 0.0  ;;  %v3391_v5 = vsel %vm9433_vm12, %v7826_v26, %v3378_v7  ;;  %v3392_v34 = vsel %vm9434_vm0, %v3378_v7, %v7937_v1  ;;  %vm9438_vm12 = vmmov %vm9437_vm11 }
 0x7fb   : > { %3569 = vst [vmem:[#allocation3 + $0x1f8] sm:$0xff] %v3561_v44  ;;  %v3407_v58 = vsel %vm9383_vm13, %v3391_v5, 0.0  ;;  %v3408_v13 = vsel %vm9386_vm7, %v3392_v34, 0.0  ;;  %5801 = vmatpush.msk.msra.mxu2 %vm9383_vm13, %v3391_v5  ;;  %vm9436_vm0 = vcmask 7168  }
 0x7fc   : > { %3570 = vst [vmem:[#allocation3 + $0xa8] sm:$0xff] %v3562_v32 }
 0x7fd   : > { %3415 = vst [vmem:[#allocation3 + $0xd8] sm:$0xff] %v3407_v58 }
 0x7fe   : > { %3416 = vst [vmem:[#allocation3 + $0x160] sm:$0xff] %v3408_v13 }
 0x7ff   : > { %v8018_v4 = vpop.permute.xlu2 %3323 }
 0x800   : > { %v3314_v39 = vpop.permute.xlu1 %3313 }
 0x801   : > { %v3329_v9 = vsel %vm9435_vm5, %v7728_v63, %v3314_v39  ;;  %v3448_v50 = vpop.permute.xlu0 %3447  ;;  %vm9439_vm5 = vcmask 785408  }
 0x802   : > { %3345 = vst [vmem:[#allocation3 + $0x168] sm:$0xff] %v3329_v9  ;;  %v3460_v18 = vsel %vm9436_vm0, %v3446_v57, %v3448_v50  ;;  %vm9440_vm0 = vmmov %vm9439_vm5 }
 0x803   : > { %v3476_v0 = vsel %vm9405_vm9, %v3460_v18, 0.0  ;;  %5802 = vmatpush.msk.msra.mxu3 %vm9405_vm9, %v3460_v18 }
 0x804   : > { %3484 = vst [vmem:[#allocation3 + $0x180] sm:$0xff] %v3476_v0 }
 0x805   : > { %5803 = vmatpush.msk.msra.mxu3 %vm9386_vm7, %v3392_v34 }
 0x807   : > { %v8029_v61 = vpop.permute.xlu2 %3257  ;;  %3919 = vmatpush.msra.mxu3 %v3332_v33 }
 0x808   : > { %v3246_v7 = vpop.permute.xlu1 %3245 }
 0x809   : > { %v3261_v63 = vsel %vm9437_vm11, %v7744_v35, %v3246_v7  ;;  %v3262_v57 = vsel %vm9438_vm12, %v3246_v7, %v7918_v42  ;;  %v3670_v44 = vpop.permute.xlu0 %3669  ;;  %vm9441_vm12 = vcmask 7168  }
 0x80a   : > { %v3277_v32 = vsel %vm9399_vm3, %v3261_v63, 0.0  ;;  %v3278_v5 = vsel %vm9391_vm4, %v3262_v57, 0.0  ;;  %v3681_v34 = vsel %vm9439_vm5, %v7888_v51, %v3670_v44  ;;  %v3682_v58 = vsel %vm9440_vm0, %v3670_v44, %v3672_v43 }
 0x80b   : > { %3285 = vst [vmem:[#allocation3 + $0xc8] sm:$0xff] %v3277_v32  ;;  %vm9442_vm5 = vcmask 252928  }
 0x80c   : > { %3286 = vst [vmem:[#allocation3 + $0xd0] sm:$0xff] %v3278_v5  ;;  %vm9443_vm0 = vmmov %vm9442_vm5 }
 0x80d   : > { %3697 = vst [vmem:[#allocation3 + $0x58] sm:$0xff] %v3681_v34 }
 0x80e   : > { %3698 = vst [vmem:[#allocation3 + $0xa0] sm:$0xff] %v3682_v58 }
 0x80f   : > { %v3254_v35 = vpop.permute.xlu2 %3253 }
 0x810   : > { %v8044_v33 = vsel %vm9437_vm11, %v7956_v31, %v3254_v35  ;;  %v8046_v13 = vpop.permute.xlu1 %3453  ;;  %vm9444_vm11 = vmmov %vm9441_vm12 }
 0x811   : > { %v3281_v18 = vsel %vm9425_vm6, %v8044_v33, 0.0  ;;  %v8053_v51 = vsel %vm9441_vm12, %v8046_v13, %v3456_v55  ;;  %v3374_v0 = vpop.permute.xlu0 %3373  ;;  %vm9445_vm12 = vcmask 1039360  }
 0x812   : > { %3289 = vst [vmem:[#allocation3 + $0xb8] sm:$0xff] %v3281_v18  ;;  %v3480_v43 = vsel %vm6401_vm10, %v8053_v51, 0.0  ;;  %v3389_v7 = vsel %vm9442_vm5, %v7694_v41, %v3374_v0  ;;  %v3390_v44 = vsel %vm9443_vm0, %v3374_v0, %v7826_v26  ;;  %vm9446_vm5 = vmmov %vm9445_vm12  ;;  %vm9447_vm0 = vnez %v9420_v12 }
 0x813   : > { %3488 = vst [vmem:[#allocation3 + $0x178] sm:$0xff] %v3480_v43  ;;  %v3405_v32 = vsel %vm9377_vm2, %v3389_v7, 0.0  ;;  %v3406_v55 = vsel %vm9379_vm15, %v3390_v44, 0.0  ;;  %5804 = vmatpush.msk.msra.mxu0 %vm9377_vm2, %v3389_v7  ;;  %5805 = vmatpush.msk.msra.mxu1 %vm9379_vm15, %v3390_v44 }
 0x814   : > { %3413 = vst [vmem:[#allocation3 + $0x80] sm:$0xff] %v3405_v32 }
 0x815   : > { %3414 = vst [vmem:[#allocation3 + $0x70] sm:$0xff] %v3406_v55  ;;  %3859 = vmatpush.msra.mxu0 %v3329_v9 }
 0x817   : > { %5806 = vmatpush.msk.msra.mxu0 %vm9399_vm3, %v3261_v63 }
 0x818   : > { %v3450_v41 = vpop.permute.xlu1 %3449 }
 0x819   : > { %v3461_v26 = vsel %vm9444_vm11, %v3448_v50, %v3450_v41  ;;  %v3538_v5 = vpop.permute.xlu0 %3537  ;;  %5807 = vmatpush.msk.msrb.mxu0 %vm9310_vm1, %v7883_v11  ;;  %vm9448_vm11 = vnez %v9400_v46 }
 0x81a   : > { %v3477_v18 = vsel %vm9425_vm6, %v3461_v26, 0.0  ;;  %v3547_v0 = vsel %vm9445_vm12, %v7899_v52, %v3538_v5  ;;  %v3548_v9 = vsel %vm9446_vm5, %v3538_v5, %v7712_v14  ;;  %vm9449_vm12 = vcmask 261120  }
 0x81b   : > { %3485 = vst [vmem:[#allocation3 + $0x208] sm:$0xff] %v3477_v18  ;;  %v3563_v63 = vsel %vm9447_vm0, %v3547_v0, 0.0  ;;  %v3564_v50 = vsel %vm9448_vm11, %v3548_v9, 0.0  ;;  %3933 = vmatpush.msrb.mxu0 %v3681_v34  ;;  %vm9450_vm5 = vmmov %vm9449_vm12 }
 0x81c   : > { %3571 = vst [vmem:[#allocation3 + $0xb0] sm:$0xff] %v3563_v63 }
 0x81d   : > { %3572 = vst [vmem:[#allocation3 + $0x98] sm:$0xff] %v3564_v50  ;;  %5808 = vmatpush.msk.msrb.mxu0 %vm9425_vm6, %v7960_v10 }
 0x81f   : > { %5809 = vmatpush.msk.msrb.mxu0 %vm9310_vm1, %v7996_v8 }
 0x820   : > { %v3388_v11 = vpop.permute.xlu1 %3387 }
 0x821   : > { %v3316_v14 = vpop.permute.xlu0 %3315  ;;  %3936 = vmatpush.msrb.mxu0 %v7625_v30 }
 0x822   : > { %v3330_v52 = vsel %vm9449_vm12, %v3314_v39, %v3316_v14  ;;  %v3331_v43 = vsel %vm9450_vm5, %v3316_v14, %v7982_v53  ;;  %vm9451_vm12 = vcmask 269312  }
 0x823   : > { %3346 = vst [vmem:[#allocation3 + $0x78] sm:$0xff] %v3330_v52  ;;  %3879 = vmatpush.msra.mxu1 %v3330_v52  ;;  %3899 = vmatpush.msra.mxu2 %v3331_v43  ;;  %vm9452_vm5 = vmmov %vm9451_vm12 }
 0x824   : > { %3347 = vst [vmem:[#allocation3 + $0x210] sm:$0xff] %v3331_v43  ;;  %5810 = vmatpush.msk.msrb.mxu0 %vm9425_vm6, %v3461_v26  ;;  %vm9454_vm3 = vmmov %vm9452_vm5 }
 0x825   : > { %5811 = vmatpush.msk.msra.mxu1 %vm9391_vm4, %v3262_v57  ;;  %vm9453_vm4 = vnez %v9413_v6  ;;  %vm9455_vm2 = vmmov %vm9454_vm3 }
 0x827   : > { %5812 = vmatpush.msk.msrb.mxu1 %vm9419_vm14, %v7942_v21 }
 0x828   : > { %v3256_v30 = vpop.permute.xlu1 %3255 }
 0x829   : > { %3953 = vmatpush.msrb.mxu1 %v3682_v58  ;;  %v8104_v10 = vsel %vm9451_vm12, %v3254_v35, %v3256_v30  ;;  %v8108_v53 = vsel %vm9452_vm5, %v3256_v30, %v8029_v61  ;;  %v3250_v8 = vpop.permute.xlu0 %3249  ;;  %vm9456_vm12 = vnez %v9402_v17  ;;  %vm9459_vm5 = vcmask 588800  }
 0x82a   : > { %v3282_v39 = vsel %vm9427_vm8, %v8104_v10, 0.0  ;;  %v3283_v57 = vsel %vm9453_vm4, %v8108_v53, 0.0  ;;  %v3263_v21 = vsel %vm9454_vm3, %v7918_v42, %v3250_v8  ;;  %v3264_v34 = vsel %vm9455_vm2, %v3250_v8, %v7956_v31 }
 0x82b   : > { %5813 = vmatpush.msk.msrb.mxu1 %vm9427_vm8, %v7963_v49  ;;  %3290 = vst [vmem:[#allocation3 + $0x128] sm:$0xff] %v3282_v39  ;;  %v3279_v58 = vsel %vm9456_vm12, %v3263_v21, 0.0  ;;  %v3280_v35 = vsel %vm9405_vm9, %v3264_v34, 0.0  ;;  %5814 = vmatpush.msk.msra.mxu2 %vm9456_vm12, %v3263_v21  ;;  %vm9457_vm2 = vcmask 7168   ;;  %vm9463_vm12 = vcmask 252928  }
 0x82c   : > { %3291 = vst [vmem:[#allocation3 + $0x138] sm:$0xff] %v3283_v57  ;;  %5815 = vmatpush.msk.msra.mxu3 %vm9405_vm9, %v3264_v34  ;;  %vm9458_vm3 = vmmov %vm9457_vm2 }
 0x82d   : > { %3287 = vst [vmem:[#allocation3 + $0x50] sm:$0xff] %v3279_v58  ;;  %5816 = vmatpush.msk.msrb.mxu1 %vm9419_vm14, %v8000_v38  ;;  %5817 = vmatpush.msk.msrb.mxu2 %vm9447_vm0, %v7946_v22 }
 0x82e   : > { %3288 = vst [vmem:[#allocation3 + $0x100] sm:$0xff] %v3280_v35  ;;  %5818 = vmatpush.msk.msrb.mxu3 %vm9448_vm11, %v7851_v24 }
 0x82f   : > { %3956 = vmatpush.msrb.mxu1 %v7631_v36  ;;  %3973 = vmatpush.msrb.mxu2 %v7988_v48 }
 0x830   : > { %3993 = vmatpush.msrb.mxu3 %v7906_v19  ;;  %v3328_v44 = vpop.permute.xlu1 %3327 }
 0x831   : > { %v3452_v42 = vpop.permute.xlu0 %3451  ;;  %5819 = vmatpush.msk.msrb.mxu2 %vm9453_vm4, %v7921_v47 }
 0x832   : > { %v3462_v31 = vsel %vm9457_vm2, %v3450_v41, %v3452_v42  ;;  %v3463_v22 = vsel %vm9458_vm3, %v3452_v42, %v8046_v13  ;;  %5820 = vmatpush.msk.msrb.mxu3 %vm6401_vm10, %v7878_v62  ;;  %v3841_v62 = vld [vmem:[%s9032_s8] sm:$0xf]  ;;  %vm9460_vm2 = vmmov %vm9459_vm5 }
 0x833   : > { %v3478_v36 = vsel %vm9427_vm8, %v3462_v31, 0.0  ;;  %v3479_v24 = vsel %vm9453_vm4, %v3463_v22, 0.0  ;;  %5821 = vmatpush.msk.msrb.mxu2 %vm9447_vm0, %v3547_v0  ;;  %5823 = vmatpush.msk.msrb.mxu1 %vm9427_vm8, %v3462_v31  ;;  %vm9461_vm3 = vmmov %vm9460_vm2 }
 0x834   : > { %3486 = vst [vmem:[#allocation3 + $0xc0] sm:$0xff] %v3478_v36  ;;  %5822 = vmatpush.msk.msrb.mxu3 %vm9448_vm11, %v3548_v9  ;;  %5509 = vmatmul.msk.f32.vlgmr.msra.gmra.mxu0 %vm9459_vm5, %v3841_v62  ;;  %vm9462_vm9 = vmmov %vm9460_vm2 }
 0x835   : > { %3487 = vst [vmem:[#allocation3 + $0x68] sm:$0xff] %v3479_v24  ;;  %3976 = vmatpush.msrb.mxu2 %v7634_v25  ;;  %5512 = vmatmul.msk.f32.vlgmr.msra.gmra.mxu3 %vm9461_vm3, %v3841_v62  ;;  %vm9464_vm5 = vmmov %vm9463_vm12 }
 0x836   : > { %3996 = vmatpush.msrb.mxu3 %v7637_v16  ;;  %5511 = vmatmul.msk.f32.vlgmr.msra.gmra.mxu2 %vm9460_vm2, %v3841_v62  ;;  %vm9467_vm2 = vcmask 261120  }
 0x837   : > { %5824 = vmatpush.msk.msrb.mxu2 %vm9453_vm4, %v3463_v22  ;;  %5510 = vmatmul.msk.f32.vlgmr.msra.gmra.mxu1 %vm9462_vm9, %v3841_v62  ;;  %vm9465_vm9 = vmmov %vm9464_vm5 }
 0x838   : > { %5825 = vmatpush.msk.msrb.mxu3 %vm6401_vm10, %v8053_v51  ;;  %vm9468_vm3 = vmmov %vm9467_vm2 }
 0x839   : > { %v3386_v19 = vpop.permute.xlu0 %3385 }
 0x83a   : > { %v3395_v25 = vsel %vm9463_vm12, %v7980_v20, %v3386_v19  ;;  %v3396_v47 = vsel %vm9464_vm5, %v3386_v19, %v3388_v11  ;;  %vm9466_vm12 = vmmov %vm9464_vm5  ;;  %vm9469_vm5 = vcmask 588800  }
 0x83b   : > { %v3411_v16 = vsel %vm9447_vm0, %v3395_v25, 0.0  ;;  %v3412_v49 = vsel %vm9448_vm11, %v3396_v47, 0.0  ;;  %5826 = vmatpush.msk.msrb.mxu2 %vm9447_vm0, %v3395_v25  ;;  %5827 = vmatpush.msk.msrb.mxu3 %vm9448_vm11, %v3396_v47 }
 0x83c   : > { %3419 = vst [vmem:[#allocation3 + $0x10] sm:$0xff] %v3411_v16  ;;  %v5854_v16 = vmov 4096.0  }
 0x83d   : > { %3420 = vst [vmem:[#allocation3 + $0x188] sm:$0xff] %v3412_v49  ;;  %5639 = vrcp.f32 %v5854_v16 }
 0x841   : > { %v3382_v48 = vpop.permute.xlu0 %3381 }
 0x842   : > { %v3393_v38 = vsel %vm9465_vm9, %v7937_v1, %v3382_v48  ;;  %v3394_v13 = vsel %vm9466_vm12, %v3382_v48, %v7980_v20  ;;  %vm9470_vm9 = vmmov %vm9467_vm2 }
 0x843   : > { %v3409_v51 = vsel %vm9310_vm1, %v3393_v38, 0.0  ;;  %v3410_v7 = vsel %vm9419_vm14, %v3394_v13, 0.0  ;;  %5828 = vmatpush.msk.msrb.mxu0 %vm9310_vm1, %v3393_v38  ;;  %5829 = vmatpush.msk.msrb.mxu1 %vm9419_vm14, %v3394_v13  ;;  %vm9471_vm12 = vmmov %vm9467_vm2  ;;  %v5640_v49 = vpop.eup %5639 }
 0x844   : > { %3417 = vst [vmem:[#allocation3 + $0x1d8] sm:$0xff] %v3409_v51  ;;  %v4032_v48 = vmul.f32 4096.0, %v5640_v49 }
 0x845   : > { %3418 = vst [vmem:[#allocation3 + $0x1a0] sm:$0xff] %v3410_v7 }
 0x846   : > { %v4033_v38 = vsub.f32 1.0, %v4032_v48 }
 0x848   : > { %v4034_v13 = vmul.f32 %v5640_v49, %v4033_v38 }
 0x849   : > { %v3326_v32 = vpop.permute.xlu0 %3325 }
 0x84a   : > { %v3335_v1 = vsel %vm9467_vm2, %v8018_v4, %v3326_v32  ;;  %v3336_v20 = vsel %vm9468_vm3, %v3326_v32, %v3328_v44  ;;  %vm9472_vm2 = vmmov %vm9469_vm5  ;;  %v4035_v51 = vadd.f32 %v5640_v49, %v4034_v13 }
 0x84b   : > { %3351 = vst [vmem:[#allocation3 + $0x140] sm:$0xff] %v3335_v1  ;;  %3979 = vmatpush.msrb.mxu2 %v3335_v1  ;;  %3999 = vmatpush.msrb.mxu3 %v3336_v20  ;;  %vm9473_vm3 = vmmov %vm9472_vm2 }
 0x84c   : > { %3352 = vst [vmem:[#allocation3 + $0x200] sm:$0xff] %v3336_v20 }
 0x84d   : > { %5830 = vmatpush.msk.msrb.mxu2 %vm9453_vm4, %v8108_v53 }
 0x84e   : > { %5515 = vmatmul.msk.f32.vlgmr.msrb.gmra.mxu2 %vm9469_vm5, %v3841_v62  ;;  %vm9474_vm5 = vcmask 269312  }
 0x851   : > { %v3322_v55 = vpop.permute.xlu0 %3321 }
 0x852   : > { %v3333_v41 = vsel %vm9470_vm9, %v7935_v45, %v3322_v55  ;;  %v3334_v26 = vsel %vm9471_vm12, %v3322_v55, %v8018_v4  ;;  %vm9475_vm9 = vmmov %vm9472_vm2  ;;  %vm9143_vm12 = vcmask 1043456  }
 0x853   : > { %3349 = vst [vmem:[#allocation3 + $0x20] sm:$0xff] %v3333_v41  ;;  %3939 = vmatpush.msrb.mxu0 %v3333_v41  ;;  %3959 = vmatpush.msrb.mxu1 %v3334_v26 }
 0x854   : > { %3350 = vst [vmem:[#allocation3 + $0x40] sm:$0xff] %v3334_v26 }
 0x855   : > { %5831 = vmatpush.msk.msrb.mxu0 %vm9425_vm6, %v8044_v33  ;;  %5832 = vmatpush.msk.msrb.mxu1 %vm9427_vm8, %v8104_v10 }
 0x856   : > { %5513 = vmatmul.msk.f32.vlgmr.msrb.gmra.mxu0 %vm9472_vm2, %v3841_v62  ;;  %5514 = vmatmul.msk.f32.vlgmr.msrb.gmra.mxu1 %vm9473_vm3, %v3841_v62  ;;  %vm4036_vm2 = vweird.f32 %v5640_v49 }
 0x857   : > { %v8233_v7 = vsel %vm4036_vm2, %v5640_v49, %v4035_v51 }
 0x858   : > { %9476 = vst [vmem:[#allocation19_spill] sm:$0xff] %v8233_v7 }
 0x859   : > { %v3260_v45 = vpop.permute.xlu0 %3259 }
 0x85a   : > { %v3268_v4 = vsel %vm9474_vm5, %v8029_v61, %v3260_v45 }
 0x85b   : > { %v3284_v5 = vsel %vm6401_vm10, %v3268_v4, 0.0  ;;  %5833 = vmatpush.msk.msrb.mxu3 %vm6401_vm10, %v3268_v4 }
 0x85c   : > { %3292 = vst [vmem:[#allocation3 + $0xe8] sm:$0xff] %v3284_v5  ;;  %5516 = vmatmul.msk.f32.vlgmr.msrb.gmra.mxu3 %vm9475_vm9, %v3841_v62 }
 0x8b1   : > { %v3862_v18 = vpop.f32.mrf.mxu0 }
 0x8b2   : > { %v4006_v0 = vsel %vm9143_vm12, %v3862_v18, 0.0 }
 0x8b4   : > { %v3882_v33 = vpop.f32.mrf.mxu1 }
 0x8b5   : > { %v4007_v9 = vsel %vm9143_vm12, %v3882_v33, 0.0 }
 0x8b6   : > { %v4008_v50 = vadd.f32 %v4007_v9, %v4006_v0 }
 0x8b8   : > { %v3922_v11 = vpop.f32.mrf.mxu3 }
 0x8b9   : > { %v3902_v63 = vpop.f32.mrf.mxu2  ;;  %v4011_v52 = vsel %vm9143_vm12, %v3922_v11, 0.0 }
 0x8ba   : > { %v4009_v61 = vsel %vm9143_vm12, %v3902_v63, 0.0 }
 0x8bb   : > { %v4010_v14 = vadd.f32 %v4009_v61, %v4008_v50 }
 0x8bd   : > { %v4012_v30 = vadd.f32 %v4011_v52, %v4010_v14 }
 0x8d1   : > { %v3982_v57 = vpop.f32.mrf.mxu2 }
 0x8d2   : > { %v4017_v34 = vsel %vm9143_vm12, %v3982_v57, 0.0 }
 0x8d3   : > { %v3942_v43 = vpop.f32.mrf.mxu0  ;;  %v3962_v53 = vpop.f32.mrf.mxu1 }
 0x8d4   : > { %v4013_v10 = vsel %vm9143_vm12, %v3942_v43, 0.0  ;;  %v4015_v39 = vsel %vm9143_vm12, %v3962_v53, 0.0 }
 0x8d5   : > { %v4014_v8 = vadd.f32 %v4013_v10, %v4012_v30 }
 0x8d7   : > { %v4016_v21 = vadd.f32 %v4015_v39, %v4014_v8 }
 0x8d9   : > { %v4018_v58 = vadd.f32 %v4017_v34, %v4016_v21 }
 0x8df   : > { %v4002_v35 = vpop.f32.mrf.mxu3 }
 0x8e0   : > { %v4019_v42 = vsel %vm9143_vm12, %v4002_v35, 0.0 }
 0x8e1   : > { %v4020_v31 = vadd.f32 %v4019_v42, %v4018_v58 }
 0x8e3   : > { %4021 = vadd.xlane.f32.xlu1 %v4020_v31 }
 0x956   : > { %v4022_v22 = vpop.xlane.xlu1 %4021 }
 0x957   : > { %v4023_v36 = vrot.slane %v4022_v22, 4 }
 0x959   : > { %v4024_v24 = vadd.f32 %v4023_v36, %v4022_v22 }
 0x95b   : > { %v4025_v62 = vrot.slane %v4024_v24, 2 }
 0x95d   : > { %v4026_v19 = vadd.f32 %v4025_v62, %v4024_v24 }
 0x95f   : > { %v4027_v25 = vrot.slane %v4026_v19, 1 }
 0x961   : > { %v4028_v47 = vadd.f32 %v4027_v25, %v4026_v19 }
 0x963   : > { %5537 = vpush %v4028_v47 }
 0x994   : > { %s5538_s19 = spop %5537 }
 0x995   : > { %v4030_v44 = vstv %s5538_s19 }
 0x996   : > { %v4038_v32 = vmul.f32 %v8233_v7, %v4030_v44 }
 0x998   : > { %v4039_v1 = vsub.f32 %v3862_v18, %v4038_v32  ;;  %v4040_v20 = vsub.f32 %v3882_v33, %v4038_v32  ;;  %v4041_v55 = vsub.f32 %v3902_v63, %v4038_v32  ;;  %v4042_v41 = vsub.f32 %v3922_v11, %v4038_v32 }
 0x999   : > { %v4043_v26 = vsub.f32 %v3942_v43, %v4038_v32  ;;  %v4044_v0 = vsub.f32 %v3962_v53, %v4038_v32  ;;  %v4045_v52 = vsub.f32 %v3982_v57, %v4038_v32  ;;  %v4046_v18 = vsub.f32 %v4002_v35, %v4038_v32  ;;  %v4104_v32 = vpop.permute.xlu0 %4103 }
 0x99a   : > { %v4047_v45 = vmul.f32 %v4039_v1, %v4039_v1  ;;  %v4048_v4 = vmul.f32 %v4040_v20, %v4040_v20  ;;  %v4049_v5 = vmul.f32 %v4041_v55, %v4041_v55  ;;  %v4050_v9 = vmul.f32 %v4042_v41, %v4042_v41 }
 0x99b   : > { %v4051_v30 = vmul.f32 %v4043_v26, %v4043_v26  ;;  %v4052_v33 = vmul.f32 %v4044_v0, %v4044_v0  ;;  %v4053_v43 = vmul.f32 %v4045_v52, %v4045_v52  ;;  %v4054_v21 = vmul.f32 %v4046_v18, %v4046_v18 }
 0x99c   : > { %v4055_v50 = vsel %vm9143_vm12, %v4047_v45, 0.0  ;;  %v4056_v61 = vsel %vm9143_vm12, %v4048_v4, 0.0  ;;  %v4058_v10 = vsel %vm9143_vm12, %v4049_v5, 0.0  ;;  %v4060_v63 = vsel %vm9143_vm12, %v4050_v9, 0.0 }
 0x99d   : > { %v4057_v14 = vadd.f32 %v4056_v61, %v4055_v50  ;;  %v4062_v39 = vsel %vm9143_vm12, %v4051_v30, 0.0  ;;  %v4064_v34 = vsel %vm9143_vm12, %v4052_v33, 0.0  ;;  %v4066_v42 = vsel %vm9143_vm12, %v4053_v43, 0.0 }
 0x99e   : > { %v4068_v31 = vsel %vm9143_vm12, %v4054_v21, 0.0 }
 0x99f   : > { %v4059_v8 = vadd.f32 %v4058_v10, %v4057_v14 }
 0x9a1   : > { %v4061_v11 = vadd.f32 %v4060_v63, %v4059_v8 }
 0x9a3   : > { %v4063_v53 = vadd.f32 %v4062_v39, %v4061_v11 }
 0x9a5   : > { %v4065_v58 = vadd.f32 %v4064_v34, %v4063_v53  ;;  %v4118_v34 = vpop.permute.xlu0 %4117 }
 0x9a7   : > { %v4067_v57 = vadd.f32 %v4066_v42, %v4065_v58 }
 0x9a9   : > { %v4069_v22 = vadd.f32 %v4068_v31, %v4067_v57 }
 0x9ab   : > { %4070 = vadd.xlane.f32.xlu2 %v4069_v22 }
 0xa1e   : > { %v4071_v35 = vpop.xlane.xlu2 %4070 }
 0xa1f   : > { %v4072_v36 = vrot.slane %v4071_v35, 4 }
 0xa21   : > { %v4073_v24 = vadd.f32 %v4072_v36, %v4071_v35 }
 0xa23   : > { %v4074_v62 = vrot.slane %v4073_v24, 2 }
 0xa25   : > { %v4075_v19 = vadd.f32 %v4074_v62, %v4073_v24 }
 0xa27   : > { %v4076_v25 = vrot.slane %v4075_v19, 1 }
 0xa29   : > { %v4077_v47 = vadd.f32 %v4076_v25, %v4075_v19 }
 0xa2b   : > { %5539 = vpush %v4077_v47 }
 0xa5c   : > { %s5540_s26 = spop %5539 }
 0xa5d   : > { %v4079_v16 = vstv %s5540_s26 }
 0xa5e   : > { %v4080_v49 = vmul.f32 %v4079_v16, %v8233_v7 }
 0xa60   : > { %v4081_v48 = vadd.f32 1e-05, %v4080_v49 }
 0xa62   : > { %5641 = vrsqrt.f32 %v4081_v48  ;;  %vm4088_vm5 = vweird.f32 %v4081_v48 }
 0xa68   : > { %v5642_v38 = vpop.eup %5641 }
 0xa69   : > { %v4083_v13 = vmul.f32 %v5642_v38, %v4081_v48  ;;  %vm4089_vm3 = vweird.f32 %v5642_v38 }
 0xa6a   : > { %vm4090_vm9 = vmor %vm4088_vm5, %vm4089_vm3 }
 0xa6b   : > { %v4084_v51 = vmul.f32 %v5642_v38, %v4083_v13 }
 0xa6d   : > { %v4085_v44 = vmul.f32 0.5, %v4084_v51 }
 0xa6f   : > { %v4086_v45 = vsub.f32 1.5, %v4085_v44 }
 0xa71   : > { %v4087_v4 = vmul.f32 %v5642_v38, %v4086_v45 }
 0xa73   : > { %v4091_v5 = vsel %vm4090_vm9, %v5642_v38, %v4087_v4 }
 0xa74   : > { %v4092_v9 = vmul.f32 %v4091_v5, %v4039_v1  ;;  %v4093_v50 = vmul.f32 %v4091_v5, %v4040_v20  ;;  %v4094_v61 = vmul.f32 %v4091_v5, %v4041_v55  ;;  %v4095_v14 = vmul.f32 %v4091_v5, %v4042_v41 }
 0xa75   : > { %v4096_v30 = vmul.f32 %v4091_v5, %v4043_v26  ;;  %v4097_v10 = vmul.f32 %v4091_v5, %v4044_v0  ;;  %v4098_v8 = vmul.f32 %v4091_v5, %v4045_v52  ;;  %v4099_v33 = vmul.f32 %v4091_v5, %v4046_v18 }
 0xa76   : > { %v4106_v63 = vmul.f32 %v4104_v32, %v4092_v9  ;;  %v4107_v11 = vmul.f32 %v4104_v32, %v4093_v50  ;;  %v4108_v43 = vmul.f32 %v4104_v32, %v4094_v61  ;;  %v4109_v39 = vmul.f32 %v4104_v32, %v4095_v14 }
 0xa77   : > { %v4110_v53 = vmul.f32 %v4104_v32, %v4096_v30  ;;  %v4111_v21 = vmul.f32 %v4104_v32, %v4097_v10  ;;  %v4112_v58 = vmul.f32 %v4104_v32, %v4098_v8  ;;  %v4113_v42 = vmul.f32 %v4104_v32, %v4099_v33 }
 0xa78   : > { %v8245_v57 = vadd.f32 %v4118_v34, %v4106_v63  ;;  %v8247_v31 = vadd.f32 %v4118_v34, %v4107_v11  ;;  %v8249_v1 = vadd.f32 %v4118_v34, %v4108_v43  ;;  %v8251_v20 = vadd.f32 %v4118_v34, %v4109_v39 }
 0xa79   : > { %v8253_v55 = vadd.f32 %v4118_v34, %v4110_v53  ;;  %v8255_v41 = vadd.f32 %v4118_v34, %v4111_v21  ;;  %v8257_v26 = vadd.f32 %v4118_v34, %v4112_v58  ;;  %v8259_v0 = vadd.f32 %v4118_v34, %v4113_v42 }
 0xa7a   : > { %v8262_v52 = vmul.f32 0.70710677, %v8245_v57  ;;  %v8265_v18 = vmul.f32 0.70710677, %v8247_v31  ;;  %v8268_v22 = vmul.f32 0.70710677, %v8249_v1 }
 0xa7b   : > { %v8271_v35 = vmul.f32 0.70710677, %v8251_v20  ;;  %v8274_v36 = vmul.f32 0.70710677, %v8253_v55  ;;  %v8277_v24 = vmul.f32 0.70710677, %v8255_v41 }
 0xa7c   : > { %v8280_v62 = vmul.f32 0.70710677, %v8257_v26  ;;  %v8283_v19 = vmul.f32 0.70710677, %v8259_v0  ;;  %v8286_v25 = vand.u32 2147483647, %v8262_v52 }
 0xa7d   : > { %v8289_v47 = vand.u32 2147483647, %v8265_v18  ;;  %v8292_v16 = vand.u32 2147483647, %v8268_v22  ;;  %v8295_v49 = vand.u32 2147483647, %v8271_v35 }
 0xa7e   : > { %v8298_v48 = vand.u32 2147483647, %v8274_v36  ;;  %v8301_v38 = vand.u32 2147483647, %v8277_v24  ;;  %v4168_v13 = vmul.f32 0.3275911, %v8286_v25 }
 0xa7f   : > { %v4169_v51 = vmul.f32 0.3275911, %v8289_v47  ;;  %v4170_v44 = vmul.f32 0.3275911, %v8292_v16  ;;  %v8307_v32 = vand.u32 2147483647, %v8280_v62 }
 0xa80   : > { %v8310_v45 = vand.u32 2147483647, %v8283_v19  ;;  %v4171_v4 = vmul.f32 0.3275911, %v8295_v49  ;;  %v4172_v5 = vmul.f32 0.3275911, %v8298_v48 }
 0xa81   : > { %v8314_v9 = vadd.f32 1.0, %v4168_v13  ;;  %v8316_v50 = vadd.f32 1.0, %v4169_v51  ;;  %v8318_v61 = vadd.f32 1.0, %v4170_v44  ;;  %v4173_v14 = vmul.f32 0.3275911, %v8301_v38 }
 0xa82   : > { %v8321_v30 = vadd.f32 1.0, %v4171_v4  ;;  %v4174_v10 = vmul.f32 0.3275911, %v8307_v32  ;;  %v4175_v8 = vmul.f32 0.3275911, %v8310_v45  ;;  %v8327_v33 = vadd.f32 1.0, %v4172_v5 }
 0xa83   : > { %5643 = vrcp.f32 %v8314_v9  ;;  %v4195_v63 = vand.u32 2147483648, %v8314_v9  ;;  %v4210_v11 = vand.u32 2147483648, %v8316_v50  ;;  %v8332_v43 = vadd.f32 1.0, %v4173_v14 }
 0xa84   : > { %5645 = vrcp.f32 %v8316_v50  ;;  %v4225_v39 = vand.u32 2147483648, %v8318_v61  ;;  %v8336_v53 = vadd.f32 1.0, %v4174_v10  ;;  %v8338_v21 = vadd.f32 1.0, %v4175_v8 }
 0xa85   : > { %5647 = vrcp.f32 %v8318_v61  ;;  %v4193_v34 = vand.u32 2147483647, %v8314_v9  ;;  %v4208_v42 = vand.u32 2147483647, %v8316_v50  ;;  %v4240_v13 = vand.u32 2147483648, %v8321_v30 }
 0xa86   : > { %5649 = vrcp.f32 %v8321_v30  ;;  %v4196_v4 = vor.u32 1.1754944e-38, %v4195_v63  ;;  %v8352_v5 = vor.u32 1.1754944e-38, %v4210_v11  ;;  %v4223_v14 = vand.u32 2147483647, %v8318_v61 }
 0xa87   : > { %5651 = vrcp.f32 %v8327_v33  ;;  %v8360_v7 = vor.u32 1.1754944e-38, %v4225_v39  ;;  %v4238_v15 = vand.u32 2147483647, %v8321_v30  ;;  %v4253_v6 = vand.u32 2147483647, %v8327_v33 }
 0xa88   : > { %vm8364_vm9 = vcmp.eq.f32.partialorder %v4193_v34, 8.507059e+37  ;;  %v4255_v60 = vand.u32 2147483648, %v8327_v33  ;;  %5653 = vrcp.f32 %v8332_v43  ;;  %vm8376_vm2 = vcmp.eq.f32.partialorder %v4208_v42, 8.507059e+37 }
 0xa89   : > { %v8342_v58 = vpop.eup %5643  ;;  %vm8381_vm10 = vcmp.eq.f32.partialorder %v4223_v14, 8.507059e+37  ;;  %vm8388_vm3 = vcmp.eq.f32.partialorder %v4238_v15, 8.507059e+37  ;;  %v4268_v42 = vand.u32 2147483647, %v8332_v43  ;;  %5655 = vrcp.f32 %v8336_v53 }
 0xa8a   : > { %v8348_v51 = vpop.eup %5645  ;;  %v4185_v44 = vmul.f32 %v8342_v58, %v8314_v9  ;;  %vm8398_vm5 = vcmp.eq.f32.partialorder %v4253_v6, 8.507059e+37  ;;  %vm9487_vm12 = vweird.f32 %v8342_v58  ;;  %vm9488_vm4 = vweird.f32 %v8314_v9 }
 0xa8b   : > { %v8356_v10 = vpop.eup %5647  ;;  %v4200_v8 = vmul.f32 %v8348_v51, %v8316_v50  ;;  %vm8406_vm6 = vmor %vm9488_vm4, %vm9487_vm12  ;;  %vm9491_vm14 = vweird.f32 %v8348_v51  ;;  %vm9492_vm1 = vweird.f32 %v8316_v50  ;;  %vm9496_vm12 = vweird.f32 %v8318_v61 }
 0xa8c   : > { %v4186_v59 = vsub.f32 1.0, %v4185_v44  ;;  %v4215_v11 = vmul.f32 %v8356_v10, %v8318_v61  ;;  %v5650_v39 = vpop.eup %5649  ;;  %v4241_v44 = vor.u32 1.1754944e-38, %v4240_v13  ;;  %vm8419_vm11 = vmor %vm9492_vm1, %vm9491_vm14  ;;  %vm9495_vm4 = vweird.f32 %v8356_v10 }
 0xa8d   : > { %v4201_v2 = vsub.f32 1.0, %v4200_v8  ;;  %v4230_v29 = vmul.f32 %v5650_v39, %v8321_v30  ;;  %v5652_v8 = vpop.eup %5651  ;;  %vm8428_vm0 = vmor %vm9496_vm12, %vm9495_vm4  ;;  %vm8433_vm8 = vcmp.eq.f32.partialorder %v4268_v42, 8.507059e+37  ;;  %vm9501_vm1 = vweird.f32 %v5650_v39 }
 0xa8e   : > { %v4187_v34 = vmul.f32 %v8342_v58, %v4186_v59  ;;  %v4216_v56 = vsub.f32 1.0, %v4215_v11  ;;  %v4270_v11 = vand.u32 2147483648, %v8332_v43  ;;  %v4245_v46 = vmul.f32 %v5652_v8, %v8327_v33 }
 0xa8f   : > { %v4202_v13 = vmul.f32 %v8348_v51, %v4201_v2  ;;  %v4231_v40 = vsub.f32 1.0, %v4230_v29  ;;  %vm9502_vm14 = vweird.f32 %v8321_v30  ;;  %5657 = vrcp.f32 %v8338_v21 }
 0xa90   : > { %v4188_v14 = vadd.f32 %v8342_v58, %v4187_v34  ;;  %v4217_v54 = vmul.f32 %v8356_v10, %v4216_v56  ;;  %v4256_v34 = vor.u32 1.1754944e-38, %v4255_v60  ;;  %v5654_v56 = vpop.eup %5653  ;;  %v4246_v23 = vsub.f32 1.0, %v4245_v46  ;;  %vm4236_vm4 = vmor %vm9502_vm14, %vm9501_vm1 }
 0xa91   : > { %v4203_v2 = vadd.f32 %v8348_v51, %v4202_v13  ;;  %v4232_v13 = vmul.f32 %v5650_v39, %v4231_v40  ;;  %v5656_v37 = vpop.eup %5655  ;;  %vm4265_vm12 = vweird.f32 %v5654_v56  ;;  %vm9507_vm1 = vweird.f32 %v8332_v43 }
 0xa92   : > { %v4192_v6 = vsel %vm8406_vm6, %v8342_v58, %v4188_v14  ;;  %v4218_v9 = vadd.f32 %v8356_v10, %v4217_v54  ;;  %v4260_v58 = vmul.f32 %v5654_v56, %v8332_v43  ;;  %v4271_v14 = vor.u32 1.1754944e-38, %v4270_v11  ;;  %vm4266_vm14 = vmor %vm9507_vm1, %vm4265_vm12 }
 0xa93   : > { %v4283_v54 = vand.u32 2147483647, %v8336_v53  ;;  %v4207_v40 = vsel %vm8419_vm11, %v8348_v51, %v4203_v2  ;;  %v4233_v61 = vadd.f32 %v5650_v39, %v4232_v13  ;;  %v4247_v15 = vmul.f32 %v5652_v8, %v4246_v23 }
 0xa94   : > { %v4222_v46 = vsel %vm8428_vm0, %v8356_v10, %v4218_v9  ;;  %v8446_v42 = vsel %vm8364_vm9, %v4196_v4, %v4192_v6  ;;  %v4261_v11 = vsub.f32 1.0, %v4260_v58  ;;  %vm4279_vm6 = vweird.f32 %v8336_v53 }
 0xa95   : > { %v4237_v51 = vsel %vm4236_vm4, %v5650_v39, %v4233_v61  ;;  %v4248_v2 = vadd.f32 %v5652_v8, %v4247_v15  ;;  %v4275_v29 = vmul.f32 %v5656_v37, %v8336_v53  ;;  %v4285_v10 = vand.u32 2147483648, %v8336_v53 }
 0xa96   : > { %v8457_v23 = vsel %vm8376_vm2, %v8352_v5, %v4207_v40  ;;  %v8462_v30 = vsel %vm8381_vm10, %v8360_v7, %v4222_v46  ;;  %vm9503_vm0 = vweird.f32 %v5652_v8  ;;  %vm9504_vm11 = vweird.f32 %v8327_v33  ;;  %v5658_v40 = vpop.eup %5657 }
 0xa97   : > { %vm4251_vm9 = vmor %vm9504_vm11, %vm9503_vm0  ;;  %v4262_v4 = vmul.f32 %v5654_v56, %v4261_v11  ;;  %v8470_v63 = vsel %vm8388_vm3, %v4241_v44, %v4237_v51  ;;  %v4276_v17 = vsub.f32 1.0, %v4275_v29  ;;  %vm8472_vm2 = vcmp.eq.f32.partialorder %v4283_v54, 8.507059e+37 }
 0xa98   : > { %v4252_v39 = vsel %vm4251_vm9, %v5652_v8, %v4248_v2  ;;  %vm4280_vm10 = vweird.f32 %v5656_v37  ;;  %v4304_v33 = vmul.f32 1.0614054, %v8446_v42  ;;  %v4286_v59 = vor.u32 1.1754944e-38, %v4285_v10 }
 0xa99   : > { %v8478_v12 = vsel %vm8398_vm5, %v4256_v34, %v4252_v39  ;;  %v4263_v7 = vadd.f32 %v5654_v56, %v4262_v4  ;;  %v4277_v44 = vmul.f32 %v5656_v37, %v4276_v17  ;;  %v4305_v8 = vmul.f32 1.0614054, %v8457_v23  ;;  %vm4281_vm3 = vmor %vm4279_vm6, %vm4280_vm10 }
 0xa9a   : > { %v4306_v6 = vmul.f32 1.0614054, %v8462_v30  ;;  %v4298_v13 = vand.u32 2147483647, %v8338_v21  ;;  %v4307_v27 = vmul.f32 1.0614054, %v8470_v63  ;;  %v4290_v11 = vmul.f32 %v5658_v40, %v8338_v21 }
 0xa9b   : > { %v4267_v9 = vsel %vm4266_vm14, %v5654_v56, %v4263_v7  ;;  %v4308_v34 = vmul.f32 1.0614054, %v8478_v12  ;;  %v4278_v58 = vadd.f32 %v5656_v37, %v4277_v44  ;;  %v4312_v43 = vadd.f32 -1.4531521, %v4304_v33 }
 0xa9c   : > { %v8491_v60 = vsel %vm8433_vm8, %v4271_v14, %v4267_v9  ;;  %v4313_v54 = vadd.f32 -1.4531521, %v4305_v8  ;;  %v4314_v46 = vadd.f32 -1.4531521, %v4306_v6  ;;  %v4315_v61 = vadd.f32 -1.4531521, %v4307_v27 }
 0xa9d   : > { %v4309_v56 = vmul.f32 1.0614054, %v8491_v60  ;;  %v4282_v15 = vsel %vm4281_vm3, %v5656_v37, %v4278_v58  ;;  %v4300_v51 = vand.u32 2147483648, %v8338_v21  ;;  %v4316_v50 = vadd.f32 -1.4531521, %v4308_v34 }
 0xa9e   : > { %v8501_v14 = vsel %vm8472_vm2, %v4286_v59, %v4282_v15  ;;  %v4320_v29 = vmul.f32 %v4312_v43, %v8446_v42  ;;  %v4321_v53 = vmul.f32 %v4313_v54, %v8457_v23  ;;  %v4291_v10 = vsub.f32 1.0, %v4290_v11 }
 0xa9f   : > { %v4317_v2 = vadd.f32 -1.4531521, %v4309_v56  ;;  %v4310_v4 = vmul.f32 1.0614054, %v8501_v14  ;;  %v4322_v39 = vmul.f32 %v4314_v46, %v8462_v30  ;;  %v4323_v37 = vmul.f32 %v4315_v61, %v8470_v63 }
 0xaa0   : > { %vm4295_vm8 = vweird.f32 %v5658_v40  ;;  %v4324_v17 = vmul.f32 %v4316_v50, %v8478_v12  ;;  %v4328_v5 = vadd.f32 1.4214138, %v4320_v29  ;;  %v4292_v33 = vmul.f32 %v5658_v40, %v4291_v10 }
 0xaa1   : > { %v4325_v7 = vmul.f32 %v4317_v2, %v8491_v60  ;;  %v4318_v44 = vadd.f32 -1.4531521, %v4310_v4  ;;  %v4329_v59 = vadd.f32 1.4214138, %v4321_v53  ;;  %v4330_v8 = vadd.f32 1.4214138, %v4322_v39 }
 0xaa2   : > { %v4293_v6 = vadd.f32 %v5658_v40, %v4292_v33  ;;  %vm4294_vm5 = vweird.f32 %v8338_v21  ;;  %v4331_v9 = vadd.f32 1.4214138, %v4323_v37  ;;  %v4332_v27 = vadd.f32 1.4214138, %v4324_v17 }
 0xaa3   : > { %vm4296_vm6 = vmor %vm4294_vm5, %vm4295_vm8  ;;  %v4301_v34 = vor.u32 1.1754944e-38, %v4300_v51  ;;  %v4326_v58 = vmul.f32 %v4318_v44, %v8501_v14  ;;  %v4333_v43 = vadd.f32 1.4214138, %v4325_v7  ;;  %v4336_v54 = vmul.f32 %v4328_v5, %v8446_v42 }
 0xaa4   : > { %v4297_v56 = vsel %vm4296_vm6, %v5658_v40, %v4293_v6  ;;  %vm4299_vm4 = vcmp.eq.f32.partialorder %v4298_v13, 8.507059e+37  ;;  %v4337_v46 = vmul.f32 %v4329_v59, %v8457_v23  ;;  %v4338_v61 = vmul.f32 %v4330_v8, %v8462_v30  ;;  %v4940_v8 = vld [vmem:[#allocation2 + $0x38] sm:$0xf] }
 0xaa5   : > { %v8515_v15 = vsel %vm4299_vm4, %v4301_v34, %v4297_v56  ;;  %v4339_v21 = vmul.f32 %v4331_v9, %v8470_v63  ;;  %v4340_v50 = vmul.f32 %v4332_v27, %v8478_v12  ;;  %v4334_v51 = vadd.f32 1.4214138, %v4326_v58  ;;  %4966 = vrot.lane.b32.xlu0 %v4940_v8, %s5843_s28 }
 0xaa6   : > { %v4311_v11 = vmul.f32 1.0614054, %v8515_v15  ;;  %v4341_v2 = vmul.f32 %v4333_v43, %v8491_v60  ;;  %v4344_v29 = vadd.f32 -0.28449672, %v4336_v54  ;;  %v4345_v10 = vadd.f32 -0.28449672, %v4337_v46 }
 0xaa7   : > { %v4346_v40 = vadd.f32 -0.28449672, %v4338_v61  ;;  %v8522_v13 = vmul.f32 0.5, %v8245_v57  ;;  %v8525_v4 = vmul.f32 0.5, %v8247_v31  ;;  %v8528_v39 = vmul.f32 0.5, %v8249_v1 }
 0xaa8   : > { %v4319_v53 = vadd.f32 -1.4531521, %v4311_v11  ;;  %v8531_v37 = vmul.f32 0.5, %v8251_v20  ;;  %v8534_v17 = vmul.f32 0.5, %v8253_v55  ;;  %v4347_v5 = vadd.f32 -0.28449672, %v4339_v21 }
 0xaa9   : > { %v4348_v33 = vadd.f32 -0.28449672, %v4340_v50  ;;  %v4342_v44 = vmul.f32 %v4334_v51, %v8501_v14  ;;  %v4349_v57 = vadd.f32 -0.28449672, %v4341_v2  ;;  %v4352_v59 = vmul.f32 %v4344_v29, %v8446_v42  ;;  %v4524_v61 = vld [vmem:[#allocation2 + $0x30] sm:$0xf] }
 0xaaa   : > { %v4327_v7 = vmul.f32 %v4319_v53, %v8515_v15  ;;  %v4376_v31 = vsub.f32 0.0, %v8286_v25  ;;  %v4353_v6 = vmul.f32 %v4345_v10, %v8457_v23  ;;  %v4354_v20 = vmul.f32 %v4346_v40, %v8462_v30  ;;  %v4652_v11 = vld [vmem:[#allocation2 + $0x30] sm:$0xf]  ;;  %4542 = vrot.lane.b32.xlu1 %v4524_v61, %s9256_s25 }
 0xaab   : > { %v4377_v55 = vsub.f32 0.0, %v8289_v47  ;;  %v4378_v9 = vsub.f32 0.0, %v8292_v16  ;;  %v4379_v27 = vsub.f32 0.0, %v8295_v49  ;;  %v4380_v34 = vsub.f32 0.0, %v8298_v48  ;;  %4670 = vrot.lane.b32.xlu2 %v4652_v11, %s5847_s17  ;;  %v4812_v11 = vld [vmem:[#allocation2 + $0x38] sm:$0xf] }
 0xaac   : > { %v4335_v1 = vadd.f32 1.4214138, %v4327_v7  ;;  %v4381_v58 = vsub.f32 0.0, %v8301_v38  ;;  %v4355_v54 = vmul.f32 %v4347_v5, %v8470_v63  ;;  %v4382_v56 = vsub.f32 0.0, %v8307_v32  ;;  %v4584_v7 = vld [vmem:[#allocation2 + $0x30] sm:$0xf] }
 0xaad   : > { %v4383_v46 = vsub.f32 0.0, %v8310_v45  ;;  %vm4144_vm12 = vcmp.ge.f32.partialorder %v8262_v52, 0.0  ;;  %v4384_v21 = vmul.f32 %v4376_v31, %v8286_v25  ;;  %v4385_v50 = vmul.f32 %v4377_v55, %v8289_v47  ;;  %4602 = vrot.lane.b32.xlu0 %v4584_v7, %s9375_s27 }
 0xaae   : > { %v4343_v43 = vmul.f32 %v4335_v1, %v8515_v15  ;;  %v4386_v51 = vmul.f32 %v4378_v9, %v8292_v16  ;;  %v4387_v2 = vmul.f32 %v4379_v27, %v8295_v49  ;;  %vm4145_vm0 = vcmp.ge.f32.partialorder %v8265_v18, 0.0  ;;  %v4456_v27 = vld [vmem:[#allocation2 + $0x30] sm:$0xf] }
 0xaaf   : > { %vm4146_vm11 = vcmp.ge.f32.partialorder %v8268_v22, 0.0  ;;  %v4350_v29 = vadd.f32 -0.28449672, %v4342_v44  ;;  %v4388_v10 = vmul.f32 %v4380_v34, %v8298_v48  ;;  %v4389_v40 = vmul.f32 %v4381_v58, %v8301_v38 }
 0xab0   : > { %v4351_v53 = vadd.f32 -0.28449672, %v4343_v43  ;;  %vm4147_vm9 = vcmp.ge.f32.partialorder %v8271_v35, 0.0  ;;  %v4390_v25 = vmul.f32 %v4382_v56, %v8307_v32  ;;  %v4392_v47 = vmul.f32 1.442695, %v4384_v21 }
 0xab1   : > { %v4394_v16 = vmul.f32 1.442695, %v4385_v50  ;;  %v4396_v49 = vmul.f32 1.442695, %v4386_v51  ;;  %vm4148_vm2 = vcmp.ge.f32.partialorder %v8274_v36, 0.0  ;;  %v4356_v5 = vmul.f32 %v4348_v33, %v8478_v12 }
 0xab2   : > { %v4360_v44 = vadd.f32 0.2548296, %v4352_v59  ;;  %v4391_v31 = vmul.f32 %v4383_v46, %v8310_v45  ;;  %v4398_v48 = vmul.f32 1.442695, %v4387_v2  ;;  %v4357_v38 = vmul.f32 %v4349_v57, %v8491_v60  ;;  %v4880_v45 = vld [vmem:[#allocation2 + $0x38] sm:$0xf]  ;;  %4474 = vrot.lane.b32.xlu1 %v4456_v27, %s5850_s20 }
 0xab3   : > { %v4361_v8 = vadd.f32 0.2548296, %v4353_v6  ;;  %5659 = vpow2.f32 %v4392_v47  ;;  %v4400_v1 = vmul.f32 1.442695, %v4388_v10  ;;  %v4358_v55 = vmul.f32 %v4350_v29, %v8501_v14  ;;  %4906 = vrot.lane.b32.xlu2 %v4880_v45, %s5844_s29 }
 0xab4   : > { %v4362_v9 = vadd.f32 0.2548296, %v4354_v20  ;;  %5661 = vpow2.f32 %v4394_v16  ;;  %v4402_v32 = vmul.f32 1.442695, %v4389_v40  ;;  %v4359_v34 = vmul.f32 %v4351_v53, %v8515_v15 }
 0xab5   : > { %v4363_v33 = vadd.f32 0.2548296, %v4355_v54  ;;  %5663 = vpow2.f32 %v4396_v49  ;;  %v4404_v59 = vmul.f32 1.442695, %v4390_v25  ;;  %v4364_v58 = vadd.f32 0.2548296, %v4356_v5  ;;  %4838 = vrot.lane.b32.xlu0 %v4812_v11, %s5845_s30 }
 0xab6   : > { %v4368_v57 = vmul.f32 %v4360_v44, %v8446_v42  ;;  %5665 = vpow2.f32 %v4398_v48  ;;  %v4406_v6 = vmul.f32 1.442695, %v4391_v31  ;;  %vm4149_vm10 = vcmp.ge.f32.partialorder %v8277_v24, 0.0 }
 0xab7   : > { %v4365_v43 = vadd.f32 0.2548296, %v4357_v38  ;;  %v4369_v20 = vmul.f32 %v4361_v8, %v8457_v23  ;;  %5667 = vpow2.f32 %v4400_v1  ;;  %vm4150_vm1 = vcmp.ge.f32.partialorder %v8280_v62, 0.0 }
 0xab8   : > { %v4366_v56 = vadd.f32 0.2548296, %v4358_v55  ;;  %v4370_v54 = vmul.f32 %v4362_v9, %v8462_v30  ;;  %5669 = vpow2.f32 %v4402_v32  ;;  %vm4151_vm14 = vcmp.ge.f32.partialorder %v8283_v19, 0.0 }
 0xab9   : > { %v5660_v46 = vpop.eup %5659  ;;  %v4367_v42 = vadd.f32 0.2548296, %v4359_v34  ;;  %v4371_v61 = vmul.f32 %v4363_v33, %v8470_v63  ;;  %5671 = vpow2.f32 %v4404_v59  ;;  %v4152_v21 = vsel %vm4144_vm12, 1.0, %v9374_v3  ;;  %v4744_v33 = vld [vmem:[#allocation2 + $0x38] sm:$0xf] }
 0xaba   : > { %v5662_v23 = vpop.eup %5661  ;;  %v4372_v50 = vmul.f32 %v4364_v58, %v8478_v12  ;;  %5673 = vpow2.f32 %v4406_v6  ;;  %v4408_v30 = vmul.f32 %v5660_v46, %v4368_v57  ;;  %v4153_v2 = vsel %vm4145_vm0, 1.0, %v9374_v3 }
 0xabb   : > { %v5664_v51 = vpop.eup %5663  ;;  %v4154_v63 = vsel %vm4146_vm11, 1.0, %v9374_v3  ;;  %v4373_v29 = vmul.f32 %v4365_v43, %v8491_v60  ;;  %v4409_v53 = vmul.f32 %v5662_v23, %v4369_v20  ;;  %v4155_v52 = vsel %vm4147_vm9, 1.0, %v9374_v3 }
 0xabc   : > { %v5666_v10 = vpop.eup %5665  ;;  %v4374_v12 = vmul.f32 %v4366_v56, %v8501_v14  ;;  %v4410_v40 = vmul.f32 %v5664_v51, %v4370_v54  ;;  %v4416_v7 = vsub.f32 1.0, %v4408_v30  ;;  %v4156_v22 = vsel %vm4148_vm2, 1.0, %v9374_v3 }
 0xabd   : > { %v5668_v18 = vpop.eup %5667  ;;  %v4375_v25 = vmul.f32 %v4367_v42, %v8515_v15  ;;  %v4411_v60 = vmul.f32 %v5666_v10, %v4371_v61  ;;  %v4417_v47 = vsub.f32 1.0, %v4409_v53  ;;  %v4157_v35 = vsel %vm4149_vm10, 1.0, %v9374_v3  ;;  %4770 = vrot.lane.b32.xlu0 %v4744_v33, %s5846_s0 }
 0xabe   : > { %v5670_v16 = vpop.eup %5669  ;;  %v4412_v49 = vmul.f32 %v5668_v18, %v4372_v50  ;;  %v4418_v14 = vsub.f32 1.0, %v4410_v40  ;;  %v4424_v5 = vmul.f32 %v4416_v7, %v4152_v21  ;;  %v4158_v31 = vsel %vm4150_vm1, 1.0, %v9374_v3 }
 0xabf   : > { %v5672_v44 = vpop.eup %5671  ;;  %v4413_v48 = vmul.f32 %v5670_v16, %v4373_v29  ;;  %v4419_v36 = vsub.f32 1.0, %v4411_v60  ;;  %v4425_v38 = vmul.f32 %v4417_v47, %v4153_v2  ;;  %v4159_v56 = vsel %vm4151_vm14, 1.0, %v9374_v3 }
 0xac0   : > { %v5674_v8 = vpop.eup %5673  ;;  %v4414_v15 = vmul.f32 %v5672_v44, %v4374_v12  ;;  %v4420_v1 = vsub.f32 1.0, %v4412_v49  ;;  %v4426_v55 = vmul.f32 %v4418_v14, %v4154_v63  ;;  %v4432_v9 = vadd.f32 1.0, %v4424_v5 }
 0xac1   : > { %v4415_v32 = vmul.f32 %v5674_v8, %v4375_v25  ;;  %v4421_v27 = vsub.f32 1.0, %v4413_v48  ;;  %v4427_v24 = vmul.f32 %v4419_v36, %v4155_v52  ;;  %v4433_v34 = vadd.f32 1.0, %v4425_v38 }
 0xac2   : > { %v4422_v59 = vsub.f32 1.0, %v4414_v15  ;;  %v4428_v45 = vmul.f32 %v4420_v1, %v4156_v22  ;;  %v4434_v58 = vadd.f32 1.0, %v4426_v55  ;;  %v4440_v57 = vmul.f32 %v4432_v9, %v8522_v13 }
 0xac3   : > { %v4423_v62 = vsub.f32 1.0, %v4415_v32  ;;  %v4429_v6 = vmul.f32 %v4421_v27, %v4157_v35  ;;  %v4435_v43 = vadd.f32 1.0, %v4427_v24  ;;  %v4441_v20 = vmul.f32 %v4433_v34, %v8525_v4 }
 0xac4   : > { %v4430_v54 = vmul.f32 %v4422_v59, %v4158_v31  ;;  %v4436_v46 = vadd.f32 1.0, %v4428_v45  ;;  %v4442_v42 = vmul.f32 %v4434_v58, %v8528_v39  ;;  %4448 = vst [vmem:[#allocation2] sm:$0xf] %v4440_v57  ;;  %v4133_v61 = vmul.f32 0.5, %v8255_v41 }
 0xac5   : > { %v4431_v11 = vmul.f32 %v4423_v62, %v4159_v56  ;;  %v4437_v13 = vadd.f32 1.0, %v4429_v6  ;;  %v4443_v23 = vmul.f32 %v4435_v43, %v8531_v37  ;;  %4449 = vst [vmem:[#allocation2 + $0x18] sm:$0xf] %v4441_v20  ;;  %v4134_v4 = vmul.f32 0.5, %v8257_v26 }
 0xac6   : > { %v4438_v21 = vadd.f32 1.0, %v4430_v54  ;;  %v4444_v19 = vmul.f32 %v4436_v46, %v8534_v17  ;;  %4450 = vst [vmem:[#allocation2 + $0x10] sm:$0xf] %v4442_v42  ;;  %v4135_v3 = vmul.f32 0.5, %v8259_v0  ;;  %vm9508_vm3 = vcmask 777216  }
 0xac7   : > { %v4439_v50 = vadd.f32 1.0, %v4431_v11  ;;  %v4445_v39 = vmul.f32 %v4437_v13, %v4133_v61  ;;  %4451 = vst [vmem:[#allocation2 + $0x48] sm:$0xf] %v4443_v23  ;;  %vm9509_vm8 = vmmov %vm9508_vm3  ;;  %vm9513_vm6 = vcmask 1039360   ;;  %vm9520_vm9 = vcmask 793600  }
 0xac8   : > { %v4446_v30 = vmul.f32 %v4438_v21, %v4134_v4  ;;  %4452 = vst [vmem:[#allocation2 + $0x28] sm:$0xf] %v4444_v19  ;;  %vm9510_vm5 = vmmov %vm9508_vm3 }
 0xac9   : > { %v4447_v51 = vmul.f32 %v4439_v50, %v4135_v3  ;;  %4453 = vst [vmem:[#allocation2 + $0x8] sm:$0xf] %v4445_v39  ;;  %vm9514_vm4 = vmmov %vm9508_vm3 }
 0xaca   : > { %4454 = vst [vmem:[#allocation2 + $0x20] sm:$0xf] %v4446_v30  ;;  %vm9517_vm0 = vmmov %vm9508_vm3 }
 0xacb   : > { %4455 = vst [vmem:[#allocation2 + $0x40] sm:$0xf] %v4447_v51  ;;  %v4872_v2 = vld [vmem:[#allocation2] sm:$0xf]  ;;  %vm9523_vm10 = vmmov %vm9517_vm0 }
 0xacc   : > { %v4933_v41 = vld [vmem:[#allocation2 + $0x18] sm:$0xf]  ;;  %v4932_v29 = vld [vmem:[#allocation2] sm:$0xf]  ;;  %vm9526_vm14 = vmmov %vm9513_vm6 }
 0xacd   : > { %v4934_v37 = vld [vmem:[#allocation2 + $0x10] sm:$0xf]  ;;  %4952 = vrot.lane.b32.xlu1 %v4933_v41, %s5843_s28  ;;  %v4720_v10 = vld [vmem:[#allocation2] sm:$0xf]  ;;  %v4721_v52 = vld [vmem:[#allocation2 + $0x18] sm:$0xf] }
 0xace   : > { %4954 = vrot.lane.b32.xlu0 %v4934_v37, %s5843_s28  ;;  %v4807_v17 = vld [vmem:[#allocation2 + $0x48] sm:$0xf]  ;;  %v4738_v53 = vld [vmem:[#allocation2 + $0x10] sm:$0xf]  ;;  %4728 = vst [vmem:[#allocation3 + $0x1b0] sm:$0xf] %v4720_v10 }
 0xacf   : > { %v4936_v26 = vld [vmem:[#allocation2 + $0x28] sm:$0xf]  ;;  %v4722_v12 = vld [vmem:[#allocation2 + $0x10] sm:$0xf]  ;;  %4729 = vst [vmem:[#allocation3 + $0x1c0] sm:$0xf] %v4721_v52 }
 0xad0   : > { %4958 = vrot.lane.b32.xlu2 %v4936_v26, %s5843_s28  ;;  %v4935_v0 = vld [vmem:[#allocation2 + $0x48] sm:$0xf]  ;;  %4730 = vst [vmem:[#allocation3] sm:$0xf] %v4722_v12  ;;  %v4804_v22 = vld [vmem:[#allocation2] sm:$0xf] }
 0xad1   : > { %v4876_v63 = vld [vmem:[#allocation2 + $0x28] sm:$0xf]  ;;  %v4726_v25 = vld [vmem:[#allocation2 + $0x20] sm:$0xf]  ;;  %v4874_v60 = vld [vmem:[#allocation2 + $0x10] sm:$0xf] }
 0xad2   : > { %v4723_v40 = vld [vmem:[#allocation2 + $0x48] sm:$0xf]  ;;  %v4727_v47 = vld [vmem:[#allocation2 + $0x40] sm:$0xf]  ;;  %v4805_v16 = vld [vmem:[#allocation2 + $0x18] sm:$0xf] }
 0xad3   : > { %v4724_v7 = vld [vmem:[#allocation2 + $0x28] sm:$0xf]  ;;  %4731 = vst [vmem:[#allocation3 + $0xe0] sm:$0xf] %v4723_v40  ;;  %v4736_v35 = vld [vmem:[#allocation2] sm:$0xf] }
 0xad4   : > { %v4725_v18 = vld [vmem:[#allocation2 + $0x8] sm:$0xf]  ;;  %4732 = vst [vmem:[#allocation3 + $0x28] sm:$0xf] %v4724_v7  ;;  %v4737_v14 = vld [vmem:[#allocation2 + $0x18] sm:$0xf] }
 0xad5   : > { %4828 = vrot.lane.b32.xlu1 %v4807_v17, %s5845_s30  ;;  %4733 = vst [vmem:[#allocation3 + $0x190] sm:$0xf] %v4725_v18  ;;  %v4875_v49 = vld [vmem:[#allocation2 + $0x48] sm:$0xf]  ;;  %v4938_v5 = vld [vmem:[#allocation2 + $0x20] sm:$0xf] }
 0xad6   : > { %4956 = vrot.lane.b32.xlu0 %v4935_v0, %s5843_s28  ;;  %4734 = vst [vmem:[#allocation3 + $0x218] sm:$0xf] %v4726_v25  ;;  %v4806_v44 = vld [vmem:[#allocation2 + $0x10] sm:$0xf]  ;;  %v4939_v31 = vld [vmem:[#allocation2 + $0x40] sm:$0xf] }
 0xad7   : > { %4735 = vst [vmem:[#allocation3 + $0x108] sm:$0xf] %v4727_v47  ;;  %v4655_v48 = vld [vmem:[#allocation2 + $0x10] sm:$0xf]  ;;  %v4873_v36 = vld [vmem:[#allocation2 + $0x18] sm:$0xf] }
 0xad8   : > { %4890 = vrot.lane.b32.xlu2 %v4872_v2, %s5844_s29  ;;  %v4937_v38 = vld [vmem:[#allocation2 + $0x8] sm:$0xf]  ;;  %v4878_v8 = vld [vmem:[#allocation2 + $0x20] sm:$0xf]  ;;  %v4587_v55 = vld [vmem:[#allocation2 + $0x10] sm:$0xf] }
 0xad9   : > { %v4739_v15 = vld [vmem:[#allocation2 + $0x48] sm:$0xf]  ;;  %v4879_v1 = vld [vmem:[#allocation2 + $0x40] sm:$0xf]  ;;  %v4654_v45 = vld [vmem:[#allocation2 + $0x18] sm:$0xf] }
 0xada   : > { %v4808_v9 = vld [vmem:[#allocation2 + $0x28] sm:$0xf]  ;;  %v4810_v32 = vld [vmem:[#allocation2 + $0x20] sm:$0xf]  ;;  %v4586_v43 = vld [vmem:[#allocation2 + $0x18] sm:$0xf] }
 0xadb   : > { %v4656_v27 = vld [vmem:[#allocation2 + $0x48] sm:$0xf]  ;;  %v4585_v6 = vld [vmem:[#allocation2] sm:$0xf]  ;;  %v4527_v56 = vld [vmem:[#allocation2 + $0x10] sm:$0xf] }
 0xadc   : > { %v4740_v24 = vld [vmem:[#allocation2 + $0x28] sm:$0xf]  ;;  %v4743_v42 = vld [vmem:[#allocation2 + $0x40] sm:$0xf]  ;;  %v4526_v4 = vld [vmem:[#allocation2 + $0x18] sm:$0xf] }
 0xadd   : > { %4898 = vrot.lane.b32.xlu1 %v4876_v63, %s5844_s29  ;;  %v4588_v33 = vld [vmem:[#allocation2 + $0x48] sm:$0xf]  ;;  %v4653_v61 = vld [vmem:[#allocation2] sm:$0xf]  ;;  %v4459_v30 = vld [vmem:[#allocation2 + $0x10] sm:$0xf] }
 0xade   : > { %4950 = vrot.lane.b32.xlu0 %v4932_v29, %s5843_s28  ;;  %v4877_v59 = vld [vmem:[#allocation2 + $0x8] sm:$0xf]  ;;  %v4811_v21 = vld [vmem:[#allocation2 + $0x40] sm:$0xf]  ;;  %v4458_v29 = vld [vmem:[#allocation2 + $0x18] sm:$0xf] }
 0xadf   : > { %v4809_v57 = vld [vmem:[#allocation2 + $0x8] sm:$0xf]  ;;  %v4525_v50 = vld [vmem:[#allocation2] sm:$0xf] }
 0xae0   : > { %4758 = vrot.lane.b32.xlu2 %v4738_v53, %s5846_s0  ;;  %v4741_v13 = vld [vmem:[#allocation2 + $0x8] sm:$0xf]  ;;  %v4742_v51 = vld [vmem:[#allocation2 + $0x20] sm:$0xf] }
 0xae1   : > { %v4457_v41 = vld [vmem:[#allocation2] sm:$0xf]  ;;  %v4658_v63 = vld [vmem:[#allocation2 + $0x8] sm:$0xf] }
 0xae2   : > { %v4659_v53 = vld [vmem:[#allocation2 + $0x20] sm:$0xf] }
 0xae5   : > { %4822 = vrot.lane.b32.xlu1 %v4804_v22, %s5845_s30 }
 0xae6   : > { %4894 = vrot.lane.b32.xlu0 %v4874_v60, %s5844_s29 }
 0xae8   : > { %4824 = vrot.lane.b32.xlu2 %v4805_v16, %s5845_s30 }
 0xaed   : > { %4754 = vrot.lane.b32.xlu1 %v4736_v35, %s5846_s0 }
 0xaee   : > { %4896 = vrot.lane.b32.xlu0 %v4875_v49, %s5844_s29  ;;  %v4591_v49 = vld [vmem:[#allocation2 + $0x20] sm:$0xf] }
 0xaf0   : > { %4756 = vrot.lane.b32.xlu2 %v4737_v14, %s5846_s0  ;;  %v4528_v14 = vld [vmem:[#allocation2 + $0x48] sm:$0xf] }
 0xaf5   : > { %4962 = vrot.lane.b32.xlu1 %v4938_v5, %s5843_s28  ;;  %v4657_v5 = vld [vmem:[#allocation2 + $0x28] sm:$0xf] }
 0xaf6   : > { %4826 = vrot.lane.b32.xlu0 %v4806_v44, %s5845_s30 }
 0xaf8   : > { %4964 = vrot.lane.b32.xlu2 %v4939_v31, %s5843_s28 }
 0xafd   : > { %4676 = vrot.lane.b32.xlu1 %v4655_v48, %s5847_s17 }
 0xafe   : > { %4892 = vrot.lane.b32.xlu0 %v4873_v36, %s5844_s29 }
 0xb00   : > { %4960 = vrot.lane.b32.xlu2 %v4937_v38, %s5843_s28  ;;  %v9515_v38 = vld [vmem:[#allocation6_spill] sm:$0xff] }
 0xb01   : > { %vm9516_vm12 = vnez %v9515_v38 }
 0xb05   : > { %4902 = vrot.lane.b32.xlu1 %v4878_v8, %s5844_s29  ;;  %v8648_v34 = vpop.permute.xlu2 %4670 }
 0xb06   : > { %4760 = vrot.lane.b32.xlu0 %v4739_v15, %s5846_s0 }
 0xb08   : > { %4904 = vrot.lane.b32.xlu2 %v4879_v1, %s5844_s29 }
 0xb0d   : > { %4608 = vrot.lane.b32.xlu1 %v4587_v55, %s9375_s27  ;;  %v8656_v62 = vpop.permute.xlu2 %4906 }
 0xb0e   : > { %4830 = vrot.lane.b32.xlu0 %v4808_v9, %s5845_s30  ;;  %v9518_v9 = vld [vmem:[#allocation13_spill] sm:$0xff] }
 0xb0f   : > { %vm9519_vm11 = vnez %v9518_v9 }
 0xb10   : > { %4834 = vrot.lane.b32.xlu2 %v4810_v32, %s5845_s30 }
 0xb15   : > { %4678 = vrot.lane.b32.xlu1 %v4656_v27, %s5847_s17  ;;  %v4589_v27 = vld [vmem:[#allocation2 + $0x28] sm:$0xf] }
 0xb16   : > { %4762 = vrot.lane.b32.xlu0 %v4740_v24, %s5846_s0  ;;  %v4460_v24 = vld [vmem:[#allocation2 + $0x48] sm:$0xf] }
 0xb17   : > { %v8653_v58 = vpop.permute.xlu0 %4966 }
 0xb18   : > { %4610 = vrot.lane.b32.xlu2 %v4588_v33, %s9375_s27  ;;  %v4592_v33 = vld [vmem:[#allocation2 + $0x40] sm:$0xf] }
 0xb1c   : > { %v8665_v46 = vpop.permute.xlu1 %4542 }
 0xb1d   : > { %4900 = vrot.lane.b32.xlu1 %v4877_v59, %s5844_s29 }
 0xb1e   : > { %4674 = vrot.lane.b32.xlu0 %v4654_v45, %s5847_s17 }
 0xb1f   : > { %v8660_v20 = vpop.permute.xlu0 %4602 }
 0xb20   : > { %4832 = vrot.lane.b32.xlu2 %v4809_v57, %s5845_s30  ;;  %v9521_v57 = vld [vmem:[#allocation8_spill] sm:$0xff] }
 0xb21   : > { %vm9522_vm2 = vnez %v9521_v57 }
 0xb24   : > { %v8675_v19 = vpop.permute.xlu1 %4474 }
 0xb25   : > { %4604 = vrot.lane.b32.xlu1 %v4585_v6, %s9375_s27 }
 0xb26   : > { %4606 = vrot.lane.b32.xlu0 %v4586_v43, %s9375_s27 }
 0xb27   : > { %v8669_v11 = vpop.permute.xlu0 %4838 }
 0xb28   : > { %4548 = vrot.lane.b32.xlu2 %v4527_v56, %s9256_s25 }
 0xb2a   : > { %v8663_v54 = vpop.permute.xlu2 %4958 }
 0xb2d   : > { %4768 = vrot.lane.b32.xlu1 %v4743_v42, %s5846_s0 }
 0xb2e   : > { %4672 = vrot.lane.b32.xlu0 %v4653_v61, %s5847_s17  ;;  %v9524_v61 = vld [vmem:[#allocation14_spill] sm:$0xff] }
 0xb2f   : > { %v8678_v3 = vpop.permute.xlu0 %4770  ;;  %vm9525_vm1 = vnez %v9524_v61  ;;  %v5037_v61 = vld [vmem:[#allocation3 + $0x190] sm:$0xff] }
 0xb30   : > { %4764 = vrot.lane.b32.xlu2 %v4741_v13, %s5846_s0 }
 0xb32   : > { %v8672_v23 = vpop.permute.xlu2 %4890 }
 0xb35   : > { %4546 = vrot.lane.b32.xlu1 %v4526_v4, %s9256_s25  ;;  %v4531_v4 = vld [vmem:[#allocation2 + $0x20] sm:$0xf] }
 0xb36   : > { %4836 = vrot.lane.b32.xlu0 %v4811_v21, %s5845_s30  ;;  %v4590_v21 = vld [vmem:[#allocation2 + $0x8] sm:$0xf]  ;;  %s5528_s30 = sshll.u32 %s9627_s22, 5 }
 0xb38   : > { %4544 = vrot.lane.b32.xlu2 %v4525_v50, %s9256_s25  ;;  %v4462_v50 = vld [vmem:[#allocation2 + $0x8] sm:$0xf] }
 0xb3a   : > { %v8681_v39 = vpop.permute.xlu2 %4758 }
 0xb3d   : > { %4480 = vrot.lane.b32.xlu1 %v4459_v30, %s5850_s20 }
 0xb3e   : > { %4766 = vrot.lane.b32.xlu0 %v4742_v51, %s5846_s0 }
 0xb3f   : > { %v4953_v37 = vpop.permute.xlu1 %4952 }
 0xb40   : > { %4476 = vrot.lane.b32.xlu2 %v4457_v41, %s5850_s20  ;;  %v4955_v26 = vpop.permute.xlu0 %4954 }
 0xb41   : > { %v4969_v17 = vsel %vm9508_vm3, %v4953_v37, %v4955_v26  ;;  %vm9527_vm3 = vcmask 785408  }
 0xb42   : > { %v8687_v0 = vpop.permute.xlu2 %4824  ;;  %v4985_v2 = vsel %vm9379_vm15, %v4969_v17, 0.0 }
 0xb43   : > { %4993 = vst [vmem:[#allocation3 + $0x130] sm:$0xf] %v4985_v2 }
 0xb45   : > { %4682 = vrot.lane.b32.xlu1 %v4658_v63, %s5847_s17  ;;  %v4529_v63 = vld [vmem:[#allocation2 + $0x28] sm:$0xf] }
 0xb46   : > { %4478 = vrot.lane.b32.xlu0 %v4458_v29, %s5850_s20  ;;  %v4660_v29 = vld [vmem:[#allocation2 + $0x40] sm:$0xf] }
 0xb47   : > { %v8693_v10 = vpop.permute.xlu1 %4828 }
 0xb48   : > { %4684 = vrot.lane.b32.xlu2 %v4659_v53, %s5847_s17  ;;  %v4957_v52 = vpop.permute.xlu0 %4956  ;;  %v4532_v53 = vld [vmem:[#allocation2 + $0x40] sm:$0xf] }
 0xb49   : > { %v4970_v12 = vsel %vm9509_vm8, %v4955_v26, %v4957_v52  ;;  %v4971_v40 = vsel %vm9510_vm5, %v4957_v52, %v8663_v54  ;;  %vm9528_vm8 = vmmov %vm9527_vm3 }
 0xb4a   : > { %v4757_v7 = vpop.permute.xlu2 %4756  ;;  %v4986_v22 = vsel %vm9383_vm13, %v4970_v12, 0.0  ;;  %v4987_v60 = vsel %vm9386_vm7, %v4971_v40, 0.0  ;;  %v5065_v47 = vld [vmem:[#allocation3 + $0x130] sm:$0xff]  ;;  %vm9529_vm5 = vmmov %vm9527_vm3 }
 0xb4b   : > { %v4773_v16 = vsel %vm9513_vm6, %v4757_v7, %v8681_v39  ;;  %4994 = vst [vmem:[#allocation3 + $0x48] sm:$0xf] %v4986_v22  ;;  %5103 = vmatpush.msra.mxu1 %v5065_v47  ;;  %vm9530_vm6 = vmmov %vm9517_vm0  ;;  %v9532_v22 = vld [vmem:[#allocation15_spill] sm:$0xff] }
 0xb4c   : > { %v4789_v35 = vsel %vm9379_vm15, %v4773_v16, 0.0  ;;  %4995 = vst [vmem:[#allocation3 + $0x158] sm:$0xf] %v4987_v60  ;;  %v9534_v60 = vld [vmem:[#allocation11_spill] sm:$0xff] }
 0xb4d   : > { %4797 = vst [vmem:[#allocation3 + $0x18] sm:$0xf] %v4789_v35  ;;  %4616 = vrot.lane.b32.xlu1 %v4591_v49, %s9375_s27 }
 0xb4e   : > { %4550 = vrot.lane.b32.xlu0 %v4528_v14, %s9256_s25  ;;  %v9538_v14 = vld [vmem:[#allocation9_spill] sm:$0xff] }
 0xb4f   : > { %v8709_v44 = vpop.permute.xlu1 %4898 }
 0xb50   : > { %4680 = vrot.lane.b32.xlu2 %v4657_v5, %s5847_s17  ;;  %v4951_v31 = vpop.permute.xlu0 %4950 }
 0xb51   : > { %v4968_v48 = vsel %vm9514_vm4, %v4951_v31, %v4953_v37  ;;  %vm9531_vm4 = vmmov %vm9517_vm0  ;;  %v9540_v31 = vld [vmem:[#allocation7_spill] sm:$0xff] }
 0xb52   : > { %v4965_v36 = vpop.permute.xlu2 %4964  ;;  %v4984_v8 = vsel %vm9516_vm12, %v4968_v48, 0.0  ;;  %v5066_v15 = vld [vmem:[#allocation3 + $0x48] sm:$0xff] }
 0xb53   : > { %v4975_v1 = vsel %vm9517_vm0, %v4965_v36, %v8653_v58  ;;  %4992 = vst [vmem:[#allocation3 + $0x1c8] sm:$0xf] %v4984_v8  ;;  %5123 = vmatpush.msra.mxu2 %v5066_v15  ;;  %v5067_v55 = vld [vmem:[#allocation3 + $0x158] sm:$0xff]  ;;  %vm9533_vm0 = vnez %v9532_v22  ;;  %v4464_v15 = vld [vmem:[#allocation2 + $0x40] sm:$0xf] }
 0xb54   : > { %v4991_v32 = vsel %vm9519_vm11, %v4975_v1, 0.0  ;;  %5143 = vmatpush.msra.mxu3 %v5067_v55 }
 0xb55   : > { %4999 = vst [vmem:[#allocation3 + $0x220] sm:$0xf] %v4991_v32  ;;  %4612 = vrot.lane.b32.xlu1 %v4589_v27, %s9375_s27 }
 0xb56   : > { %4482 = vrot.lane.b32.xlu0 %v4460_v24, %s5850_s20 }
 0xb57   : > { %v4823_v59 = vpop.permute.xlu1 %4822 }
 0xb58   : > { %4618 = vrot.lane.b32.xlu2 %v4592_v33, %s9375_s27  ;;  %v4840_v45 = vsel %vm9520_vm9, %v4823_v59, %v8687_v0  ;;  %v4895_v58 = vpop.permute.xlu0 %4894  ;;  %vm9535_vm9 = vnez %v9534_v60  ;;  %v4463_v59 = vld [vmem:[#allocation2 + $0x20] sm:$0xf] }
 0xb59   : > { %v4856_v6 = vsel %vm9522_vm2, %v4840_v45, 0.0 }
 0xb5a   : > { %v4961_v43 = vpop.permute.xlu2 %4960  ;;  %4864 = vst [vmem:[#allocation3 + $0x1e8] sm:$0xf] %v4856_v6  ;;  %v5064_v56 = vld [vmem:[#allocation3 + $0x1c8] sm:$0xff] }
 0xb5b   : > { %v4972_v42 = vsel %vm9523_vm10, %v8663_v54, %v4961_v43  ;;  %5083 = vmatpush.msra.mxu0 %v5064_v56  ;;  %vm9536_vm10 = vcmask 793600  }
 0xb5c   : > { %v4988_v13 = vsel %vm9525_vm1, %v4972_v42, 0.0 }
 0xb5d   : > { %4996 = vst [vmem:[#allocation3 + $0x118] sm:$0xf] %v4988_v13  ;;  %4556 = vrot.lane.b32.xlu1 %v4531_v4, %s9256_s25 }
 0xb5e   : > { %4614 = vrot.lane.b32.xlu0 %v4590_v21, %s9375_s27 }
 0xb5f   : > { %v4755_v30 = vpop.permute.xlu1 %4754 }
 0xb60   : > { %4486 = vrot.lane.b32.xlu2 %v4462_v50, %s5850_s20  ;;  %v4772_v51 = vsel %vm9526_vm14, %v4755_v30, %v4757_v7  ;;  %v4897_v41 = vpop.permute.xlu0 %4896  ;;  %vm9537_vm14 = vmmov %vm9536_vm10  ;;  %v9545_v50 = vld [vmem:[#allocation17_spill] sm:$0xff] }
 0xb61   : > { %v4788_v54 = vsel %vm9516_vm12, %v4772_v51, 0.0  ;;  %v4910_v37 = vsel %vm9527_vm3, %v4895_v58, %v4897_v41  ;;  %v4911_v17 = vsel %vm9528_vm8, %v4897_v41, %v8709_v44  ;;  %vm9539_vm3 = vnez %v9538_v14  ;;  %v5048_v21 = vld [vmem:[#allocation3 + $0x1e8] sm:$0xff] }
 0xb62   : > { %v4905_v26 = vpop.permute.xlu2 %4904  ;;  %4796 = vst [vmem:[#allocation3 + $0xf8] sm:$0xf] %v4788_v54  ;;  %vm9541_vm8 = vnez %v9540_v31  ;;  %v5041_v54 = vld [vmem:[#allocation3 + $0x18] sm:$0xff] }
 0xb63   : > { %v4915_v2 = vsel %vm9529_vm5, %v4905_v26, %v8656_v62  ;;  %4926 = vst [vmem:[#allocation3 + $0x1b8] sm:$0xf] %v4910_v37 }
 0xb64   : > { %4931 = vst [vmem:[#allocation3 + $0x8] sm:$0xf] %v4915_v2  ;;  %v5033_v2 = vld [vmem:[#allocation3 + $0x1c0] sm:$0xff] }
 0xb65   : > { %4927 = vst [vmem:[#allocation3 + $0x120] sm:$0xf] %v4911_v17  ;;  %4552 = vrot.lane.b32.xlu1 %v4529_v63, %s9256_s25 }
 0xb66   : > { %4686 = vrot.lane.b32.xlu0 %v4660_v29, %s5847_s17 }
 0xb67   : > { %v4963_v52 = vpop.permute.xlu1 %4962 }
 0xb68   : > { %4558 = vrot.lane.b32.xlu2 %v4532_v53, %s9256_s25  ;;  %v4973_v12 = vsel %vm9530_vm6, %v4961_v43, %v4963_v52  ;;  %v4974_v40 = vsel %vm9531_vm4, %v4963_v52, %v4965_v36  ;;  %v4827_v7 = vpop.permute.xlu0 %4826  ;;  %vm9542_vm6 = vmmov %vm9529_vm5 }
 0xb69   : > { %v4989_v62 = vsel %vm9533_vm0, %v4973_v12, 0.0  ;;  %v4990_v47 = vsel %vm9535_vm9, %v4974_v40, 0.0  ;;  %v4841_v16 = vsel %vm9536_vm10, %v8687_v0, %v4827_v7  ;;  %v4842_v35 = vsel %vm9537_vm14, %v4827_v7, %v8693_v10  ;;  %v4530_v0 = vld [vmem:[#allocation2 + $0x8] sm:$0xf]  ;;  %vm9543_vm4 = vmmov %vm9529_vm5  ;;  %v9550_v40 = vld [vmem:[#allocation10_spill] sm:$0xff] }
 0xb6a   : > { %v8754_v49 = vpop.permute.xlu2 %4834  ;;  %4997 = vst [vmem:[#allocation3 + $0xf0] sm:$0xf] %v4989_v62  ;;  %v4857_v5 = vsel %vm9539_vm3, %v4841_v16, 0.0  ;;  %v4858_v48 = vsel %vm9541_vm8, %v4842_v35, 0.0  ;;  %v5058_v36 = vld [vmem:[#allocation3 + $0x1b8] sm:$0xff]  ;;  %vm9544_vm10 = vcmask 1039360  }
 0xb6b   : > { %4998 = vst [vmem:[#allocation3 + $0x238] sm:$0xf] %v4990_v47  ;;  %5124 = vmatpush.msra.mxu2 %v5058_v36  ;;  %v5040_v41 = vld [vmem:[#allocation3 + $0xf8] sm:$0xff]  ;;  %v9552_v62 = vld [vmem:[#allocation16_spill] sm:$0xff] }
 0xb6c   : > { %4865 = vst [vmem:[#allocation3 + $0x1d0] sm:$0xf] %v4857_v5  ;;  %v5059_v8 = vld [vmem:[#allocation3 + $0x120] sm:$0xff] }
 0xb6d   : > { %4866 = vst [vmem:[#allocation3 + $0x1f0] sm:$0xf] %v4858_v48  ;;  %5144 = vmatpush.msra.mxu3 %v5059_v8  ;;  %4490 = vrot.lane.b32.xlu1 %v4464_v15, %s5850_s20  ;;  %v5034_v35 = vld [vmem:[#allocation3] sm:$0xff] }
 0xb6e   : > { %4554 = vrot.lane.b32.xlu0 %v4530_v0, %s9256_s25  ;;  %s530_s25 = scalar_lea.vmem %s9025_s1, %s9627_s22 }
 0xb6f   : > { %v8762_v1 = vpop.permute.xlu1 %4676 }
 0xb70   : > { %v4893_v55 = vpop.permute.xlu0 %4892 }
 0xb71   : > { %v4908_v32 = vsel %vm9529_vm5, %v8672_v23, %v4893_v55  ;;  %v4909_v27 = vsel %vm9542_vm6, %v4893_v55, %v4895_v58  ;;  %vm9546_vm5 = vnez %v9545_v50  ;;  %vm9547_vm6 = vcmask 252928  }
 0xb72   : > { %v8767_v24 = vpop.permute.xlu2 %4610  ;;  %4924 = vst [vmem:[#allocation3 + $0x228] sm:$0xf] %v4908_v32 }
 0xb73   : > { %4925 = vst [vmem:[#allocation3 + $0x30] sm:$0xf] %v4909_v27  ;;  %v5049_v51 = vld [vmem:[#allocation3 + $0x1d0] sm:$0xff] }
 0xb74   : > { %v5050_v33 = vld [vmem:[#allocation3 + $0x1f0] sm:$0xff] }
 0xb75   : > { %5125 = vmatpush.msra.mxu2 %v5050_v33 }
 0xb76   : > { %4488 = vrot.lane.b32.xlu0 %v4463_v59, %s5850_s20 }
 0xb77   : > { %v4903_v45 = vpop.permute.xlu1 %4902 }
 0xb78   : > { %v4914_v6 = vsel %vm9543_vm4, %v4903_v45, %v4905_v26  ;;  %v4761_v43 = vpop.permute.xlu0 %4760  ;;  %v5032_v26 = vld [vmem:[#allocation3 + $0x1b0] sm:$0xff]  ;;  %vm9548_vm4 = vmmov %vm9537_vm14 }
 0xb79   : > { %4930 = vst [vmem:[#allocation3 + $0x170] sm:$0xf] %v4914_v6  ;;  %v4774_v56 = vsel %vm9544_vm10, %v8681_v39, %v4761_v43  ;;  %v5056_v23 = vld [vmem:[#allocation3 + $0x228] sm:$0xff]  ;;  %v4461_v39 = vld [vmem:[#allocation2 + $0x28] sm:$0xf]  ;;  %vm9549_vm10 = vmmov %vm9548_vm4 }
 0xb7a   : > { %v4833_v42 = vpop.permute.xlu2 %4832  ;;  %v4790_v58 = vsel %vm9383_vm13, %v4774_v56, 0.0  ;;  %5084 = vmatpush.msra.mxu0 %v5056_v23  ;;  %v5057_v13 = vld [vmem:[#allocation3 + $0x30] sm:$0xff] }
 0xb7b   : > { %v4845_v4 = vsel %vm9537_vm14, %v4833_v42, %v8754_v49  ;;  %4798 = vst [vmem:[#allocation3 + $0x1a8] sm:$0xf] %v4790_v58  ;;  %5104 = vmatpush.msra.mxu1 %v5057_v13  ;;  %vm9551_vm14 = vnez %v9550_v40 }
 0xb7c   : > { %v4861_v30 = vsel %vm9546_vm5, %v4845_v4, 0.0  ;;  %5085 = vmatpush.msra.mxu0 %v5048_v21 }
 0xb7d   : > { %4869 = vst [vmem:[#allocation3 + $0x148] sm:$0xf] %v4861_v30  ;;  %5105 = vmatpush.msra.mxu1 %v5049_v51 }
 0xb7e   : > { %4484 = vrot.lane.b32.xlu0 %v4461_v39, %s5850_s20  ;;  %5086 = vmatpush.msra.mxu0 %v5040_v41  ;;  %s535_s20 = scalar_lea.vmem %s9040_s16, %s5528_s30 }
 0xb7f   : > { %5106 = vmatpush.msra.mxu1 %v5041_v54  ;;  %v4609_v37 = vpop.permute.xlu1 %4608 }
 0xb80   : > { %v4623_v17 = vsel %vm9547_vm6, %v4609_v37, %v8767_v24  ;;  %5087 = vmatpush.msra.mxu0 %v5032_v26  ;;  %v4831_v63 = vpop.permute.xlu0 %4830  ;;  %vm9553_vm6 = vnez %v9552_v62  ;;  %v5062_v9 = vld [vmem:[#allocation3 + $0x170] sm:$0xff] }
 0xb81   : > { %v4639_v29 = vsel %vm9386_vm7, %v4623_v17, 0.0  ;;  %5107 = vmatpush.msra.mxu1 %v5033_v2  ;;  %v4843_v53 = vsel %vm9548_vm4, %v8693_v10, %v4831_v63  ;;  %v4844_v52 = vsel %vm9549_vm10, %v4831_v63, %v4833_v42  ;;  %vm9554_vm4 = vcmask 7168  }
 0xb82   : > { %v8787_v12 = vpop.permute.xlu2 %4548  ;;  %4647 = vst [vmem:[#allocation3 + $0x160] sm:$0xf] %v4639_v29  ;;  %v4859_v7 = vsel %vm9551_vm14, %v4843_v53, 0.0  ;;  %v4860_v47 = vsel %vm9553_vm6, %v4844_v52, 0.0  ;;  %v5042_v16 = vld [vmem:[#allocation3 + $0x1a8] sm:$0xff]  ;;  %vm9555_vm10 = vcmask 1039360  }
 0xb83   : > { %4867 = vst [vmem:[#allocation3 + $0x1e0] sm:$0xf] %v4859_v7  ;;  %5126 = vmatpush.msra.mxu2 %v5042_v16  ;;  %vm9556_vm5 = vmmov %vm9555_vm10 }
 0xb84   : > { %4868 = vst [vmem:[#allocation3 + $0x150] sm:$0xf] %v4860_v47 }
 0xb85   : > { %5127 = vmatpush.msra.mxu2 %v5034_v35 }
 0xb87   : > { %v8793_v5 = vpop.permute.xlu1 %4678 }
 0xb88   : > { %v4691_v10 = vsel %vm9554_vm4, %v8762_v1, %v8793_v5  ;;  %v4763_v48 = vpop.permute.xlu0 %4762  ;;  %vm9557_vm4 = vcmask 785408  }
 0xb89   : > { %v4707_v36 = vsel %vm9551_vm14, %v4691_v10, 0.0  ;;  %v4775_v8 = vsel %vm9555_vm10, %v4761_v43, %v4763_v48  ;;  %vm9558_vm10 = vmmov %vm9557_vm4  ;;  %v5019_v21 = vld [vmem:[#allocation3 + $0x160] sm:$0xff] }
 0xb8a   : > { %v8801_v15 = vpop.permute.xlu2 %4764  ;;  %4715 = vst [vmem:[#allocation3 + $0x180] sm:$0xf] %v4707_v36  ;;  %v4791_v0 = vsel %vm9386_vm7, %v4775_v8, 0.0  ;;  %v5051_v55 = vld [vmem:[#allocation3 + $0x1e0] sm:$0xff]  ;;  %vm9559_vm7 = vcmask 7168   ;;  %v9574_v36 = vld [vmem:[#allocation18_spill] sm:$0xff] }
 0xb8b   : > { %v4776_v32 = vsel %vm9556_vm5, %v4763_v48, %v8801_v15  ;;  %4799 = vst [vmem:[#allocation3 + $0x90] sm:$0xf] %v4791_v0  ;;  %5145 = vmatpush.msra.mxu3 %v5051_v55  ;;  %vm9560_vm5 = vcmask 261120   ;;  %v9572_v10 = vld [vmem:[#allocation12_spill] sm:$0xff] }
 0xb8c   : > { %v4792_v27 = vsel %vm9525_vm1, %v4776_v32, 0.0 }
 0xb8d   : > { %4800 = vst [vmem:[#allocation3 + $0x1f8] sm:$0xf] %v4792_v27 }
 0xb8f   : > { %v4901_v33 = vpop.permute.xlu1 %4900 }
 0xb90   : > { %v4912_v59 = vsel %vm9557_vm4, %v8709_v44, %v4901_v33  ;;  %v4913_v6 = vsel %vm9558_vm10, %v4901_v33, %v4903_v45  ;;  %v4675_v43 = vpop.permute.xlu0 %4674  ;;  %v5035_v44 = vld [vmem:[#allocation3 + $0xe0] sm:$0xff]  ;;  %vm9561_vm4 = vcmask 252928  }
 0xb91   : > { %4928 = vst [vmem:[#allocation3 + $0x58] sm:$0xf] %v4912_v59  ;;  %v4690_v25 = vsel %vm9559_vm7, %v4675_v43, %v8762_v1  ;;  %v5027_v45 = vld [vmem:[#allocation3 + $0x180] sm:$0xff]  ;;  %vm9562_vm10 = vmmov %vm9561_vm4 }
 0xb92   : > { %4929 = vst [vmem:[#allocation3 + $0xa0] sm:$0xf] %v4913_v6  ;;  %v4545_v56 = vpop.permute.xlu2 %4544  ;;  %v4706_v23 = vsel %vm9541_vm8, %v4690_v25, 0.0  ;;  %v5043_v42 = vld [vmem:[#allocation3 + $0x90] sm:$0xff]  ;;  %vm9563_vm7 = vmmov %vm9561_vm4 }
 0xb93   : > { %v4560_v58 = vsel %vm9560_vm5, %v8665_v46, %v4545_v56  ;;  %4714 = vst [vmem:[#allocation3 + $0x230] sm:$0xf] %v4706_v23  ;;  %5146 = vmatpush.msra.mxu3 %v5043_v42  ;;  %vm9564_vm5 = vcmask 269312   ;;  %v5068_v42 = vld [vmem:[#allocation3 + $0x118] sm:$0xff] }
 0xb94   : > { %4576 = vst [vmem:[#allocation3 + $0x168] sm:$0xf] %v4560_v58 }
 0xb95   : > { %5147 = vmatpush.msra.mxu3 %v5035_v44 }
 0xb97   : > { %5148 = vmatpush.msra.mxu3 %v5027_v45  ;;  %v4605_v13 = vpop.permute.xlu1 %4604 }
 0xb98   : > { %v4620_v1 = vsel %vm9561_vm4, %v8660_v20, %v4605_v13  ;;  %v4607_v4 = vpop.permute.xlu0 %4606  ;;  %vm9568_vm4 = vcmask 261120   ;;  %v5060_v45 = vld [vmem:[#allocation3 + $0x58] sm:$0xff] }
 0xb99   : > { %v4636_v30 = vsel %vm9516_vm12, %v4620_v1, 0.0  ;;  %v4621_v51 = vsel %vm9562_vm10, %v4605_v13, %v4607_v4  ;;  %v4622_v46 = vsel %vm9563_vm7, %v4607_v4, %v4609_v37  ;;  %5149 = vmatpush.msra.mxu3 %v5019_v21  ;;  %vm9565_vm12 = vcmask 1039360   ;;  %vm9569_vm10 = vmmov %vm9568_vm4  ;;  %v5052_v13 = vld [vmem:[#allocation3 + $0x150] sm:$0xff]  ;;  %v5044_v1 = vld [vmem:[#allocation3 + $0x1f8] sm:$0xff] }
 0xb9a   : > { %4644 = vst [vmem:[#allocation3 + $0x80] sm:$0xf] %v4636_v30  ;;  %v8824_v39 = vpop.permute.xlu2 %4476  ;;  %v4637_v41 = vsel %vm9379_vm15, %v4621_v51, 0.0  ;;  %v4638_v54 = vsel %vm9383_vm13, %v4622_v46, 0.0  ;;  %v5026_v20 = vld [vmem:[#allocation3 + $0x230] sm:$0xff]  ;;  %vm9566_vm15 = vcmask 7168  }
 0xb9b   : > { %v4492_v38 = vsel %vm9564_vm5, %v8675_v19, %v8824_v39  ;;  %4645 = vst [vmem:[#allocation3 + $0x70] sm:$0xf] %v4637_v41  ;;  %5128 = vmatpush.msra.mxu2 %v5026_v20  ;;  %vm9567_vm13 = vmmov %vm9566_vm15  ;;  %vm9570_vm7 = vcmask 793600   ;;  %vm9573_vm5 = vnez %v9572_v10  ;;  %v5008_v33 = vld [vmem:[#allocation3 + $0x168] sm:$0xff] }
 0xb9c   : > { %v4508_v37 = vsel %vm9522_vm2, %v4492_v38, 0.0  ;;  %4646 = vst [vmem:[#allocation3 + $0xd8] sm:$0xf] %v4638_v54  ;;  %v5036_v20 = vld [vmem:[#allocation3 + $0x28] sm:$0xff] }
 0xb9d   : > { %4516 = vst [vmem:[#allocation3 + $0xc8] sm:$0xf] %v4508_v37 }
 0xb9f   : > { %v4769_v26 = vpop.permute.xlu1 %4768 }
 0xba0   : > { %v4779_v28 = vsel %vm9565_vm12, %v4769_v26, %v8678_v3  ;;  %v4673_v17 = vpop.permute.xlu0 %4672  ;;  %vm9575_vm12 = vnez %v9574_v36 }
 0xba1   : > { %v4795_v18 = vsel %vm9519_vm11, %v4779_v28, 0.0  ;;  %v4688_v2 = vsel %vm9566_vm15, %v8648_v34, %v4673_v17  ;;  %v4689_v19 = vsel %vm9567_vm13, %v4673_v17, %v4675_v43  ;;  %vm9576_vm15 = vmmov %vm9567_vm13  ;;  %vm9577_vm13 = vcmask 1039360  }
 0xba2   : > { %4803 = vst [vmem:[#allocation3 + $0x98] sm:$0xf] %v4795_v18  ;;  %v8842_v63 = vpop.permute.xlu2 %4684  ;;  %v4704_v29 = vsel %vm9522_vm2, %v4688_v2, 0.0  ;;  %v4705_v53 = vsel %vm9539_vm3, %v4689_v19, 0.0  ;;  %vm9571_vm2 = vmmov %vm9570_vm7  ;;  %v5017_v27 = vld [vmem:[#allocation3 + $0x70] sm:$0xff] }
 0xba3   : > { %4712 = vst [vmem:[#allocation3 + $0x88] sm:$0xf] %v4704_v29  ;;  %v5018_v3 = vld [vmem:[#allocation3 + $0xd8] sm:$0xff]  ;;  %v5069_v29 = vld [vmem:[#allocation3 + $0xf0] sm:$0xff] }
 0xba4   : > { %4713 = vst [vmem:[#allocation3 + $0x60] sm:$0xf] %v4705_v53  ;;  %5129 = vmatpush.msra.mxu2 %v5018_v3  ;;  %v5000_v43 = vld [vmem:[#allocation3 + $0xc8] sm:$0xff]  ;;  %v5070_v3 = vld [vmem:[#allocation3 + $0x238] sm:$0xff] }
 0xba7   : > { %v4547_v52 = vpop.permute.xlu1 %4546 }
 0xba8   : > { %v4561_v7 = vsel %vm9568_vm4, %v4545_v56, %v4547_v52  ;;  %v4562_v34 = vsel %vm9569_vm10, %v4547_v52, %v8787_v12  ;;  %v4837_v47 = vpop.permute.xlu0 %4836  ;;  %vm9578_vm4 = vmmov %vm9577_vm13  ;;  %v5061_v52 = vld [vmem:[#allocation3 + $0xa0] sm:$0xff] }
 0xba9   : > { %4577 = vst [vmem:[#allocation3 + $0x78] sm:$0xf] %v4561_v7  ;;  %v4846_v16 = vsel %vm9570_vm7, %v8754_v49, %v4837_v47  ;;  %v4847_v57 = vsel %vm9571_vm2, %v4837_v47, %v8669_v11  ;;  %v5016_v11 = vld [vmem:[#allocation3 + $0x80] sm:$0xff]  ;;  %vm9579_vm10 = vmmov %vm9576_vm15  ;;  %vm9581_vm2 = vnez %v9545_v50 }
 0xbaa   : > { %4578 = vst [vmem:[#allocation3 + $0x210] sm:$0xf] %v4562_v34  ;;  %v4681_v35 = vpop.permute.xlu2 %4680  ;;  %v4862_v48 = vsel %vm9573_vm5, %v4846_v16, 0.0  ;;  %v4863_v8 = vsel %vm9575_vm12, %v4847_v57, 0.0  ;;  %v5024_v0 = vld [vmem:[#allocation3 + $0x88] sm:$0xff]  ;;  %vm9580_vm7 = vmmov %vm9579_vm10 }
 0xbab   : > { %v4692_v55 = vsel %vm9576_vm15, %v8793_v5, %v4681_v35  ;;  %4870 = vst [vmem:[#allocation3 + $0x198] sm:$0xf] %v4862_v48  ;;  %5088 = vmatpush.msra.mxu0 %v5024_v0  ;;  %v5025_v32 = vld [vmem:[#allocation3 + $0x60] sm:$0xff]  ;;  %vm9582_vm15 = vcmask 269312   ;;  %v5053_v34 = vld [vmem:[#allocation3 + $0x148] sm:$0xff] }
 0xbac   : > { %v4708_v49 = vsel %vm9553_vm6, %v4692_v55, 0.0  ;;  %4871 = vst [vmem:[#allocation3 + $0x110] sm:$0xf] %v4863_v8  ;;  %5108 = vmatpush.msra.mxu1 %v5025_v32  ;;  %v8911_v55 = vld [vmem:[%s9035_s11] sm:$0xf]  ;;  %v5038_v32 = vld [vmem:[#allocation3 + $0x218] sm:$0xff] }
 0xbad   : > { %4716 = vst [vmem:[#allocation3 + $0x208] sm:$0xf] %v4708_v49  ;;  %5089 = vmatpush.msra.mxu0 %v5016_v11 }
 0xbae   : > { %5109 = vmatpush.msra.mxu1 %v5017_v27 }
 0xbaf   : > { %5090 = vmatpush.msra.mxu0 %v5008_v33  ;;  %v8863_v59 = vpop.permute.xlu1 %4480 }
 0xbb0   : > { %v4767_v6 = vpop.permute.xlu0 %4766  ;;  %v5009_v5 = vld [vmem:[#allocation3 + $0x78] sm:$0xff] }
 0xbb1   : > { %v4777_v25 = vsel %vm9577_vm13, %v8801_v15, %v4767_v6  ;;  %v4778_v56 = vsel %vm9578_vm4, %v4767_v6, %v4769_v26  ;;  %5091 = vmatpush.msra.mxu0 %v5000_v43  ;;  %5110 = vmatpush.msra.mxu1 %v5009_v5  ;;  %v5010_v23 = vld [vmem:[#allocation3 + $0x210] sm:$0xff]  ;;  %vm9583_vm13 = vmmov %vm9582_vm15  ;;  %vm9584_vm4 = vcmask 252928  }
 0xbb2   : > { %v4793_v58 = vsel %vm9533_vm0, %v4777_v25, 0.0  ;;  %v4794_v44 = vsel %vm9535_vm9, %v4778_v56, 0.0  ;;  %5130 = vmatpush.msra.mxu2 %v5010_v23  ;;  %v4619_v26 = vpop.permute.xlu2 %4618  ;;  %v5054_v57 = vld [vmem:[#allocation3 + $0x198] sm:$0xff] }
 0xbb3   : > { %5163 = vmatpush.msrb.mxu0 %v5068_v42  ;;  %4801 = vst [vmem:[#allocation3 + $0xa8] sm:$0xf] %v4793_v58  ;;  %v5071_v42 = vld [vmem:[#allocation3 + $0x220] sm:$0xff]  ;;  %v5063_v58 = vld [vmem:[#allocation3 + $0x8] sm:$0xff] }
 0xbb4   : > { %4802 = vst [vmem:[#allocation3 + $0xb0] sm:$0xf] %v4794_v44  ;;  %v5028_v28 = vld [vmem:[#allocation3 + $0x208] sm:$0xff] }
 0xbb5   : > { %5164 = vmatpush.msrb.mxu0 %v5060_v45  ;;  %v5055_v45 = vld [vmem:[#allocation3 + $0x110] sm:$0xff] }
 0xbb7   : > { %5165 = vmatpush.msrb.mxu0 %v5052_v13  ;;  %v4683_v15 = vpop.permute.xlu1 %4682 }
 0xbb8   : > { %v4693_v4 = vsel %vm9579_vm10, %v4681_v35, %v4683_v15  ;;  %v4694_v21 = vsel %vm9580_vm7, %v4683_v15, %v8842_v63  ;;  %v4479_v30 = vpop.permute.xlu0 %4478  ;;  %v5047_v15 = vld [vmem:[#allocation3 + $0x98] sm:$0xff] }
 0xbb9   : > { %5166 = vmatpush.msrb.mxu0 %v5044_v1  ;;  %v4709_v51 = vsel %vm9581_vm2, %v4693_v4, 0.0  ;;  %v4710_v46 = vsel %vm9573_vm5, %v4694_v21, 0.0  ;;  %v4493_v41 = vsel %vm9582_vm15, %v8824_v39, %v4479_v30  ;;  %v4494_v54 = vsel %vm9583_vm13, %v4479_v30, %v8863_v59  ;;  %vm9592_vm15 = vmmov %vm9584_vm4  ;;  %v5039_v30 = vld [vmem:[#allocation3 + $0x108] sm:$0xff] }
 0xbba   : > { %4717 = vst [vmem:[#allocation3 + $0xc0] sm:$0xf] %v4709_v51  ;;  %v4509_v38 = vsel %vm9539_vm3, %v4493_v41, 0.0  ;;  %v4510_v37 = vsel %vm9541_vm8, %v4494_v54, 0.0  ;;  %vm9585_vm3 = vcmask 261120   ;;  %v8895_v53 = vpop.permute.xlu2 %4486  ;;  %vm9587_vm8 = vmmov %vm9583_vm13  ;;  %v5045_v0 = vld [vmem:[#allocation3 + $0xa8] sm:$0xff] }
 0xbbb   : > { %5167 = vmatpush.msrb.mxu0 %v5036_v20  ;;  %4718 = vst [vmem:[#allocation3 + $0x68] sm:$0xf] %v4710_v46  ;;  %vm9590_vm10 = vmmov %vm9585_vm3 }
 0xbbc   : > { %4517 = vst [vmem:[#allocation3 + $0xd0] sm:$0xf] %v4509_v38  ;;  %vm9593_vm13 = vmmov %vm9584_vm4 }
 0xbbd   : > { %5168 = vmatpush.msrb.mxu0 %v5028_v28  ;;  %4518 = vst [vmem:[#allocation3 + $0x50] sm:$0xf] %v4510_v37 }
 0xbbf   : > { %v4617_v17 = vpop.permute.xlu1 %4616 }
 0xbc0   : > { %v4627_v39 = vsel %vm9584_vm4, %v4617_v17, %v4619_v26  ;;  %v8888_v18 = vpop.permute.xlu0 %4550 }
 0xbc1   : > { %v4643_v2 = vsel %vm9519_vm11, %v4627_v39, 0.0  ;;  %v4563_v14 = vsel %vm9585_vm3, %v8787_v12, %v8888_v18  ;;  %vm9586_vm11 = vmmov %vm9584_vm4  ;;  %v5029_v40 = vld [vmem:[#allocation3 + $0xc0] sm:$0xff] }
 0xbc2   : > { %4651 = vst [vmem:[#allocation3 + $0x188] sm:$0xf] %v4643_v2  ;;  %v4559_v49 = vpop.permute.xlu2 %4558  ;;  %v5030_v11 = vld [vmem:[#allocation3 + $0x68] sm:$0xff] }
 0xbc3   : > { %4579 = vst [vmem:[#allocation3 + $0x38] sm:$0xf] %v4563_v14  ;;  %v5001_v31 = vld [vmem:[#allocation3 + $0xd0] sm:$0xff] }
 0xbc4   : > { %5111 = vmatpush.msra.mxu1 %v5001_v31  ;;  %v5002_v19 = vld [vmem:[#allocation3 + $0x50] sm:$0xff] }
 0xbc5   : > { %5131 = vmatpush.msra.mxu2 %v5002_v19 }
 0xbc6   : > { %5183 = vmatpush.msrb.mxu1 %v5069_v29 }
 0xbc7   : > { %5203 = vmatpush.msrb.mxu2 %v5070_v3  ;;  %v4613_v7 = vpop.permute.xlu1 %4612 }
 0xbc8   : > { %5184 = vmatpush.msrb.mxu1 %v5061_v52  ;;  %v4624_v12 = vsel %vm9586_vm11, %v8767_v24, %v4613_v7  ;;  %v8899_v47 = vpop.permute.xlu0 %4482  ;;  %v5046_v24 = vld [vmem:[#allocation3 + $0xb0] sm:$0xff]  ;;  %vm9597_vm11 = vmmov %vm9585_vm3 }
 0xbc9   : > { %5204 = vmatpush.msrb.mxu2 %v5062_v9  ;;  %v4640_v16 = vsel %vm9525_vm1, %v4624_v12, 0.0  ;;  %v4495_v35 = vsel %vm9587_vm8, %v8863_v59, %v8899_v47  ;;  %vm9588_vm1 = vcmask 588800   ;;  %v5023_v20 = vld [vmem:[#allocation3 + $0x188] sm:$0xff] }
 0xbca   : > { %5185 = vmatpush.msrb.mxu1 %v5053_v34  ;;  %4648 = vst [vmem:[#allocation3 + $0x1d8] sm:$0xf] %v4640_v16  ;;  %v4511_v48 = vsel %vm9551_vm14, %v4495_v35, 0.0  ;;  %v5011_v8 = vld [vmem:[#allocation3 + $0x38] sm:$0xff]  ;;  %5519 = vmatmul.msk.f32.vlgmr.msra.gmra.mxu2 %vm9588_vm1, %v8911_v55  ;;  %vm9589_vm14 = vmmov %vm9588_vm1 }
 0xbcb   : > { %5205 = vmatpush.msrb.mxu2 %v5054_v57  ;;  %4519 = vst [vmem:[#allocation3 + $0x100] sm:$0xf] %v4511_v48  ;;  %5150 = vmatpush.msra.mxu3 %v5011_v8  ;;  %vm9591_vm7 = vmmov %vm9588_vm1 }
 0xbcc   : > { %5186 = vmatpush.msrb.mxu1 %v5045_v0  ;;  %5517 = vmatmul.msk.f32.vlgmr.msra.gmra.mxu0 %vm9589_vm14, %v8911_v55  ;;  %vm9594_vm4 = vmmov %vm9588_vm1 }
 0xbcd   : > { %5206 = vmatpush.msrb.mxu2 %v5046_v24  ;;  %5518 = vmatmul.msk.f32.vlgmr.msra.gmra.mxu1 %vm9591_vm7, %v8911_v55  ;;  %vm9598_vm1 = vmmov %vm9587_vm8  ;;  %vm9605_vm7 = vcmask 1043456  }
 0xbce   : > { %5187 = vmatpush.msrb.mxu1 %v5037_v61  ;;  %vm9599_vm14 = vmmov %vm9598_vm1 }
 0xbcf   : > { %5207 = vmatpush.msrb.mxu2 %v5038_v32  ;;  %v4557_v27 = vpop.permute.xlu1 %4556 }
 0xbd0   : > { %5188 = vmatpush.msrb.mxu1 %v5029_v40  ;;  %v4567_v33 = vsel %vm9590_vm10, %v4557_v27, %v4559_v49  ;;  %v4615_v59 = vpop.permute.xlu0 %4614  ;;  %vm9600_vm10 = vmmov %vm9598_vm1 }
 0xbd1   : > { %5208 = vmatpush.msrb.mxu2 %v5030_v11  ;;  %4583 = vst [vmem:[#allocation3 + $0x200] sm:$0xf] %v4567_v33  ;;  %v4625_v6 = vsel %vm9592_vm15, %v4613_v7, %v4615_v59  ;;  %v4626_v43 = vsel %vm9593_vm13, %v4615_v59, %v4617_v17  ;;  %v5020_v5 = vld [vmem:[#allocation3 + $0x1d8] sm:$0xff]  ;;  %vm9606_vm15 = vmmov %vm9605_vm7 }
 0xbd2   : > { %v4641_v25 = vsel %vm9533_vm0, %v4625_v6, 0.0  ;;  %v4642_v56 = vsel %vm9535_vm9, %v4626_v43, 0.0  ;;  %v5003_v23 = vld [vmem:[#allocation3 + $0x100] sm:$0xff]  ;;  %5169 = vmatpush.msrb.mxu0 %v5020_v5  ;;  %vm9595_vm0 = vcmask 7168   ;;  %vm9596_vm9 = vmmov %vm9585_vm3  ;;  %v5323_v43 = vld [vmem:[%s9036_s12] sm:$0xf] }
 0xbd3   : > { %4649 = vst [vmem:[#allocation3 + $0x1a0] sm:$0xf] %v4641_v25  ;;  %5151 = vmatpush.msra.mxu3 %v5003_v23  ;;  %vm9607_vm13 = vmmov %vm9605_vm7  ;;  %v5351_v5 = vld [vmem:[%s530_s25] sm:$0x1] }
 0xbd4   : > { %4650 = vst [vmem:[#allocation3 + $0x10] sm:$0xf] %v4642_v56  ;;  %5520 = vmatmul.msk.f32.vlgmr.msra.gmra.mxu3 %vm9594_vm4, %v8911_v55  ;;  %v5352_v25 = vsub.f32 0.0, %v5351_v5 }
 0xbd5   : > { %5223 = vmatpush.msrb.mxu3 %v5071_v42 }
 0xbd6   : > { %v5353_v56 = vmul.f32 1.442695, %v5352_v25 }
 0xbd7   : > { %5224 = vmatpush.msrb.mxu3 %v5063_v58  ;;  %v4553_v44 = vpop.permute.xlu1 %4552 }
 0xbd8   : > { %v4564_v22 = vsel %vm9585_vm3, %v8888_v18, %v4553_v44  ;;  %v4687_v60 = vpop.permute.xlu0 %4686  ;;  %v5015_v38 = vld [vmem:[#allocation3 + $0x200] sm:$0xff]  ;;  %5675 = vpow2.f32 %v5353_v56 }
 0xbd9   : > { %5225 = vmatpush.msrb.mxu3 %v5055_v45  ;;  %4580 = vst [vmem:[#allocation3 + $0x20] sm:$0xf] %v4564_v22  ;;  %v4695_v13 = vsel %vm9595_vm0, %v8842_v63, %v4687_v60 }
 0xbda   : > { %v4711_v1 = vsel %vm9575_vm12, %v4695_v13, 0.0  ;;  %v5021_v4 = vld [vmem:[#allocation3 + $0x1a0] sm:$0xff] }
 0xbdb   : > { %5226 = vmatpush.msrb.mxu3 %v5047_v15  ;;  %4719 = vst [vmem:[#allocation3 + $0x178] sm:$0xf] %v4711_v1  ;;  %5189 = vmatpush.msrb.mxu1 %v5021_v4  ;;  %v5022_v21 = vld [vmem:[#allocation3 + $0x10] sm:$0xff] }
 0xbdc   : > { %5209 = vmatpush.msrb.mxu2 %v5022_v21 }
 0xbdd   : > { %5227 = vmatpush.msrb.mxu3 %v5039_v30 }
 0xbde   : > { %v5676_v23 = vpop.eup %5675 }
 0xbdf   : > { %v4491_v37 = vpop.permute.xlu1 %4490  ;;  %v5355_v42 = vadd.f32 1.0, %v5676_v23 }
 0xbe0   : > { %v4555_v51 = vpop.permute.xlu0 %4554  ;;  %v5012_v46 = vld [vmem:[#allocation3 + $0x20] sm:$0xff] }
 0xbe1   : > { %v4565_v41 = vsel %vm9596_vm9, %v4553_v44, %v4555_v51  ;;  %v4566_v54 = vsel %vm9597_vm11, %v4555_v51, %v4557_v27  ;;  %5170 = vmatpush.msrb.mxu0 %v5012_v46  ;;  %5677 = vrcp.f32 %v5355_v42  ;;  %v5367_v13 = vand.u32 2147483648, %v5355_v42 }
 0xbe2   : > { %4581 = vst [vmem:[#allocation3 + $0x40] sm:$0xf] %v4565_v41  ;;  %v5031_v63 = vld [vmem:[#allocation3 + $0x178] sm:$0xff]  ;;  %v5365_v1 = vand.u32 2147483647, %v5355_v42 }
 0xbe3   : > { %4582 = vst [vmem:[#allocation3 + $0x140] sm:$0xf] %v4566_v54  ;;  %5228 = vmatpush.msrb.mxu3 %v5031_v63  ;;  %v5368_v51 = vor.u32 1.1754944e-38, %v5367_v13 }
 0xbe5   : > { %5229 = vmatpush.msrb.mxu3 %v5023_v20 }
 0xbe7   : > { %5230 = vmatpush.msrb.mxu3 %v5015_v38  ;;  %v5678_v44 = vpop.eup %5677 }
 0xbe8   : > { %v4489_v26 = vpop.permute.xlu0 %4488  ;;  %v5357_v22 = vmul.f32 %v5678_v44, %v5355_v42 }
 0xbe9   : > { %v4498_v28 = vsel %vm9587_vm8, %v8895_v53, %v4489_v26  ;;  %v4499_v17 = vsel %vm9598_vm1, %v4489_v26, %v4491_v37  ;;  %v5013_v39 = vld [vmem:[#allocation3 + $0x40] sm:$0xff]  ;;  %vm5361_vm8 = vweird.f32 %v5355_v42  ;;  %vm5362_vm1 = vweird.f32 %v5678_v44  ;;  %v5372_v37 = vld [vmem:[%s9038_s14] sm:$0xf] }
 0xbea   : > { %v4514_v18 = vsel %vm9573_vm5, %v4498_v28, 0.0  ;;  %v4515_v2 = vsel %vm9575_vm12, %v4499_v17, 0.0  ;;  %5190 = vmatpush.msrb.mxu1 %v5013_v39  ;;  %v5014_v14 = vld [vmem:[#allocation3 + $0x140] sm:$0xff]  ;;  %vm9601_vm5 = vmmov %vm9594_vm4  ;;  %v5358_v15 = vsub.f32 1.0, %v5357_v22 }
 0xbeb   : > { %4522 = vst [vmem:[#allocation3 + $0x138] sm:$0xf] %v4514_v18  ;;  %5210 = vmatpush.msrb.mxu2 %v5014_v14  ;;  %vm9602_vm12 = vmmov %vm9594_vm4  ;;  %v9613_v18 = vld [vmem:[#allocation19_spill] sm:$0xff] }
 0xbec   : > { %4523 = vst [vmem:[#allocation3 + $0xe8] sm:$0xf] %v4515_v2  ;;  %v5359_v21 = vmul.f32 %v5678_v44, %v5358_v15 }
 0xbee   : > { %v5360_v46 = vadd.f32 %v5678_v44, %v5359_v21 }
 0xbf0   : > { %v4485_v31 = vpop.permute.xlu0 %4484 }
 0xbf1   : > { %v4496_v19 = vsel %vm9599_vm14, %v8899_v47, %v4485_v31  ;;  %v4497_v29 = vsel %vm9600_vm10, %v4485_v31, %v8895_v53  ;;  %vm5363_vm14 = vmor %vm5361_vm8, %vm5362_vm1  ;;  %vm5366_vm10 = vcmp.eq.f32.partialorder %v5365_v1, 8.507059e+37 }
 0xbf2   : > { %v4512_v3 = vsel %vm9553_vm6, %v4496_v19, 0.0  ;;  %v4513_v10 = vsel %vm9581_vm2, %v4497_v29, 0.0  ;;  %v5006_v36 = vld [vmem:[#allocation3 + $0x138] sm:$0xff]  ;;  %vm9603_vm6 = vmmov %vm9594_vm4  ;;  %v5364_v54 = vsel %vm5363_vm14, %v5678_v44, %v5360_v46 }
 0xbf3   : > { %4520 = vst [vmem:[#allocation3 + $0xb8] sm:$0xf] %v4512_v3  ;;  %5211 = vmatpush.msrb.mxu2 %v5006_v36  ;;  %v5007_v52 = vld [vmem:[#allocation3 + $0xe8] sm:$0xff]  ;;  %vm9604_vm2 = vmmov %vm9594_vm4  ;;  %v5369_v20 = vsel %vm5366_vm10, %v5368_v51, %v5364_v54 }
 0xbf4   : > { %4521 = vst [vmem:[#allocation3 + $0x128] sm:$0xf] %v4513_v10  ;;  %5231 = vmatpush.msrb.mxu3 %v5007_v52  ;;  %5523 = vmatmul.msk.f32.vlgmr.msrb.gmra.mxu2 %vm9601_vm5, %v8911_v55  ;;  %vm9608_vm4 = vmmov %vm9605_vm7  ;;  %v5371_v38 = vmul.f32 %v5369_v20, %v5351_v5  ;;  %vm5377_vm5 = vcmask 257024  }
 0xbf5   : > { %5524 = vmatmul.msk.f32.vlgmr.msrb.gmra.mxu3 %vm9602_vm12, %v8911_v55  ;;  %vm9609_vm3 = vmmov %vm9608_vm4 }
 0xbf6   : > { %vm9610_vm0 = vmmov %vm9609_vm3  ;;  %v5374_v26 = vperm.slane %v5371_v38, 0 }
 0xbf7   : > { %vm9611_vm9 = vmmov %vm9610_vm0 }
 0xbf8   : > { %vm9612_vm11 = vmmov %vm9610_vm0  ;;  %v5376_v28 = vmul.f32 %v5374_v26, %v5372_v37 }
 0xbf9   : > { %vm9614_vm12 = vmmov %vm9610_vm0 }
 0xbfa   : > { %v5004_v9 = vld [vmem:[#allocation3 + $0xb8] sm:$0xff]  ;;  %v5378_v17 = vsel %vm5377_vm5, %v5376_v28, 0.0 }
 0xbfb   : > { %5171 = vmatpush.msrb.mxu0 %v5004_v9  ;;  %v5005_v53 = vld [vmem:[#allocation3 + $0x128] sm:$0xff]  ;;  %5379 = vadd.xlane.f32.xlu1 %v5378_v17 }
 0xbfc   : > { %5191 = vmatpush.msrb.mxu1 %v5005_v53  ;;  %5521 = vmatmul.msk.f32.vlgmr.msrb.gmra.mxu0 %vm9603_vm6, %v8911_v55  ;;  %vm9615_vm6 = vmmov %vm9610_vm0 }
 0xbfd   : > { %5522 = vmatmul.msk.f32.vlgmr.msrb.gmra.mxu1 %vm9604_vm2, %v8911_v55  ;;  %vm9616_vm2 = vmmov %vm9610_vm0 }
 0xbfe   : > { %vm9622_vm8 = vmmov %vm9616_vm2 }
 0xbff   : > { %vm9623_vm1 = vmmov %vm9616_vm2 }
 0xc00   : > { %vm9624_vm14 = vmmov %vm9623_vm1 }
 0xc01   : > { %vm9625_vm10 = vmmov %vm9623_vm1 }
 0xc49   : > { %v8959_v50 = vpop.f32.mrf.mxu0 }
 0xc4a   : > { %v8961_v62 = vpop.f32.mrf.mxu1  ;;  %v5236_v7 = vsel %vm9605_vm7, %v8959_v50, 0.0  ;;  %vm9617_vm7 = vmmov %vm9610_vm0 }
 0xc4b   : > { %v5237_v12 = vsel %vm9606_vm15, %v8961_v62, 0.0  ;;  %vm9618_vm15 = vmmov %vm9610_vm0 }
 0xc4c   : > { %v5238_v47 = vadd.f32 %v5237_v12, %v5236_v7 }
 0xc4d   : > { %v8967_v34 = vpop.f32.mrf.mxu2 }
 0xc4e   : > { %v5239_v16 = vsel %vm9607_vm13, %v8967_v34, 0.0  ;;  %vm9619_vm13 = vmmov %vm9610_vm0 }
 0xc4f   : > { %v5240_v35 = vadd.f32 %v5239_v16, %v5238_v47 }
 0xc57   : > { %v5153_v57 = vpop.f32.mrf.mxu3 }
 0xc58   : > { %v5241_v48 = vsel %vm9608_vm4, %v5153_v57, 0.0  ;;  %vm9620_vm4 = vmmov %vm9610_vm0 }
 0xc59   : > { %v5242_v8 = vadd.f32 %v5241_v48, %v5240_v35 }
 0xc77   : > { %v8972_v24 = vpop.f32.mrf.mxu2 }
 0xc78   : > { %v8976_v49 = vpop.f32.mrf.mxu3  ;;  %v5247_v11 = vsel %vm9611_vm9, %v8972_v24, 0.0 }
 0xc79   : > { %v5173_v0 = vpop.f32.mrf.mxu0  ;;  %v5249_v33 = vsel %vm9612_vm11, %v8976_v49, 0.0 }
 0xc7a   : > { %v5243_v61 = vsel %vm9609_vm3, %v5173_v0, 0.0  ;;  %v5193_v55 = vpop.f32.mrf.mxu1  ;;  %vm9621_vm3 = vmmov %vm9610_vm0 }
 0xc7b   : > { %v5244_v32 = vadd.f32 %v5243_v61, %v5242_v8  ;;  %v5245_v40 = vsel %vm9610_vm0, %v5193_v55, 0.0 }
 0xc7d   : > { %v5246_v27 = vadd.f32 %v5245_v40, %v5244_v32 }
 0xc7f   : > { %v5248_v59 = vadd.f32 %v5247_v11, %v5246_v27 }
 0xc81   : > { %v5250_v6 = vadd.f32 %v5249_v33, %v5248_v59 }
 0xc83   : > { %5251 = vadd.xlane.f32.xlu2 %v5250_v6  ;;  %v5381_v6 = vld [vmem:[%s9039_s15] sm:$0xf] }
 0xc9b   : > { %5326 = vperm.xlu2 %5566, %v5323_v43   ;;  %v5380_v43 = vpop.xlane.xlu1 %5379 }
 0xc9c   : > { %v5382_v5 = vadd.f32 %v5381_v6, %v5380_v43 }
 0xc9e   : > { %5385 = vperm.xlu1 %5568, %v5382_v5  }
 0xcf6   : > { %v5252_v58 = vpop.xlane.xlu2 %5251 }
 0xcf7   : > { %v5253_v45 = vrot.slane %v5252_v58, 4 }
 0xcf9   : > { %v5254_v60 = vadd.f32 %v5253_v45, %v5252_v58 }
 0xcfb   : > { %v5255_v4 = vrot.slane %v5254_v60, 2 }
 0xcfd   : > { %v5256_v30 = vadd.f32 %v5255_v4, %v5254_v60 }
 0xcfe   : > { %v5327_v38 = vpop.permute.xlu2 %5326 }
 0xcff   : > { %v5257_v41 = vrot.slane %v5256_v30, 1 }
 0xd01   : > { %v5258_v63 = vadd.f32 %v5257_v41, %v5256_v30 }
 0xd03   : > { %5541 = vpush %v5258_v63 }
 0xd34   : > { %s5542_s18 = spop %5541 }
 0xd35   : > { %v5260_v39 = vstv %s5542_s18 }
 0xd36   : > { %v5261_v2 = vmul.f32 %v5260_v39, %v9613_v18 }
 0xd38   : > { %v5262_v14 = vsub.f32 %v8959_v50, %v5261_v2  ;;  %v5263_v31 = vsub.f32 %v8961_v62, %v5261_v2  ;;  %v5264_v19 = vsub.f32 %v8967_v34, %v5261_v2  ;;  %v5265_v29 = vsub.f32 %v5153_v57, %v5261_v2 }
 0xd39   : > { %v5266_v3 = vsub.f32 %v5173_v0, %v5261_v2  ;;  %v5267_v9 = vsub.f32 %v5193_v55, %v5261_v2  ;;  %v5268_v16 = vsub.f32 %v8972_v24, %v5261_v2  ;;  %v5269_v34 = vsub.f32 %v8976_v49, %v5261_v2  ;;  %v5337_v49 = vld [vmem:[%s9037_s13] sm:$0xf] }
 0xd3a   : > { %v5270_v10 = vmul.f32 %v5262_v14, %v5262_v14  ;;  %v5271_v36 = vmul.f32 %v5263_v31, %v5263_v31  ;;  %v5272_v52 = vmul.f32 %v5264_v19, %v5264_v19  ;;  %v5273_v53 = vmul.f32 %v5265_v29, %v5265_v29 }
 0xd3b   : > { %v5274_v35 = vmul.f32 %v5266_v3, %v5266_v3  ;;  %v5275_v57 = vmul.f32 %v5267_v9, %v5267_v9  ;;  %v5276_v0 = vmul.f32 %v5268_v16, %v5268_v16  ;;  %v5277_v32 = vmul.f32 %v5269_v34, %v5269_v34 }
 0xd3c   : > { %v5278_v7 = vsel %vm9614_vm12, %v5270_v10, 0.0  ;;  %v5279_v12 = vsel %vm9615_vm6, %v5271_v36, 0.0  ;;  %v5281_v50 = vsel %vm9616_vm2, %v5272_v52, 0.0  ;;  %v5283_v48 = vsel %vm9617_vm7, %v5273_v53, 0.0  ;;  %v5386_v52 = vpop.permute.xlu1 %5385 }
 0xd3d   : > { %v5280_v47 = vadd.f32 %v5279_v12, %v5278_v7  ;;  %v5285_v61 = vsel %vm9618_vm15, %v5274_v35, 0.0  ;;  %v5287_v40 = vsel %vm9619_vm13, %v5275_v57, 0.0  ;;  %v5289_v24 = vsel %vm9620_vm4, %v5276_v0, 0.0 }
 0xd3e   : > { %v5291_v33 = vsel %vm9621_vm3, %v5277_v32, 0.0 }
 0xd3f   : > { %v5282_v62 = vadd.f32 %v5281_v50, %v5280_v47 }
 0xd41   : > { %v5284_v8 = vadd.f32 %v5283_v48, %v5282_v62 }
 0xd43   : > { %v5286_v55 = vadd.f32 %v5285_v61, %v5284_v8 }
 0xd45   : > { %v5288_v11 = vadd.f32 %v5287_v40, %v5286_v55 }
 0xd47   : > { %v5290_v27 = vadd.f32 %v5289_v24, %v5288_v11 }
 0xd49   : > { %v5292_v59 = vadd.f32 %v5291_v33, %v5290_v27 }
 0xd4b   : > { %5293 = vadd.xlane.f32.xlu0 %v5292_v59 }
 0xd5f   : > { %5340 = vperm.xlu0 %5567, %v5337_v49  }
 0xdbe   : > { %v5294_v25 = vpop.xlane.xlu0 %5293 }
 0xdbf   : > { %v5295_v56 = vrot.slane %v5294_v25, 4 }
 0xdc1   : > { %v5296_v23 = vadd.f32 %v5295_v56, %v5294_v25 }
 0xdc3   : > { %v5297_v42 = vrot.slane %v5296_v23, 2 }
 0xdc5   : > { %v5298_v58 = vadd.f32 %v5297_v42, %v5296_v23 }
 0xdc7   : > { %v5299_v44 = vrot.slane %v5298_v58, 1 }
 0xdc9   : > { %v5300_v45 = vadd.f32 %v5299_v44, %v5298_v58 }
 0xdcb   : > { %5543 = vpush %v5300_v45 }
 0xdd1   : > { %v5341_v36 = vpop.permute.xlu0 %5340 }
 0xdfc   : > { %s5544_s29 = spop %5543 }
 0xdfd   : > { %v5302_v22 = vstv %s5544_s29 }
 0xdfe   : > { %v5303_v60 = vmul.f32 %v5302_v22, %v9613_v18 }
 0xe00   : > { %v5304_v13 = vadd.f32 1e-05, %v5303_v60 }
 0xe02   : > { %5679 = vrsqrt.f32 %v5304_v13  ;;  %vm5311_vm9 = vweird.f32 %v5304_v13 }
 0xe08   : > { %v5680_v15 = vpop.eup %5679 }
 0xe09   : > { %v5306_v1 = vmul.f32 %v5680_v15, %v5304_v13  ;;  %vm5312_vm0 = vweird.f32 %v5680_v15 }
 0xe0a   : > { %vm5313_vm11 = vmor %vm5311_vm9, %vm5312_vm0 }
 0xe0b   : > { %v5307_v4 = vmul.f32 %v5680_v15, %v5306_v1 }
 0xe0d   : > { %v5308_v21 = vmul.f32 0.5, %v5307_v4 }
 0xe0f   : > { %v5309_v30 = vsub.f32 1.5, %v5308_v21 }
 0xe11   : > { %v5310_v51 = vmul.f32 %v5680_v15, %v5309_v30 }
 0xe13   : > { %v5314_v46 = vsel %vm5313_vm11, %v5680_v15, %v5310_v51 }
 0xe14   : > { %v5315_v41 = vmul.f32 %v5314_v46, %v5262_v14  ;;  %v5316_v54 = vmul.f32 %v5314_v46, %v5263_v31  ;;  %v5317_v63 = vmul.f32 %v5314_v46, %v5264_v19  ;;  %v5318_v20 = vmul.f32 %v5314_v46, %v5265_v29 }
 0xe15   : > { %v5319_v37 = vmul.f32 %v5314_v46, %v5266_v3  ;;  %v5320_v26 = vmul.f32 %v5314_v46, %v5267_v9  ;;  %v5321_v28 = vmul.f32 %v5314_v46, %v5268_v16  ;;  %v5322_v17 = vmul.f32 %v5314_v46, %v5269_v34 }
 0xe16   : > { %v5329_v39 = vmul.f32 %v5327_v38, %v5315_v41  ;;  %v5330_v18 = vmul.f32 %v5327_v38, %v5316_v54  ;;  %v5331_v2 = vmul.f32 %v5327_v38, %v5317_v63  ;;  %v5332_v10 = vmul.f32 %v5327_v38, %v5318_v20 }
 0xe17   : > { %v5333_v53 = vmul.f32 %v5327_v38, %v5319_v37  ;;  %v5334_v7 = vmul.f32 %v5327_v38, %v5320_v26  ;;  %v5335_v12 = vmul.f32 %v5327_v38, %v5321_v28  ;;  %v5336_v47 = vmul.f32 %v5327_v38, %v5322_v17 }
 0xe18   : > { %v5343_v14 = vadd.f32 %v5341_v36, %v5329_v39  ;;  %v5344_v31 = vadd.f32 %v5341_v36, %v5330_v18  ;;  %v5345_v19 = vadd.f32 %v5341_v36, %v5331_v2  ;;  %v5346_v29 = vadd.f32 %v5341_v36, %v5332_v10 }
 0xe19   : > { %v5347_v3 = vadd.f32 %v5341_v36, %v5333_v53  ;;  %v5348_v9 = vadd.f32 %v5341_v36, %v5334_v7  ;;  %v5349_v16 = vadd.f32 %v5341_v36, %v5335_v12  ;;  %v5350_v35 = vadd.f32 %v5341_v36, %v5336_v47 }
 0xe1a   : > { %v5389_v50 = vadd.f32 %v5386_v52, %v5344_v31  ;;  %v5391_v62 = vadd.f32 %v5386_v52, %v5346_v29  ;;  %v5388_v48 = vadd.f32 %v5386_v52, %v5343_v14  ;;  %v5390_v8 = vadd.f32 %v5386_v52, %v5345_v19 }
 0xe1b   : > { %v5393_v34 = vadd.f32 %v5386_v52, %v5348_v9  ;;  %v5395_v57 = vadd.f32 %v5386_v52, %v5350_v35  ;;  %v5392_v55 = vadd.f32 %v5386_v52, %v5347_v3  ;;  %v5394_v32 = vadd.f32 %v5386_v52, %v5349_v16 }
 0xe1c   : > { %v5404_v0 = vrot.slane %v5389_v50, 4  ;;  %v5405_v61 = vrot.slane %v5391_v62, 4 }
 0xe1d   : > { %v5406_v40 = vrot.slane %v5393_v34, 4  ;;  %v5407_v11 = vrot.slane %v5395_v57, 4 }
 0xe1e   : > { %v5408_v24 = vsel %vm9622_vm8, %v5388_v48, %v5404_v0  ;;  %v5409_v27 = vsel %vm9623_vm1, %v5390_v8, %v5405_v61 }
 0xe1f   : > { %v5410_v33 = vsel %vm9624_vm14, %v5392_v55, %v5406_v40  ;;  %v5411_v59 = vsel %vm9625_vm10, %v5394_v32, %v5407_v11  ;;  %5416 = vst [vmem:[%s535_s20] sm:$0xff] %v5408_v24 }
 0xe20   : > { %5417 = vst [vmem:[%s535_s20 + $0x8] sm:$0xff] %v5409_v27 }
 0xe21   : > { %5418 = vst [vmem:[%s535_s20 + $0x10] sm:$0xff] %v5410_v33 }
 0xe22   : > { %5419 = vst [vmem:[%s535_s20 + $0x18] sm:$0xff] %v5411_v59 }
 0xe23 PF: > { %s26_s21 = sadd.s32 1, %s5840_s21  }
 0xe24   : > { %p23_p4 = scmp.ge.s32.totalorder %s26_s21, 4  }
 0xe26   :  { %25 = sbr.rel (!%p23_p4) target bundleno = 2 (0x2), region = 117 }

</bundles_post_ra>
